<compile_context>
chip_gen: v7x
topology: tpu7x:2x2x1
jax: 0.10.0
libtpu: 0.0.40
codegen_flags: <defaults>
</compile_context>

<pallas_src>
import functools

import jax
import jax.numpy as jnp
import numpy as np
from jax import lax
from jax.experimental import pallas as pl
from jax.experimental.pallas import tpu as pltpu

EPS = 1e-5  # nn.InstanceNorm2d default eps


# ---------------------------------------------------------------------------
# In-kernel helpers (activations are (C, HW) f32 values, HW on lanes)
# ---------------------------------------------------------------------------
def _instance_norm(y):
    # InstanceNorm2d(affine=False): per-channel stats over the spatial axis.
    mean = jnp.mean(y, axis=1, keepdims=True)
    var = jnp.mean(jnp.square(y - mean), axis=1, keepdims=True)
    return (y - mean) * lax.rsqrt(var + EPS)


def _zero_pad_strips(ref, padf, hw):
    # Zero only the two padf-wide pad strips of a flat row-padded scratch
    # buffer; the body is fully overwritten before every read.
    c = ref.shape[0]
    ref[:, 0:padf] = jnp.zeros((c, padf), ref.dtype)
    ref[:, padf + hw:padf + hw + padf] = jnp.zeros((c, padf), ref.dtype)


def _conv_gemm(x, pad_ref, slab_ref, w_ref, bias, *, ks, H, W):
    """'same' stride-1 conv as ONE MXU GEMM.

    x:        (cin, H*W) f32 activation.
    pad_ref:  (cin, H*W + 2*pad*(W+1)) f32 scratch; pad strips hold zeros.
    slab_ref: (>=ks*ks*cin, >=H*W) f32 scratch for the im2col patch slab.
    w_ref:    (cout, ks*ks*cin) bf16 ref, K ordered (kh, kw, cin).
    Returns raw conv output (cout, H*W) f32 (bias added when given).
    """
    cin = x.shape[0]
    hw = H * W
    pad = ks // 2
    padf = pad * (W + 1)
    k_dim = ks * ks * cin

    # Write the body into the persistent row-padded scratch (pads stay zero).
    pad_ref[:, padf:padf + hw] = x
    xp = pad_ref[...]                                         # (cin, hwp) f32

    # Column masks in the *input* frame: one select per kw offset, not per tap.
    col = (lax.broadcasted_iota(jnp.int32, (1, xp.shape[1]), 1)
           + 8 * W - padf) % W
    shifted = {}
    for dw in range(-pad, pad + 1):
        if dw == 0:
            shifted[dw] = xp
        elif dw > 0:
            shifted[dw] = jnp.where(col >= dw, xp, 0.0)
        else:
            shifted[dw] = jnp.where(col < W + dw, xp, 0.0)

    # im2col slab in VMEM: ks*ks shifted slices stored at aligned sublane rows.
    for kh in range(ks):
        for kw in range(ks):
            start = padf + (kh - pad) * W + (kw - pad)
            r0 = (kh * ks + kw) * cin
            slab_ref[r0:r0 + cin, 0:hw] = shifted[kw - pad][:, start:start + hw]

    # One bf16 cast + one K-deep GEMM per conv (f32 accumulation on the MXU).
    slab = slab_ref[0:k_dim, 0:hw].astype(jnp.bfloat16)
    y = jnp.dot(w_ref[...], slab, preferred_element_type=jnp.float32)
    if bias is not None:
        y = y + bias
    return y


# ---------------------------------------------------------------------------
# The fused whole-network kernel (one image per grid step)
# ---------------------------------------------------------------------------
def _generator_kernel(*refs, n_res, H, W):
    n_in = 15 + 2 * n_res
    in_refs = refs[:n_in]
    out_ref = refs[n_in]
    (pad_e1, pad_a, pad_b, pad_c, pad_d, pad_e, slab_ref) = refs[n_in + 1:]

    x_ref = in_refs[0]
    w_e1, w_e2, w_e3, w_e4 = in_refs[1:5]
    w_res = in_refs[5:5 + 2 * n_res]
    w_d1, w_d2, w_d3, w_d4 = in_refs[5 + 2 * n_res:9 + 2 * n_res]
    b_e1, b_d4 = in_refs[9 + 2 * n_res:11 + 2 * n_res]
    dmat1, dmat2, umat1, umat2 = in_refs[11 + 2 * n_res:15 + 2 * n_res]

    H2, W2, H4, W4 = H // 2, W // 2, H // 4, W // 4
    hw, hw2, hw4 = H * W, H2 * W2, H4 * W4

    # Establish zero pad strips for every padded-activation scratch buffer.
    _zero_pad_strips(pad_e1, 2 * (W + 1), hw)
    _zero_pad_strips(pad_a, W + 1, hw)
    _zero_pad_strips(pad_b, W2 + 1, hw2)
    _zero_pad_strips(pad_c, W4 + 1, hw4)
    _zero_pad_strips(pad_d, W2 + 1, hw2)
    _zero_pad_strips(pad_e, W + 1, hw)

    relu = lambda v: jnp.maximum(v, 0.0)

    x = x_ref[0]                                              # (cin_pad, HW)

    # ------------------------------ encoder ------------------------------
    a = relu(_conv_gemm(x, pad_e1, slab_ref, w_e1, b_e1[...], ks=5, H=H, W=W))

    a = _conv_gemm(a, pad_a, slab_ref, w_e2, None, ks=3, H=H, W=W)
    a = jnp.dot(a, dmat1[...], preferred_element_type=jnp.float32)  # stride 2
    a = relu(_instance_norm(a))

    a = _conv_gemm(a, pad_b, slab_ref, w_e3, None, ks=3, H=H2, W=W2)
    a = relu(_instance_norm(a))

    a = _conv_gemm(a, pad_b, slab_ref, w_e4, None, ks=3, H=H2, W=W2)
    a = jnp.dot(a, dmat2[...], preferred_element_type=jnp.float32)  # stride 2
    a = relu(_instance_norm(a))

    # -------------------------- residual blocks --------------------------
    # TODO(synk): ResBlock_new assumed conv3x3-IN-ReLU-conv3x3-IN + identity.
    for i in range(n_res):
        skip = a
        t = _conv_gemm(a, pad_c, slab_ref, w_res[2 * i], None, ks=3, H=H4, W=W4)
        t = relu(_instance_norm(t))
        t = _conv_gemm(t, pad_c, slab_ref, w_res[2 * i + 1], None,
                       ks=3, H=H4, W=W4)
        a = skip + _instance_norm(t)

    # ------------------------------ decoder ------------------------------
    a = _conv_gemm(a, pad_c, slab_ref, w_d1, None, ks=3, H=H4, W=W4)
    a = relu(_instance_norm(a))

    a = jnp.dot(a, umat1[...], preferred_element_type=jnp.float32)  # nearest 2x
    a = _conv_gemm(a, pad_d, slab_ref, w_d2, None, ks=3, H=H2, W=W2)
    a = relu(_instance_norm(a))

    a = jnp.dot(a, umat2[...], preferred_element_type=jnp.float32)  # nearest 2x
    a = _conv_gemm(a, pad_e, slab_ref, w_d3, None, ks=3, H=H, W=W)
    a = relu(_instance_norm(a))

    a = _conv_gemm(a, pad_a, slab_ref, w_d4, b_d4[...], ks=3, H=H, W=W)
    out_ref[0] = jnp.tanh(a).astype(out_ref.dtype)


# ---------------------------------------------------------------------------
# Wrapper-side packing helpers
# ---------------------------------------------------------------------------
def _pack_weight(w, cin_pad=None):
    # PyTorch OIHW -> (Cout, ks*ks*Cin) bf16 with K ordered (kh, kw, cin).
    cout, cin, ks, _ = w.shape
    if cin_pad is not None and cin_pad > cin:
        w = jnp.pad(w, ((0, 0), (0, cin_pad - cin), (0, 0), (0, 0)))
        cin = cin_pad
    wt = jnp.transpose(w, (0, 2, 3, 1)).reshape(cout, ks * ks * cin)
    return wt.astype(jnp.bfloat16)


def _downsample_matrix(H, W):
    # stride-2 (pad=1, k=3) output == full-res conv output at even rows/cols.
    Ho, Wo = H // 2, W // 2
    d = np.zeros((H * W, Ho * Wo), np.float32)
    q = np.arange(Ho * Wo)
    d[2 * (q // Wo) * W + 2 * (q % Wo), q] = 1.0
    return jnp.asarray(d)


def _upsample_matrix(H, W):
    # nearest-neighbour 2x upsample as an exact 0/1 duplication matrix.
    Hb, Wb = 2 * H, 2 * W
    u = np.zeros((H * W, Hb * Wb), np.float32)
    q = np.arange(Hb * Wb)
    u[(q // Wb // 2) * W + (q % Wb) // 2, q] = 1.0
    return jnp.asarray(u)


# ---------------------------------------------------------------------------
# Parameters (deterministic, synthetic; PyTorch Conv2d weight layout OIHW)
# ---------------------------------------------------------------------------
def init_params(key, in_nc, out_nc, nf, n_res):
    specs = {
        "enc1": (5, in_nc, nf),
        "enc2": (3, nf, 2 * nf),
        "enc3": (3, 2 * nf, 2 * nf),
        "enc4": (3, 2 * nf, 4 * nf),
    }
    for i in range(n_res):
        specs[f"res{i}_a"] = (3, 4 * nf, 4 * nf)
        specs[f"res{i}_b"] = (3, 4 * nf, 4 * nf)
    specs.update({
        "dec1": (3, 4 * nf, 4 * nf),
        "dec2": (3, 4 * nf, 2 * nf),
        "dec3": (3, 2 * nf, nf),
        "dec4": (3, nf, out_nc),
    })
    params = {}
    keys = jax.random.split(key, len(specs))
    for kk, (name, (ks, cin, cout)) in zip(keys, specs.items()):
        kw_, kb_ = jax.random.split(kk)
        scale = 1.0 / np.sqrt(ks * ks * cin)
        params[name] = (
            jax.random.normal(kw_, (cout, cin, ks, ks), jnp.float32) * scale,
            jax.random.normal(kb_, (cout,), jnp.float32) * 0.01,
        )
    return params


# ---------------------------------------------------------------------------
# Forward pass (mirrors InpaintingGenerator.forward); NCHW in / NCHW out
# ---------------------------------------------------------------------------
def inpainting_generator_forward(x, params, *, n_res):
    x = x.astype(jnp.float32)
    n, in_nc, hh, ww = x.shape
    nf = params["enc1"][0].shape[0]
    out_nc = params["dec4"][0].shape[0]
    hw = hh * ww
    h2, w2, h4, w4 = hh // 2, ww // 2, hh // 4, ww // 4
    hw2, hw4 = h2 * w2, h4 * w4

    # Pad input channels up to a sublane multiple so slab stores stay aligned.
    cinp = -(-in_nc // 8) * 8
    xf = x.reshape(n, in_nc, hw)
    if cinp > in_nc:
        xf = jnp.pad(xf, ((0, 0), (0, cinp - in_nc), (0, 0)))

    weights = [_pack_weight(params["enc1"][0], cin_pad=cinp),
               _pack_weight(params["enc2"][0]),
               _pack_weight(params["enc3"][0]),
               _pack_weight(params["enc4"][0])]
    for i in range(n_res):
        weights.append(_pack_weight(params[f"res{i}_a"][0]))
        weights.append(_pack_weight(params[f"res{i}_b"][0]))
    weights += [_pack_weight(params["dec1"][0]),
                _pack_weight(params["dec2"][0]),
                _pack_weight(params["dec3"][0]),
                _pack_weight(params["dec4"][0])]

    # Bias is only needed where no InstanceNorm follows (exact no-op otherwise).
    b_e1 = params["enc1"][1].reshape(nf, 1).astype(jnp.float32)
    b_d4 = params["dec4"][1].reshape(out_nc, 1).astype(jnp.float32)

    dmat1 = _downsample_matrix(hh, ww)     # (hw,  hw2)
    dmat2 = _downsample_matrix(h2, w2)     # (hw2, hw4)
    umat1 = _upsample_matrix(h4, w4)       # (hw4, hw2)
    umat2 = _upsample_matrix(h2, w2)       # (hw2, hw)

    args = [xf] + weights + [b_e1, b_d4, dmat1, dmat2, umat1, umat2]

    def _full2d(arr):
        return pl.BlockSpec(arr.shape, lambda i: (0, 0))

    in_specs = [pl.BlockSpec((1, cinp, hw), lambda i: (i, 0, 0))]
    in_specs += [_full2d(a) for a in args[1:]]

    max_k = max(int(w.shape[1]) for w in weights)
    scratch_shapes = [
        pltpu.VMEM((cinp, hw + 4 * (ww + 1)), jnp.float32),      # enc1 (pad 2)
        pltpu.VMEM((nf, hw + 2 * (ww + 1)), jnp.float32),        # enc2 / dec4
        pltpu.VMEM((2 * nf, hw2 + 2 * (w2 + 1)), jnp.float32),   # enc3 / enc4
        pltpu.VMEM((4 * nf, hw4 + 2 * (w4 + 1)), jnp.float32),   # res / dec1
        pltpu.VMEM((4 * nf, hw2 + 2 * (w2 + 1)), jnp.float32),   # dec2
        pltpu.VMEM((2 * nf, hw + 2 * (ww + 1)), jnp.float32),    # dec3
        pltpu.VMEM((max_k, hw), jnp.float32),                    # im2col slab
    ]

    kernel = functools.partial(_generator_kernel, n_res=n_res, H=hh, W=ww)
    out = pl.pallas_call(
        kernel,
        out_shape=jax.ShapeDtypeStruct((n, out_nc, hw), jnp.float32),
        grid=(n,),
        in_specs=in_specs,
        out_specs=pl.BlockSpec((1, out_nc, hw), lambda i: (i, 0, 0)),
        scratch_shapes=scratch_shapes,
        compiler_params=pltpu.CompilerParams(
            dimension_semantics=("parallel",)),
    )(*args)
    return out.reshape(n, out_nc, hh, ww)


# ---------------------------------------------------------------------------
if __name__ == "__main__":
    in_nc, out_nc, nf, n_res = 4, 3, 8, 2
    N, H, W = 2, 16, 16

    key = jax.random.PRNGKey(0)
    kx, kp = jax.random.split(key)
    x = jax.random.normal(kx, (N, in_nc, H, W), jnp.float32)
    params = init_params(kp, in_nc, out_nc, nf, n_res)

    fwd = jax.jit(functools.partial(inpainting_generator_forward, n_res=n_res))
    y = fwd(x, params)
    jax.block_until_ready(y)

    assert y.shape == (N, out_nc, H, W), y.shape
    assert bool(jnp.all(jnp.isfinite(y)))
    assert float(jnp.max(jnp.abs(y))) <= 1.0 + 1e-6  # tanh output range
    print("KERNEL_OK")
</pallas_src>

<mosaic_0001>
module attributes {stable_mosaic.version = 11 : i64} {
  func.func @_generator_kernel(%arg0: i32, %arg1: memref<1x8x256xf32, #tpu.memory_space<vmem>>, %arg2: memref<8x200xbf16, #tpu.memory_space<vmem>>, %arg3: memref<16x72xbf16, #tpu.memory_space<vmem>>, %arg4: memref<16x144xbf16, #tpu.memory_space<vmem>>, %arg5: memref<32x144xbf16, #tpu.memory_space<vmem>>, %arg6: memref<32x288xbf16, #tpu.memory_space<vmem>>, %arg7: memref<32x288xbf16, #tpu.memory_space<vmem>>, %arg8: memref<32x288xbf16, #tpu.memory_space<vmem>>, %arg9: memref<32x288xbf16, #tpu.memory_space<vmem>>, %arg10: memref<32x288xbf16, #tpu.memory_space<vmem>>, %arg11: memref<16x288xbf16, #tpu.memory_space<vmem>>, %arg12: memref<8x144xbf16, #tpu.memory_space<vmem>>, %arg13: memref<3x72xbf16, #tpu.memory_space<vmem>>, %arg14: memref<8x1xf32, #tpu.memory_space<vmem>>, %arg15: memref<3x1xf32, #tpu.memory_space<vmem>>, %arg16: memref<256x64xf32, #tpu.memory_space<vmem>>, %arg17: memref<64x16xf32, #tpu.memory_space<vmem>>, %arg18: memref<16x64xf32, #tpu.memory_space<vmem>>, %arg19: memref<64x256xf32, #tpu.memory_space<vmem>>, %arg20: memref<1x3x256xf32, #tpu.memory_space<vmem>>, %arg21: memref<8x324xf32, #tpu.memory_space<vmem>>, %arg22: memref<8x290xf32, #tpu.memory_space<vmem>>, %arg23: memref<16x82xf32, #tpu.memory_space<vmem>>, %arg24: memref<32x26xf32, #tpu.memory_space<vmem>>, %arg25: memref<32x82xf32, #tpu.memory_space<vmem>>, %arg26: memref<16x290xf32, #tpu.memory_space<vmem>>, %arg27: memref<288x256xf32, #tpu.memory_space<vmem>>) attributes {dimension_semantics = [#tpu.dimension_semantics<parallel>], iteration_bounds = array<i64: 2>, scalar_prefetch = 0 : i64, scratch_operands = 7 : i64, tpu.core_type = #tpu.core_type<tc>, window_params = [{transform_indices = @transform_0, window_bounds = array<i64: 1, 8, 256>}, {pipeline_mode = #tpu.pipeline_mode<synchronous>, transform_indices = @transform_1, window_bounds = array<i64: 8, 200>}, {pipeline_mode = #tpu.pipeline_mode<synchronous>, transform_indices = @transform_2, window_bounds = array<i64: 16, 72>}, {pipeline_mode = #tpu.pipeline_mode<synchronous>, transform_indices = @transform_3, window_bounds = array<i64: 16, 144>}, {pipeline_mode = #tpu.pipeline_mode<synchronous>, transform_indices = @transform_4, window_bounds = array<i64: 32, 144>}, {pipeline_mode = #tpu.pipeline_mode<synchronous>, transform_indices = @transform_5, window_bounds = array<i64: 32, 288>}, {pipeline_mode = #tpu.pipeline_mode<synchronous>, transform_indices = @transform_6, window_bounds = array<i64: 32, 288>}, {pipeline_mode = #tpu.pipeline_mode<synchronous>, transform_indices = @transform_7, window_bounds = array<i64: 32, 288>}, {pipeline_mode = #tpu.pipeline_mode<synchronous>, transform_indices = @transform_8, window_bounds = array<i64: 32, 288>}, {pipeline_mode = #tpu.pipeline_mode<synchronous>, transform_indices = @transform_9, window_bounds = array<i64: 32, 288>}, {pipeline_mode = #tpu.pipeline_mode<synchronous>, transform_indices = @transform_10, window_bounds = array<i64: 16, 288>}, {pipeline_mode = #tpu.pipeline_mode<synchronous>, transform_indices = @transform_11, window_bounds = array<i64: 8, 144>}, {pipeline_mode = #tpu.pipeline_mode<synchronous>, transform_indices = @transform_12, window_bounds = array<i64: 3, 72>}, {pipeline_mode = #tpu.pipeline_mode<synchronous>, transform_indices = @transform_13, window_bounds = array<i64: 8, 1>}, {pipeline_mode = #tpu.pipeline_mode<synchronous>, transform_indices = @transform_14, window_bounds = array<i64: 3, 1>}, {pipeline_mode = #tpu.pipeline_mode<synchronous>, transform_indices = @transform_15, window_bounds = array<i64: 256, 64>}, {pipeline_mode = #tpu.pipeline_mode<synchronous>, transform_indices = @transform_16, window_bounds = array<i64: 64, 16>}, {pipeline_mode = #tpu.pipeline_mode<synchronous>, transform_indices = @transform_17, window_bounds = array<i64: 16, 64>}, {pipeline_mode = #tpu.pipeline_mode<synchronous>, transform_indices = @transform_18, window_bounds = array<i64: 64, 256>}, {transform_indices = @transform_19, window_bounds = array<i64: 1, 3, 256>}]} {
    %cst = arith.constant 0.000000e+00 : f32
    %0 = vector.broadcast %cst : f32 to vector<8x34xf32>
    %c0 = arith.constant 0 : index
    %c0_0 = arith.constant 0 : index
    %1 = vector.load %arg21[%c0, %c0_0] : memref<8x324xf32, #tpu.memory_space<vmem>>, vector<8x34xf32>
    tpu.vector_store %arg21[%c0, %c0_0], %0 {strides = array<i32>} : memref<8x324xf32, #tpu.memory_space<vmem>>, vector<8x34xf32>,
    %cst_1 = arith.constant 0.000000e+00 : f32
    %2 = vector.broadcast %cst_1 : f32 to vector<8x34xf32>
    %c0_2 = arith.constant 0 : index
    %c290 = arith.constant 290 : index
    %3 = vector.load %arg21[%c0_2, %c290] : memref<8x324xf32, #tpu.memory_space<vmem>>, vector<8x34xf32>
    tpu.vector_store %arg21[%c0_2, %c290], %2 {strides = array<i32>} : memref<8x324xf32, #tpu.memory_space<vmem>>, vector<8x34xf32>,
    %cst_3 = arith.constant 0.000000e+00 : f32
    %4 = vector.broadcast %cst_3 : f32 to vector<8x17xf32>
    %c0_4 = arith.constant 0 : index
    %c0_5 = arith.constant 0 : index
    %5 = vector.load %arg22[%c0_4, %c0_5] : memref<8x290xf32, #tpu.memory_space<vmem>>, vector<8x17xf32>
    tpu.vector_store %arg22[%c0_4, %c0_5], %4 {strides = array<i32>} : memref<8x290xf32, #tpu.memory_space<vmem>>, vector<8x17xf32>,
    %cst_6 = arith.constant 0.000000e+00 : f32
    %6 = vector.broadcast %cst_6 : f32 to vector<8x17xf32>
    %c0_7 = arith.constant 0 : index
    %c273 = arith.constant 273 : index
    %7 = vector.load %arg22[%c0_7, %c273] : memref<8x290xf32, #tpu.memory_space<vmem>>, vector<8x17xf32>
    tpu.vector_store %arg22[%c0_7, %c273], %6 {strides = array<i32>} : memref<8x290xf32, #tpu.memory_space<vmem>>, vector<8x17xf32>,
    %cst_8 = arith.constant 0.000000e+00 : f32
    %8 = vector.broadcast %cst_8 : f32 to vector<16x9xf32>
    %c0_9 = arith.constant 0 : index
    %c0_10 = arith.constant 0 : index
    %9 = vector.load %arg23[%c0_9, %c0_10] : memref<16x82xf32, #tpu.memory_space<vmem>>, vector<16x9xf32>
    tpu.vector_store %arg23[%c0_9, %c0_10], %8 {strides = array<i32>} : memref<16x82xf32, #tpu.memory_space<vmem>>, vector<16x9xf32>,
    %cst_11 = arith.constant 0.000000e+00 : f32
    %10 = vector.broadcast %cst_11 : f32 to vector<16x9xf32>
    %c0_12 = arith.constant 0 : index
    %c73 = arith.constant 73 : index
    %11 = vector.load %arg23[%c0_12, %c73] : memref<16x82xf32, #tpu.memory_space<vmem>>, vector<16x9xf32>
    tpu.vector_store %arg23[%c0_12, %c73], %10 {strides = array<i32>} : memref<16x82xf32, #tpu.memory_space<vmem>>, vector<16x9xf32>,
    %cst_13 = arith.constant 0.000000e+00 : f32
    %12 = vector.broadcast %cst_13 : f32 to vector<32x5xf32>
    %c0_14 = arith.constant 0 : index
    %c0_15 = arith.constant 0 : index
    %13 = vector.load %arg24[%c0_14, %c0_15] : memref<32x26xf32, #tpu.memory_space<vmem>>, vector<32x5xf32>
    tpu.vector_store %arg24[%c0_14, %c0_15], %12 {strides = array<i32>} : memref<32x26xf32, #tpu.memory_space<vmem>>, vector<32x5xf32>,
    %cst_16 = arith.constant 0.000000e+00 : f32
    %14 = vector.broadcast %cst_16 : f32 to vector<32x5xf32>
    %c0_17 = arith.constant 0 : index
    %c21 = arith.constant 21 : index
    %15 = vector.load %arg24[%c0_17, %c21] : memref<32x26xf32, #tpu.memory_space<vmem>>, vector<32x5xf32>
    tpu.vector_store %arg24[%c0_17, %c21], %14 {strides = array<i32>} : memref<32x26xf32, #tpu.memory_space<vmem>>, vector<32x5xf32>,
    %cst_18 = arith.constant 0.000000e+00 : f32
    %16 = vector.broadcast %cst_18 : f32 to vector<32x9xf32>
    %c0_19 = arith.constant 0 : index
    %c0_20 = arith.constant 0 : index
    %17 = vector.load %arg25[%c0_19, %c0_20] : memref<32x82xf32, #tpu.memory_space<vmem>>, vector<32x9xf32>
    tpu.vector_store %arg25[%c0_19, %c0_20], %16 {strides = array<i32>} : memref<32x82xf32, #tpu.memory_space<vmem>>, vector<32x9xf32>,
    %cst_21 = arith.constant 0.000000e+00 : f32
    %18 = vector.broadcast %cst_21 : f32 to vector<32x9xf32>
    %c0_22 = arith.constant 0 : index
    %c73_23 = arith.constant 73 : index
    %19 = vector.load %arg25[%c0_22, %c73_23] : memref<32x82xf32, #tpu.memory_space<vmem>>, vector<32x9xf32>
    tpu.vector_store %arg25[%c0_22, %c73_23], %18 {strides = array<i32>} : memref<32x82xf32, #tpu.memory_space<vmem>>, vector<32x9xf32>,
    %cst_24 = arith.constant 0.000000e+00 : f32
    %20 = vector.broadcast %cst_24 : f32 to vector<16x17xf32>
    %c0_25 = arith.constant 0 : index
    %c0_26 = arith.constant 0 : index
    %21 = vector.load %arg26[%c0_25, %c0_26] : memref<16x290xf32, #tpu.memory_space<vmem>>, vector<16x17xf32>
    tpu.vector_store %arg26[%c0_25, %c0_26], %20 {strides = array<i32>} : memref<16x290xf32, #tpu.memory_space<vmem>>, vector<16x17xf32>,
    %cst_27 = arith.constant 0.000000e+00 : f32
    %22 = vector.broadcast %cst_27 : f32 to vector<16x17xf32>
    %c0_28 = arith.constant 0 : index
    %c273_29 = arith.constant 273 : index
    %23 = vector.load %arg26[%c0_28, %c273_29] : memref<16x290xf32, #tpu.memory_space<vmem>>, vector<16x17xf32>
    tpu.vector_store %arg26[%c0_28, %c273_29], %22 {strides = array<i32>} : memref<16x290xf32, #tpu.memory_space<vmem>>, vector<16x17xf32>,
    %c0_30 = arith.constant 0 : index
    %c0_31 = arith.constant 0 : index
    %c0_32 = arith.constant 0 : index
    %24 = vector.load %arg1[%c0_30, %c0_31, %c0_32] : memref<1x8x256xf32, #tpu.memory_space<vmem>>, vector<1x8x256xf32>
    %25 = vector.shape_cast %24 : vector<1x8x256xf32> to vector<8x256xf32>
    %c0_33 = arith.constant 0 : index
    %c0_34 = arith.constant 0 : index
    %26 = vector.load %arg14[%c0_33, %c0_34] : memref<8x1xf32, #tpu.memory_space<vmem>>, vector<8x1xf32>
    %c0_35 = arith.constant 0 : index
    %c34 = arith.constant 34 : index
    %27 = vector.load %arg21[%c0_35, %c34] : memref<8x324xf32, #tpu.memory_space<vmem>>, vector<8x256xf32>
    tpu.vector_store %arg21[%c0_35, %c34], %25 {strides = array<i32>} : memref<8x324xf32, #tpu.memory_space<vmem>>, vector<8x256xf32>,
    %c0_36 = arith.constant 0 : index
    %c0_37 = arith.constant 0 : index
    %28 = vector.load %arg21[%c0_36, %c0_37] : memref<8x324xf32, #tpu.memory_space<vmem>>, vector<8x324xf32>
    %29 = tpu.iota {dimensions = array<i32: 1>} : vector<1x324xi32>
    %c128_i32 = arith.constant 128 : i32
    %30 = vector.broadcast %c128_i32 : i32 to vector<1x324xi32>
    %31 = arith.addi %29, %30 : vector<1x324xi32>
    %c34_i32 = arith.constant 34 : i32
    %32 = vector.broadcast %c34_i32 : i32 to vector<1x324xi32>
    %33 = arith.subi %31, %32 : vector<1x324xi32>
    %c16_i32 = arith.constant 16 : i32
    %c0_i32 = arith.constant 0 : i32
    %34 = arith.cmpi eq, %c16_i32, %c0_i32 : i32
    %c1_i32 = arith.constant 1 : i32
    %35 = arith.select %34, %c1_i32, %c16_i32 : i32
    %36 = vector.broadcast %35 : i32 to vector<1x324xi32>
    %37 = arith.remsi %33, %36 : vector<1x324xi32>
    %c0_i32_38 = arith.constant 0 : i32
    %38 = vector.broadcast %c0_i32_38 : i32 to vector<1x324xi32>
    %39 = arith.cmpi ne, %37, %38 : vector<1x324xi32>
    %c0_i32_39 = arith.constant 0 : i32
    %40 = vector.broadcast %c0_i32_39 : i32 to vector<1x324xi32>
    %41 = arith.cmpi slt, %37, %40 : vector<1x324xi32>
    %c0_i32_40 = arith.constant 0 : i32
    %42 = arith.cmpi slt, %35, %c0_i32_40 : i32
    %43 = vector.broadcast %42 : i1 to vector<1x324xi1>
    %44 = vector.broadcast %43 : vector<1x324xi1> to vector<1x324xi1>
    %45 = arith.xori %41, %44 : vector<1x324xi1>
    %46 = arith.andi %45, %39 : vector<1x324xi1>
    %47 = vector.broadcast %35 : i32 to vector<1x324xi32>
    %48 = arith.addi %37, %47 : vector<1x324xi32>
    %49 = arith.select %46, %48, %37 : vector<1x324xi1>, vector<1x324xi32>
    %c14_i32 = arith.constant 14 : i32
    %50 = vector.broadcast %c14_i32 : i32 to vector<1x324xi32>
    %51 = arith.cmpi slt, %49, %50 : vector<1x324xi32>
    %cst_41 = arith.constant 0.000000e+00 : f32
    %52 = vector.shape_cast %51 : vector<1x324xi1> to vector<1x324xi1>
    %53 = vector.broadcast %52 : vector<1x324xi1> to vector<8x324xi1>
    %54 = vector.broadcast %cst_41 : f32 to vector<8x324xf32>
    %55 = arith.select %53, %28, %54 : vector<8x324xi1>, vector<8x324xf32>
    %c15_i32 = arith.constant 15 : i32
    %56 = vector.broadcast %c15_i32 : i32 to vector<1x324xi32>
    %57 = arith.cmpi slt, %49, %56 : vector<1x324xi32>
    %cst_42 = arith.constant 0.000000e+00 : f32
    %58 = vector.shape_cast %57 : vector<1x324xi1> to vector<1x324xi1>
    %59 = vector.broadcast %58 : vector<1x324xi1> to vector<8x324xi1>
    %60 = vector.broadcast %cst_42 : f32 to vector<8x324xf32>
    %61 = arith.select %59, %28, %60 : vector<8x324xi1>, vector<8x324xf32>
    %c1_i32_43 = arith.constant 1 : i32
    %62 = vector.broadcast %c1_i32_43 : i32 to vector<1x324xi32>
    %63 = arith.cmpi sge, %49, %62 : vector<1x324xi32>
    %cst_44 = arith.constant 0.000000e+00 : f32
    %64 = vector.shape_cast %63 : vector<1x324xi1> to vector<1x324xi1>
    %65 = vector.broadcast %64 : vector<1x324xi1> to vector<8x324xi1>
    %66 = vector.broadcast %cst_44 : f32 to vector<8x324xf32>
    %67 = arith.select %65, %28, %66 : vector<8x324xi1>, vector<8x324xf32>
    %c2_i32 = arith.constant 2 : i32
    %68 = vector.broadcast %c2_i32 : i32 to vector<1x324xi32>
    %69 = arith.cmpi sge, %49, %68 : vector<1x324xi32>
    %cst_45 = arith.constant 0.000000e+00 : f32
    %70 = vector.shape_cast %69 : vector<1x324xi1> to vector<1x324xi1>
    %71 = vector.broadcast %70 : vector<1x324xi1> to vector<8x324xi1>
    %72 = vector.broadcast %cst_45 : f32 to vector<8x324xf32>
    %73 = arith.select %71, %28, %72 : vector<8x324xi1>, vector<8x324xf32>
    %74 = vector.extract_strided_slice %55 {offsets = [0, 0], sizes = [8, 256], strides = [1, 1]} : vector<8x324xf32> to vector<8x256xf32>
    %c0_46 = arith.constant 0 : index
    %c0_47 = arith.constant 0 : index
    %75 = vector.load %arg27[%c0_46, %c0_47] : memref<288x256xf32, #tpu.memory_space<vmem>>, vector<8x256xf32>
    tpu.vector_store %arg27[%c0_46, %c0_47], %74 {strides = array<i32>} : memref<288x256xf32, #tpu.memory_space<vmem>>, vector<8x256xf32>,
    %76 = vector.extract_strided_slice %61 {offsets = [0, 1], sizes = [8, 256], strides = [1, 1]} : vector<8x324xf32> to vector<8x256xf32>
    %c8 = arith.constant 8 : index
    %c0_48 = arith.constant 0 : index
    %77 = vector.load %arg27[%c8, %c0_48] : memref<288x256xf32, #tpu.memory_space<vmem>>, vector<8x256xf32>
    tpu.vector_store %arg27[%c8, %c0_48], %76 {strides = array<i32>} : memref<288x256xf32, #tpu.memory_space<vmem>>, vector<8x256xf32>,
    %78 = vector.extract_strided_slice %28 {offsets = [0, 2], sizes = [8, 256], strides = [1, 1]} : vector<8x324xf32> to vector<8x256xf32>
    %c16 = arith.constant 16 : index
    %c0_49 = arith.constant 0 : index
    %79 = vector.load %arg27[%c16, %c0_49] : memref<288x256xf32, #tpu.memory_space<vmem>>, vector<8x256xf32>
    tpu.vector_store %arg27[%c16, %c0_49], %78 {strides = array<i32>} : memref<288x256xf32, #tpu.memory_space<vmem>>, vector<8x256xf32>,
    %80 = vector.extract_strided_slice %67 {offsets = [0, 3], sizes = [8, 256], strides = [1, 1]} : vector<8x324xf32> to vector<8x256xf32>
    %c24 = arith.constant 24 : index
    %c0_50 = arith.constant 0 : index
    %81 = vector.load %arg27[%c24, %c0_50] : memref<288x256xf32, #tpu.memory_space<vmem>>, vector<8x256xf32>
    tpu.vector_store %arg27[%c24, %c0_50], %80 {strides = array<i32>} : memref<288x256xf32, #tpu.memory_space<vmem>>, vector<8x256xf32>,
    %82 = vector.extract_strided_slice %73 {offsets = [0, 4], sizes = [8, 256], strides = [1, 1]} : vector<8x324xf32> to vector<8x256xf32>
    %c32 = arith.constant 32 : index
    %c0_51 = arith.constant 0 : index
    %83 = vector.load %arg27[%c32, %c0_51] : memref<288x256xf32, #tpu.memory_space<vmem>>, vector<8x256xf32>
    tpu.vector_store %arg27[%c32, %c0_51], %82 {strides = array<i32>} : memref<288x256xf32, #tpu.memory_space<vmem>>, vector<8x256xf32>,
    %84 = vector.extract_strided_slice %55 {offsets = [0, 16], sizes = [8, 256], strides = [1, 1]} : vector<8x324xf32> to vector<8x256xf32>
    %c40 = arith.constant 40 : index
    %c0_52 = arith.constant 0 : index
    %85 = vector.load %arg27[%c40, %c0_52] : memref<288x256xf32, #tpu.memory_space<vmem>>, vector<8x256xf32>
    tpu.vector_store %arg27[%c40, %c0_52], %84 {strides = array<i32>} : memref<288x256xf32, #tpu.memory_space<vmem>>, vector<8x256xf32>,
    %86 = vector.extract_strided_slice %61 {offsets = [0, 17], sizes = [8, 256], strides = [1, 1]} : vector<8x324xf32> to vector<8x256xf32>
    %c48 = arith.constant 48 : index
    %c0_53 = arith.constant 0 : index
    %87 = vector.load %arg27[%c48, %c0_53] : memref<288x256xf32, #tpu.memory_space<vmem>>, vector<8x256xf32>
    tpu.vector_store %arg27[%c48, %c0_53], %86 {strides = array<i32>} : memref<288x256xf32, #tpu.memory_space<vmem>>, vector<8x256xf32>,
    %88 = vector.extract_strided_slice %28 {offsets = [0, 18], sizes = [8, 256], strides = [1, 1]} : vector<8x324xf32> to vector<8x256xf32>
    %c56 = arith.constant 56 : index
    %c0_54 = arith.constant 0 : index
    %89 = vector.load %arg27[%c56, %c0_54] : memref<288x256xf32, #tpu.memory_space<vmem>>, vector<8x256xf32>
    tpu.vector_store %arg27[%c56, %c0_54], %88 {strides = array<i32>} : memref<288x256xf32, #tpu.memory_space<vmem>>, vector<8x256xf32>,
    %90 = vector.extract_strided_slice %67 {offsets = [0, 19], sizes = [8, 256], strides = [1, 1]} : vector<8x324xf32> to vector<8x256xf32>
    %c64 = arith.constant 64 : index
    %c0_55 = arith.constant 0 : index
    %91 = vector.load %arg27[%c64, %c0_55] : memref<288x256xf32, #tpu.memory_space<vmem>>, vector<8x256xf32>
    tpu.vector_store %arg27[%c64, %c0_55], %90 {strides = array<i32>} : memref<288x256xf32, #tpu.memory_space<vmem>>, vector<8x256xf32>,
    %92 = vector.extract_strided_slice %73 {offsets = [0, 20], sizes = [8, 256], strides = [1, 1]} : vector<8x324xf32> to vector<8x256xf32>
    %c72 = arith.constant 72 : index
    %c0_56 = arith.constant 0 : index
    %93 = vector.load %arg27[%c72, %c0_56] : memref<288x256xf32, #tpu.memory_space<vmem>>, vector<8x256xf32>
    tpu.vector_store %arg27[%c72, %c0_56], %92 {strides = array<i32>} : memref<288x256xf32, #tpu.memory_space<vmem>>, vector<8x256xf32>,
    %94 = vector.extract_strided_slice %55 {offsets = [0, 32], sizes = [8, 256], strides = [1, 1]} : vector<8x324xf32> to vector<8x256xf32>
    %c80 = arith.constant 80 : index
    %c0_57 = arith.constant 0 : index
    %95 = vector.load %arg27[%c80, %c0_57] : memref<288x256xf32, #tpu.memory_space<vmem>>, vector<8x256xf32>
    tpu.vector_store %arg27[%c80, %c0_57], %94 {strides = array<i32>} : memref<288x256xf32, #tpu.memory_space<vmem>>, vector<8x256xf32>,
    %96 = vector.extract_strided_slice %61 {offsets = [0, 33], sizes = [8, 256], strides = [1, 1]} : vector<8x324xf32> to vector<8x256xf32>
    %c88 = arith.constant 88 : index
    %c0_58 = arith.constant 0 : index
    %97 = vector.load %arg27[%c88, %c0_58] : memref<288x256xf32, #tpu.memory_space<vmem>>, vector<8x256xf32>
    tpu.vector_store %arg27[%c88, %c0_58], %96 {strides = array<i32>} : memref<288x256xf32, #tpu.memory_space<vmem>>, vector<8x256xf32>,
    %98 = vector.extract_strided_slice %28 {offsets = [0, 34], sizes = [8, 256], strides = [1, 1]} : vector<8x324xf32> to vector<8x256xf32>
    %c96 = arith.constant 96 : index
    %c0_59 = arith.constant 0 : index
    %99 = vector.load %arg27[%c96, %c0_59] : memref<288x256xf32, #tpu.memory_space<vmem>>, vector<8x256xf32>
    tpu.vector_store %arg27[%c96, %c0_59], %98 {strides = array<i32>} : memref<288x256xf32, #tpu.memory_space<vmem>>, vector<8x256xf32>,
    %100 = vector.extract_strided_slice %67 {offsets = [0, 35], sizes = [8, 256], strides = [1, 1]} : vector<8x324xf32> to vector<8x256xf32>
    %c104 = arith.constant 104 : index
    %c0_60 = arith.constant 0 : index
    %101 = vector.load %arg27[%c104, %c0_60] : memref<288x256xf32, #tpu.memory_space<vmem>>, vector<8x256xf32>
    tpu.vector_store %arg27[%c104, %c0_60], %100 {strides = array<i32>} : memref<288x256xf32, #tpu.memory_space<vmem>>, vector<8x256xf32>,
    %102 = vector.extract_strided_slice %73 {offsets = [0, 36], sizes = [8, 256], strides = [1, 1]} : vector<8x324xf32> to vector<8x256xf32>
    %c112 = arith.constant 112 : index
    %c0_61 = arith.constant 0 : index
    %103 = vector.load %arg27[%c112, %c0_61] : memref<288x256xf32, #tpu.memory_space<vmem>>, vector<8x256xf32>
    tpu.vector_store %arg27[%c112, %c0_61], %102 {strides = array<i32>} : memref<288x256xf32, #tpu.memory_space<vmem>>, vector<8x256xf32>,
    %104 = vector.extract_strided_slice %55 {offsets = [0, 48], sizes = [8, 256], strides = [1, 1]} : vector<8x324xf32> to vector<8x256xf32>
    %c120 = arith.constant 120 : index
    %c0_62 = arith.constant 0 : index
    %105 = vector.load %arg27[%c120, %c0_62] : memref<288x256xf32, #tpu.memory_space<vmem>>, vector<8x256xf32>
    tpu.vector_store %arg27[%c120, %c0_62], %104 {strides = array<i32>} : memref<288x256xf32, #tpu.memory_space<vmem>>, vector<8x256xf32>,
    %106 = vector.extract_strided_slice %61 {offsets = [0, 49], sizes = [8, 256], strides = [1, 1]} : vector<8x324xf32> to vector<8x256xf32>
    %c128 = arith.constant 128 : index
    %c0_63 = arith.constant 0 : index
    %107 = vector.load %arg27[%c128, %c0_63] : memref<288x256xf32, #tpu.memory_space<vmem>>, vector<8x256xf32>
    tpu.vector_store %arg27[%c128, %c0_63], %106 {strides = array<i32>} : memref<288x256xf32, #tpu.memory_space<vmem>>, vector<8x256xf32>,
    %108 = vector.extract_strided_slice %28 {offsets = [0, 50], sizes = [8, 256], strides = [1, 1]} : vector<8x324xf32> to vector<8x256xf32>
    %c136 = arith.constant 136 : index
    %c0_64 = arith.constant 0 : index
    %109 = vector.load %arg27[%c136, %c0_64] : memref<288x256xf32, #tpu.memory_space<vmem>>, vector<8x256xf32>
    tpu.vector_store %arg27[%c136, %c0_64], %108 {strides = array<i32>} : memref<288x256xf32, #tpu.memory_space<vmem>>, vector<8x256xf32>,
    %110 = vector.extract_strided_slice %67 {offsets = [0, 51], sizes = [8, 256], strides = [1, 1]} : vector<8x324xf32> to vector<8x256xf32>
    %c144 = arith.constant 144 : index
    %c0_65 = arith.constant 0 : index
    %111 = vector.load %arg27[%c144, %c0_65] : memref<288x256xf32, #tpu.memory_space<vmem>>, vector<8x256xf32>
    tpu.vector_store %arg27[%c144, %c0_65], %110 {strides = array<i32>} : memref<288x256xf32, #tpu.memory_space<vmem>>, vector<8x256xf32>,
    %112 = vector.extract_strided_slice %73 {offsets = [0, 52], sizes = [8, 256], strides = [1, 1]} : vector<8x324xf32> to vector<8x256xf32>
    %c152 = arith.constant 152 : index
    %c0_66 = arith.constant 0 : index
    %113 = vector.load %arg27[%c152, %c0_66] : memref<288x256xf32, #tpu.memory_space<vmem>>, vector<8x256xf32>
    tpu.vector_store %arg27[%c152, %c0_66], %112 {strides = array<i32>} : memref<288x256xf32, #tpu.memory_space<vmem>>, vector<8x256xf32>,
    %114 = vector.extract_strided_slice %55 {offsets = [0, 64], sizes = [8, 256], strides = [1, 1]} : vector<8x324xf32> to vector<8x256xf32>
    %c160 = arith.constant 160 : index
    %c0_67 = arith.constant 0 : index
    %115 = vector.load %arg27[%c160, %c0_67] : memref<288x256xf32, #tpu.memory_space<vmem>>, vector<8x256xf32>
    tpu.vector_store %arg27[%c160, %c0_67], %114 {strides = array<i32>} : memref<288x256xf32, #tpu.memory_space<vmem>>, vector<8x256xf32>,
    %116 = vector.extract_strided_slice %61 {offsets = [0, 65], sizes = [8, 256], strides = [1, 1]} : vector<8x324xf32> to vector<8x256xf32>
    %c168 = arith.constant 168 : index
    %c0_68 = arith.constant 0 : index
    %117 = vector.load %arg27[%c168, %c0_68] : memref<288x256xf32, #tpu.memory_space<vmem>>, vector<8x256xf32>
    tpu.vector_store %arg27[%c168, %c0_68], %116 {strides = array<i32>} : memref<288x256xf32, #tpu.memory_space<vmem>>, vector<8x256xf32>,
    %118 = vector.extract_strided_slice %28 {offsets = [0, 66], sizes = [8, 256], strides = [1, 1]} : vector<8x324xf32> to vector<8x256xf32>
    %c176 = arith.constant 176 : index
    %c0_69 = arith.constant 0 : index
    %119 = vector.load %arg27[%c176, %c0_69] : memref<288x256xf32, #tpu.memory_space<vmem>>, vector<8x256xf32>
    tpu.vector_store %arg27[%c176, %c0_69], %118 {strides = array<i32>} : memref<288x256xf32, #tpu.memory_space<vmem>>, vector<8x256xf32>,
    %120 = vector.extract_strided_slice %67 {offsets = [0, 67], sizes = [8, 256], strides = [1, 1]} : vector<8x324xf32> to vector<8x256xf32>
    %c184 = arith.constant 184 : index
    %c0_70 = arith.constant 0 : index
    %121 = vector.load %arg27[%c184, %c0_70] : memref<288x256xf32, #tpu.memory_space<vmem>>, vector<8x256xf32>
    tpu.vector_store %arg27[%c184, %c0_70], %120 {strides = array<i32>} : memref<288x256xf32, #tpu.memory_space<vmem>>, vector<8x256xf32>,
    %122 = vector.extract_strided_slice %73 {offsets = [0, 68], sizes = [8, 256], strides = [1, 1]} : vector<8x324xf32> to vector<8x256xf32>
    %c192 = arith.constant 192 : index
    %c0_71 = arith.constant 0 : index
    %123 = vector.load %arg27[%c192, %c0_71] : memref<288x256xf32, #tpu.memory_space<vmem>>, vector<8x256xf32>
    tpu.vector_store %arg27[%c192, %c0_71], %122 {strides = array<i32>} : memref<288x256xf32, #tpu.memory_space<vmem>>, vector<8x256xf32>,
    %c0_72 = arith.constant 0 : index
    %c0_73 = arith.constant 0 : index
    %124 = vector.load %arg27[%c0_72, %c0_73] : memref<288x256xf32, #tpu.memory_space<vmem>>, vector<200x256xf32>
    %125 = arith.truncf %124 : vector<200x256xf32> to vector<200x256xbf16>
    %c0_74 = arith.constant 0 : index
    %c0_75 = arith.constant 0 : index
    %126 = vector.load %arg2[%c0_74, %c0_75] : memref<8x200xbf16, #tpu.memory_space<vmem>>, vector<8x200xbf16>
    %cst_76 = arith.constant dense<0.000000e+00> : vector<8x256xf32>
    %127 = tpu.matmul %126, %125, %cst_76 {dimension_numbers = #tpu.dot_dimension_numbers<[1], [0], [0], [1], [0, 0, 1, 1], [], []>} : vector<8x200xbf16>, vector<200x256xbf16>, vector<8x256xf32> -> vector<8x256xf32>
    %128 = vector.broadcast %26 : vector<8x1xf32> to vector<8x256xf32>
    %129 = arith.addf %127, %128 : vector<8x256xf32>
    %cst_77 = arith.constant 0.000000e+00 : f32
    %130 = vector.broadcast %cst_77 : f32 to vector<8x256xf32>
    %131 = arith.maximumf %129, %130 : vector<8x256xf32>
    %c0_78 = arith.constant 0 : index
    %c17 = arith.constant 17 : index
    %132 = vector.load %arg22[%c0_78, %c17] : memref<8x290xf32, #tpu.memory_space<vmem>>, vector<8x256xf32>
    tpu.vector_store %arg22[%c0_78, %c17], %131 {strides = array<i32>} : memref<8x290xf32, #tpu.memory_space<vmem>>, vector<8x256xf32>,
    %c0_79 = arith.constant 0 : index
    %c0_80 = arith.constant 0 : index
    %133 = vector.load %arg22[%c0_79, %c0_80] : memref<8x290xf32, #tpu.memory_space<vmem>>, vector<8x290xf32>
    %134 = tpu.iota {dimensions = array<i32: 1>} : vector<1x290xi32>
    %c128_i32_81 = arith.constant 128 : i32
    %135 = vector.broadcast %c128_i32_81 : i32 to vector<1x290xi32>
    %136 = arith.addi %134, %135 : vector<1x290xi32>
    %c17_i32 = arith.constant 17 : i32
    %137 = vector.broadcast %c17_i32 : i32 to vector<1x290xi32>
    %138 = arith.subi %136, %137 : vector<1x290xi32>
    %c16_i32_82 = arith.constant 16 : i32
    %c0_i32_83 = arith.constant 0 : i32
    %139 = arith.cmpi eq, %c16_i32_82, %c0_i32_83 : i32
    %c1_i32_84 = arith.constant 1 : i32
    %140 = arith.select %139, %c1_i32_84, %c16_i32_82 : i32
    %141 = vector.broadcast %140 : i32 to vector<1x290xi32>
    %142 = arith.remsi %138, %141 : vector<1x290xi32>
    %c0_i32_85 = arith.constant 0 : i32
    %143 = vector.broadcast %c0_i32_85 : i32 to vector<1x290xi32>
    %144 = arith.cmpi ne, %142, %143 : vector<1x290xi32>
    %c0_i32_86 = arith.constant 0 : i32
    %145 = vector.broadcast %c0_i32_86 : i32 to vector<1x290xi32>
    %146 = arith.cmpi slt, %142, %145 : vector<1x290xi32>
    %c0_i32_87 = arith.constant 0 : i32
    %147 = arith.cmpi slt, %140, %c0_i32_87 : i32
    %148 = vector.broadcast %147 : i1 to vector<1x290xi1>
    %149 = vector.broadcast %148 : vector<1x290xi1> to vector<1x290xi1>
    %150 = arith.xori %146, %149 : vector<1x290xi1>
    %151 = arith.andi %150, %144 : vector<1x290xi1>
    %152 = vector.broadcast %140 : i32 to vector<1x290xi32>
    %153 = arith.addi %142, %152 : vector<1x290xi32>
    %154 = arith.select %151, %153, %142 : vector<1x290xi1>, vector<1x290xi32>
    %c15_i32_88 = arith.constant 15 : i32
    %155 = vector.broadcast %c15_i32_88 : i32 to vector<1x290xi32>
    %156 = arith.cmpi slt, %154, %155 : vector<1x290xi32>
    %cst_89 = arith.constant 0.000000e+00 : f32
    %157 = vector.shape_cast %156 : vector<1x290xi1> to vector<1x290xi1>
    %158 = vector.broadcast %157 : vector<1x290xi1> to vector<8x290xi1>
    %159 = vector.broadcast %cst_89 : f32 to vector<8x290xf32>
    %160 = arith.select %158, %133, %159 : vector<8x290xi1>, vector<8x290xf32>
    %c1_i32_90 = arith.constant 1 : i32
    %161 = vector.broadcast %c1_i32_90 : i32 to vector<1x290xi32>
    %162 = arith.cmpi sge, %154, %161 : vector<1x290xi32>
    %cst_91 = arith.constant 0.000000e+00 : f32
    %163 = vector.shape_cast %162 : vector<1x290xi1> to vector<1x290xi1>
    %164 = vector.broadcast %163 : vector<1x290xi1> to vector<8x290xi1>
    %165 = vector.broadcast %cst_91 : f32 to vector<8x290xf32>
    %166 = arith.select %164, %133, %165 : vector<8x290xi1>, vector<8x290xf32>
    %167 = vector.extract_strided_slice %160 {offsets = [0, 0], sizes = [8, 256], strides = [1, 1]} : vector<8x290xf32> to vector<8x256xf32>
    %c0_92 = arith.constant 0 : index
    %c0_93 = arith.constant 0 : index
    %168 = vector.load %arg27[%c0_92, %c0_93] : memref<288x256xf32, #tpu.memory_space<vmem>>, vector<8x256xf32>
    tpu.vector_store %arg27[%c0_92, %c0_93], %167 {strides = array<i32>} : memref<288x256xf32, #tpu.memory_space<vmem>>, vector<8x256xf32>,
    %169 = vector.extract_strided_slice %133 {offsets = [0, 1], sizes = [8, 256], strides = [1, 1]} : vector<8x290xf32> to vector<8x256xf32>
    %c8_94 = arith.constant 8 : index
    %c0_95 = arith.constant 0 : index
    %170 = vector.load %arg27[%c8_94, %c0_95] : memref<288x256xf32, #tpu.memory_space<vmem>>, vector<8x256xf32>
    tpu.vector_store %arg27[%c8_94, %c0_95], %169 {strides = array<i32>} : memref<288x256xf32, #tpu.memory_space<vmem>>, vector<8x256xf32>,
    %171 = vector.extract_strided_slice %166 {offsets = [0, 2], sizes = [8, 256], strides = [1, 1]} : vector<8x290xf32> to vector<8x256xf32>
    %c16_96 = arith.constant 16 : index
    %c0_97 = arith.constant 0 : index
    %172 = vector.load %arg27[%c16_96, %c0_97] : memref<288x256xf32, #tpu.memory_space<vmem>>, vector<8x256xf32>
    tpu.vector_store %arg27[%c16_96, %c0_97], %171 {strides = array<i32>} : memref<288x256xf32, #tpu.memory_space<vmem>>, vector<8x256xf32>,
    %173 = vector.extract_strided_slice %160 {offsets = [0, 16], sizes = [8, 256], strides = [1, 1]} : vector<8x290xf32> to vector<8x256xf32>
    %c24_98 = arith.constant 24 : index
    %c0_99 = arith.constant 0 : index
    %174 = vector.load %arg27[%c24_98, %c0_99] : memref<288x256xf32, #tpu.memory_space<vmem>>, vector<8x256xf32>
    tpu.vector_store %arg27[%c24_98, %c0_99], %173 {strides = array<i32>} : memref<288x256xf32, #tpu.memory_space<vmem>>, vector<8x256xf32>,
    %175 = vector.extract_strided_slice %133 {offsets = [0, 17], sizes = [8, 256], strides = [1, 1]} : vector<8x290xf32> to vector<8x256xf32>
    %c32_100 = arith.constant 32 : index
    %c0_101 = arith.constant 0 : index
    %176 = vector.load %arg27[%c32_100, %c0_101] : memref<288x256xf32, #tpu.memory_space<vmem>>, vector<8x256xf32>
    tpu.vector_store %arg27[%c32_100, %c0_101], %175 {strides = array<i32>} : memref<288x256xf32, #tpu.memory_space<vmem>>, vector<8x256xf32>,
    %177 = vector.extract_strided_slice %166 {offsets = [0, 18], sizes = [8, 256], strides = [1, 1]} : vector<8x290xf32> to vector<8x256xf32>
    %c40_102 = arith.constant 40 : index
    %c0_103 = arith.constant 0 : index
    %178 = vector.load %arg27[%c40_102, %c0_103] : memref<288x256xf32, #tpu.memory_space<vmem>>, vector<8x256xf32>
    tpu.vector_store %arg27[%c40_102, %c0_103], %177 {strides = array<i32>} : memref<288x256xf32, #tpu.memory_space<vmem>>, vector<8x256xf32>,
    %179 = vector.extract_strided_slice %160 {offsets = [0, 32], sizes = [8, 256], strides = [1, 1]} : vector<8x290xf32> to vector<8x256xf32>
    %c48_104 = arith.constant 48 : index
    %c0_105 = arith.constant 0 : index
    %180 = vector.load %arg27[%c48_104, %c0_105] : memref<288x256xf32, #tpu.memory_space<vmem>>, vector<8x256xf32>
    tpu.vector_store %arg27[%c48_104, %c0_105], %179 {strides = array<i32>} : memref<288x256xf32, #tpu.memory_space<vmem>>, vector<8x256xf32>,
    %181 = vector.extract_strided_slice %133 {offsets = [0, 33], sizes = [8, 256], strides = [1, 1]} : vector<8x290xf32> to vector<8x256xf32>
    %c56_106 = arith.constant 56 : index
    %c0_107 = arith.constant 0 : index
    %182 = vector.load %arg27[%c56_106, %c0_107] : memref<288x256xf32, #tpu.memory_space<vmem>>, vector<8x256xf32>
    tpu.vector_store %arg27[%c56_106, %c0_107], %181 {strides = array<i32>} : memref<288x256xf32, #tpu.memory_space<vmem>>, vector<8x256xf32>,
    %183 = vector.extract_strided_slice %166 {offsets = [0, 34], sizes = [8, 256], strides = [1, 1]} : vector<8x290xf32> to vector<8x256xf32>
    %c64_108 = arith.constant 64 : index
    %c0_109 = arith.constant 0 : index
    %184 = vector.load %arg27[%c64_108, %c0_109] : memref<288x256xf32, #tpu.memory_space<vmem>>, vector<8x256xf32>
    tpu.vector_store %arg27[%c64_108, %c0_109], %183 {strides = array<i32>} : memref<288x256xf32, #tpu.memory_space<vmem>>, vector<8x256xf32>,
    %c0_110 = arith.constant 0 : index
    %c0_111 = arith.constant 0 : index
    %185 = vector.load %arg27[%c0_110, %c0_111] : memref<288x256xf32, #tpu.memory_space<vmem>>, vector<72x256xf32>
    %186 = arith.truncf %185 : vector<72x256xf32> to vector<72x256xbf16>
    %c0_112 = arith.constant 0 : index
    %c0_113 = arith.constant 0 : index
    %187 = vector.load %arg3[%c0_112, %c0_113] : memref<16x72xbf16, #tpu.memory_space<vmem>>, vector<16x72xbf16>
    %cst_114 = arith.constant dense<0.000000e+00> : vector<16x256xf32>
    %188 = tpu.matmul %187, %186, %cst_114 {dimension_numbers = #tpu.dot_dimension_numbers<[1], [0], [0], [1], [0, 0, 1, 1], [], []>} : vector<16x72xbf16>, vector<72x256xbf16>, vector<16x256xf32> -> vector<16x256xf32>
    %c0_115 = arith.constant 0 : index
    %c0_116 = arith.constant 0 : index
    %189 = vector.load %arg16[%c0_115, %c0_116] : memref<256x64xf32, #tpu.memory_space<vmem>>, vector<256x64xf32>
    %cst_117 = arith.constant dense<0.000000e+00> : vector<16x64xf32>
    %190 = tpu.matmul %188, %189, %cst_117 {dimension_numbers = #tpu.dot_dimension_numbers<[1], [0], [0], [1], [0, 0, 1, 1], [], []>} : vector<16x256xf32>, vector<256x64xf32>, vector<16x64xf32> -> vector<16x64xf32>
    %cst_118 = arith.constant dense<0.000000e+00> : vector<16xf32>
    %191 = vector.multi_reduction <add>, %190, %cst_118 [1] : vector<16x64xf32> to vector<16xf32>
    %192 = vector.shape_cast %191 : vector<16xf32> to vector<16x1xf32>
    %cst_119 = arith.constant 6.400000e+01 : f32
    %193 = vector.broadcast %cst_119 : f32 to vector<16x1xf32>
    %194 = arith.divf %192, %193 : vector<16x1xf32>
    %195 = vector.broadcast %194 : vector<16x1xf32> to vector<16x64xf32>
    %196 = arith.subf %190, %195 : vector<16x64xf32>
    %197 = arith.mulf %196, %196 : vector<16x64xf32>
    %cst_120 = arith.constant dense<0.000000e+00> : vector<16xf32>
    %198 = vector.multi_reduction <add>, %197, %cst_120 [1] : vector<16x64xf32> to vector<16xf32>
    %199 = vector.shape_cast %198 : vector<16xf32> to vector<16x1xf32>
    %cst_121 = arith.constant 6.400000e+01 : f32
    %200 = vector.broadcast %cst_121 : f32 to vector<16x1xf32>
    %201 = arith.divf %199, %200 : vector<16x1xf32>
    %202 = vector.broadcast %194 : vector<16x1xf32> to vector<16x64xf32>
    %203 = arith.subf %190, %202 : vector<16x64xf32>
    %cst_122 = arith.constant 9.99999974E-6 : f32
    %204 = vector.broadcast %cst_122 : f32 to vector<16x1xf32>
    %205 = arith.addf %201, %204 : vector<16x1xf32>
    %206 = math.rsqrt %205 : vector<16x1xf32>
    %207 = vector.broadcast %206 : vector<16x1xf32> to vector<16x64xf32>
    %208 = arith.mulf %203, %207 : vector<16x64xf32>
    %cst_123 = arith.constant 0.000000e+00 : f32
    %209 = vector.broadcast %cst_123 : f32 to vector<16x64xf32>
    %210 = arith.maximumf %208, %209 : vector<16x64xf32>
    %c0_124 = arith.constant 0 : index
    %c9 = arith.constant 9 : index
    %211 = vector.load %arg23[%c0_124, %c9] : memref<16x82xf32, #tpu.memory_space<vmem>>, vector<16x64xf32>
    tpu.vector_store %arg23[%c0_124, %c9], %210 {strides = array<i32>} : memref<16x82xf32, #tpu.memory_space<vmem>>, vector<16x64xf32>,
    %c0_125 = arith.constant 0 : index
    %c0_126 = arith.constant 0 : index
    %212 = vector.load %arg23[%c0_125, %c0_126] : memref<16x82xf32, #tpu.memory_space<vmem>>, vector<16x82xf32>
    %213 = tpu.iota {dimensions = array<i32: 1>} : vector<1x82xi32>
    %c64_i32 = arith.constant 64 : i32
    %214 = vector.broadcast %c64_i32 : i32 to vector<1x82xi32>
    %215 = arith.addi %213, %214 : vector<1x82xi32>
    %c9_i32 = arith.constant 9 : i32
    %216 = vector.broadcast %c9_i32 : i32 to vector<1x82xi32>
    %217 = arith.subi %215, %216 : vector<1x82xi32>
    %c8_i32 = arith.constant 8 : i32
    %c0_i32_127 = arith.constant 0 : i32
    %218 = arith.cmpi eq, %c8_i32, %c0_i32_127 : i32
    %c1_i32_128 = arith.constant 1 : i32
    %219 = arith.select %218, %c1_i32_128, %c8_i32 : i32
    %220 = vector.broadcast %219 : i32 to vector<1x82xi32>
    %221 = arith.remsi %217, %220 : vector<1x82xi32>
    %c0_i32_129 = arith.constant 0 : i32
    %222 = vector.broadcast %c0_i32_129 : i32 to vector<1x82xi32>
    %223 = arith.cmpi ne, %221, %222 : vector<1x82xi32>
    %c0_i32_130 = arith.constant 0 : i32
    %224 = vector.broadcast %c0_i32_130 : i32 to vector<1x82xi32>
    %225 = arith.cmpi slt, %221, %224 : vector<1x82xi32>
    %c0_i32_131 = arith.constant 0 : i32
    %226 = arith.cmpi slt, %219, %c0_i32_131 : i32
    %227 = vector.broadcast %226 : i1 to vector<1x82xi1>
    %228 = vector.broadcast %227 : vector<1x82xi1> to vector<1x82xi1>
    %229 = arith.xori %225, %228 : vector<1x82xi1>
    %230 = arith.andi %229, %223 : vector<1x82xi1>
    %231 = vector.broadcast %219 : i32 to vector<1x82xi32>
    %232 = arith.addi %221, %231 : vector<1x82xi32>
    %233 = arith.select %230, %232, %221 : vector<1x82xi1>, vector<1x82xi32>
    %c7_i32 = arith.constant 7 : i32
    %234 = vector.broadcast %c7_i32 : i32 to vector<1x82xi32>
    %235 = arith.cmpi slt, %233, %234 : vector<1x82xi32>
    %cst_132 = arith.constant 0.000000e+00 : f32
    %236 = vector.shape_cast %235 : vector<1x82xi1> to vector<1x82xi1>
    %237 = vector.broadcast %236 : vector<1x82xi1> to vector<16x82xi1>
    %238 = vector.broadcast %cst_132 : f32 to vector<16x82xf32>
    %239 = arith.select %237, %212, %238 : vector<16x82xi1>, vector<16x82xf32>
    %c1_i32_133 = arith.constant 1 : i32
    %240 = vector.broadcast %c1_i32_133 : i32 to vector<1x82xi32>
    %241 = arith.cmpi sge, %233, %240 : vector<1x82xi32>
    %cst_134 = arith.constant 0.000000e+00 : f32
    %242 = vector.shape_cast %241 : vector<1x82xi1> to vector<1x82xi1>
    %243 = vector.broadcast %242 : vector<1x82xi1> to vector<16x82xi1>
    %244 = vector.broadcast %cst_134 : f32 to vector<16x82xf32>
    %245 = arith.select %243, %212, %244 : vector<16x82xi1>, vector<16x82xf32>
    %246 = vector.extract_strided_slice %239 {offsets = [0, 0], sizes = [16, 64], strides = [1, 1]} : vector<16x82xf32> to vector<16x64xf32>
    %c0_135 = arith.constant 0 : index
    %c0_136 = arith.constant 0 : index
    %247 = vector.load %arg27[%c0_135, %c0_136] : memref<288x256xf32, #tpu.memory_space<vmem>>, vector<16x64xf32>
    tpu.vector_store %arg27[%c0_135, %c0_136], %246 {strides = array<i32>} : memref<288x256xf32, #tpu.memory_space<vmem>>, vector<16x64xf32>,
    %248 = vector.extract_strided_slice %212 {offsets = [0, 1], sizes = [16, 64], strides = [1, 1]} : vector<16x82xf32> to vector<16x64xf32>
    %c16_137 = arith.constant 16 : index
    %c0_138 = arith.constant 0 : index
    %249 = vector.load %arg27[%c16_137, %c0_138] : memref<288x256xf32, #tpu.memory_space<vmem>>, vector<16x64xf32>
    tpu.vector_store %arg27[%c16_137, %c0_138], %248 {strides = array<i32>} : memref<288x256xf32, #tpu.memory_space<vmem>>, vector<16x64xf32>,
    %250 = vector.extract_strided_slice %245 {offsets = [0, 2], sizes = [16, 64], strides = [1, 1]} : vector<16x82xf32> to vector<16x64xf32>
    %c32_139 = arith.constant 32 : index
    %c0_140 = arith.constant 0 : index
    %251 = vector.load %arg27[%c32_139, %c0_140] : memref<288x256xf32, #tpu.memory_space<vmem>>, vector<16x64xf32>
    tpu.vector_store %arg27[%c32_139, %c0_140], %250 {strides = array<i32>} : memref<288x256xf32, #tpu.memory_space<vmem>>, vector<16x64xf32>,
    %252 = vector.extract_strided_slice %239 {offsets = [0, 8], sizes = [16, 64], strides = [1, 1]} : vector<16x82xf32> to vector<16x64xf32>
    %c48_141 = arith.constant 48 : index
    %c0_142 = arith.constant 0 : index
    %253 = vector.load %arg27[%c48_141, %c0_142] : memref<288x256xf32, #tpu.memory_space<vmem>>, vector<16x64xf32>
    tpu.vector_store %arg27[%c48_141, %c0_142], %252 {strides = array<i32>} : memref<288x256xf32, #tpu.memory_space<vmem>>, vector<16x64xf32>,
    %254 = vector.extract_strided_slice %212 {offsets = [0, 9], sizes = [16, 64], strides = [1, 1]} : vector<16x82xf32> to vector<16x64xf32>
    %c64_143 = arith.constant 64 : index
    %c0_144 = arith.constant 0 : index
    %255 = vector.load %arg27[%c64_143, %c0_144] : memref<288x256xf32, #tpu.memory_space<vmem>>, vector<16x64xf32>
    tpu.vector_store %arg27[%c64_143, %c0_144], %254 {strides = array<i32>} : memref<288x256xf32, #tpu.memory_space<vmem>>, vector<16x64xf32>,
    %256 = vector.extract_strided_slice %245 {offsets = [0, 10], sizes = [16, 64], strides = [1, 1]} : vector<16x82xf32> to vector<16x64xf32>
    %c80_145 = arith.constant 80 : index
    %c0_146 = arith.constant 0 : index
    %257 = vector.load %arg27[%c80_145, %c0_146] : memref<288x256xf32, #tpu.memory_space<vmem>>, vector<16x64xf32>
    tpu.vector_store %arg27[%c80_145, %c0_146], %256 {strides = array<i32>} : memref<288x256xf32, #tpu.memory_space<vmem>>, vector<16x64xf32>,
    %258 = vector.extract_strided_slice %239 {offsets = [0, 16], sizes = [16, 64], strides = [1, 1]} : vector<16x82xf32> to vector<16x64xf32>
    %c96_147 = arith.constant 96 : index
    %c0_148 = arith.constant 0 : index
    %259 = vector.load %arg27[%c96_147, %c0_148] : memref<288x256xf32, #tpu.memory_space<vmem>>, vector<16x64xf32>
    tpu.vector_store %arg27[%c96_147, %c0_148], %258 {strides = array<i32>} : memref<288x256xf32, #tpu.memory_space<vmem>>, vector<16x64xf32>,
    %260 = vector.extract_strided_slice %212 {offsets = [0, 17], sizes = [16, 64], strides = [1, 1]} : vector<16x82xf32> to vector<16x64xf32>
    %c112_149 = arith.constant 112 : index
    %c0_150 = arith.constant 0 : index
    %261 = vector.load %arg27[%c112_149, %c0_150] : memref<288x256xf32, #tpu.memory_space<vmem>>, vector<16x64xf32>
    tpu.vector_store %arg27[%c112_149, %c0_150], %260 {strides = array<i32>} : memref<288x256xf32, #tpu.memory_space<vmem>>, vector<16x64xf32>,
    %262 = vector.extract_strided_slice %245 {offsets = [0, 18], sizes = [16, 64], strides = [1, 1]} : vector<16x82xf32> to vector<16x64xf32>
    %c128_151 = arith.constant 128 : index
    %c0_152 = arith.constant 0 : index
    %263 = vector.load %arg27[%c128_151, %c0_152] : memref<288x256xf32, #tpu.memory_space<vmem>>, vector<16x64xf32>
    tpu.vector_store %arg27[%c128_151, %c0_152], %262 {strides = array<i32>} : memref<288x256xf32, #tpu.memory_space<vmem>>, vector<16x64xf32>,
    %c0_153 = arith.constant 0 : index
    %c0_154 = arith.constant 0 : index
    %264 = vector.load %arg27[%c0_153, %c0_154] : memref<288x256xf32, #tpu.memory_space<vmem>>, vector<144x64xf32>
    %265 = arith.truncf %264 : vector<144x64xf32> to vector<144x64xbf16>
    %c0_155 = arith.constant 0 : index
    %c0_156 = arith.constant 0 : index
    %266 = vector.load %arg4[%c0_155, %c0_156] : memref<16x144xbf16, #tpu.memory_space<vmem>>, vector<16x144xbf16>
    %cst_157 = arith.constant dense<0.000000e+00> : vector<16x64xf32>
    %267 = tpu.matmul %266, %265, %cst_157 {dimension_numbers = #tpu.dot_dimension_numbers<[1], [0], [0], [1], [0, 0, 1, 1], [], []>} : vector<16x144xbf16>, vector<144x64xbf16>, vector<16x64xf32> -> vector<16x64xf32>
    %cst_158 = arith.constant dense<0.000000e+00> : vector<16xf32>
    %268 = vector.multi_reduction <add>, %267, %cst_158 [1] : vector<16x64xf32> to vector<16xf32>
    %269 = vector.shape_cast %268 : vector<16xf32> to vector<16x1xf32>
    %cst_159 = arith.constant 6.400000e+01 : f32
    %270 = vector.broadcast %cst_159 : f32 to vector<16x1xf32>
    %271 = arith.divf %269, %270 : vector<16x1xf32>
    %272 = vector.broadcast %271 : vector<16x1xf32> to vector<16x64xf32>
    %273 = arith.subf %267, %272 : vector<16x64xf32>
    %274 = arith.mulf %273, %273 : vector<16x64xf32>
    %cst_160 = arith.constant dense<0.000000e+00> : vector<16xf32>
    %275 = vector.multi_reduction <add>, %274, %cst_160 [1] : vector<16x64xf32> to vector<16xf32>
    %276 = vector.shape_cast %275 : vector<16xf32> to vector<16x1xf32>
    %cst_161 = arith.constant 6.400000e+01 : f32
    %277 = vector.broadcast %cst_161 : f32 to vector<16x1xf32>
    %278 = arith.divf %276, %277 : vector<16x1xf32>
    %279 = vector.broadcast %271 : vector<16x1xf32> to vector<16x64xf32>
    %280 = arith.subf %267, %279 : vector<16x64xf32>
    %cst_162 = arith.constant 9.99999974E-6 : f32
    %281 = vector.broadcast %cst_162 : f32 to vector<16x1xf32>
    %282 = arith.addf %278, %281 : vector<16x1xf32>
    %283 = math.rsqrt %282 : vector<16x1xf32>
    %284 = vector.broadcast %283 : vector<16x1xf32> to vector<16x64xf32>
    %285 = arith.mulf %280, %284 : vector<16x64xf32>
    %cst_163 = arith.constant 0.000000e+00 : f32
    %286 = vector.broadcast %cst_163 : f32 to vector<16x64xf32>
    %287 = arith.maximumf %285, %286 : vector<16x64xf32>
    %c0_164 = arith.constant 0 : index
    %c9_165 = arith.constant 9 : index
    %288 = vector.load %arg23[%c0_164, %c9_165] : memref<16x82xf32, #tpu.memory_space<vmem>>, vector<16x64xf32>
    tpu.vector_store %arg23[%c0_164, %c9_165], %287 {strides = array<i32>} : memref<16x82xf32, #tpu.memory_space<vmem>>, vector<16x64xf32>,
    %c0_166 = arith.constant 0 : index
    %c0_167 = arith.constant 0 : index
    %289 = vector.load %arg23[%c0_166, %c0_167] : memref<16x82xf32, #tpu.memory_space<vmem>>, vector<16x82xf32>
    %290 = tpu.iota {dimensions = array<i32: 1>} : vector<1x82xi32>
    %c64_i32_168 = arith.constant 64 : i32
    %291 = vector.broadcast %c64_i32_168 : i32 to vector<1x82xi32>
    %292 = arith.addi %290, %291 : vector<1x82xi32>
    %c9_i32_169 = arith.constant 9 : i32
    %293 = vector.broadcast %c9_i32_169 : i32 to vector<1x82xi32>
    %294 = arith.subi %292, %293 : vector<1x82xi32>
    %c8_i32_170 = arith.constant 8 : i32
    %c0_i32_171 = arith.constant 0 : i32
    %295 = arith.cmpi eq, %c8_i32_170, %c0_i32_171 : i32
    %c1_i32_172 = arith.constant 1 : i32
    %296 = arith.select %295, %c1_i32_172, %c8_i32_170 : i32
    %297 = vector.broadcast %296 : i32 to vector<1x82xi32>
    %298 = arith.remsi %294, %297 : vector<1x82xi32>
    %c0_i32_173 = arith.constant 0 : i32
    %299 = vector.broadcast %c0_i32_173 : i32 to vector<1x82xi32>
    %300 = arith.cmpi ne, %298, %299 : vector<1x82xi32>
    %c0_i32_174 = arith.constant 0 : i32
    %301 = vector.broadcast %c0_i32_174 : i32 to vector<1x82xi32>
    %302 = arith.cmpi slt, %298, %301 : vector<1x82xi32>
    %c0_i32_175 = arith.constant 0 : i32
    %303 = arith.cmpi slt, %296, %c0_i32_175 : i32
    %304 = vector.broadcast %303 : i1 to vector<1x82xi1>
    %305 = vector.broadcast %304 : vector<1x82xi1> to vector<1x82xi1>
    %306 = arith.xori %302, %305 : vector<1x82xi1>
    %307 = arith.andi %306, %300 : vector<1x82xi1>
    %308 = vector.broadcast %296 : i32 to vector<1x82xi32>
    %309 = arith.addi %298, %308 : vector<1x82xi32>
    %310 = arith.select %307, %309, %298 : vector<1x82xi1>, vector<1x82xi32>
    %c7_i32_176 = arith.constant 7 : i32
    %311 = vector.broadcast %c7_i32_176 : i32 to vector<1x82xi32>
    %312 = arith.cmpi slt, %310, %311 : vector<1x82xi32>
    %cst_177 = arith.constant 0.000000e+00 : f32
    %313 = vector.shape_cast %312 : vector<1x82xi1> to vector<1x82xi1>
    %314 = vector.broadcast %313 : vector<1x82xi1> to vector<16x82xi1>
    %315 = vector.broadcast %cst_177 : f32 to vector<16x82xf32>
    %316 = arith.select %314, %289, %315 : vector<16x82xi1>, vector<16x82xf32>
    %c1_i32_178 = arith.constant 1 : i32
    %317 = vector.broadcast %c1_i32_178 : i32 to vector<1x82xi32>
    %318 = arith.cmpi sge, %310, %317 : vector<1x82xi32>
    %cst_179 = arith.constant 0.000000e+00 : f32
    %319 = vector.shape_cast %318 : vector<1x82xi1> to vector<1x82xi1>
    %320 = vector.broadcast %319 : vector<1x82xi1> to vector<16x82xi1>
    %321 = vector.broadcast %cst_179 : f32 to vector<16x82xf32>
    %322 = arith.select %320, %289, %321 : vector<16x82xi1>, vector<16x82xf32>
    %323 = vector.extract_strided_slice %316 {offsets = [0, 0], sizes = [16, 64], strides = [1, 1]} : vector<16x82xf32> to vector<16x64xf32>
    %c0_180 = arith.constant 0 : index
    %c0_181 = arith.constant 0 : index
    %324 = vector.load %arg27[%c0_180, %c0_181] : memref<288x256xf32, #tpu.memory_space<vmem>>, vector<16x64xf32>
    tpu.vector_store %arg27[%c0_180, %c0_181], %323 {strides = array<i32>} : memref<288x256xf32, #tpu.memory_space<vmem>>, vector<16x64xf32>,
    %325 = vector.extract_strided_slice %289 {offsets = [0, 1], sizes = [16, 64], strides = [1, 1]} : vector<16x82xf32> to vector<16x64xf32>
    %c16_182 = arith.constant 16 : index
    %c0_183 = arith.constant 0 : index
    %326 = vector.load %arg27[%c16_182, %c0_183] : memref<288x256xf32, #tpu.memory_space<vmem>>, vector<16x64xf32>
    tpu.vector_store %arg27[%c16_182, %c0_183], %325 {strides = array<i32>} : memref<288x256xf32, #tpu.memory_space<vmem>>, vector<16x64xf32>,
    %327 = vector.extract_strided_slice %322 {offsets = [0, 2], sizes = [16, 64], strides = [1, 1]} : vector<16x82xf32> to vector<16x64xf32>
    %c32_184 = arith.constant 32 : index
    %c0_185 = arith.constant 0 : index
    %328 = vector.load %arg27[%c32_184, %c0_185] : memref<288x256xf32, #tpu.memory_space<vmem>>, vector<16x64xf32>
    tpu.vector_store %arg27[%c32_184, %c0_185], %327 {strides = array<i32>} : memref<288x256xf32, #tpu.memory_space<vmem>>, vector<16x64xf32>,
    %329 = vector.extract_strided_slice %316 {offsets = [0, 8], sizes = [16, 64], strides = [1, 1]} : vector<16x82xf32> to vector<16x64xf32>
    %c48_186 = arith.constant 48 : index
    %c0_187 = arith.constant 0 : index
    %330 = vector.load %arg27[%c48_186, %c0_187] : memref<288x256xf32, #tpu.memory_space<vmem>>, vector<16x64xf32>
    tpu.vector_store %arg27[%c48_186, %c0_187], %329 {strides = array<i32>} : memref<288x256xf32, #tpu.memory_space<vmem>>, vector<16x64xf32>,
    %331 = vector.extract_strided_slice %289 {offsets = [0, 9], sizes = [16, 64], strides = [1, 1]} : vector<16x82xf32> to vector<16x64xf32>
    %c64_188 = arith.constant 64 : index
    %c0_189 = arith.constant 0 : index
    %332 = vector.load %arg27[%c64_188, %c0_189] : memref<288x256xf32, #tpu.memory_space<vmem>>, vector<16x64xf32>
    tpu.vector_store %arg27[%c64_188, %c0_189], %331 {strides = array<i32>} : memref<288x256xf32, #tpu.memory_space<vmem>>, vector<16x64xf32>,
    %333 = vector.extract_strided_slice %322 {offsets = [0, 10], sizes = [16, 64], strides = [1, 1]} : vector<16x82xf32> to vector<16x64xf32>
    %c80_190 = arith.constant 80 : index
    %c0_191 = arith.constant 0 : index
    %334 = vector.load %arg27[%c80_190, %c0_191] : memref<288x256xf32, #tpu.memory_space<vmem>>, vector<16x64xf32>
    tpu.vector_store %arg27[%c80_190, %c0_191], %333 {strides = array<i32>} : memref<288x256xf32, #tpu.memory_space<vmem>>, vector<16x64xf32>,
    %335 = vector.extract_strided_slice %316 {offsets = [0, 16], sizes = [16, 64], strides = [1, 1]} : vector<16x82xf32> to vector<16x64xf32>
    %c96_192 = arith.constant 96 : index
    %c0_193 = arith.constant 0 : index
    %336 = vector.load %arg27[%c96_192, %c0_193] : memref<288x256xf32, #tpu.memory_space<vmem>>, vector<16x64xf32>
    tpu.vector_store %arg27[%c96_192, %c0_193], %335 {strides = array<i32>} : memref<288x256xf32, #tpu.memory_space<vmem>>, vector<16x64xf32>,
    %337 = vector.extract_strided_slice %289 {offsets = [0, 17], sizes = [16, 64], strides = [1, 1]} : vector<16x82xf32> to vector<16x64xf32>
    %c112_194 = arith.constant 112 : index
    %c0_195 = arith.constant 0 : index
    %338 = vector.load %arg27[%c112_194, %c0_195] : memref<288x256xf32, #tpu.memory_space<vmem>>, vector<16x64xf32>
    tpu.vector_store %arg27[%c112_194, %c0_195], %337 {strides = array<i32>} : memref<288x256xf32, #tpu.memory_space<vmem>>, vector<16x64xf32>,
    %339 = vector.extract_strided_slice %322 {offsets = [0, 18], sizes = [16, 64], strides = [1, 1]} : vector<16x82xf32> to vector<16x64xf32>
    %c128_196 = arith.constant 128 : index
    %c0_197 = arith.constant 0 : index
    %340 = vector.load %arg27[%c128_196, %c0_197] : memref<288x256xf32, #tpu.memory_space<vmem>>, vector<16x64xf32>
    tpu.vector_store %arg27[%c128_196, %c0_197], %339 {strides = array<i32>} : memref<288x256xf32, #tpu.memory_space<vmem>>, vector<16x64xf32>,
    %c0_198 = arith.constant 0 : index
    %c0_199 = arith.constant 0 : index
    %341 = vector.load %arg27[%c0_198, %c0_199] : memref<288x256xf32, #tpu.memory_space<vmem>>, vector<144x64xf32>
    %342 = arith.truncf %341 : vector<144x64xf32> to vector<144x64xbf16>
    %c0_200 = arith.constant 0 : index
    %c0_201 = arith.constant 0 : index
    %343 = vector.load %arg5[%c0_200, %c0_201] : memref<32x144xbf16, #tpu.memory_space<vmem>>, vector<32x144xbf16>
    %cst_202 = arith.constant dense<0.000000e+00> : vector<32x64xf32>
    %344 = tpu.matmul %343, %342, %cst_202 {dimension_numbers = #tpu.dot_dimension_numbers<[1], [0], [0], [1], [0, 0, 1, 1], [], []>} : vector<32x144xbf16>, vector<144x64xbf16>, vector<32x64xf32> -> vector<32x64xf32>
    %c0_203 = arith.constant 0 : index
    %c0_204 = arith.constant 0 : index
    %345 = vector.load %arg17[%c0_203, %c0_204] : memref<64x16xf32, #tpu.memory_space<vmem>>, vector<64x16xf32>
    %cst_205 = arith.constant dense<0.000000e+00> : vector<32x16xf32>
    %346 = tpu.matmul %344, %345, %cst_205 {dimension_numbers = #tpu.dot_dimension_numbers<[1], [0], [0], [1], [0, 0, 1, 1], [], []>} : vector<32x64xf32>, vector<64x16xf32>, vector<32x16xf32> -> vector<32x16xf32>
    %cst_206 = arith.constant dense<0.000000e+00> : vector<32xf32>
    %347 = vector.multi_reduction <add>, %346, %cst_206 [1] : vector<32x16xf32> to vector<32xf32>
    %348 = vector.shape_cast %347 : vector<32xf32> to vector<32x1xf32>
    %cst_207 = arith.constant 1.600000e+01 : f32
    %349 = vector.broadcast %cst_207 : f32 to vector<32x1xf32>
    %350 = arith.divf %348, %349 : vector<32x1xf32>
    %351 = vector.broadcast %350 : vector<32x1xf32> to vector<32x16xf32>
    %352 = arith.subf %346, %351 : vector<32x16xf32>
    %353 = arith.mulf %352, %352 : vector<32x16xf32>
    %cst_208 = arith.constant dense<0.000000e+00> : vector<32xf32>
    %354 = vector.multi_reduction <add>, %353, %cst_208 [1] : vector<32x16xf32> to vector<32xf32>
    %355 = vector.shape_cast %354 : vector<32xf32> to vector<32x1xf32>
    %cst_209 = arith.constant 1.600000e+01 : f32
    %356 = vector.broadcast %cst_209 : f32 to vector<32x1xf32>
    %357 = arith.divf %355, %356 : vector<32x1xf32>
    %358 = vector.broadcast %350 : vector<32x1xf32> to vector<32x16xf32>
    %359 = arith.subf %346, %358 : vector<32x16xf32>
    %cst_210 = arith.constant 9.99999974E-6 : f32
    %360 = vector.broadcast %cst_210 : f32 to vector<32x1xf32>
    %361 = arith.addf %357, %360 : vector<32x1xf32>
    %362 = math.rsqrt %361 : vector<32x1xf32>
    %363 = vector.broadcast %362 : vector<32x1xf32> to vector<32x16xf32>
    %364 = arith.mulf %359, %363 : vector<32x16xf32>
    %cst_211 = arith.constant 0.000000e+00 : f32
    %365 = vector.broadcast %cst_211 : f32 to vector<32x16xf32>
    %366 = arith.maximumf %364, %365 : vector<32x16xf32>
    %c0_212 = arith.constant 0 : index
    %c5 = arith.constant 5 : index
    %367 = vector.load %arg24[%c0_212, %c5] : memref<32x26xf32, #tpu.memory_space<vmem>>, vector<32x16xf32>
    tpu.vector_store %arg24[%c0_212, %c5], %366 {strides = array<i32>} : memref<32x26xf32, #tpu.memory_space<vmem>>, vector<32x16xf32>,
    %c0_213 = arith.constant 0 : index
    %c0_214 = arith.constant 0 : index
    %368 = vector.load %arg24[%c0_213, %c0_214] : memref<32x26xf32, #tpu.memory_space<vmem>>, vector<32x26xf32>
    %369 = tpu.iota {dimensions = array<i32: 1>} : vector<1x26xi32>
    %c32_i32 = arith.constant 32 : i32
    %370 = vector.broadcast %c32_i32 : i32 to vector<1x26xi32>
    %371 = arith.addi %369, %370 : vector<1x26xi32>
    %c5_i32 = arith.constant 5 : i32
    %372 = vector.broadcast %c5_i32 : i32 to vector<1x26xi32>
    %373 = arith.subi %371, %372 : vector<1x26xi32>
    %c4_i32 = arith.constant 4 : i32
    %c0_i32_215 = arith.constant 0 : i32
    %374 = arith.cmpi eq, %c4_i32, %c0_i32_215 : i32
    %c1_i32_216 = arith.constant 1 : i32
    %375 = arith.select %374, %c1_i32_216, %c4_i32 : i32
    %376 = vector.broadcast %375 : i32 to vector<1x26xi32>
    %377 = arith.remsi %373, %376 : vector<1x26xi32>
    %c0_i32_217 = arith.constant 0 : i32
    %378 = vector.broadcast %c0_i32_217 : i32 to vector<1x26xi32>
    %379 = arith.cmpi ne, %377, %378 : vector<1x26xi32>
    %c0_i32_218 = arith.constant 0 : i32
    %380 = vector.broadcast %c0_i32_218 : i32 to vector<1x26xi32>
    %381 = arith.cmpi slt, %377, %380 : vector<1x26xi32>
    %c0_i32_219 = arith.constant 0 : i32
    %382 = arith.cmpi slt, %375, %c0_i32_219 : i32
    %383 = vector.broadcast %382 : i1 to vector<1x26xi1>
    %384 = vector.broadcast %383 : vector<1x26xi1> to vector<1x26xi1>
    %385 = arith.xori %381, %384 : vector<1x26xi1>
    %386 = arith.andi %385, %379 : vector<1x26xi1>
    %387 = vector.broadcast %375 : i32 to vector<1x26xi32>
    %388 = arith.addi %377, %387 : vector<1x26xi32>
    %389 = arith.select %386, %388, %377 : vector<1x26xi1>, vector<1x26xi32>
    %c3_i32 = arith.constant 3 : i32
    %390 = vector.broadcast %c3_i32 : i32 to vector<1x26xi32>
    %391 = arith.cmpi slt, %389, %390 : vector<1x26xi32>
    %cst_220 = arith.constant 0.000000e+00 : f32
    %392 = vector.shape_cast %391 : vector<1x26xi1> to vector<1x26xi1>
    %393 = vector.broadcast %392 : vector<1x26xi1> to vector<32x26xi1>
    %394 = vector.broadcast %cst_220 : f32 to vector<32x26xf32>
    %395 = arith.select %393, %368, %394 : vector<32x26xi1>, vector<32x26xf32>
    %c1_i32_221 = arith.constant 1 : i32
    %396 = vector.broadcast %c1_i32_221 : i32 to vector<1x26xi32>
    %397 = arith.cmpi sge, %389, %396 : vector<1x26xi32>
    %cst_222 = arith.constant 0.000000e+00 : f32
    %398 = vector.shape_cast %397 : vector<1x26xi1> to vector<1x26xi1>
    %399 = vector.broadcast %398 : vector<1x26xi1> to vector<32x26xi1>
    %400 = vector.broadcast %cst_222 : f32 to vector<32x26xf32>
    %401 = arith.select %399, %368, %400 : vector<32x26xi1>, vector<32x26xf32>
    %402 = vector.extract_strided_slice %395 {offsets = [0, 0], sizes = [32, 16], strides = [1, 1]} : vector<32x26xf32> to vector<32x16xf32>
    %c0_223 = arith.constant 0 : index
    %c0_224 = arith.constant 0 : index
    %403 = vector.load %arg27[%c0_223, %c0_224] : memref<288x256xf32, #tpu.memory_space<vmem>>, vector<32x16xf32>
    tpu.vector_store %arg27[%c0_223, %c0_224], %402 {strides = array<i32>} : memref<288x256xf32, #tpu.memory_space<vmem>>, vector<32x16xf32>,
    %404 = vector.extract_strided_slice %368 {offsets = [0, 1], sizes = [32, 16], strides = [1, 1]} : vector<32x26xf32> to vector<32x16xf32>
    %c32_225 = arith.constant 32 : index
    %c0_226 = arith.constant 0 : index
    %405 = vector.load %arg27[%c32_225, %c0_226] : memref<288x256xf32, #tpu.memory_space<vmem>>, vector<32x16xf32>
    tpu.vector_store %arg27[%c32_225, %c0_226], %404 {strides = array<i32>} : memref<288x256xf32, #tpu.memory_space<vmem>>, vector<32x16xf32>,
    %406 = vector.extract_strided_slice %401 {offsets = [0, 2], sizes = [32, 16], strides = [1, 1]} : vector<32x26xf32> to vector<32x16xf32>
    %c64_227 = arith.constant 64 : index
    %c0_228 = arith.constant 0 : index
    %407 = vector.load %arg27[%c64_227, %c0_228] : memref<288x256xf32, #tpu.memory_space<vmem>>, vector<32x16xf32>
    tpu.vector_store %arg27[%c64_227, %c0_228], %406 {strides = array<i32>} : memref<288x256xf32, #tpu.memory_space<vmem>>, vector<32x16xf32>,
    %408 = vector.extract_strided_slice %395 {offsets = [0, 4], sizes = [32, 16], strides = [1, 1]} : vector<32x26xf32> to vector<32x16xf32>
    %c96_229 = arith.constant 96 : index
    %c0_230 = arith.constant 0 : index
    %409 = vector.load %arg27[%c96_229, %c0_230] : memref<288x256xf32, #tpu.memory_space<vmem>>, vector<32x16xf32>
    tpu.vector_store %arg27[%c96_229, %c0_230], %408 {strides = array<i32>} : memref<288x256xf32, #tpu.memory_space<vmem>>, vector<32x16xf32>,
    %410 = vector.extract_strided_slice %368 {offsets = [0, 5], sizes = [32, 16], strides = [1, 1]} : vector<32x26xf32> to vector<32x16xf32>
    %c128_231 = arith.constant 128 : index
    %c0_232 = arith.constant 0 : index
    %411 = vector.load %arg27[%c128_231, %c0_232] : memref<288x256xf32, #tpu.memory_space<vmem>>, vector<32x16xf32>
    tpu.vector_store %arg27[%c128_231, %c0_232], %410 {strides = array<i32>} : memref<288x256xf32, #tpu.memory_space<vmem>>, vector<32x16xf32>,
    %412 = vector.extract_strided_slice %401 {offsets = [0, 6], sizes = [32, 16], strides = [1, 1]} : vector<32x26xf32> to vector<32x16xf32>
    %c160_233 = arith.constant 160 : index
    %c0_234 = arith.constant 0 : index
    %413 = vector.load %arg27[%c160_233, %c0_234] : memref<288x256xf32, #tpu.memory_space<vmem>>, vector<32x16xf32>
    tpu.vector_store %arg27[%c160_233, %c0_234], %412 {strides = array<i32>} : memref<288x256xf32, #tpu.memory_space<vmem>>, vector<32x16xf32>,
    %414 = vector.extract_strided_slice %395 {offsets = [0, 8], sizes = [32, 16], strides = [1, 1]} : vector<32x26xf32> to vector<32x16xf32>
    %c192_235 = arith.constant 192 : index
    %c0_236 = arith.constant 0 : index
    %415 = vector.load %arg27[%c192_235, %c0_236] : memref<288x256xf32, #tpu.memory_space<vmem>>, vector<32x16xf32>
    tpu.vector_store %arg27[%c192_235, %c0_236], %414 {strides = array<i32>} : memref<288x256xf32, #tpu.memory_space<vmem>>, vector<32x16xf32>,
    %416 = vector.extract_strided_slice %368 {offsets = [0, 9], sizes = [32, 16], strides = [1, 1]} : vector<32x26xf32> to vector<32x16xf32>
    %c224 = arith.constant 224 : index
    %c0_237 = arith.constant 0 : index
    %417 = vector.load %arg27[%c224, %c0_237] : memref<288x256xf32, #tpu.memory_space<vmem>>, vector<32x16xf32>
    tpu.vector_store %arg27[%c224, %c0_237], %416 {strides = array<i32>} : memref<288x256xf32, #tpu.memory_space<vmem>>, vector<32x16xf32>,
    %418 = vector.extract_strided_slice %401 {offsets = [0, 10], sizes = [32, 16], strides = [1, 1]} : vector<32x26xf32> to vector<32x16xf32>
    %c256 = arith.constant 256 : index
    %c0_238 = arith.constant 0 : index
    %419 = vector.load %arg27[%c256, %c0_238] : memref<288x256xf32, #tpu.memory_space<vmem>>, vector<32x16xf32>
    tpu.vector_store %arg27[%c256, %c0_238], %418 {strides = array<i32>} : memref<288x256xf32, #tpu.memory_space<vmem>>, vector<32x16xf32>,
    %c0_239 = arith.constant 0 : index
    %c0_240 = arith.constant 0 : index
    %420 = vector.load %arg27[%c0_239, %c0_240] : memref<288x256xf32, #tpu.memory_space<vmem>>, vector<288x16xf32>
    %421 = arith.truncf %420 : vector<288x16xf32> to vector<288x16xbf16>
    %c0_241 = arith.constant 0 : index
    %c0_242 = arith.constant 0 : index
    %422 = vector.load %arg6[%c0_241, %c0_242] : memref<32x288xbf16, #tpu.memory_space<vmem>>, vector<32x288xbf16>
    %cst_243 = arith.constant dense<0.000000e+00> : vector<32x16xf32>
    %423 = tpu.matmul %422, %421, %cst_243 {dimension_numbers = #tpu.dot_dimension_numbers<[1], [0], [0], [1], [0, 0, 1, 1], [], []>} : vector<32x288xbf16>, vector<288x16xbf16>, vector<32x16xf32> -> vector<32x16xf32>
    %cst_244 = arith.constant dense<0.000000e+00> : vector<32xf32>
    %424 = vector.multi_reduction <add>, %423, %cst_244 [1] : vector<32x16xf32> to vector<32xf32>
    %425 = vector.shape_cast %424 : vector<32xf32> to vector<32x1xf32>
    %cst_245 = arith.constant 1.600000e+01 : f32
    %426 = vector.broadcast %cst_245 : f32 to vector<32x1xf32>
    %427 = arith.divf %425, %426 : vector<32x1xf32>
    %428 = vector.broadcast %427 : vector<32x1xf32> to vector<32x16xf32>
    %429 = arith.subf %423, %428 : vector<32x16xf32>
    %430 = arith.mulf %429, %429 : vector<32x16xf32>
    %cst_246 = arith.constant dense<0.000000e+00> : vector<32xf32>
    %431 = vector.multi_reduction <add>, %430, %cst_246 [1] : vector<32x16xf32> to vector<32xf32>
    %432 = vector.shape_cast %431 : vector<32xf32> to vector<32x1xf32>
    %cst_247 = arith.constant 1.600000e+01 : f32
    %433 = vector.broadcast %cst_247 : f32 to vector<32x1xf32>
    %434 = arith.divf %432, %433 : vector<32x1xf32>
    %435 = vector.broadcast %427 : vector<32x1xf32> to vector<32x16xf32>
    %436 = arith.subf %423, %435 : vector<32x16xf32>
    %cst_248 = arith.constant 9.99999974E-6 : f32
    %437 = vector.broadcast %cst_248 : f32 to vector<32x1xf32>
    %438 = arith.addf %434, %437 : vector<32x1xf32>
    %439 = math.rsqrt %438 : vector<32x1xf32>
    %440 = vector.broadcast %439 : vector<32x1xf32> to vector<32x16xf32>
    %441 = arith.mulf %436, %440 : vector<32x16xf32>
    %cst_249 = arith.constant 0.000000e+00 : f32
    %442 = vector.broadcast %cst_249 : f32 to vector<32x16xf32>
    %443 = arith.maximumf %441, %442 : vector<32x16xf32>
    %c0_250 = arith.constant 0 : index
    %c5_251 = arith.constant 5 : index
    %444 = vector.load %arg24[%c0_250, %c5_251] : memref<32x26xf32, #tpu.memory_space<vmem>>, vector<32x16xf32>
    tpu.vector_store %arg24[%c0_250, %c5_251], %443 {strides = array<i32>} : memref<32x26xf32, #tpu.memory_space<vmem>>, vector<32x16xf32>,
    %c0_252 = arith.constant 0 : index
    %c0_253 = arith.constant 0 : index
    %445 = vector.load %arg24[%c0_252, %c0_253] : memref<32x26xf32, #tpu.memory_space<vmem>>, vector<32x26xf32>
    %446 = tpu.iota {dimensions = array<i32: 1>} : vector<1x26xi32>
    %c32_i32_254 = arith.constant 32 : i32
    %447 = vector.broadcast %c32_i32_254 : i32 to vector<1x26xi32>
    %448 = arith.addi %446, %447 : vector<1x26xi32>
    %c5_i32_255 = arith.constant 5 : i32
    %449 = vector.broadcast %c5_i32_255 : i32 to vector<1x26xi32>
    %450 = arith.subi %448, %449 : vector<1x26xi32>
    %c4_i32_256 = arith.constant 4 : i32
    %c0_i32_257 = arith.constant 0 : i32
    %451 = arith.cmpi eq, %c4_i32_256, %c0_i32_257 : i32
    %c1_i32_258 = arith.constant 1 : i32
    %452 = arith.select %451, %c1_i32_258, %c4_i32_256 : i32
    %453 = vector.broadcast %452 : i32 to vector<1x26xi32>
    %454 = arith.remsi %450, %453 : vector<1x26xi32>
    %c0_i32_259 = arith.constant 0 : i32
    %455 = vector.broadcast %c0_i32_259 : i32 to vector<1x26xi32>
    %456 = arith.cmpi ne, %454, %455 : vector<1x26xi32>
    %c0_i32_260 = arith.constant 0 : i32
    %457 = vector.broadcast %c0_i32_260 : i32 to vector<1x26xi32>
    %458 = arith.cmpi slt, %454, %457 : vector<1x26xi32>
    %c0_i32_261 = arith.constant 0 : i32
    %459 = arith.cmpi slt, %452, %c0_i32_261 : i32
    %460 = vector.broadcast %459 : i1 to vector<1x26xi1>
    %461 = vector.broadcast %460 : vector<1x26xi1> to vector<1x26xi1>
    %462 = arith.xori %458, %461 : vector<1x26xi1>
    %463 = arith.andi %462, %456 : vector<1x26xi1>
    %464 = vector.broadcast %452 : i32 to vector<1x26xi32>
    %465 = arith.addi %454, %464 : vector<1x26xi32>
    %466 = arith.select %463, %465, %454 : vector<1x26xi1>, vector<1x26xi32>
    %c3_i32_262 = arith.constant 3 : i32
    %467 = vector.broadcast %c3_i32_262 : i32 to vector<1x26xi32>
    %468 = arith.cmpi slt, %466, %467 : vector<1x26xi32>
    %cst_263 = arith.constant 0.000000e+00 : f32
    %469 = vector.shape_cast %468 : vector<1x26xi1> to vector<1x26xi1>
    %470 = vector.broadcast %469 : vector<1x26xi1> to vector<32x26xi1>
    %471 = vector.broadcast %cst_263 : f32 to vector<32x26xf32>
    %472 = arith.select %470, %445, %471 : vector<32x26xi1>, vector<32x26xf32>
    %c1_i32_264 = arith.constant 1 : i32
    %473 = vector.broadcast %c1_i32_264 : i32 to vector<1x26xi32>
    %474 = arith.cmpi sge, %466, %473 : vector<1x26xi32>
    %cst_265 = arith.constant 0.000000e+00 : f32
    %475 = vector.shape_cast %474 : vector<1x26xi1> to vector<1x26xi1>
    %476 = vector.broadcast %475 : vector<1x26xi1> to vector<32x26xi1>
    %477 = vector.broadcast %cst_265 : f32 to vector<32x26xf32>
    %478 = arith.select %476, %445, %477 : vector<32x26xi1>, vector<32x26xf32>
    %479 = vector.extract_strided_slice %472 {offsets = [0, 0], sizes = [32, 16], strides = [1, 1]} : vector<32x26xf32> to vector<32x16xf32>
    %c0_266 = arith.constant 0 : index
    %c0_267 = arith.constant 0 : index
    %480 = vector.load %arg27[%c0_266, %c0_267] : memref<288x256xf32, #tpu.memory_space<vmem>>, vector<32x16xf32>
    tpu.vector_store %arg27[%c0_266, %c0_267], %479 {strides = array<i32>} : memref<288x256xf32, #tpu.memory_space<vmem>>, vector<32x16xf32>,
    %481 = vector.extract_strided_slice %445 {offsets = [0, 1], sizes = [32, 16], strides = [1, 1]} : vector<32x26xf32> to vector<32x16xf32>
    %c32_268 = arith.constant 32 : index
    %c0_269 = arith.constant 0 : index
    %482 = vector.load %arg27[%c32_268, %c0_269] : memref<288x256xf32, #tpu.memory_space<vmem>>, vector<32x16xf32>
    tpu.vector_store %arg27[%c32_268, %c0_269], %481 {strides = array<i32>} : memref<288x256xf32, #tpu.memory_space<vmem>>, vector<32x16xf32>,
    %483 = vector.extract_strided_slice %478 {offsets = [0, 2], sizes = [32, 16], strides = [1, 1]} : vector<32x26xf32> to vector<32x16xf32>
    %c64_270 = arith.constant 64 : index
    %c0_271 = arith.constant 0 : index
    %484 = vector.load %arg27[%c64_270, %c0_271] : memref<288x256xf32, #tpu.memory_space<vmem>>, vector<32x16xf32>
    tpu.vector_store %arg27[%c64_270, %c0_271], %483 {strides = array<i32>} : memref<288x256xf32, #tpu.memory_space<vmem>>, vector<32x16xf32>,
    %485 = vector.extract_strided_slice %472 {offsets = [0, 4], sizes = [32, 16], strides = [1, 1]} : vector<32x26xf32> to vector<32x16xf32>
    %c96_272 = arith.constant 96 : index
    %c0_273 = arith.constant 0 : index
    %486 = vector.load %arg27[%c96_272, %c0_273] : memref<288x256xf32, #tpu.memory_space<vmem>>, vector<32x16xf32>
    tpu.vector_store %arg27[%c96_272, %c0_273], %485 {strides = array<i32>} : memref<288x256xf32, #tpu.memory_space<vmem>>, vector<32x16xf32>,
    %487 = vector.extract_strided_slice %445 {offsets = [0, 5], sizes = [32, 16], strides = [1, 1]} : vector<32x26xf32> to vector<32x16xf32>
    %c128_274 = arith.constant 128 : index
    %c0_275 = arith.constant 0 : index
    %488 = vector.load %arg27[%c128_274, %c0_275] : memref<288x256xf32, #tpu.memory_space<vmem>>, vector<32x16xf32>
    tpu.vector_store %arg27[%c128_274, %c0_275], %487 {strides = array<i32>} : memref<288x256xf32, #tpu.memory_space<vmem>>, vector<32x16xf32>,
    %489 = vector.extract_strided_slice %478 {offsets = [0, 6], sizes = [32, 16], strides = [1, 1]} : vector<32x26xf32> to vector<32x16xf32>
    %c160_276 = arith.constant 160 : index
    %c0_277 = arith.constant 0 : index
    %490 = vector.load %arg27[%c160_276, %c0_277] : memref<288x256xf32, #tpu.memory_space<vmem>>, vector<32x16xf32>
    tpu.vector_store %arg27[%c160_276, %c0_277], %489 {strides = array<i32>} : memref<288x256xf32, #tpu.memory_space<vmem>>, vector<32x16xf32>,
    %491 = vector.extract_strided_slice %472 {offsets = [0, 8], sizes = [32, 16], strides = [1, 1]} : vector<32x26xf32> to vector<32x16xf32>
    %c192_278 = arith.constant 192 : index
    %c0_279 = arith.constant 0 : index
    %492 = vector.load %arg27[%c192_278, %c0_279] : memref<288x256xf32, #tpu.memory_space<vmem>>, vector<32x16xf32>
    tpu.vector_store %arg27[%c192_278, %c0_279], %491 {strides = array<i32>} : memref<288x256xf32, #tpu.memory_space<vmem>>, vector<32x16xf32>,
    %493 = vector.extract_strided_slice %445 {offsets = [0, 9], sizes = [32, 16], strides = [1, 1]} : vector<32x26xf32> to vector<32x16xf32>
    %c224_280 = arith.constant 224 : index
    %c0_281 = arith.constant 0 : index
    %494 = vector.load %arg27[%c224_280, %c0_281] : memref<288x256xf32, #tpu.memory_space<vmem>>, vector<32x16xf32>
    tpu.vector_store %arg27[%c224_280, %c0_281], %493 {strides = array<i32>} : memref<288x256xf32, #tpu.memory_space<vmem>>, vector<32x16xf32>,
    %495 = vector.extract_strided_slice %478 {offsets = [0, 10], sizes = [32, 16], strides = [1, 1]} : vector<32x26xf32> to vector<32x16xf32>
    %c256_282 = arith.constant 256 : index
    %c0_283 = arith.constant 0 : index
    %496 = vector.load %arg27[%c256_282, %c0_283] : memref<288x256xf32, #tpu.memory_space<vmem>>, vector<32x16xf32>
    tpu.vector_store %arg27[%c256_282, %c0_283], %495 {strides = array<i32>} : memref<288x256xf32, #tpu.memory_space<vmem>>, vector<32x16xf32>,
    %c0_284 = arith.constant 0 : index
    %c0_285 = arith.constant 0 : index
    %497 = vector.load %arg27[%c0_284, %c0_285] : memref<288x256xf32, #tpu.memory_space<vmem>>, vector<288x16xf32>
    %498 = arith.truncf %497 : vector<288x16xf32> to vector<288x16xbf16>
    %c0_286 = arith.constant 0 : index
    %c0_287 = arith.constant 0 : index
    %499 = vector.load %arg7[%c0_286, %c0_287] : memref<32x288xbf16, #tpu.memory_space<vmem>>, vector<32x288xbf16>
    %cst_288 = arith.constant dense<0.000000e+00> : vector<32x16xf32>
    %500 = tpu.matmul %499, %498, %cst_288 {dimension_numbers = #tpu.dot_dimension_numbers<[1], [0], [0], [1], [0, 0, 1, 1], [], []>} : vector<32x288xbf16>, vector<288x16xbf16>, vector<32x16xf32> -> vector<32x16xf32>
    %cst_289 = arith.constant dense<0.000000e+00> : vector<32xf32>
    %501 = vector.multi_reduction <add>, %500, %cst_289 [1] : vector<32x16xf32> to vector<32xf32>
    %502 = vector.shape_cast %501 : vector<32xf32> to vector<32x1xf32>
    %cst_290 = arith.constant 1.600000e+01 : f32
    %503 = vector.broadcast %cst_290 : f32 to vector<32x1xf32>
    %504 = arith.divf %502, %503 : vector<32x1xf32>
    %505 = vector.broadcast %504 : vector<32x1xf32> to vector<32x16xf32>
    %506 = arith.subf %500, %505 : vector<32x16xf32>
    %507 = arith.mulf %506, %506 : vector<32x16xf32>
    %cst_291 = arith.constant dense<0.000000e+00> : vector<32xf32>
    %508 = vector.multi_reduction <add>, %507, %cst_291 [1] : vector<32x16xf32> to vector<32xf32>
    %509 = vector.shape_cast %508 : vector<32xf32> to vector<32x1xf32>
    %cst_292 = arith.constant 1.600000e+01 : f32
    %510 = vector.broadcast %cst_292 : f32 to vector<32x1xf32>
    %511 = arith.divf %509, %510 : vector<32x1xf32>
    %512 = vector.broadcast %504 : vector<32x1xf32> to vector<32x16xf32>
    %513 = arith.subf %500, %512 : vector<32x16xf32>
    %cst_293 = arith.constant 9.99999974E-6 : f32
    %514 = vector.broadcast %cst_293 : f32 to vector<32x1xf32>
    %515 = arith.addf %511, %514 : vector<32x1xf32>
    %516 = math.rsqrt %515 : vector<32x1xf32>
    %517 = vector.broadcast %516 : vector<32x1xf32> to vector<32x16xf32>
    %518 = arith.mulf %513, %517 : vector<32x16xf32>
    %519 = arith.addf %366, %518 : vector<32x16xf32>
    %c0_294 = arith.constant 0 : index
    %c5_295 = arith.constant 5 : index
    %520 = vector.load %arg24[%c0_294, %c5_295] : memref<32x26xf32, #tpu.memory_space<vmem>>, vector<32x16xf32>
    tpu.vector_store %arg24[%c0_294, %c5_295], %519 {strides = array<i32>} : memref<32x26xf32, #tpu.memory_space<vmem>>, vector<32x16xf32>,
    %c0_296 = arith.constant 0 : index
    %c0_297 = arith.constant 0 : index
    %521 = vector.load %arg24[%c0_296, %c0_297] : memref<32x26xf32, #tpu.memory_space<vmem>>, vector<32x26xf32>
    %522 = tpu.iota {dimensions = array<i32: 1>} : vector<1x26xi32>
    %c32_i32_298 = arith.constant 32 : i32
    %523 = vector.broadcast %c32_i32_298 : i32 to vector<1x26xi32>
    %524 = arith.addi %522, %523 : vector<1x26xi32>
    %c5_i32_299 = arith.constant 5 : i32
    %525 = vector.broadcast %c5_i32_299 : i32 to vector<1x26xi32>
    %526 = arith.subi %524, %525 : vector<1x26xi32>
    %c4_i32_300 = arith.constant 4 : i32
    %c0_i32_301 = arith.constant 0 : i32
    %527 = arith.cmpi eq, %c4_i32_300, %c0_i32_301 : i32
    %c1_i32_302 = arith.constant 1 : i32
    %528 = arith.select %527, %c1_i32_302, %c4_i32_300 : i32
    %529 = vector.broadcast %528 : i32 to vector<1x26xi32>
    %530 = arith.remsi %526, %529 : vector<1x26xi32>
    %c0_i32_303 = arith.constant 0 : i32
    %531 = vector.broadcast %c0_i32_303 : i32 to vector<1x26xi32>
    %532 = arith.cmpi ne, %530, %531 : vector<1x26xi32>
    %c0_i32_304 = arith.constant 0 : i32
    %533 = vector.broadcast %c0_i32_304 : i32 to vector<1x26xi32>
    %534 = arith.cmpi slt, %530, %533 : vector<1x26xi32>
    %c0_i32_305 = arith.constant 0 : i32
    %535 = arith.cmpi slt, %528, %c0_i32_305 : i32
    %536 = vector.broadcast %535 : i1 to vector<1x26xi1>
    %537 = vector.broadcast %536 : vector<1x26xi1> to vector<1x26xi1>
    %538 = arith.xori %534, %537 : vector<1x26xi1>
    %539 = arith.andi %538, %532 : vector<1x26xi1>
    %540 = vector.broadcast %528 : i32 to vector<1x26xi32>
    %541 = arith.addi %530, %540 : vector<1x26xi32>
    %542 = arith.select %539, %541, %530 : vector<1x26xi1>, vector<1x26xi32>
    %c3_i32_306 = arith.constant 3 : i32
    %543 = vector.broadcast %c3_i32_306 : i32 to vector<1x26xi32>
    %544 = arith.cmpi slt, %542, %543 : vector<1x26xi32>
    %cst_307 = arith.constant 0.000000e+00 : f32
    %545 = vector.shape_cast %544 : vector<1x26xi1> to vector<1x26xi1>
    %546 = vector.broadcast %545 : vector<1x26xi1> to vector<32x26xi1>
    %547 = vector.broadcast %cst_307 : f32 to vector<32x26xf32>
    %548 = arith.select %546, %521, %547 : vector<32x26xi1>, vector<32x26xf32>
    %c1_i32_308 = arith.constant 1 : i32
    %549 = vector.broadcast %c1_i32_308 : i32 to vector<1x26xi32>
    %550 = arith.cmpi sge, %542, %549 : vector<1x26xi32>
    %cst_309 = arith.constant 0.000000e+00 : f32
    %551 = vector.shape_cast %550 : vector<1x26xi1> to vector<1x26xi1>
    %552 = vector.broadcast %551 : vector<1x26xi1> to vector<32x26xi1>
    %553 = vector.broadcast %cst_309 : f32 to vector<32x26xf32>
    %554 = arith.select %552, %521, %553 : vector<32x26xi1>, vector<32x26xf32>
    %555 = vector.extract_strided_slice %548 {offsets = [0, 0], sizes = [32, 16], strides = [1, 1]} : vector<32x26xf32> to vector<32x16xf32>
    %c0_310 = arith.constant 0 : index
    %c0_311 = arith.constant 0 : index
    %556 = vector.load %arg27[%c0_310, %c0_311] : memref<288x256xf32, #tpu.memory_space<vmem>>, vector<32x16xf32>
    tpu.vector_store %arg27[%c0_310, %c0_311], %555 {strides = array<i32>} : memref<288x256xf32, #tpu.memory_space<vmem>>, vector<32x16xf32>,
    %557 = vector.extract_strided_slice %521 {offsets = [0, 1], sizes = [32, 16], strides = [1, 1]} : vector<32x26xf32> to vector<32x16xf32>
    %c32_312 = arith.constant 32 : index
    %c0_313 = arith.constant 0 : index
    %558 = vector.load %arg27[%c32_312, %c0_313] : memref<288x256xf32, #tpu.memory_space<vmem>>, vector<32x16xf32>
    tpu.vector_store %arg27[%c32_312, %c0_313], %557 {strides = array<i32>} : memref<288x256xf32, #tpu.memory_space<vmem>>, vector<32x16xf32>,
    %559 = vector.extract_strided_slice %554 {offsets = [0, 2], sizes = [32, 16], strides = [1, 1]} : vector<32x26xf32> to vector<32x16xf32>
    %c64_314 = arith.constant 64 : index
    %c0_315 = arith.constant 0 : index
    %560 = vector.load %arg27[%c64_314, %c0_315] : memref<288x256xf32, #tpu.memory_space<vmem>>, vector<32x16xf32>
    tpu.vector_store %arg27[%c64_314, %c0_315], %559 {strides = array<i32>} : memref<288x256xf32, #tpu.memory_space<vmem>>, vector<32x16xf32>,
    %561 = vector.extract_strided_slice %548 {offsets = [0, 4], sizes = [32, 16], strides = [1, 1]} : vector<32x26xf32> to vector<32x16xf32>
    %c96_316 = arith.constant 96 : index
    %c0_317 = arith.constant 0 : index
    %562 = vector.load %arg27[%c96_316, %c0_317] : memref<288x256xf32, #tpu.memory_space<vmem>>, vector<32x16xf32>
    tpu.vector_store %arg27[%c96_316, %c0_317], %561 {strides = array<i32>} : memref<288x256xf32, #tpu.memory_space<vmem>>, vector<32x16xf32>,
    %563 = vector.extract_strided_slice %521 {offsets = [0, 5], sizes = [32, 16], strides = [1, 1]} : vector<32x26xf32> to vector<32x16xf32>
    %c128_318 = arith.constant 128 : index
    %c0_319 = arith.constant 0 : index
    %564 = vector.load %arg27[%c128_318, %c0_319] : memref<288x256xf32, #tpu.memory_space<vmem>>, vector<32x16xf32>
    tpu.vector_store %arg27[%c128_318, %c0_319], %563 {strides = array<i32>} : memref<288x256xf32, #tpu.memory_space<vmem>>, vector<32x16xf32>,
    %565 = vector.extract_strided_slice %554 {offsets = [0, 6], sizes = [32, 16], strides = [1, 1]} : vector<32x26xf32> to vector<32x16xf32>
    %c160_320 = arith.constant 160 : index
    %c0_321 = arith.constant 0 : index
    %566 = vector.load %arg27[%c160_320, %c0_321] : memref<288x256xf32, #tpu.memory_space<vmem>>, vector<32x16xf32>
    tpu.vector_store %arg27[%c160_320, %c0_321], %565 {strides = array<i32>} : memref<288x256xf32, #tpu.memory_space<vmem>>, vector<32x16xf32>,
    %567 = vector.extract_strided_slice %548 {offsets = [0, 8], sizes = [32, 16], strides = [1, 1]} : vector<32x26xf32> to vector<32x16xf32>
    %c192_322 = arith.constant 192 : index
    %c0_323 = arith.constant 0 : index
    %568 = vector.load %arg27[%c192_322, %c0_323] : memref<288x256xf32, #tpu.memory_space<vmem>>, vector<32x16xf32>
    tpu.vector_store %arg27[%c192_322, %c0_323], %567 {strides = array<i32>} : memref<288x256xf32, #tpu.memory_space<vmem>>, vector<32x16xf32>,
    %569 = vector.extract_strided_slice %521 {offsets = [0, 9], sizes = [32, 16], strides = [1, 1]} : vector<32x26xf32> to vector<32x16xf32>
    %c224_324 = arith.constant 224 : index
    %c0_325 = arith.constant 0 : index
    %570 = vector.load %arg27[%c224_324, %c0_325] : memref<288x256xf32, #tpu.memory_space<vmem>>, vector<32x16xf32>
    tpu.vector_store %arg27[%c224_324, %c0_325], %569 {strides = array<i32>} : memref<288x256xf32, #tpu.memory_space<vmem>>, vector<32x16xf32>,
    %571 = vector.extract_strided_slice %554 {offsets = [0, 10], sizes = [32, 16], strides = [1, 1]} : vector<32x26xf32> to vector<32x16xf32>
    %c256_326 = arith.constant 256 : index
    %c0_327 = arith.constant 0 : index
    %572 = vector.load %arg27[%c256_326, %c0_327] : memref<288x256xf32, #tpu.memory_space<vmem>>, vector<32x16xf32>
    tpu.vector_store %arg27[%c256_326, %c0_327], %571 {strides = array<i32>} : memref<288x256xf32, #tpu.memory_space<vmem>>, vector<32x16xf32>,
    %c0_328 = arith.constant 0 : index
    %c0_329 = arith.constant 0 : index
    %573 = vector.load %arg27[%c0_328, %c0_329] : memref<288x256xf32, #tpu.memory_space<vmem>>, vector<288x16xf32>
    %574 = arith.truncf %573 : vector<288x16xf32> to vector<288x16xbf16>
    %c0_330 = arith.constant 0 : index
    %c0_331 = arith.constant 0 : index
    %575 = vector.load %arg8[%c0_330, %c0_331] : memref<32x288xbf16, #tpu.memory_space<vmem>>, vector<32x288xbf16>
    %cst_332 = arith.constant dense<0.000000e+00> : vector<32x16xf32>
    %576 = tpu.matmul %575, %574, %cst_332 {dimension_numbers = #tpu.dot_dimension_numbers<[1], [0], [0], [1], [0, 0, 1, 1], [], []>} : vector<32x288xbf16>, vector<288x16xbf16>, vector<32x16xf32> -> vector<32x16xf32>
    %cst_333 = arith.constant dense<0.000000e+00> : vector<32xf32>
    %577 = vector.multi_reduction <add>, %576, %cst_333 [1] : vector<32x16xf32> to vector<32xf32>
    %578 = vector.shape_cast %577 : vector<32xf32> to vector<32x1xf32>
    %cst_334 = arith.constant 1.600000e+01 : f32
    %579 = vector.broadcast %cst_334 : f32 to vector<32x1xf32>
    %580 = arith.divf %578, %579 : vector<32x1xf32>
    %581 = vector.broadcast %580 : vector<32x1xf32> to vector<32x16xf32>
    %582 = arith.subf %576, %581 : vector<32x16xf32>
    %583 = arith.mulf %582, %582 : vector<32x16xf32>
    %cst_335 = arith.constant dense<0.000000e+00> : vector<32xf32>
    %584 = vector.multi_reduction <add>, %583, %cst_335 [1] : vector<32x16xf32> to vector<32xf32>
    %585 = vector.shape_cast %584 : vector<32xf32> to vector<32x1xf32>
    %cst_336 = arith.constant 1.600000e+01 : f32
    %586 = vector.broadcast %cst_336 : f32 to vector<32x1xf32>
    %587 = arith.divf %585, %586 : vector<32x1xf32>
    %588 = vector.broadcast %580 : vector<32x1xf32> to vector<32x16xf32>
    %589 = arith.subf %576, %588 : vector<32x16xf32>
    %cst_337 = arith.constant 9.99999974E-6 : f32
    %590 = vector.broadcast %cst_337 : f32 to vector<32x1xf32>
    %591 = arith.addf %587, %590 : vector<32x1xf32>
    %592 = math.rsqrt %591 : vector<32x1xf32>
    %593 = vector.broadcast %592 : vector<32x1xf32> to vector<32x16xf32>
    %594 = arith.mulf %589, %593 : vector<32x16xf32>
    %cst_338 = arith.constant 0.000000e+00 : f32
    %595 = vector.broadcast %cst_338 : f32 to vector<32x16xf32>
    %596 = arith.maximumf %594, %595 : vector<32x16xf32>
    %c0_339 = arith.constant 0 : index
    %c5_340 = arith.constant 5 : index
    %597 = vector.load %arg24[%c0_339, %c5_340] : memref<32x26xf32, #tpu.memory_space<vmem>>, vector<32x16xf32>
    tpu.vector_store %arg24[%c0_339, %c5_340], %596 {strides = array<i32>} : memref<32x26xf32, #tpu.memory_space<vmem>>, vector<32x16xf32>,
    %c0_341 = arith.constant 0 : index
    %c0_342 = arith.constant 0 : index
    %598 = vector.load %arg24[%c0_341, %c0_342] : memref<32x26xf32, #tpu.memory_space<vmem>>, vector<32x26xf32>
    %599 = tpu.iota {dimensions = array<i32: 1>} : vector<1x26xi32>
    %c32_i32_343 = arith.constant 32 : i32
    %600 = vector.broadcast %c32_i32_343 : i32 to vector<1x26xi32>
    %601 = arith.addi %599, %600 : vector<1x26xi32>
    %c5_i32_344 = arith.constant 5 : i32
    %602 = vector.broadcast %c5_i32_344 : i32 to vector<1x26xi32>
    %603 = arith.subi %601, %602 : vector<1x26xi32>
    %c4_i32_345 = arith.constant 4 : i32
    %c0_i32_346 = arith.constant 0 : i32
    %604 = arith.cmpi eq, %c4_i32_345, %c0_i32_346 : i32
    %c1_i32_347 = arith.constant 1 : i32
    %605 = arith.select %604, %c1_i32_347, %c4_i32_345 : i32
    %606 = vector.broadcast %605 : i32 to vector<1x26xi32>
    %607 = arith.remsi %603, %606 : vector<1x26xi32>
    %c0_i32_348 = arith.constant 0 : i32
    %608 = vector.broadcast %c0_i32_348 : i32 to vector<1x26xi32>
    %609 = arith.cmpi ne, %607, %608 : vector<1x26xi32>
    %c0_i32_349 = arith.constant 0 : i32
    %610 = vector.broadcast %c0_i32_349 : i32 to vector<1x26xi32>
    %611 = arith.cmpi slt, %607, %610 : vector<1x26xi32>
    %c0_i32_350 = arith.constant 0 : i32
    %612 = arith.cmpi slt, %605, %c0_i32_350 : i32
    %613 = vector.broadcast %612 : i1 to vector<1x26xi1>
    %614 = vector.broadcast %613 : vector<1x26xi1> to vector<1x26xi1>
    %615 = arith.xori %611, %614 : vector<1x26xi1>
    %616 = arith.andi %615, %609 : vector<1x26xi1>
    %617 = vector.broadcast %605 : i32 to vector<1x26xi32>
    %618 = arith.addi %607, %617 : vector<1x26xi32>
    %619 = arith.select %616, %618, %607 : vector<1x26xi1>, vector<1x26xi32>
    %c3_i32_351 = arith.constant 3 : i32
    %620 = vector.broadcast %c3_i32_351 : i32 to vector<1x26xi32>
    %621 = arith.cmpi slt, %619, %620 : vector<1x26xi32>
    %cst_352 = arith.constant 0.000000e+00 : f32
    %622 = vector.shape_cast %621 : vector<1x26xi1> to vector<1x26xi1>
    %623 = vector.broadcast %622 : vector<1x26xi1> to vector<32x26xi1>
    %624 = vector.broadcast %cst_352 : f32 to vector<32x26xf32>
    %625 = arith.select %623, %598, %624 : vector<32x26xi1>, vector<32x26xf32>
    %c1_i32_353 = arith.constant 1 : i32
    %626 = vector.broadcast %c1_i32_353 : i32 to vector<1x26xi32>
    %627 = arith.cmpi sge, %619, %626 : vector<1x26xi32>
    %cst_354 = arith.constant 0.000000e+00 : f32
    %628 = vector.shape_cast %627 : vector<1x26xi1> to vector<1x26xi1>
    %629 = vector.broadcast %628 : vector<1x26xi1> to vector<32x26xi1>
    %630 = vector.broadcast %cst_354 : f32 to vector<32x26xf32>
    %631 = arith.select %629, %598, %630 : vector<32x26xi1>, vector<32x26xf32>
    %632 = vector.extract_strided_slice %625 {offsets = [0, 0], sizes = [32, 16], strides = [1, 1]} : vector<32x26xf32> to vector<32x16xf32>
    %c0_355 = arith.constant 0 : index
    %c0_356 = arith.constant 0 : index
    %633 = vector.load %arg27[%c0_355, %c0_356] : memref<288x256xf32, #tpu.memory_space<vmem>>, vector<32x16xf32>
    tpu.vector_store %arg27[%c0_355, %c0_356], %632 {strides = array<i32>} : memref<288x256xf32, #tpu.memory_space<vmem>>, vector<32x16xf32>,
    %634 = vector.extract_strided_slice %598 {offsets = [0, 1], sizes = [32, 16], strides = [1, 1]} : vector<32x26xf32> to vector<32x16xf32>
    %c32_357 = arith.constant 32 : index
    %c0_358 = arith.constant 0 : index
    %635 = vector.load %arg27[%c32_357, %c0_358] : memref<288x256xf32, #tpu.memory_space<vmem>>, vector<32x16xf32>
    tpu.vector_store %arg27[%c32_357, %c0_358], %634 {strides = array<i32>} : memref<288x256xf32, #tpu.memory_space<vmem>>, vector<32x16xf32>,
    %636 = vector.extract_strided_slice %631 {offsets = [0, 2], sizes = [32, 16], strides = [1, 1]} : vector<32x26xf32> to vector<32x16xf32>
    %c64_359 = arith.constant 64 : index
    %c0_360 = arith.constant 0 : index
    %637 = vector.load %arg27[%c64_359, %c0_360] : memref<288x256xf32, #tpu.memory_space<vmem>>, vector<32x16xf32>
    tpu.vector_store %arg27[%c64_359, %c0_360], %636 {strides = array<i32>} : memref<288x256xf32, #tpu.memory_space<vmem>>, vector<32x16xf32>,
    %638 = vector.extract_strided_slice %625 {offsets = [0, 4], sizes = [32, 16], strides = [1, 1]} : vector<32x26xf32> to vector<32x16xf32>
    %c96_361 = arith.constant 96 : index
    %c0_362 = arith.constant 0 : index
    %639 = vector.load %arg27[%c96_361, %c0_362] : memref<288x256xf32, #tpu.memory_space<vmem>>, vector<32x16xf32>
    tpu.vector_store %arg27[%c96_361, %c0_362], %638 {strides = array<i32>} : memref<288x256xf32, #tpu.memory_space<vmem>>, vector<32x16xf32>,
    %640 = vector.extract_strided_slice %598 {offsets = [0, 5], sizes = [32, 16], strides = [1, 1]} : vector<32x26xf32> to vector<32x16xf32>
    %c128_363 = arith.constant 128 : index
    %c0_364 = arith.constant 0 : index
    %641 = vector.load %arg27[%c128_363, %c0_364] : memref<288x256xf32, #tpu.memory_space<vmem>>, vector<32x16xf32>
    tpu.vector_store %arg27[%c128_363, %c0_364], %640 {strides = array<i32>} : memref<288x256xf32, #tpu.memory_space<vmem>>, vector<32x16xf32>,
    %642 = vector.extract_strided_slice %631 {offsets = [0, 6], sizes = [32, 16], strides = [1, 1]} : vector<32x26xf32> to vector<32x16xf32>
    %c160_365 = arith.constant 160 : index
    %c0_366 = arith.constant 0 : index
    %643 = vector.load %arg27[%c160_365, %c0_366] : memref<288x256xf32, #tpu.memory_space<vmem>>, vector<32x16xf32>
    tpu.vector_store %arg27[%c160_365, %c0_366], %642 {strides = array<i32>} : memref<288x256xf32, #tpu.memory_space<vmem>>, vector<32x16xf32>,
    %644 = vector.extract_strided_slice %625 {offsets = [0, 8], sizes = [32, 16], strides = [1, 1]} : vector<32x26xf32> to vector<32x16xf32>
    %c192_367 = arith.constant 192 : index
    %c0_368 = arith.constant 0 : index
    %645 = vector.load %arg27[%c192_367, %c0_368] : memref<288x256xf32, #tpu.memory_space<vmem>>, vector<32x16xf32>
    tpu.vector_store %arg27[%c192_367, %c0_368], %644 {strides = array<i32>} : memref<288x256xf32, #tpu.memory_space<vmem>>, vector<32x16xf32>,
    %646 = vector.extract_strided_slice %598 {offsets = [0, 9], sizes = [32, 16], strides = [1, 1]} : vector<32x26xf32> to vector<32x16xf32>
    %c224_369 = arith.constant 224 : index
    %c0_370 = arith.constant 0 : index
    %647 = vector.load %arg27[%c224_369, %c0_370] : memref<288x256xf32, #tpu.memory_space<vmem>>, vector<32x16xf32>
    tpu.vector_store %arg27[%c224_369, %c0_370], %646 {strides = array<i32>} : memref<288x256xf32, #tpu.memory_space<vmem>>, vector<32x16xf32>,
    %648 = vector.extract_strided_slice %631 {offsets = [0, 10], sizes = [32, 16], strides = [1, 1]} : vector<32x26xf32> to vector<32x16xf32>
    %c256_371 = arith.constant 256 : index
    %c0_372 = arith.constant 0 : index
    %649 = vector.load %arg27[%c256_371, %c0_372] : memref<288x256xf32, #tpu.memory_space<vmem>>, vector<32x16xf32>
    tpu.vector_store %arg27[%c256_371, %c0_372], %648 {strides = array<i32>} : memref<288x256xf32, #tpu.memory_space<vmem>>, vector<32x16xf32>,
    %c0_373 = arith.constant 0 : index
    %c0_374 = arith.constant 0 : index
    %650 = vector.load %arg27[%c0_373, %c0_374] : memref<288x256xf32, #tpu.memory_space<vmem>>, vector<288x16xf32>
    %651 = arith.truncf %650 : vector<288x16xf32> to vector<288x16xbf16>
    %c0_375 = arith.constant 0 : index
    %c0_376 = arith.constant 0 : index
    %652 = vector.load %arg9[%c0_375, %c0_376] : memref<32x288xbf16, #tpu.memory_space<vmem>>, vector<32x288xbf16>
    %cst_377 = arith.constant dense<0.000000e+00> : vector<32x16xf32>
    %653 = tpu.matmul %652, %651, %cst_377 {dimension_numbers = #tpu.dot_dimension_numbers<[1], [0], [0], [1], [0, 0, 1, 1], [], []>} : vector<32x288xbf16>, vector<288x16xbf16>, vector<32x16xf32> -> vector<32x16xf32>
    %cst_378 = arith.constant dense<0.000000e+00> : vector<32xf32>
    %654 = vector.multi_reduction <add>, %653, %cst_378 [1] : vector<32x16xf32> to vector<32xf32>
    %655 = vector.shape_cast %654 : vector<32xf32> to vector<32x1xf32>
    %cst_379 = arith.constant 1.600000e+01 : f32
    %656 = vector.broadcast %cst_379 : f32 to vector<32x1xf32>
    %657 = arith.divf %655, %656 : vector<32x1xf32>
    %658 = vector.broadcast %657 : vector<32x1xf32> to vector<32x16xf32>
    %659 = arith.subf %653, %658 : vector<32x16xf32>
    %660 = arith.mulf %659, %659 : vector<32x16xf32>
    %cst_380 = arith.constant dense<0.000000e+00> : vector<32xf32>
    %661 = vector.multi_reduction <add>, %660, %cst_380 [1] : vector<32x16xf32> to vector<32xf32>
    %662 = vector.shape_cast %661 : vector<32xf32> to vector<32x1xf32>
    %cst_381 = arith.constant 1.600000e+01 : f32
    %663 = vector.broadcast %cst_381 : f32 to vector<32x1xf32>
    %664 = arith.divf %662, %663 : vector<32x1xf32>
    %665 = vector.broadcast %657 : vector<32x1xf32> to vector<32x16xf32>
    %666 = arith.subf %653, %665 : vector<32x16xf32>
    %cst_382 = arith.constant 9.99999974E-6 : f32
    %667 = vector.broadcast %cst_382 : f32 to vector<32x1xf32>
    %668 = arith.addf %664, %667 : vector<32x1xf32>
    %669 = math.rsqrt %668 : vector<32x1xf32>
    %670 = vector.broadcast %669 : vector<32x1xf32> to vector<32x16xf32>
    %671 = arith.mulf %666, %670 : vector<32x16xf32>
    %672 = arith.addf %519, %671 : vector<32x16xf32>
    %c0_383 = arith.constant 0 : index
    %c5_384 = arith.constant 5 : index
    %673 = vector.load %arg24[%c0_383, %c5_384] : memref<32x26xf32, #tpu.memory_space<vmem>>, vector<32x16xf32>
    tpu.vector_store %arg24[%c0_383, %c5_384], %672 {strides = array<i32>} : memref<32x26xf32, #tpu.memory_space<vmem>>, vector<32x16xf32>,
    %c0_385 = arith.constant 0 : index
    %c0_386 = arith.constant 0 : index
    %674 = vector.load %arg24[%c0_385, %c0_386] : memref<32x26xf32, #tpu.memory_space<vmem>>, vector<32x26xf32>
    %675 = tpu.iota {dimensions = array<i32: 1>} : vector<1x26xi32>
    %c32_i32_387 = arith.constant 32 : i32
    %676 = vector.broadcast %c32_i32_387 : i32 to vector<1x26xi32>
    %677 = arith.addi %675, %676 : vector<1x26xi32>
    %c5_i32_388 = arith.constant 5 : i32
    %678 = vector.broadcast %c5_i32_388 : i32 to vector<1x26xi32>
    %679 = arith.subi %677, %678 : vector<1x26xi32>
    %c4_i32_389 = arith.constant 4 : i32
    %c0_i32_390 = arith.constant 0 : i32
    %680 = arith.cmpi eq, %c4_i32_389, %c0_i32_390 : i32
    %c1_i32_391 = arith.constant 1 : i32
    %681 = arith.select %680, %c1_i32_391, %c4_i32_389 : i32
    %682 = vector.broadcast %681 : i32 to vector<1x26xi32>
    %683 = arith.remsi %679, %682 : vector<1x26xi32>
    %c0_i32_392 = arith.constant 0 : i32
    %684 = vector.broadcast %c0_i32_392 : i32 to vector<1x26xi32>
    %685 = arith.cmpi ne, %683, %684 : vector<1x26xi32>
    %c0_i32_393 = arith.constant 0 : i32
    %686 = vector.broadcast %c0_i32_393 : i32 to vector<1x26xi32>
    %687 = arith.cmpi slt, %683, %686 : vector<1x26xi32>
    %c0_i32_394 = arith.constant 0 : i32
    %688 = arith.cmpi slt, %681, %c0_i32_394 : i32
    %689 = vector.broadcast %688 : i1 to vector<1x26xi1>
    %690 = vector.broadcast %689 : vector<1x26xi1> to vector<1x26xi1>
    %691 = arith.xori %687, %690 : vector<1x26xi1>
    %692 = arith.andi %691, %685 : vector<1x26xi1>
    %693 = vector.broadcast %681 : i32 to vector<1x26xi32>
    %694 = arith.addi %683, %693 : vector<1x26xi32>
    %695 = arith.select %692, %694, %683 : vector<1x26xi1>, vector<1x26xi32>
    %c3_i32_395 = arith.constant 3 : i32
    %696 = vector.broadcast %c3_i32_395 : i32 to vector<1x26xi32>
    %697 = arith.cmpi slt, %695, %696 : vector<1x26xi32>
    %cst_396 = arith.constant 0.000000e+00 : f32
    %698 = vector.shape_cast %697 : vector<1x26xi1> to vector<1x26xi1>
    %699 = vector.broadcast %698 : vector<1x26xi1> to vector<32x26xi1>
    %700 = vector.broadcast %cst_396 : f32 to vector<32x26xf32>
    %701 = arith.select %699, %674, %700 : vector<32x26xi1>, vector<32x26xf32>
    %c1_i32_397 = arith.constant 1 : i32
    %702 = vector.broadcast %c1_i32_397 : i32 to vector<1x26xi32>
    %703 = arith.cmpi sge, %695, %702 : vector<1x26xi32>
    %cst_398 = arith.constant 0.000000e+00 : f32
    %704 = vector.shape_cast %703 : vector<1x26xi1> to vector<1x26xi1>
    %705 = vector.broadcast %704 : vector<1x26xi1> to vector<32x26xi1>
    %706 = vector.broadcast %cst_398 : f32 to vector<32x26xf32>
    %707 = arith.select %705, %674, %706 : vector<32x26xi1>, vector<32x26xf32>
    %708 = vector.extract_strided_slice %701 {offsets = [0, 0], sizes = [32, 16], strides = [1, 1]} : vector<32x26xf32> to vector<32x16xf32>
    %c0_399 = arith.constant 0 : index
    %c0_400 = arith.constant 0 : index
    %709 = vector.load %arg27[%c0_399, %c0_400] : memref<288x256xf32, #tpu.memory_space<vmem>>, vector<32x16xf32>
    tpu.vector_store %arg27[%c0_399, %c0_400], %708 {strides = array<i32>} : memref<288x256xf32, #tpu.memory_space<vmem>>, vector<32x16xf32>,
    %710 = vector.extract_strided_slice %674 {offsets = [0, 1], sizes = [32, 16], strides = [1, 1]} : vector<32x26xf32> to vector<32x16xf32>
    %c32_401 = arith.constant 32 : index
    %c0_402 = arith.constant 0 : index
    %711 = vector.load %arg27[%c32_401, %c0_402] : memref<288x256xf32, #tpu.memory_space<vmem>>, vector<32x16xf32>
    tpu.vector_store %arg27[%c32_401, %c0_402], %710 {strides = array<i32>} : memref<288x256xf32, #tpu.memory_space<vmem>>, vector<32x16xf32>,
    %712 = vector.extract_strided_slice %707 {offsets = [0, 2], sizes = [32, 16], strides = [1, 1]} : vector<32x26xf32> to vector<32x16xf32>
    %c64_403 = arith.constant 64 : index
    %c0_404 = arith.constant 0 : index
    %713 = vector.load %arg27[%c64_403, %c0_404] : memref<288x256xf32, #tpu.memory_space<vmem>>, vector<32x16xf32>
    tpu.vector_store %arg27[%c64_403, %c0_404], %712 {strides = array<i32>} : memref<288x256xf32, #tpu.memory_space<vmem>>, vector<32x16xf32>,
    %714 = vector.extract_strided_slice %701 {offsets = [0, 4], sizes = [32, 16], strides = [1, 1]} : vector<32x26xf32> to vector<32x16xf32>
    %c96_405 = arith.constant 96 : index
    %c0_406 = arith.constant 0 : index
    %715 = vector.load %arg27[%c96_405, %c0_406] : memref<288x256xf32, #tpu.memory_space<vmem>>, vector<32x16xf32>
    tpu.vector_store %arg27[%c96_405, %c0_406], %714 {strides = array<i32>} : memref<288x256xf32, #tpu.memory_space<vmem>>, vector<32x16xf32>,
    %716 = vector.extract_strided_slice %674 {offsets = [0, 5], sizes = [32, 16], strides = [1, 1]} : vector<32x26xf32> to vector<32x16xf32>
    %c128_407 = arith.constant 128 : index
    %c0_408 = arith.constant 0 : index
    %717 = vector.load %arg27[%c128_407, %c0_408] : memref<288x256xf32, #tpu.memory_space<vmem>>, vector<32x16xf32>
    tpu.vector_store %arg27[%c128_407, %c0_408], %716 {strides = array<i32>} : memref<288x256xf32, #tpu.memory_space<vmem>>, vector<32x16xf32>,
    %718 = vector.extract_strided_slice %707 {offsets = [0, 6], sizes = [32, 16], strides = [1, 1]} : vector<32x26xf32> to vector<32x16xf32>
    %c160_409 = arith.constant 160 : index
    %c0_410 = arith.constant 0 : index
    %719 = vector.load %arg27[%c160_409, %c0_410] : memref<288x256xf32, #tpu.memory_space<vmem>>, vector<32x16xf32>
    tpu.vector_store %arg27[%c160_409, %c0_410], %718 {strides = array<i32>} : memref<288x256xf32, #tpu.memory_space<vmem>>, vector<32x16xf32>,
    %720 = vector.extract_strided_slice %701 {offsets = [0, 8], sizes = [32, 16], strides = [1, 1]} : vector<32x26xf32> to vector<32x16xf32>
    %c192_411 = arith.constant 192 : index
    %c0_412 = arith.constant 0 : index
    %721 = vector.load %arg27[%c192_411, %c0_412] : memref<288x256xf32, #tpu.memory_space<vmem>>, vector<32x16xf32>
    tpu.vector_store %arg27[%c192_411, %c0_412], %720 {strides = array<i32>} : memref<288x256xf32, #tpu.memory_space<vmem>>, vector<32x16xf32>,
    %722 = vector.extract_strided_slice %674 {offsets = [0, 9], sizes = [32, 16], strides = [1, 1]} : vector<32x26xf32> to vector<32x16xf32>
    %c224_413 = arith.constant 224 : index
    %c0_414 = arith.constant 0 : index
    %723 = vector.load %arg27[%c224_413, %c0_414] : memref<288x256xf32, #tpu.memory_space<vmem>>, vector<32x16xf32>
    tpu.vector_store %arg27[%c224_413, %c0_414], %722 {strides = array<i32>} : memref<288x256xf32, #tpu.memory_space<vmem>>, vector<32x16xf32>,
    %724 = vector.extract_strided_slice %707 {offsets = [0, 10], sizes = [32, 16], strides = [1, 1]} : vector<32x26xf32> to vector<32x16xf32>
    %c256_415 = arith.constant 256 : index
    %c0_416 = arith.constant 0 : index
    %725 = vector.load %arg27[%c256_415, %c0_416] : memref<288x256xf32, #tpu.memory_space<vmem>>, vector<32x16xf32>
    tpu.vector_store %arg27[%c256_415, %c0_416], %724 {strides = array<i32>} : memref<288x256xf32, #tpu.memory_space<vmem>>, vector<32x16xf32>,
    %c0_417 = arith.constant 0 : index
    %c0_418 = arith.constant 0 : index
    %726 = vector.load %arg27[%c0_417, %c0_418] : memref<288x256xf32, #tpu.memory_space<vmem>>, vector<288x16xf32>
    %727 = arith.truncf %726 : vector<288x16xf32> to vector<288x16xbf16>
    %c0_419 = arith.constant 0 : index
    %c0_420 = arith.constant 0 : index
    %728 = vector.load %arg10[%c0_419, %c0_420] : memref<32x288xbf16, #tpu.memory_space<vmem>>, vector<32x288xbf16>
    %cst_421 = arith.constant dense<0.000000e+00> : vector<32x16xf32>
    %729 = tpu.matmul %728, %727, %cst_421 {dimension_numbers = #tpu.dot_dimension_numbers<[1], [0], [0], [1], [0, 0, 1, 1], [], []>} : vector<32x288xbf16>, vector<288x16xbf16>, vector<32x16xf32> -> vector<32x16xf32>
    %cst_422 = arith.constant dense<0.000000e+00> : vector<32xf32>
    %730 = vector.multi_reduction <add>, %729, %cst_422 [1] : vector<32x16xf32> to vector<32xf32>
    %731 = vector.shape_cast %730 : vector<32xf32> to vector<32x1xf32>
    %cst_423 = arith.constant 1.600000e+01 : f32
    %732 = vector.broadcast %cst_423 : f32 to vector<32x1xf32>
    %733 = arith.divf %731, %732 : vector<32x1xf32>
    %734 = vector.broadcast %733 : vector<32x1xf32> to vector<32x16xf32>
    %735 = arith.subf %729, %734 : vector<32x16xf32>
    %736 = arith.mulf %735, %735 : vector<32x16xf32>
    %cst_424 = arith.constant dense<0.000000e+00> : vector<32xf32>
    %737 = vector.multi_reduction <add>, %736, %cst_424 [1] : vector<32x16xf32> to vector<32xf32>
    %738 = vector.shape_cast %737 : vector<32xf32> to vector<32x1xf32>
    %cst_425 = arith.constant 1.600000e+01 : f32
    %739 = vector.broadcast %cst_425 : f32 to vector<32x1xf32>
    %740 = arith.divf %738, %739 : vector<32x1xf32>
    %741 = vector.broadcast %733 : vector<32x1xf32> to vector<32x16xf32>
    %742 = arith.subf %729, %741 : vector<32x16xf32>
    %cst_426 = arith.constant 9.99999974E-6 : f32
    %743 = vector.broadcast %cst_426 : f32 to vector<32x1xf32>
    %744 = arith.addf %740, %743 : vector<32x1xf32>
    %745 = math.rsqrt %744 : vector<32x1xf32>
    %746 = vector.broadcast %745 : vector<32x1xf32> to vector<32x16xf32>
    %747 = arith.mulf %742, %746 : vector<32x16xf32>
    %cst_427 = arith.constant 0.000000e+00 : f32
    %748 = vector.broadcast %cst_427 : f32 to vector<32x16xf32>
    %749 = arith.maximumf %747, %748 : vector<32x16xf32>
    %c0_428 = arith.constant 0 : index
    %c0_429 = arith.constant 0 : index
    %750 = vector.load %arg18[%c0_428, %c0_429] : memref<16x64xf32, #tpu.memory_space<vmem>>, vector<16x64xf32>
    %cst_430 = arith.constant dense<0.000000e+00> : vector<32x64xf32>
    %751 = tpu.matmul %749, %750, %cst_430 {dimension_numbers = #tpu.dot_dimension_numbers<[1], [0], [0], [1], [0, 0, 1, 1], [], []>} : vector<32x16xf32>, vector<16x64xf32>, vector<32x64xf32> -> vector<32x64xf32>
    %c0_431 = arith.constant 0 : index
    %c9_432 = arith.constant 9 : index
    %752 = vector.load %arg25[%c0_431, %c9_432] : memref<32x82xf32, #tpu.memory_space<vmem>>, vector<32x64xf32>
    tpu.vector_store %arg25[%c0_431, %c9_432], %751 {strides = array<i32>} : memref<32x82xf32, #tpu.memory_space<vmem>>, vector<32x64xf32>,
    %c0_433 = arith.constant 0 : index
    %c0_434 = arith.constant 0 : index
    %753 = vector.load %arg25[%c0_433, %c0_434] : memref<32x82xf32, #tpu.memory_space<vmem>>, vector<32x82xf32>
    %754 = tpu.iota {dimensions = array<i32: 1>} : vector<1x82xi32>
    %c64_i32_435 = arith.constant 64 : i32
    %755 = vector.broadcast %c64_i32_435 : i32 to vector<1x82xi32>
    %756 = arith.addi %754, %755 : vector<1x82xi32>
    %c9_i32_436 = arith.constant 9 : i32
    %757 = vector.broadcast %c9_i32_436 : i32 to vector<1x82xi32>
    %758 = arith.subi %756, %757 : vector<1x82xi32>
    %c8_i32_437 = arith.constant 8 : i32
    %c0_i32_438 = arith.constant 0 : i32
    %759 = arith.cmpi eq, %c8_i32_437, %c0_i32_438 : i32
    %c1_i32_439 = arith.constant 1 : i32
    %760 = arith.select %759, %c1_i32_439, %c8_i32_437 : i32
    %761 = vector.broadcast %760 : i32 to vector<1x82xi32>
    %762 = arith.remsi %758, %761 : vector<1x82xi32>
    %c0_i32_440 = arith.constant 0 : i32
    %763 = vector.broadcast %c0_i32_440 : i32 to vector<1x82xi32>
    %764 = arith.cmpi ne, %762, %763 : vector<1x82xi32>
    %c0_i32_441 = arith.constant 0 : i32
    %765 = vector.broadcast %c0_i32_441 : i32 to vector<1x82xi32>
    %766 = arith.cmpi slt, %762, %765 : vector<1x82xi32>
    %c0_i32_442 = arith.constant 0 : i32
    %767 = arith.cmpi slt, %760, %c0_i32_442 : i32
    %768 = vector.broadcast %767 : i1 to vector<1x82xi1>
    %769 = vector.broadcast %768 : vector<1x82xi1> to vector<1x82xi1>
    %770 = arith.xori %766, %769 : vector<1x82xi1>
    %771 = arith.andi %770, %764 : vector<1x82xi1>
    %772 = vector.broadcast %760 : i32 to vector<1x82xi32>
    %773 = arith.addi %762, %772 : vector<1x82xi32>
    %774 = arith.select %771, %773, %762 : vector<1x82xi1>, vector<1x82xi32>
    %c7_i32_443 = arith.constant 7 : i32
    %775 = vector.broadcast %c7_i32_443 : i32 to vector<1x82xi32>
    %776 = arith.cmpi slt, %774, %775 : vector<1x82xi32>
    %cst_444 = arith.constant 0.000000e+00 : f32
    %777 = vector.shape_cast %776 : vector<1x82xi1> to vector<1x82xi1>
    %778 = vector.broadcast %777 : vector<1x82xi1> to vector<32x82xi1>
    %779 = vector.broadcast %cst_444 : f32 to vector<32x82xf32>
    %780 = arith.select %778, %753, %779 : vector<32x82xi1>, vector<32x82xf32>
    %c1_i32_445 = arith.constant 1 : i32
    %781 = vector.broadcast %c1_i32_445 : i32 to vector<1x82xi32>
    %782 = arith.cmpi sge, %774, %781 : vector<1x82xi32>
    %cst_446 = arith.constant 0.000000e+00 : f32
    %783 = vector.shape_cast %782 : vector<1x82xi1> to vector<1x82xi1>
    %784 = vector.broadcast %783 : vector<1x82xi1> to vector<32x82xi1>
    %785 = vector.broadcast %cst_446 : f32 to vector<32x82xf32>
    %786 = arith.select %784, %753, %785 : vector<32x82xi1>, vector<32x82xf32>
    %787 = vector.extract_strided_slice %780 {offsets = [0, 0], sizes = [32, 64], strides = [1, 1]} : vector<32x82xf32> to vector<32x64xf32>
    %c0_447 = arith.constant 0 : index
    %c0_448 = arith.constant 0 : index
    %788 = vector.load %arg27[%c0_447, %c0_448] : memref<288x256xf32, #tpu.memory_space<vmem>>, vector<32x64xf32>
    tpu.vector_store %arg27[%c0_447, %c0_448], %787 {strides = array<i32>} : memref<288x256xf32, #tpu.memory_space<vmem>>, vector<32x64xf32>,
    %789 = vector.extract_strided_slice %753 {offsets = [0, 1], sizes = [32, 64], strides = [1, 1]} : vector<32x82xf32> to vector<32x64xf32>
    %c32_449 = arith.constant 32 : index
    %c0_450 = arith.constant 0 : index
    %790 = vector.load %arg27[%c32_449, %c0_450] : memref<288x256xf32, #tpu.memory_space<vmem>>, vector<32x64xf32>
    tpu.vector_store %arg27[%c32_449, %c0_450], %789 {strides = array<i32>} : memref<288x256xf32, #tpu.memory_space<vmem>>, vector<32x64xf32>,
    %791 = vector.extract_strided_slice %786 {offsets = [0, 2], sizes = [32, 64], strides = [1, 1]} : vector<32x82xf32> to vector<32x64xf32>
    %c64_451 = arith.constant 64 : index
    %c0_452 = arith.constant 0 : index
    %792 = vector.load %arg27[%c64_451, %c0_452] : memref<288x256xf32, #tpu.memory_space<vmem>>, vector<32x64xf32>
    tpu.vector_store %arg27[%c64_451, %c0_452], %791 {strides = array<i32>} : memref<288x256xf32, #tpu.memory_space<vmem>>, vector<32x64xf32>,
    %793 = vector.extract_strided_slice %780 {offsets = [0, 8], sizes = [32, 64], strides = [1, 1]} : vector<32x82xf32> to vector<32x64xf32>
    %c96_453 = arith.constant 96 : index
    %c0_454 = arith.constant 0 : index
    %794 = vector.load %arg27[%c96_453, %c0_454] : memref<288x256xf32, #tpu.memory_space<vmem>>, vector<32x64xf32>
    tpu.vector_store %arg27[%c96_453, %c0_454], %793 {strides = array<i32>} : memref<288x256xf32, #tpu.memory_space<vmem>>, vector<32x64xf32>,
    %795 = vector.extract_strided_slice %753 {offsets = [0, 9], sizes = [32, 64], strides = [1, 1]} : vector<32x82xf32> to vector<32x64xf32>
    %c128_455 = arith.constant 128 : index
    %c0_456 = arith.constant 0 : index
    %796 = vector.load %arg27[%c128_455, %c0_456] : memref<288x256xf32, #tpu.memory_space<vmem>>, vector<32x64xf32>
    tpu.vector_store %arg27[%c128_455, %c0_456], %795 {strides = array<i32>} : memref<288x256xf32, #tpu.memory_space<vmem>>, vector<32x64xf32>,
    %797 = vector.extract_strided_slice %786 {offsets = [0, 10], sizes = [32, 64], strides = [1, 1]} : vector<32x82xf32> to vector<32x64xf32>
    %c160_457 = arith.constant 160 : index
    %c0_458 = arith.constant 0 : index
    %798 = vector.load %arg27[%c160_457, %c0_458] : memref<288x256xf32, #tpu.memory_space<vmem>>, vector<32x64xf32>
    tpu.vector_store %arg27[%c160_457, %c0_458], %797 {strides = array<i32>} : memref<288x256xf32, #tpu.memory_space<vmem>>, vector<32x64xf32>,
    %799 = vector.extract_strided_slice %780 {offsets = [0, 16], sizes = [32, 64], strides = [1, 1]} : vector<32x82xf32> to vector<32x64xf32>
    %c192_459 = arith.constant 192 : index
    %c0_460 = arith.constant 0 : index
    %800 = vector.load %arg27[%c192_459, %c0_460] : memref<288x256xf32, #tpu.memory_space<vmem>>, vector<32x64xf32>
    tpu.vector_store %arg27[%c192_459, %c0_460], %799 {strides = array<i32>} : memref<288x256xf32, #tpu.memory_space<vmem>>, vector<32x64xf32>,
    %801 = vector.extract_strided_slice %753 {offsets = [0, 17], sizes = [32, 64], strides = [1, 1]} : vector<32x82xf32> to vector<32x64xf32>
    %c224_461 = arith.constant 224 : index
    %c0_462 = arith.constant 0 : index
    %802 = vector.load %arg27[%c224_461, %c0_462] : memref<288x256xf32, #tpu.memory_space<vmem>>, vector<32x64xf32>
    tpu.vector_store %arg27[%c224_461, %c0_462], %801 {strides = array<i32>} : memref<288x256xf32, #tpu.memory_space<vmem>>, vector<32x64xf32>,
    %803 = vector.extract_strided_slice %786 {offsets = [0, 18], sizes = [32, 64], strides = [1, 1]} : vector<32x82xf32> to vector<32x64xf32>
    %c256_463 = arith.constant 256 : index
    %c0_464 = arith.constant 0 : index
    %804 = vector.load %arg27[%c256_463, %c0_464] : memref<288x256xf32, #tpu.memory_space<vmem>>, vector<32x64xf32>
    tpu.vector_store %arg27[%c256_463, %c0_464], %803 {strides = array<i32>} : memref<288x256xf32, #tpu.memory_space<vmem>>, vector<32x64xf32>,
    %c0_465 = arith.constant 0 : index
    %c0_466 = arith.constant 0 : index
    %805 = vector.load %arg27[%c0_465, %c0_466] : memref<288x256xf32, #tpu.memory_space<vmem>>, vector<288x64xf32>
    %806 = arith.truncf %805 : vector<288x64xf32> to vector<288x64xbf16>
    %c0_467 = arith.constant 0 : index
    %c0_468 = arith.constant 0 : index
    %807 = vector.load %arg11[%c0_467, %c0_468] : memref<16x288xbf16, #tpu.memory_space<vmem>>, vector<16x288xbf16>
    %cst_469 = arith.constant dense<0.000000e+00> : vector<16x64xf32>
    %808 = tpu.matmul %807, %806, %cst_469 {dimension_numbers = #tpu.dot_dimension_numbers<[1], [0], [0], [1], [0, 0, 1, 1], [], []>} : vector<16x288xbf16>, vector<288x64xbf16>, vector<16x64xf32> -> vector<16x64xf32>
    %cst_470 = arith.constant dense<0.000000e+00> : vector<16xf32>
    %809 = vector.multi_reduction <add>, %808, %cst_470 [1] : vector<16x64xf32> to vector<16xf32>
    %810 = vector.shape_cast %809 : vector<16xf32> to vector<16x1xf32>
    %cst_471 = arith.constant 6.400000e+01 : f32
    %811 = vector.broadcast %cst_471 : f32 to vector<16x1xf32>
    %812 = arith.divf %810, %811 : vector<16x1xf32>
    %813 = vector.broadcast %812 : vector<16x1xf32> to vector<16x64xf32>
    %814 = arith.subf %808, %813 : vector<16x64xf32>
    %815 = arith.mulf %814, %814 : vector<16x64xf32>
    %cst_472 = arith.constant dense<0.000000e+00> : vector<16xf32>
    %816 = vector.multi_reduction <add>, %815, %cst_472 [1] : vector<16x64xf32> to vector<16xf32>
    %817 = vector.shape_cast %816 : vector<16xf32> to vector<16x1xf32>
    %cst_473 = arith.constant 6.400000e+01 : f32
    %818 = vector.broadcast %cst_473 : f32 to vector<16x1xf32>
    %819 = arith.divf %817, %818 : vector<16x1xf32>
    %820 = vector.broadcast %812 : vector<16x1xf32> to vector<16x64xf32>
    %821 = arith.subf %808, %820 : vector<16x64xf32>
    %cst_474 = arith.constant 9.99999974E-6 : f32
    %822 = vector.broadcast %cst_474 : f32 to vector<16x1xf32>
    %823 = arith.addf %819, %822 : vector<16x1xf32>
    %824 = math.rsqrt %823 : vector<16x1xf32>
    %825 = vector.broadcast %824 : vector<16x1xf32> to vector<16x64xf32>
    %826 = arith.mulf %821, %825 : vector<16x64xf32>
    %cst_475 = arith.constant 0.000000e+00 : f32
    %827 = vector.broadcast %cst_475 : f32 to vector<16x64xf32>
    %828 = arith.maximumf %826, %827 : vector<16x64xf32>
    %c0_476 = arith.constant 0 : index
    %c0_477 = arith.constant 0 : index
    %829 = vector.load %arg19[%c0_476, %c0_477] : memref<64x256xf32, #tpu.memory_space<vmem>>, vector<64x256xf32>
    %cst_478 = arith.constant dense<0.000000e+00> : vector<16x256xf32>
    %830 = tpu.matmul %828, %829, %cst_478 {dimension_numbers = #tpu.dot_dimension_numbers<[1], [0], [0], [1], [0, 0, 1, 1], [], []>} : vector<16x64xf32>, vector<64x256xf32>, vector<16x256xf32> -> vector<16x256xf32>
    %c0_479 = arith.constant 0 : index
    %c17_480 = arith.constant 17 : index
    %831 = vector.load %arg26[%c0_479, %c17_480] : memref<16x290xf32, #tpu.memory_space<vmem>>, vector<16x256xf32>
    tpu.vector_store %arg26[%c0_479, %c17_480], %830 {strides = array<i32>} : memref<16x290xf32, #tpu.memory_space<vmem>>, vector<16x256xf32>,
    %c0_481 = arith.constant 0 : index
    %c0_482 = arith.constant 0 : index
    %832 = vector.load %arg26[%c0_481, %c0_482] : memref<16x290xf32, #tpu.memory_space<vmem>>, vector<16x290xf32>
    %833 = tpu.iota {dimensions = array<i32: 1>} : vector<1x290xi32>
    %c128_i32_483 = arith.constant 128 : i32
    %834 = vector.broadcast %c128_i32_483 : i32 to vector<1x290xi32>
    %835 = arith.addi %833, %834 : vector<1x290xi32>
    %c17_i32_484 = arith.constant 17 : i32
    %836 = vector.broadcast %c17_i32_484 : i32 to vector<1x290xi32>
    %837 = arith.subi %835, %836 : vector<1x290xi32>
    %c16_i32_485 = arith.constant 16 : i32
    %c0_i32_486 = arith.constant 0 : i32
    %838 = arith.cmpi eq, %c16_i32_485, %c0_i32_486 : i32
    %c1_i32_487 = arith.constant 1 : i32
    %839 = arith.select %838, %c1_i32_487, %c16_i32_485 : i32
    %840 = vector.broadcast %839 : i32 to vector<1x290xi32>
    %841 = arith.remsi %837, %840 : vector<1x290xi32>
    %c0_i32_488 = arith.constant 0 : i32
    %842 = vector.broadcast %c0_i32_488 : i32 to vector<1x290xi32>
    %843 = arith.cmpi ne, %841, %842 : vector<1x290xi32>
    %c0_i32_489 = arith.constant 0 : i32
    %844 = vector.broadcast %c0_i32_489 : i32 to vector<1x290xi32>
    %845 = arith.cmpi slt, %841, %844 : vector<1x290xi32>
    %c0_i32_490 = arith.constant 0 : i32
    %846 = arith.cmpi slt, %839, %c0_i32_490 : i32
    %847 = vector.broadcast %846 : i1 to vector<1x290xi1>
    %848 = vector.broadcast %847 : vector<1x290xi1> to vector<1x290xi1>
    %849 = arith.xori %845, %848 : vector<1x290xi1>
    %850 = arith.andi %849, %843 : vector<1x290xi1>
    %851 = vector.broadcast %839 : i32 to vector<1x290xi32>
    %852 = arith.addi %841, %851 : vector<1x290xi32>
    %853 = arith.select %850, %852, %841 : vector<1x290xi1>, vector<1x290xi32>
    %c15_i32_491 = arith.constant 15 : i32
    %854 = vector.broadcast %c15_i32_491 : i32 to vector<1x290xi32>
    %855 = arith.cmpi slt, %853, %854 : vector<1x290xi32>
    %cst_492 = arith.constant 0.000000e+00 : f32
    %856 = vector.shape_cast %855 : vector<1x290xi1> to vector<1x290xi1>
    %857 = vector.broadcast %856 : vector<1x290xi1> to vector<16x290xi1>
    %858 = vector.broadcast %cst_492 : f32 to vector<16x290xf32>
    %859 = arith.select %857, %832, %858 : vector<16x290xi1>, vector<16x290xf32>
    %c1_i32_493 = arith.constant 1 : i32
    %860 = vector.broadcast %c1_i32_493 : i32 to vector<1x290xi32>
    %861 = arith.cmpi sge, %853, %860 : vector<1x290xi32>
    %cst_494 = arith.constant 0.000000e+00 : f32
    %862 = vector.shape_cast %861 : vector<1x290xi1> to vector<1x290xi1>
    %863 = vector.broadcast %862 : vector<1x290xi1> to vector<16x290xi1>
    %864 = vector.broadcast %cst_494 : f32 to vector<16x290xf32>
    %865 = arith.select %863, %832, %864 : vector<16x290xi1>, vector<16x290xf32>
    %866 = vector.extract_strided_slice %859 {offsets = [0, 0], sizes = [16, 256], strides = [1, 1]} : vector<16x290xf32> to vector<16x256xf32>
    %c0_495 = arith.constant 0 : index
    %c0_496 = arith.constant 0 : index
    %867 = vector.load %arg27[%c0_495, %c0_496] : memref<288x256xf32, #tpu.memory_space<vmem>>, vector<16x256xf32>
    tpu.vector_store %arg27[%c0_495, %c0_496], %866 {strides = array<i32>} : memref<288x256xf32, #tpu.memory_space<vmem>>, vector<16x256xf32>,
    %868 = vector.extract_strided_slice %832 {offsets = [0, 1], sizes = [16, 256], strides = [1, 1]} : vector<16x290xf32> to vector<16x256xf32>
    %c16_497 = arith.constant 16 : index
    %c0_498 = arith.constant 0 : index
    %869 = vector.load %arg27[%c16_497, %c0_498] : memref<288x256xf32, #tpu.memory_space<vmem>>, vector<16x256xf32>
    tpu.vector_store %arg27[%c16_497, %c0_498], %868 {strides = array<i32>} : memref<288x256xf32, #tpu.memory_space<vmem>>, vector<16x256xf32>,
    %870 = vector.extract_strided_slice %865 {offsets = [0, 2], sizes = [16, 256], strides = [1, 1]} : vector<16x290xf32> to vector<16x256xf32>
    %c32_499 = arith.constant 32 : index
    %c0_500 = arith.constant 0 : index
    %871 = vector.load %arg27[%c32_499, %c0_500] : memref<288x256xf32, #tpu.memory_space<vmem>>, vector<16x256xf32>
    tpu.vector_store %arg27[%c32_499, %c0_500], %870 {strides = array<i32>} : memref<288x256xf32, #tpu.memory_space<vmem>>, vector<16x256xf32>,
    %872 = vector.extract_strided_slice %859 {offsets = [0, 16], sizes = [16, 256], strides = [1, 1]} : vector<16x290xf32> to vector<16x256xf32>
    %c48_501 = arith.constant 48 : index
    %c0_502 = arith.constant 0 : index
    %873 = vector.load %arg27[%c48_501, %c0_502] : memref<288x256xf32, #tpu.memory_space<vmem>>, vector<16x256xf32>
    tpu.vector_store %arg27[%c48_501, %c0_502], %872 {strides = array<i32>} : memref<288x256xf32, #tpu.memory_space<vmem>>, vector<16x256xf32>,
    %874 = vector.extract_strided_slice %832 {offsets = [0, 17], sizes = [16, 256], strides = [1, 1]} : vector<16x290xf32> to vector<16x256xf32>
    %c64_503 = arith.constant 64 : index
    %c0_504 = arith.constant 0 : index
    %875 = vector.load %arg27[%c64_503, %c0_504] : memref<288x256xf32, #tpu.memory_space<vmem>>, vector<16x256xf32>
    tpu.vector_store %arg27[%c64_503, %c0_504], %874 {strides = array<i32>} : memref<288x256xf32, #tpu.memory_space<vmem>>, vector<16x256xf32>,
    %876 = vector.extract_strided_slice %865 {offsets = [0, 18], sizes = [16, 256], strides = [1, 1]} : vector<16x290xf32> to vector<16x256xf32>
    %c80_505 = arith.constant 80 : index
    %c0_506 = arith.constant 0 : index
    %877 = vector.load %arg27[%c80_505, %c0_506] : memref<288x256xf32, #tpu.memory_space<vmem>>, vector<16x256xf32>
    tpu.vector_store %arg27[%c80_505, %c0_506], %876 {strides = array<i32>} : memref<288x256xf32, #tpu.memory_space<vmem>>, vector<16x256xf32>,
    %878 = vector.extract_strided_slice %859 {offsets = [0, 32], sizes = [16, 256], strides = [1, 1]} : vector<16x290xf32> to vector<16x256xf32>
    %c96_507 = arith.constant 96 : index
    %c0_508 = arith.constant 0 : index
    %879 = vector.load %arg27[%c96_507, %c0_508] : memref<288x256xf32, #tpu.memory_space<vmem>>, vector<16x256xf32>
    tpu.vector_store %arg27[%c96_507, %c0_508], %878 {strides = array<i32>} : memref<288x256xf32, #tpu.memory_space<vmem>>, vector<16x256xf32>,
    %880 = vector.extract_strided_slice %832 {offsets = [0, 33], sizes = [16, 256], strides = [1, 1]} : vector<16x290xf32> to vector<16x256xf32>
    %c112_509 = arith.constant 112 : index
    %c0_510 = arith.constant 0 : index
    %881 = vector.load %arg27[%c112_509, %c0_510] : memref<288x256xf32, #tpu.memory_space<vmem>>, vector<16x256xf32>
    tpu.vector_store %arg27[%c112_509, %c0_510], %880 {strides = array<i32>} : memref<288x256xf32, #tpu.memory_space<vmem>>, vector<16x256xf32>,
    %882 = vector.extract_strided_slice %865 {offsets = [0, 34], sizes = [16, 256], strides = [1, 1]} : vector<16x290xf32> to vector<16x256xf32>
    %c128_511 = arith.constant 128 : index
    %c0_512 = arith.constant 0 : index
    %883 = vector.load %arg27[%c128_511, %c0_512] : memref<288x256xf32, #tpu.memory_space<vmem>>, vector<16x256xf32>
    tpu.vector_store %arg27[%c128_511, %c0_512], %882 {strides = array<i32>} : memref<288x256xf32, #tpu.memory_space<vmem>>, vector<16x256xf32>,
    %c0_513 = arith.constant 0 : index
    %c0_514 = arith.constant 0 : index
    %884 = vector.load %arg27[%c0_513, %c0_514] : memref<288x256xf32, #tpu.memory_space<vmem>>, vector<144x256xf32>
    %885 = arith.truncf %884 : vector<144x256xf32> to vector<144x256xbf16>
    %c0_515 = arith.constant 0 : index
    %c0_516 = arith.constant 0 : index
    %886 = vector.load %arg12[%c0_515, %c0_516] : memref<8x144xbf16, #tpu.memory_space<vmem>>, vector<8x144xbf16>
    %cst_517 = arith.constant dense<0.000000e+00> : vector<8x256xf32>
    %887 = tpu.matmul %886, %885, %cst_517 {dimension_numbers = #tpu.dot_dimension_numbers<[1], [0], [0], [1], [0, 0, 1, 1], [], []>} : vector<8x144xbf16>, vector<144x256xbf16>, vector<8x256xf32> -> vector<8x256xf32>
    %cst_518 = arith.constant dense<0.000000e+00> : vector<8xf32>
    %888 = vector.multi_reduction <add>, %887, %cst_518 [1] : vector<8x256xf32> to vector<8xf32>
    %889 = vector.shape_cast %888 : vector<8xf32> to vector<8x1xf32>
    %cst_519 = arith.constant 2.560000e+02 : f32
    %890 = vector.broadcast %cst_519 : f32 to vector<8x1xf32>
    %891 = arith.divf %889, %890 : vector<8x1xf32>
    %892 = vector.broadcast %891 : vector<8x1xf32> to vector<8x256xf32>
    %893 = arith.subf %887, %892 : vector<8x256xf32>
    %894 = arith.mulf %893, %893 : vector<8x256xf32>
    %cst_520 = arith.constant dense<0.000000e+00> : vector<8xf32>
    %895 = vector.multi_reduction <add>, %894, %cst_520 [1] : vector<8x256xf32> to vector<8xf32>
    %896 = vector.shape_cast %895 : vector<8xf32> to vector<8x1xf32>
    %cst_521 = arith.constant 2.560000e+02 : f32
    %897 = vector.broadcast %cst_521 : f32 to vector<8x1xf32>
    %898 = arith.divf %896, %897 : vector<8x1xf32>
    %899 = vector.broadcast %891 : vector<8x1xf32> to vector<8x256xf32>
    %900 = arith.subf %887, %899 : vector<8x256xf32>
    %cst_522 = arith.constant 9.99999974E-6 : f32
    %901 = vector.broadcast %cst_522 : f32 to vector<8x1xf32>
    %902 = arith.addf %898, %901 : vector<8x1xf32>
    %903 = math.rsqrt %902 : vector<8x1xf32>
    %904 = vector.broadcast %903 : vector<8x1xf32> to vector<8x256xf32>
    %905 = arith.mulf %900, %904 : vector<8x256xf32>
    %cst_523 = arith.constant 0.000000e+00 : f32
    %906 = vector.broadcast %cst_523 : f32 to vector<8x256xf32>
    %907 = arith.maximumf %905, %906 : vector<8x256xf32>
    %c0_524 = arith.constant 0 : index
    %c0_525 = arith.constant 0 : index
    %908 = vector.load %arg15[%c0_524, %c0_525] : memref<3x1xf32, #tpu.memory_space<vmem>>, vector<3x1xf32>
    %c0_526 = arith.constant 0 : index
    %c17_527 = arith.constant 17 : index
    %909 = vector.load %arg22[%c0_526, %c17_527] : memref<8x290xf32, #tpu.memory_space<vmem>>, vector<8x256xf32>
    tpu.vector_store %arg22[%c0_526, %c17_527], %907 {strides = array<i32>} : memref<8x290xf32, #tpu.memory_space<vmem>>, vector<8x256xf32>,
    %c0_528 = arith.constant 0 : index
    %c0_529 = arith.constant 0 : index
    %910 = vector.load %arg22[%c0_528, %c0_529] : memref<8x290xf32, #tpu.memory_space<vmem>>, vector<8x290xf32>
    %911 = tpu.iota {dimensions = array<i32: 1>} : vector<1x290xi32>
    %c128_i32_530 = arith.constant 128 : i32
    %912 = vector.broadcast %c128_i32_530 : i32 to vector<1x290xi32>
    %913 = arith.addi %911, %912 : vector<1x290xi32>
    %c17_i32_531 = arith.constant 17 : i32
    %914 = vector.broadcast %c17_i32_531 : i32 to vector<1x290xi32>
    %915 = arith.subi %913, %914 : vector<1x290xi32>
    %c16_i32_532 = arith.constant 16 : i32
    %c0_i32_533 = arith.constant 0 : i32
    %916 = arith.cmpi eq, %c16_i32_532, %c0_i32_533 : i32
    %c1_i32_534 = arith.constant 1 : i32
    %917 = arith.select %916, %c1_i32_534, %c16_i32_532 : i32
    %918 = vector.broadcast %917 : i32 to vector<1x290xi32>
    %919 = arith.remsi %915, %918 : vector<1x290xi32>
    %c0_i32_535 = arith.constant 0 : i32
    %920 = vector.broadcast %c0_i32_535 : i32 to vector<1x290xi32>
    %921 = arith.cmpi ne, %919, %920 : vector<1x290xi32>
    %c0_i32_536 = arith.constant 0 : i32
    %922 = vector.broadcast %c0_i32_536 : i32 to vector<1x290xi32>
    %923 = arith.cmpi slt, %919, %922 : vector<1x290xi32>
    %c0_i32_537 = arith.constant 0 : i32
    %924 = arith.cmpi slt, %917, %c0_i32_537 : i32
    %925 = vector.broadcast %924 : i1 to vector<1x290xi1>
    %926 = vector.broadcast %925 : vector<1x290xi1> to vector<1x290xi1>
    %927 = arith.xori %923, %926 : vector<1x290xi1>
    %928 = arith.andi %927, %921 : vector<1x290xi1>
    %929 = vector.broadcast %917 : i32 to vector<1x290xi32>
    %930 = arith.addi %919, %929 : vector<1x290xi32>
    %931 = arith.select %928, %930, %919 : vector<1x290xi1>, vector<1x290xi32>
    %c15_i32_538 = arith.constant 15 : i32
    %932 = vector.broadcast %c15_i32_538 : i32 to vector<1x290xi32>
    %933 = arith.cmpi slt, %931, %932 : vector<1x290xi32>
    %cst_539 = arith.constant 0.000000e+00 : f32
    %934 = vector.shape_cast %933 : vector<1x290xi1> to vector<1x290xi1>
    %935 = vector.broadcast %934 : vector<1x290xi1> to vector<8x290xi1>
    %936 = vector.broadcast %cst_539 : f32 to vector<8x290xf32>
    %937 = arith.select %935, %910, %936 : vector<8x290xi1>, vector<8x290xf32>
    %c1_i32_540 = arith.constant 1 : i32
    %938 = vector.broadcast %c1_i32_540 : i32 to vector<1x290xi32>
    %939 = arith.cmpi sge, %931, %938 : vector<1x290xi32>
    %cst_541 = arith.constant 0.000000e+00 : f32
    %940 = vector.shape_cast %939 : vector<1x290xi1> to vector<1x290xi1>
    %941 = vector.broadcast %940 : vector<1x290xi1> to vector<8x290xi1>
    %942 = vector.broadcast %cst_541 : f32 to vector<8x290xf32>
    %943 = arith.select %941, %910, %942 : vector<8x290xi1>, vector<8x290xf32>
    %944 = vector.extract_strided_slice %937 {offsets = [0, 0], sizes = [8, 256], strides = [1, 1]} : vector<8x290xf32> to vector<8x256xf32>
    %c0_542 = arith.constant 0 : index
    %c0_543 = arith.constant 0 : index
    %945 = vector.load %arg27[%c0_542, %c0_543] : memref<288x256xf32, #tpu.memory_space<vmem>>, vector<8x256xf32>
    tpu.vector_store %arg27[%c0_542, %c0_543], %944 {strides = array<i32>} : memref<288x256xf32, #tpu.memory_space<vmem>>, vector<8x256xf32>,
    %946 = vector.extract_strided_slice %910 {offsets = [0, 1], sizes = [8, 256], strides = [1, 1]} : vector<8x290xf32> to vector<8x256xf32>
    %c8_544 = arith.constant 8 : index
    %c0_545 = arith.constant 0 : index
    %947 = vector.load %arg27[%c8_544, %c0_545] : memref<288x256xf32, #tpu.memory_space<vmem>>, vector<8x256xf32>
    tpu.vector_store %arg27[%c8_544, %c0_545], %946 {strides = array<i32>} : memref<288x256xf32, #tpu.memory_space<vmem>>, vector<8x256xf32>,
    %948 = vector.extract_strided_slice %943 {offsets = [0, 2], sizes = [8, 256], strides = [1, 1]} : vector<8x290xf32> to vector<8x256xf32>
    %c16_546 = arith.constant 16 : index
    %c0_547 = arith.constant 0 : index
    %949 = vector.load %arg27[%c16_546, %c0_547] : memref<288x256xf32, #tpu.memory_space<vmem>>, vector<8x256xf32>
    tpu.vector_store %arg27[%c16_546, %c0_547], %948 {strides = array<i32>} : memref<288x256xf32, #tpu.memory_space<vmem>>, vector<8x256xf32>,
    %950 = vector.extract_strided_slice %937 {offsets = [0, 16], sizes = [8, 256], strides = [1, 1]} : vector<8x290xf32> to vector<8x256xf32>
    %c24_548 = arith.constant 24 : index
    %c0_549 = arith.constant 0 : index
    %951 = vector.load %arg27[%c24_548, %c0_549] : memref<288x256xf32, #tpu.memory_space<vmem>>, vector<8x256xf32>
    tpu.vector_store %arg27[%c24_548, %c0_549], %950 {strides = array<i32>} : memref<288x256xf32, #tpu.memory_space<vmem>>, vector<8x256xf32>,
    %952 = vector.extract_strided_slice %910 {offsets = [0, 17], sizes = [8, 256], strides = [1, 1]} : vector<8x290xf32> to vector<8x256xf32>
    %c32_550 = arith.constant 32 : index
    %c0_551 = arith.constant 0 : index
    %953 = vector.load %arg27[%c32_550, %c0_551] : memref<288x256xf32, #tpu.memory_space<vmem>>, vector<8x256xf32>
    tpu.vector_store %arg27[%c32_550, %c0_551], %952 {strides = array<i32>} : memref<288x256xf32, #tpu.memory_space<vmem>>, vector<8x256xf32>,
    %954 = vector.extract_strided_slice %943 {offsets = [0, 18], sizes = [8, 256], strides = [1, 1]} : vector<8x290xf32> to vector<8x256xf32>
    %c40_552 = arith.constant 40 : index
    %c0_553 = arith.constant 0 : index
    %955 = vector.load %arg27[%c40_552, %c0_553] : memref<288x256xf32, #tpu.memory_space<vmem>>, vector<8x256xf32>
    tpu.vector_store %arg27[%c40_552, %c0_553], %954 {strides = array<i32>} : memref<288x256xf32, #tpu.memory_space<vmem>>, vector<8x256xf32>,
    %956 = vector.extract_strided_slice %937 {offsets = [0, 32], sizes = [8, 256], strides = [1, 1]} : vector<8x290xf32> to vector<8x256xf32>
    %c48_554 = arith.constant 48 : index
    %c0_555 = arith.constant 0 : index
    %957 = vector.load %arg27[%c48_554, %c0_555] : memref<288x256xf32, #tpu.memory_space<vmem>>, vector<8x256xf32>
    tpu.vector_store %arg27[%c48_554, %c0_555], %956 {strides = array<i32>} : memref<288x256xf32, #tpu.memory_space<vmem>>, vector<8x256xf32>,
    %958 = vector.extract_strided_slice %910 {offsets = [0, 33], sizes = [8, 256], strides = [1, 1]} : vector<8x290xf32> to vector<8x256xf32>
    %c56_556 = arith.constant 56 : index
    %c0_557 = arith.constant 0 : index
    %959 = vector.load %arg27[%c56_556, %c0_557] : memref<288x256xf32, #tpu.memory_space<vmem>>, vector<8x256xf32>
    tpu.vector_store %arg27[%c56_556, %c0_557], %958 {strides = array<i32>} : memref<288x256xf32, #tpu.memory_space<vmem>>, vector<8x256xf32>,
    %960 = vector.extract_strided_slice %943 {offsets = [0, 34], sizes = [8, 256], strides = [1, 1]} : vector<8x290xf32> to vector<8x256xf32>
    %c64_558 = arith.constant 64 : index
    %c0_559 = arith.constant 0 : index
    %961 = vector.load %arg27[%c64_558, %c0_559] : memref<288x256xf32, #tpu.memory_space<vmem>>, vector<8x256xf32>
    tpu.vector_store %arg27[%c64_558, %c0_559], %960 {strides = array<i32>} : memref<288x256xf32, #tpu.memory_space<vmem>>, vector<8x256xf32>,
    %c0_560 = arith.constant 0 : index
    %c0_561 = arith.constant 0 : index
    %962 = vector.load %arg27[%c0_560, %c0_561] : memref<288x256xf32, #tpu.memory_space<vmem>>, vector<72x256xf32>
    %963 = arith.truncf %962 : vector<72x256xf32> to vector<72x256xbf16>
    %c0_562 = arith.constant 0 : index
    %c0_563 = arith.constant 0 : index
    %964 = vector.load %arg13[%c0_562, %c0_563] : memref<3x72xbf16, #tpu.memory_space<vmem>>, vector<3x72xbf16>
    %cst_564 = arith.constant dense<0.000000e+00> : vector<3x256xf32>
    %965 = tpu.matmul %964, %963, %cst_564 {dimension_numbers = #tpu.dot_dimension_numbers<[1], [0], [0], [1], [0, 0, 1, 1], [], []>} : vector<3x72xbf16>, vector<72x256xbf16>, vector<3x256xf32> -> vector<3x256xf32>
    %966 = vector.broadcast %908 : vector<3x1xf32> to vector<3x256xf32>
    %967 = arith.addf %965, %966 : vector<3x256xf32>
    %968 = math.tanh %967 : vector<3x256xf32>
    %c0_565 = arith.constant 0 : index
    %c0_566 = arith.constant 0 : index
    %c0_567 = arith.constant 0 : index
    %969 = vector.load %arg20[%c0_565, %c0_566, %c0_567] : memref<1x3x256xf32, #tpu.memory_space<vmem>>, vector<1x3x256xf32>
    %970 = vector.shape_cast %969 : vector<1x3x256xf32> to vector<3x256xf32>
    %971 = vector.shape_cast %968 : vector<3x256xf32> to vector<1x3x256xf32>
    tpu.vector_store %arg20[%c0_565, %c0_566, %c0_567], %971 {strides = array<i32>} : memref<1x3x256xf32, #tpu.memory_space<vmem>>, vector<1x3x256xf32>,
    return
  }
  func.func @transform_0(%arg0: i32) -> (i32, i32, i32) {
    %c0_i32 = arith.constant 0 : i32
    %c0_i32_0 = arith.constant 0 : i32
    %c0_i32_1 = arith.constant 0 : i32
    return %arg0, %c0_i32, %c0_i32_0 : i32, i32, i32
  }
  func.func @transform_1(%arg0: i32) -> (i32, i32) {
    %c0_i32 = arith.constant 0 : i32
    %c0_i32_0 = arith.constant 0 : i32
    %c0_i32_1 = arith.constant 0 : i32
    return %c0_i32, %c0_i32_0 : i32, i32
  }
  func.func @transform_2(%arg0: i32) -> (i32, i32) {
    %c0_i32 = arith.constant 0 : i32
    %c0_i32_0 = arith.constant 0 : i32
    %c0_i32_1 = arith.constant 0 : i32
    return %c0_i32, %c0_i32_0 : i32, i32
  }
  func.func @transform_3(%arg0: i32) -> (i32, i32) {
    %c0_i32 = arith.constant 0 : i32
    %c0_i32_0 = arith.constant 0 : i32
    %c0_i32_1 = arith.constant 0 : i32
    return %c0_i32, %c0_i32_0 : i32, i32
  }
  func.func @transform_4(%arg0: i32) -> (i32, i32) {
    %c0_i32 = arith.constant 0 : i32
    %c0_i32_0 = arith.constant 0 : i32
    %c0_i32_1 = arith.constant 0 : i32
    return %c0_i32, %c0_i32_0 : i32, i32
  }
  func.func @transform_5(%arg0: i32) -> (i32, i32) {
    %c0_i32 = arith.constant 0 : i32
    %c0_i32_0 = arith.constant 0 : i32
    %c0_i32_1 = arith.constant 0 : i32
    return %c0_i32, %c0_i32_0 : i32, i32
  }
  func.func @transform_6(%arg0: i32) -> (i32, i32) {
    %c0_i32 = arith.constant 0 : i32
    %c0_i32_0 = arith.constant 0 : i32
    %c0_i32_1 = arith.constant 0 : i32
    return %c0_i32, %c0_i32_0 : i32, i32
  }
  func.func @transform_7(%arg0: i32) -> (i32, i32) {
    %c0_i32 = arith.constant 0 : i32
    %c0_i32_0 = arith.constant 0 : i32
    %c0_i32_1 = arith.constant 0 : i32
    return %c0_i32, %c0_i32_0 : i32, i32
  }
  func.func @transform_8(%arg0: i32) -> (i32, i32) {
    %c0_i32 = arith.constant 0 : i32
    %c0_i32_0 = arith.constant 0 : i32
    %c0_i32_1 = arith.constant 0 : i32
    return %c0_i32, %c0_i32_0 : i32, i32
  }
  func.func @transform_9(%arg0: i32) -> (i32, i32) {
    %c0_i32 = arith.constant 0 : i32
    %c0_i32_0 = arith.constant 0 : i32
    %c0_i32_1 = arith.constant 0 : i32
    return %c0_i32, %c0_i32_0 : i32, i32
  }
  func.func @transform_10(%arg0: i32) -> (i32, i32) {
    %c0_i32 = arith.constant 0 : i32
    %c0_i32_0 = arith.constant 0 : i32
    %c0_i32_1 = arith.constant 0 : i32
    return %c0_i32, %c0_i32_0 : i32, i32
  }
  func.func @transform_11(%arg0: i32) -> (i32, i32) {
    %c0_i32 = arith.constant 0 : i32
    %c0_i32_0 = arith.constant 0 : i32
    %c0_i32_1 = arith.constant 0 : i32
    return %c0_i32, %c0_i32_0 : i32, i32
  }
  func.func @transform_12(%arg0: i32) -> (i32, i32) {
    %c0_i32 = arith.constant 0 : i32
    %c0_i32_0 = arith.constant 0 : i32
    %c0_i32_1 = arith.constant 0 : i32
    return %c0_i32, %c0_i32_0 : i32, i32
  }
  func.func @transform_13(%arg0: i32) -> (i32, i32) {
    %c0_i32 = arith.constant 0 : i32
    %c0_i32_0 = arith.constant 0 : i32
    %c0_i32_1 = arith.constant 0 : i32
    return %c0_i32, %c0_i32_0 : i32, i32
  }
  func.func @transform_14(%arg0: i32) -> (i32, i32) {
    %c0_i32 = arith.constant 0 : i32
    %c0_i32_0 = arith.constant 0 : i32
    %c0_i32_1 = arith.constant 0 : i32
    return %c0_i32, %c0_i32_0 : i32, i32
  }
  func.func @transform_15(%arg0: i32) -> (i32, i32) {
    %c0_i32 = arith.constant 0 : i32
    %c0_i32_0 = arith.constant 0 : i32
    %c0_i32_1 = arith.constant 0 : i32
    return %c0_i32, %c0_i32_0 : i32, i32
  }
  func.func @transform_16(%arg0: i32) -> (i32, i32) {
    %c0_i32 = arith.constant 0 : i32
    %c0_i32_0 = arith.constant 0 : i32
    %c0_i32_1 = arith.constant 0 : i32
    return %c0_i32, %c0_i32_0 : i32, i32
  }
  func.func @transform_17(%arg0: i32) -> (i32, i32) {
    %c0_i32 = arith.constant 0 : i32
    %c0_i32_0 = arith.constant 0 : i32
    %c0_i32_1 = arith.constant 0 : i32
    return %c0_i32, %c0_i32_0 : i32, i32
  }
  func.func @transform_18(%arg0: i32) -> (i32, i32) {
    %c0_i32 = arith.constant 0 : i32
    %c0_i32_0 = arith.constant 0 : i32
    %c0_i32_1 = arith.constant 0 : i32
    return %c0_i32, %c0_i32_0 : i32, i32
  }
  func.func @transform_19(%arg0: i32) -> (i32, i32, i32) {
    %c0_i32 = arith.constant 0 : i32
    %c0_i32_0 = arith.constant 0 : i32
    %c0_i32_1 = arith.constant 0 : i32
    return %arg0, %c0_i32, %c0_i32_0 : i32, i32, i32
  }
}

</mosaic_0001>

<bundles_post_ra>
// kernel: inpainting_generator_forward.1
= control target key start
LH: loop header
LB: loop body
LE: loop exit
PB: predicated region body
PF: predicated region fallthrough
CT: control target
= control target key end

     0   :  { %s8195_s0 = inlined_call_operand.vmem [shape: f32[2,8,256], index: 0, kind: input, shape index: {}]   ;;  %s8196_s1 = inlined_call_operand.vmem [shape: bf16[8,200], index: 1, kind: input, shape index: {}]   ;;  %s8197_s2 = inlined_call_operand.vmem [shape: bf16[16,72], index: 2, kind: input, shape index: {}]   ;;  %s8198_s3 = inlined_call_operand.vmem [shape: bf16[16,144], index: 3, kind: input, shape index: {}]   ;;  %s8199_s4 = inlined_call_operand.vmem [shape: bf16[32,144], index: 4, kind: input, shape index: {}]   ;;  %s8200_s5 = inlined_call_operand.vmem [shape: bf16[32,288], index: 5, kind: input, shape index: {}]   ;;  %s8201_s6 = inlined_call_operand.vmem [shape: bf16[32,288], index: 6, kind: input, shape index: {}]   ;;  %s8202_s7 = inlined_call_operand.vmem [shape: bf16[32,288], index: 7, kind: input, shape index: {}]   ;;  %s8203_s8 = inlined_call_operand.vmem [shape: bf16[32,288], index: 8, kind: input, shape index: {}]   ;;  %s8204_s9 = inlined_call_operand.vmem [shape: bf16[32,288], index: 9, kind: input, shape index: {}]   ;;  %s8205_s10 = inlined_call_operand.vmem [shape: bf16[16,288], index: 10, kind: input, shape index: {}]   ;;  %s8206_s11 = inlined_call_operand.vmem [shape: bf16[8,144], index: 11, kind: input, shape index: {}]   ;;  %s8207_s12 = inlined_call_operand.vmem [shape: bf16[3,72], index: 12, kind: input, shape index: {}]   ;;  %s8208_s13 = inlined_call_operand.vmem [shape: f32[8,1], index: 13, kind: input, shape index: {}]   ;;  %s8209_s14 = inlined_call_operand.vmem [shape: f32[3,1], index: 14, kind: input, shape index: {}]   ;;  %s8210_s15 = inlined_call_operand.vmem [shape: f32[256,64], index: 15, kind: input, shape index: {}]   ;;  %s8211_s16 = inlined_call_operand.vmem [shape: f32[64,16], index: 16, kind: input, shape index: {}]   ;;  %s8212_s17 = inlined_call_operand.vmem [shape: f32[16,64], index: 17, kind: input, shape index: {}]   ;;  %s8213_s18 = inlined_call_operand.vmem [shape: f32[64,256], index: 18, kind: input, shape index: {}]   ;;  %s8214_s19 = inlined_call_operand.vmem [shape: f32[2,3,256], index: 19, kind: output, shape index: {}]  }
   0x1   :  { %8270 = sst [smem:[#allocation10_spill]] %s8195_s0  ;;  %s6411_s0 = smov 0  }
   0x2   :  { %8271 = sst [smem:[#allocation11_spill]] %s8196_s1 }
   0x3   :  { %8272 = sst [smem:[#allocation12_spill]] %s8197_s2 }
   0x4   :  { %8273 = sst [smem:[#allocation13_spill]] %s8198_s3 }
   0x5   :  { %8274 = sst [smem:[#allocation14_spill]] %s8199_s4 }
   0x6   :  { %8275 = sst [smem:[#allocation15_spill]] %s8200_s5 }
   0x7   :  { %8276 = sst [smem:[#allocation16_spill]] %s8208_s13 }
   0x8   :  { %8277 = sst [smem:[#allocation17_spill]] %s8210_s15 }
   0x9   :  { %8278 = sst [smem:[#allocation18_spill]] %s8211_s16 }
   0xa LB: > { %8279 = sst [smem:[#allocation9_spill]] %s6272_s0  ;;  %s5588_s30 = sadd.s32 4294967295, %s6272_s0   ;;  %s6272_s0 = sphi %s6411_s0, %s29_s0  }
   0xb   : > { %p5592_p0 = scmp.ge.s32.totalorder %s6272_s0, 1  ;;  %p537_p1 = scmp.lt.s32.totalorder %s6272_s0, 3 }
   0xd   : > { %p538_p2 = pnand %p5592_p0, %p537_p1 }
   0xe   : > { %p593_p3 = scmp.lt.s32.totalorder (!%p538_p2), %s5588_s30, 1  ;;  %vm604_vm0 = vcmask (!%p538_p2), 277504   ;;  %vm606_vm1 = vcmask (!%p538_p2), 556304   ;;  %v6274_v0 = vmov (!%p538_p2), 0.0   ;;  %s8280_s22 = sld [smem:[#allocation10_spill]] (!%p538_p2)  ;;  %v660_v3 = vlaneseq (!%p538_p2) }
   0xf   : > { %541 = sbr.rel (%p538_p2) target bundleno = 10343 (0x2867), region = 96  ;;  %605 = vst.msk [vmem:[#allocation2] sm:$0xff] (!%p538_p2), %vm604_vm0, %v6274_v0  ;;  %s6275_s23 = smov (!%p538_p2), 34   ;;  %vm653_vm2 = vcmask (!%p538_p2), 1047824   ;;  %v6299_v51 = vmov (!%p538_p2), 0  }
  0x10   : > { %607 = vst.msk [vmem:[#allocation2 + $0x10] sm:$0xff] (!%p538_p2), %vm606_vm1, %v6274_v0  ;;  %v6428_v4 = vand.u32 (!%p538_p2), 127, %v660_v3  ;;  %s8220_s24 = smov (!%p538_p2), 126   ;;  %s8216_s25 = smov (!%p538_p2), 94   ;;  %6117 = vset.pattern.permute.xlu0 (!%p538_p2), %v6299_v51  ;;  %1487 = vmatprep.mubr.bf16.mxu1 (!%p538_p2), %v6299_v51 }
  0x11   : > { %s8218_s3 = smov (!%p538_p2), 110   ;;  %s8245_s26 = smov (!%p538_p2), 127  }
  0x12   : > { %v663_v5 = vadd.s32 (!%p538_p2), 256, %v6428_v4  ;;  %v6443_v15 = vadd.s32 (!%p538_p2), 128, %v6428_v4  ;;  %s8224_s27 = smov (!%p538_p2), 124   ;;  %s6281_s28 = smov (!%p538_p2), 78  }
  0x13   : > { %s8241_s29 = smov (!%p538_p2), 111   ;;  %s6284_s21 = smov (!%p538_p2), 125  }
  0x14   : > { %v6431_v6 = vadd.s32 (!%p538_p2), 128, %v663_v5  ;;  %v5597_v17 = vadd.s32 (!%p538_p2), 4294967262, %v6443_v15  ;;  %s8235_s1 = smov (!%p538_p2), 96   ;;  %v6514_v26 = vadd.s32 (!%p538_p2), 128, %v6443_v15  ;;  %s8283_s13 = sld [smem:[#allocation16_spill]] (!%p538_p2) }
  0x15   : > { %s8299_s15 = sld [smem:[#allocation17_spill]] (!%p538_p2)  ;;  %s8338_s4 = sld [smem:[#allocation14_spill]] (!%p538_p2) }
  0x16   : > { %s8478_s30 = smov (!%p593_p3, %s5588_s30), 1  ;;  %v5599_v7 = vadd.s32 4294967262, %v6431_v6  ;;  %v6459_v19 = vand.u32 15, %v5597_v17  ;;  %v5598_v28 = vadd.s32 4294967262, %v6514_v26  ;;  %s8339_s16 = sld [smem:[#allocation18_spill]] }
  0x17   : > { %s5682_s20 = sshll.u32 %s8478_s30, 4  ;;  %s8362_s0 = smov 120  }
  0x18   : > { %s597_s2 = scalar_lea.vmem %s8280_s22, %s5682_s20  ;;  %v687_v8 = vand.u32 15, %v5599_v7  ;;  %vm741_vm7 = vcmp.ge.s32.totalorder %v6459_v19, 2  ;;  %vm717_vm8 = vcmp.lt.s32.totalorder %v6459_v19, 15  ;;  %vm729_vm9 = vcmp.ge.s32.totalorder %v6459_v19, 1  ;;  %s6283_s20 = smov 109  }
  0x19   : > { %v640_v1 = vld [vmem:[%s597_s2] sm:$0xff]  ;;  %v641_v2 = vld [vmem:[%s597_s2 + $0x8] sm:$0xff]  ;;  %vm705_vm11 = vcmp.lt.s32.totalorder %v6459_v19, 14  ;;  %s6286_s22 = smov 92   ;;  %s8243_s2 = smov 112   ;;  %v680_v29 = vand.u32 15, %v5598_v28 }
  0x1a   : > { %645 = vrot.lane.b32.xlu0 %v640_v1, %s6275_s23  ;;  %vm692_vm3 = vcmp.ne.s32.totalorder %v687_v8, 0  ;;  %vm695_vm4 = vcmp.lt.s32.totalorder %v687_v8, 0  ;;  %v701_v11 = vadd.s32 16, %v687_v8  ;;  %v642_v52 = vld [vmem:[%s8283_s13] sm:$0xff]  ;;  %s8317_s13 = smov 111   ;;  %s8364_s5 = sld [smem:[#allocation15_spill]] }
  0x1b   : > { %vm698_vm5 = vmand %vm695_vm4, %vm692_vm3  ;;  %vm691_vm14 = vcmp.ne.s32.totalorder %v680_v29, 0  ;;  %vm694_vm15 = vcmp.lt.s32.totalorder %v680_v29, 0  ;;  %v700_v30 = vadd.s32 16, %v680_v29 }
  0x1c   : > { %v704_v14 = vsel %vm698_vm5, %v701_v11, %v687_v8  ;;  %vm8228_vm5 = vcmask 588800  }
  0x1d   : > { %vm719_vm6 = vcmp.lt.s32.totalorder %v704_v14, 15  ;;  %vm731_vm10 = vcmp.ge.s32.totalorder %v704_v14, 1  ;;  %vm743_vm12 = vcmp.ge.s32.totalorder %v704_v14, 2  ;;  %vm707_vm13 = vcmp.lt.s32.totalorder %v704_v14, 14 }
  0x1e   : > { %647 = vrot.lane.b32.xlu0 %v641_v2, %s6275_s23  ;;  %s6288_s23 = smov 79  }
  0x8c   : > { %v646_v9 = vpop.permute.xlu0 %645 }
  0x8d   : > { %654 = vst.msk [vmem:[#allocation2] sm:$0xff] %vm653_vm2, %v646_v9 }
  0x90   : > { %v648_v10 = vpop.permute.xlu0 %647 }
  0x91   : > { %v6435_v12 = vsel %vm604_vm0, %v646_v9, %v648_v10  ;;  %656 = vst.msk [vmem:[#allocation2 + $0x10] sm:$0xff] %vm604_vm0, %v648_v10  ;;  %vm697_vm0 = vmand %vm694_vm15, %vm691_vm14  ;;  %vm812_vm15 = vcmask 1014784  }
  0x92   : > { %v6537_v31 = vsel %vm697_vm0, %v700_v30, %v680_v29  ;;  %vm8233_vm0 = vcmask 916480  }
  0x93   : > { %vm718_vm1 = vcmp.lt.s32.totalorder %v6537_v31, 15  ;;  %vm730_vm2 = vcmp.ge.s32.totalorder %v6537_v31, 1  ;;  %vm742_vm3 = vcmp.ge.s32.totalorder %v6537_v31, 2  ;;  %vm706_vm4 = vcmp.lt.s32.totalorder %v6537_v31, 14 }
  0x94   : > { %v6438_v13 = vld [vmem:[#allocation2] sm:$0xff]  ;;  %v727_v32 = vsel %vm718_vm1, %v6435_v12, 0.0  ;;  %v739_v33 = vsel %vm730_vm2, %v6435_v12, 0.0  ;;  %v6552_v34 = vsel %vm742_vm3, %v6435_v12, 0.0  ;;  %v715_v35 = vsel %vm706_vm4, %v6435_v12, 0.0 }
  0x95   : > { %774 = vrot.lane.b32.xlu1 %v6438_v13, %s8220_s24  ;;  %v6467_v20 = vsel %vm741_vm7, %v6438_v13, 0.0  ;;  %v6479_v21 = vsel %vm717_vm8, %v6438_v13, 0.0  ;;  %v6487_v22 = vsel %vm729_vm9, %v6438_v13, 0.0  ;;  %v6500_v24 = vsel %vm705_vm11, %v6438_v13, 0.0 }
  0x96   : > { %vm984_vm7 = vcmask 637952   ;;  %vm8248_vm8 = vcmask 1039360   ;;  %vm8234_vm9 = vcmask 1031168   ;;  %vm8247_vm1 = vcmask 908288  }
  0x97   : > { %vm867_vm2 = vcmask 891904   ;;  %vm880_vm3 = vcmask 883712  }
  0x98   : > { %v6445_v16 = vld [vmem:[#allocation2 + $0x10] sm:$0xff] }
  0x99   : > { %913 = vrot.lane.b32.xlu1 %v6438_v13, %s8216_s25  ;;  %778 = vrot.lane.b32.xlu0 %v6445_v16, %s8220_s24  ;;  %v6453_v18 = vsel %vm719_vm6, %v6445_v16, 0.0  ;;  %v6495_v23 = vsel %vm731_vm10, %v6445_v16, 0.0  ;;  %v6511_v25 = vsel %vm743_vm12, %v6445_v16, 0.0  ;;  %v716_v27 = vsel %vm707_vm13, %v6445_v16, 0.0 }
  0x9a   : > { %vm8230_vm6 = vcmask 769024   ;;  %vm796_vm10 = vcmask 1022976   ;;  %vm6301_vm12 = vmmov 1  }
  0x9b   : > { %vm6242_vm13 = vmpackc.low %vm6301_vm12, %vm706_vm4  ;;  %vm8231_vm4 = vcmask 785408  }
  0x9c   : > { %vm6245_vm14 = vmpackc.low %vm6301_vm12, %vm705_vm11  ;;  %vm8232_vm11 = vcmask 900096  }
  0x9d   : > { %852 = vrot.lane.b32.xlu0 %v6445_v16, %s8218_s3  ;;  %762 = vrot.lane.b32.xlu1 %v6453_v18, %s8245_s26 }
  0xa1   : > { %848 = vrot.lane.b32.xlu0 %v6438_v13, %s8218_s3  ;;  %776 = vrot.lane.b32.xlu1 %v6435_v12, %s8220_s24  ;;  %s8222_s24 = smov 62  }
  0xa5   : > { %917 = vrot.lane.b32.xlu0 %v6445_v16, %s8216_s25  ;;  %806 = vrot.lane.b32.xlu1 %v6467_v20, %s8224_s27 }
  0xa9   : > { %982 = vrot.lane.b32.xlu0 %v6445_v16, %s6281_s28  ;;  %850 = vrot.lane.b32.xlu1 %v6435_v12, %s8218_s3  ;;  %s6291_s3 = smov 108  }
  0xad   : > { %978 = vrot.lane.b32.xlu0 %v6438_v13, %s6281_s28  ;;  %835 = vrot.lane.b32.xlu1 %v6479_v21, %s8241_s29 }
  0xb1   : > { %758 = vrot.lane.b32.xlu0 %v6479_v21, %s8245_s26  ;;  %861 = vrot.lane.b32.xlu1 %v6487_v22, %s6283_s20 }
  0xb5   : > { %794 = vrot.lane.b32.xlu0 %v6495_v23, %s6284_s21  ;;  %887 = vrot.lane.b32.xlu1 %v6500_v24, %s8235_s1 }
  0xb9   : > { %790 = vrot.lane.b32.xlu0 %v6487_v22, %s6284_s21  ;;  %915 = vrot.lane.b32.xlu1 %v6435_v12, %s8216_s25  ;;  %s6289_s25 = smov 77  }
  0xbd   : > { %810 = vrot.lane.b32.xlu0 %v6511_v25, %s8224_s27  ;;  %939 = vrot.lane.b32.xlu1 %v6467_v20, %s6286_s22 }
  0xc1   : > { %826 = vrot.lane.b32.xlu0 %v716_v27, %s8243_s2  ;;  %980 = vrot.lane.b32.xlu1 %v6435_v12, %s6281_s28  ;;  %s6290_s28 = smov 64  }
  0xc5   : > { %822 = vrot.lane.b32.xlu0 %v6500_v24, %s8243_s2  ;;  %965 = vrot.lane.b32.xlu1 %v6479_v21, %s6288_s23 }
  0xc9   : > { %839 = vrot.lane.b32.xlu0 %v6453_v18, %s8241_s29  ;;  %991 = vrot.lane.b32.xlu1 %v6487_v22, %s6289_s25 }
  0xcd   : > { %865 = vrot.lane.b32.xlu0 %v6495_v23, %s6283_s20  ;;  %1017 = vrot.lane.b32.xlu1 %v6500_v24, %s6290_s28 }
  0xd1   : > { %878 = vrot.lane.b32.xlu0 %v6511_v25, %s6291_s3  ;;  %1045 = vrot.lane.b32.xlu1 %v6435_v12, %s8222_s24  ;;  %s8237_s24 = smov 95  }
  0xd5   : > { %874 = vrot.lane.b32.xlu0 %v6467_v20, %s6291_s3  ;;  %760 = vrot.lane.b32.xlu1 %v727_v32, %s8245_s26 }
  0xd9   : > { %891 = vrot.lane.b32.xlu0 %v716_v27, %s8235_s1  ;;  %792 = vrot.lane.b32.xlu1 %v739_v33, %s6284_s21  ;;  %s6294_s21 = smov 93  }
  0xdd   : > { %904 = vrot.lane.b32.xlu0 %v6453_v18, %s8237_s24  ;;  %808 = vrot.lane.b32.xlu1 %v6552_v34, %s8224_s27  ;;  %s6295_s27 = smov 80  }
  0xe1   : > { %900 = vrot.lane.b32.xlu0 %v6479_v21, %s8237_s24  ;;  %824 = vrot.lane.b32.xlu1 %v715_v35, %s8243_s2 }
  0xe5   : > { %930 = vrot.lane.b32.xlu0 %v6495_v23, %s6294_s21  ;;  %837 = vrot.lane.b32.xlu1 %v727_v32, %s8241_s29 }
  0xe9   : > { %926 = vrot.lane.b32.xlu0 %v6487_v22, %s6294_s21  ;;  %863 = vrot.lane.b32.xlu1 %v739_v33, %s6283_s20  ;;  %s6296_s20 = smov 76  }
  0xed   : > { %943 = vrot.lane.b32.xlu0 %v6511_v25, %s6286_s22  ;;  %876 = vrot.lane.b32.xlu1 %v6552_v34, %s6291_s3  ;;  %s6297_s3 = smov 63  }
  0xf1   : > { %956 = vrot.lane.b32.xlu0 %v716_v27, %s6295_s27  ;;  %889 = vrot.lane.b32.xlu1 %v715_v35, %s8235_s1 }
  0xf5   : > { %952 = vrot.lane.b32.xlu0 %v6500_v24, %s6295_s27  ;;  %902 = vrot.lane.b32.xlu1 %v727_v32, %s8237_s24 }
  0xf9   : > { %969 = vrot.lane.b32.xlu0 %v6453_v18, %s6288_s23  ;;  %928 = vrot.lane.b32.xlu1 %v739_v33, %s6294_s21  ;;  %s6300_s21 = smov 60  }
  0xfd   : > { %995 = vrot.lane.b32.xlu0 %v6495_v23, %s6289_s25  ;;  %941 = vrot.lane.b32.xlu1 %v6552_v34, %s6286_s22  ;;  %s8289_s22 = smov 110  }
 0x101   : > { %1008 = vrot.lane.b32.xlu0 %v6511_v25, %s6296_s20  ;;  %954 = vrot.lane.b32.xlu1 %v715_v35, %s6295_s27  ;;  %s6298_s27 = smov 61  }
 0x105   : > { %1004 = vrot.lane.b32.xlu0 %v6467_v20, %s6296_s20  ;;  %967 = vrot.lane.b32.xlu1 %v727_v32, %s6288_s23  ;;  %s8290_s23 = smov 94  }
 0x107   : > { %v6584_v36 = vpop.permute.xlu1 %774 }
 0x109   : > { %1021 = vrot.lane.b32.xlu0 %v716_v27, %s6290_s28  ;;  %993 = vrot.lane.b32.xlu1 %v739_v33, %s6289_s25  ;;  %s8281_s25 = smov 62  }
 0x10b   : > { %v914_v37 = vpop.permute.xlu1 %913  ;;  %v6588_v38 = vpop.permute.xlu0 %778 }
 0x10d   : > { %1034 = vrot.lane.b32.xlu0 %v6453_v18, %s6297_s3  ;;  %1006 = vrot.lane.b32.xlu1 %v6552_v34, %s6296_s20  ;;  %s8368_s20 = smov 122  }
 0x10f   : > { %v6592_v39 = vpop.permute.xlu0 %852  ;;  %v763_v40 = vpop.permute.xlu1 %762 }
 0x111   : > { %1030 = vrot.lane.b32.xlu0 %v6479_v21, %s6297_s3  ;;  %1019 = vrot.lane.b32.xlu1 %v715_v35, %s6290_s28  ;;  %s8282_s28 = sld [smem:[#allocation11_spill]] }
 0x113   : > { %v6596_v41 = vpop.permute.xlu0 %848  ;;  %v6598_v42 = vpop.permute.xlu1 %776 }
 0x114   : > { %v782_v24 = vsel %vm8234_vm9, %v6598_v42, %v6588_v38 }
 0x115   : > { %1047 = vrot.lane.b32.xlu0 %v6445_v16, %s8281_s25  ;;  %1032 = vrot.lane.b32.xlu1 %v727_v32, %s6297_s3  ;;  %s8416_s3 = smov 96  }
 0x117   : > { %v6602_v43 = vpop.permute.xlu0 %917  ;;  %v6604_v44 = vpop.permute.xlu1 %806  ;;  %v6614_v47 = vld [vmem:[%s8282_s28] sm:$0xff]  ;;  %s8256_s28 = smov 118  }
 0x118   : > { %v5601_v48 = vcombine.high %v6614_v47, %v6614_v47 }
 0x119   : > { %1060 = vrot.lane.b32.xlu0 %v6495_v23, %s6298_s27  ;;  %1058 = vrot.lane.b32.xlu1 %v739_v33, %s6298_s27  ;;  %v781_v23 = vsel %vm8234_vm9, %v6584_v36, %v6598_v42 }
 0x11a   : > { %5603 = vmatprep.mubr.msk.bf16.mxu0 %vm8228_vm5, %v5601_v48 }
 0x11b   : > { %v6607_v45 = vpop.permute.xlu0 %982  ;;  %v6609_v46 = vpop.permute.xlu1 %850 }
 0x11c   : > { %v855_v42 = vsel %vm8232_vm11, %v6596_v41, %v6609_v46 }
 0x11d   : > { %1056 = vrot.lane.b32.xlu0 %v6487_v22, %s6298_s27  ;;  %1043 = vrot.lane.b32.xlu1 %v6438_v13, %s8281_s25  ;;  %s8239_s25 = smov 17   ;;  %s8288_s27 = smov 126  }
 0x11f   : > { %v979_v49 = vpop.permute.xlu0 %978  ;;  %v6622_v50 = vpop.permute.xlu1 %835 }
 0x121   : > { %1071 = vrot.lane.b32.xlu0 %v6552_v34, %s6300_s21  ;;  %1069 = vrot.lane.b32.xlu1 %v6467_v20, %s6300_s21 }
 0x123   : > { %v759_v53 = vpop.permute.xlu0 %758  ;;  %v6631_v54 = vpop.permute.xlu1 %861 }
 0x125   : > { %1073 = vrot.lane.b32.xlu1 %v6511_v25, %s6300_s21  ;;  %1161 = vperm.xlu0 %6117, %v642_v52   ;;  %s8316_s21 = smov 112  }
 0x127   : > { %v795_v55 = vpop.permute.xlu0 %794  ;;  %v6634_v56 = vpop.permute.xlu1 %887 }
 0x12b   : > { %v791_v57 = vpop.permute.xlu0 %790  ;;  %v6636_v58 = vpop.permute.xlu1 %915 }
 0x12c   : > { %v6640_v59 = vsel %vm8230_vm6, %v914_v37, %v6636_v58 }
 0x12d   : > { %924 = vst [vmem:[#allocation8 + $0xc0] sm:$0xff] %v6640_v59 }
 0x12f   : > { %v811_v60 = vpop.permute.xlu0 %810  ;;  %v6643_v61 = vpop.permute.xlu1 %939 }
 0x133   : > { %v827_v62 = vpop.permute.xlu0 %826  ;;  %v6645_v63 = vpop.permute.xlu1 %980 }
 0x134   : > { %v6649_v1 = vsel %vm984_vm7, %v979_v49, %v6645_v63 }
 0x135   : > { %989 = vst [vmem:[#allocation8 + $0x110] sm:$0xff] %v6649_v1 }
 0x137   : > { %v823_v2 = vpop.permute.xlu0 %822  ;;  %v6652_v3 = vpop.permute.xlu1 %965 }
 0x13b   : > { %v840_v5 = vpop.permute.xlu0 %839  ;;  %v6654_v7 = vpop.permute.xlu1 %991 }
 0x13f   : > { %v866_v8 = vpop.permute.xlu0 %865  ;;  %v6656_v9 = vpop.permute.xlu1 %1017 }
 0x143   : > { %v879_v10 = vpop.permute.xlu0 %878  ;;  %v6658_v11 = vpop.permute.xlu1 %1045 }
 0x147   : > { %v875_v14 = vpop.permute.xlu0 %874  ;;  %v761_v16 = vpop.permute.xlu1 %760 }
 0x148   : > { %v765_v17 = vsel %vm8248_vm8, %v759_v53, %v761_v16  ;;  %v766_v18 = vsel %vm8248_vm8, %v761_v16, %v763_v40 }
 0x149   : > { %v6243_v22 = vpack.c.bf16 %v766_v18, %v6435_v12  ;;  %v6246_v28 = vpack.c.bf16 %v765_v17, %v6438_v13 }
 0x14b   : > { %v6662_v20 = vpop.permute.xlu0 %891  ;;  %v793_v21 = vpop.permute.xlu1 %792  ;;  %6244 = vmatprep.subr.msk.bf16.mxu0 %vm6242_vm13, %v6243_v22  ;;  %vm932_vm13 = vcmask 760832  }
 0x14c   : > { %v797_v25 = vsel %vm796_vm10, %v791_v57, %v793_v21  ;;  %v798_v27 = vsel %vm796_vm10, %v793_v21, %v795_v55  ;;  %6247 = vmatpush1.bf16.msk.msra.mxu0 %vm6245_vm14, %v6246_v28  ;;  %vm8249_vm10 = vcmask 777216   ;;  %vm945_vm14 = vcmask 752640  }
 0x14d   : > { %v1135_v29 = vpack.c.bf16 %v798_v27, %v782_v24  ;;  %v1134_v12 = vpack.c.bf16 %v797_v25, %v781_v23 }
 0x14f   : > { %v905_v30 = vpop.permute.xlu0 %904  ;;  %v809_v31 = vpop.permute.xlu1 %808  ;;  %1183 = vmatprep.subr.bf16.mxu0 %v1135_v29 }
 0x150   : > { %1184 = vmatpush1.bf16.msra.mxu0 %v1134_v12  ;;  %v813_v34 = vsel %vm812_vm15, %v6604_v44, %v809_v31  ;;  %v814_v35 = vsel %vm812_vm15, %v809_v31, %v811_v60  ;;  %v856_v44 = vsel %vm8232_vm11, %v6609_v46, %v6592_v39  ;;  %vm958_vm15 = vcmask 654336  }
 0x153   : > { %v901_v32 = vpop.permute.xlu0 %900  ;;  %v825_v33 = vpop.permute.xlu1 %824 }
 0x154   : > { %v829_v19 = vsel %vm8233_vm0, %v823_v2, %v825_v33  ;;  %v830_v36 = vsel %vm8233_vm0, %v825_v33, %v827_v62 }
 0x155   : > { %v1137_v13 = vpack.c.bf16 %v830_v36, %v814_v35  ;;  %v1136_v37 = vpack.c.bf16 %v829_v19, %v813_v34 }
 0x157   : > { %v931_v38 = vpop.permute.xlu0 %930  ;;  %v838_v40 = vpop.permute.xlu1 %837  ;;  %1185 = vmatprep.subr.bf16.mxu0 %v1137_v13 }
 0x158   : > { %v842_v48 = vsel %vm8247_vm1, %v6622_v50, %v838_v40  ;;  %v843_v49 = vsel %vm8247_vm1, %v838_v40, %v840_v5  ;;  %1186 = vmatpush1.bf16.msra.mxu0 %v1136_v37 }
 0x159   : > { %v1139_v52 = vpack.c.bf16 %v856_v44, %v843_v49  ;;  %v1138_v53 = vpack.c.bf16 %v855_v42, %v842_v48 }
 0x15b   : > { %v927_v55 = vpop.permute.xlu0 %926  ;;  %v864_v57 = vpop.permute.xlu1 %863  ;;  %1187 = vmatprep.subr.bf16.mxu0 %v1139_v52 }
 0x15c   : > { %1188 = vmatpush1.bf16.msra.mxu0 %v1138_v53  ;;  %v868_v62 = vsel %vm867_vm2, %v6631_v54, %v864_v57  ;;  %v869_v2 = vsel %vm867_vm2, %v864_v57, %v866_v8  ;;  %vm971_vm2 = vcmask 646144  }
 0x15f   : > { %v944_v60 = vpop.permute.xlu0 %943  ;;  %v877_v41 = vpop.permute.xlu1 %876 }
 0x160   : > { %v881_v39 = vsel %vm880_vm3, %v875_v14, %v877_v41  ;;  %v882_v46 = vsel %vm880_vm3, %v877_v41, %v879_v10  ;;  %vm997_vm3 = vcmask 629760  }
 0x161   : > { %885 = vst [vmem:[#allocation8 + $0x90] sm:$0xff] %v881_v39  ;;  %v1141_v50 = vpack.c.bf16 %v882_v46, %v869_v2  ;;  %v1140_v5 = vpack.c.bf16 %v881_v39, %v868_v62 }
 0x163   : > { %v957_v16 = vpop.permute.xlu0 %956  ;;  %v890_v17 = vpop.permute.xlu1 %889  ;;  %1189 = vmatprep.subr.bf16.mxu0 %v1141_v50 }
 0x164   : > { %v894_v18 = vsel %vm8231_vm4, %v6634_v56, %v890_v17  ;;  %1190 = vmatpush1.bf16.msra.mxu0 %v1140_v5  ;;  %v895_v54 = vsel %vm8231_vm4, %v890_v17, %v6662_v20  ;;  %v921_v56 = vsel %vm8230_vm6, %v6636_v58, %v6602_v43 }
 0x165   : > { %898 = vst [vmem:[#allocation8 + $0xa0] sm:$0xff] %v894_v18 }
 0x167   : > { %v953_v21 = vpop.permute.xlu0 %952  ;;  %v903_v22 = vpop.permute.xlu1 %902 }
 0x168   : > { %v907_v8 = vsel %vm8249_vm10, %v901_v32, %v903_v22  ;;  %v908_v10 = vsel %vm8249_vm10, %v903_v22, %v905_v30 }
 0x169   : > { %911 = vst [vmem:[#allocation8 + $0xb0] sm:$0xff] %v907_v8  ;;  %v1143_v14 = vpack.c.bf16 %v908_v10, %v895_v54  ;;  %v1142_v23 = vpack.c.bf16 %v907_v8, %v894_v18 }
 0x16b   : > { %v970_v24 = vpop.permute.xlu0 %969  ;;  %v929_v25 = vpop.permute.xlu1 %928  ;;  %1191 = vmatprep.subr.bf16.mxu0 %v1143_v14 }
 0x16c   : > { %v933_v27 = vsel %vm932_vm13, %v927_v55, %v929_v25  ;;  %v934_v28 = vsel %vm932_vm13, %v929_v25, %v931_v38  ;;  %1192 = vmatpush1.bf16.msra.mxu0 %v1142_v23  ;;  %vm1010_vm13 = vcmask 621568  }
 0x16d   : > { %937 = vst [vmem:[#allocation8 + $0xd0] sm:$0xff] %v933_v27  ;;  %v1145_v20 = vpack.c.bf16 %v934_v28, %v921_v56  ;;  %v1144_v29 = vpack.c.bf16 %v933_v27, %v6640_v59  ;;  %v986_v59 = vsel %vm984_vm7, %v6645_v63, %v6607_v45  ;;  %vm8227_vm7 = vcmask 523264  }
 0x16f   : > { %v996_v12 = vpop.permute.xlu0 %995  ;;  %v942_v30 = vpop.permute.xlu1 %941  ;;  %1193 = vmatprep.subr.bf16.mxu0 %v1145_v20 }
 0x170   : > { %v946_v31 = vsel %vm945_vm14, %v6643_v61, %v942_v30  ;;  %1194 = vmatpush1.bf16.msra.mxu0 %v1144_v29  ;;  %v947_v34 = vsel %vm945_vm14, %v942_v30, %v944_v60  ;;  %vm1049_vm14 = vcmask 506880  }
 0x171   : > { %950 = vst [vmem:[#allocation8 + $0xe0] sm:$0xff] %v946_v31 }
 0x173   : > { %v1009_v32 = vpop.permute.xlu0 %1008  ;;  %v955_v33 = vpop.permute.xlu1 %954 }
 0x174   : > { %v959_v43 = vsel %vm958_vm15, %v953_v21, %v955_v33  ;;  %v960_v58 = vsel %vm958_vm15, %v955_v33, %v957_v16  ;;  %vm1036_vm15 = vcmask 515072  }
 0x175   : > { %963 = vst [vmem:[#allocation8 + $0xf0] sm:$0xff] %v959_v43  ;;  %v1147_v35 = vpack.c.bf16 %v960_v58, %v947_v34  ;;  %v1146_v19 = vpack.c.bf16 %v959_v43, %v946_v31  ;;  %v5604_v58 = vadd.s32 4294967279, %v6443_v15 }
 0x177   : > { %v1005_v36 = vpop.permute.xlu0 %1004  ;;  %v968_v13 = vpop.permute.xlu1 %967  ;;  %1195 = vmatprep.subr.bf16.mxu0 %v1147_v35 }
 0x178   : > { %v972_v61 = vsel %vm971_vm2, %v6652_v3, %v968_v13  ;;  %v973_v37 = vsel %vm971_vm2, %v968_v13, %v970_v24  ;;  %1196 = vmatpush1.bf16.msra.mxu0 %v1146_v19  ;;  %vm1062_vm2 = vcmask 498688   ;;  %v1248_v19 = vand.u32 15, %v5604_v58 }
 0x179   : > { %976 = vst [vmem:[#allocation8 + $0x100] sm:$0xff] %v972_v61  ;;  %v1149_v38 = vpack.c.bf16 %v986_v59, %v973_v37  ;;  %v1148_v40 = vpack.c.bf16 %v6649_v1, %v972_v61 }
 0x17b   : > { %v1022_v42 = vpop.permute.xlu0 %1021  ;;  %v994_v44 = vpop.permute.xlu1 %993  ;;  %1197 = vmatprep.subr.bf16.mxu0 %v1149_v38  ;;  %v5605_v38 = vadd.s32 4294967279, %v6514_v26 }
 0x17c   : > { %v998_v48 = vsel %vm997_vm3, %v6654_v7, %v994_v44  ;;  %v999_v49 = vsel %vm997_vm3, %v994_v44, %v996_v12  ;;  %1198 = vmatpush1.bf16.msra.mxu0 %v1148_v40  ;;  %vm1075_vm3 = vcmask 490496  }
 0x17d   : > { %1002 = vst [vmem:[#allocation8 + $0x120] sm:$0xff] %v998_v48  ;;  %v1255_v44 = vand.u32 15, %v5605_v38 }
 0x17f   : > { %v1035_v52 = vpop.permute.xlu0 %1034  ;;  %v1007_v45 = vpop.permute.xlu1 %1006 }
 0x180   : > { %v1011_v63 = vsel %vm1010_vm13, %v1005_v36, %v1007_v45  ;;  %v1012_v3 = vsel %vm1010_vm13, %v1007_v45, %v1009_v32  ;;  %vm8229_vm13 = vcmask 1043456  }
 0x181   : > { %1015 = vst [vmem:[#allocation8 + $0x130] sm:$0xff] %v1011_v63  ;;  %v1151_v53 = vpack.c.bf16 %v1012_v3, %v999_v49  ;;  %v1150_v55 = vpack.c.bf16 %v1011_v63, %v998_v48 }
 0x183   : > { %v1031_v57 = vpop.permute.xlu0 %1030  ;;  %v1020_v60 = vpop.permute.xlu1 %1019  ;;  %1199 = vmatprep.subr.bf16.mxu0 %v1151_v53 }
 0x184   : > { %v1024_v1 = vsel %vm8227_vm7, %v6656_v9, %v1020_v60  ;;  %v1025_v7 = vsel %vm8227_vm7, %v1020_v60, %v1022_v42  ;;  %1200 = vmatpush1.bf16.msra.mxu0 %v1150_v55  ;;  %v5606_v42 = vadd.s32 4294967279, %v6431_v6  ;;  %vm1269_vm7 = vcmp.lt.s32.totalorder %v1255_v44, 0 }
 0x185   : > { %1028 = vst [vmem:[#allocation8 + $0x140] sm:$0xff] %v1024_v1  ;;  %v1275_v6 = vadd.s32 16, %v1255_v44 }
 0x186   : > { %v1262_v48 = vand.u32 15, %v5606_v42  ;;  %v1515_v42 = vld [vmem:[%s8299_s15 + $0x88] sm:$0xff] }
 0x187   : > { %v1048_v41 = vpop.permute.xlu0 %1047  ;;  %v1033_v62 = vpop.permute.xlu1 %1032 }
 0x188   : > { %v1051_v2 = vsel %vm1049_vm14, %v6658_v11, %v1048_v41  ;;  %v1037_v39 = vsel %vm1036_vm15, %v1031_v57, %v1033_v62  ;;  %v1038_v46 = vsel %vm1036_vm15, %v1033_v62, %v1035_v52  ;;  %vm610_vm15 = vcmask 277640  }
 0x189   : > { %1041 = vst [vmem:[#allocation8 + $0x150] sm:$0xff] %v1037_v39  ;;  %v1153_v50 = vpack.c.bf16 %v1038_v46, %v1025_v7  ;;  %v1152_v5 = vpack.c.bf16 %v1037_v39, %v1024_v1  ;;  %611 = vst.msk [vmem:[#allocation3 + $0x10] sm:$0xff] %vm610_vm15, %v6274_v0  ;;  %vm1267_vm5 = vcmp.ne.s32.totalorder %v1262_v48, 0  ;;  %v1276_v26 = vadd.s32 16, %v1262_v48 }
 0x18a   : > { %638 = vst.msk [vmem:[#allocation7 + $0x10] sm:$0xff] %vm610_vm15, %v6274_v0  ;;  %639 = vst.msk [vmem:[#allocation7 + $0x28] sm:$0xff] %vm610_vm15, %v6274_v0  ;;  %vm6750_vm15 = vcmp.ge.s32.totalorder %v1248_v19, 1 }
 0x18b   : > { %v1061_v16 = vpop.permute.xlu0 %1060  ;;  %v1059_v17 = vpop.permute.xlu1 %1058  ;;  %1201 = vmatprep.subr.bf16.mxu0 %v1153_v50 }
 0x18c   : > { %v1064_v9 = vsel %vm1062_vm2, %v1059_v17, %v1061_v16  ;;  %1202 = vmatpush1.bf16.msra.mxu0 %v1152_v5 }
 0x18d   : > { %v1155_v18 = vpack.c.bf16 %v1064_v9, %v1051_v2 }
 0x18f   : > { %v1057_v21 = vpop.permute.xlu0 %1056  ;;  %v1044_v22 = vpop.permute.xlu1 %1043  ;;  %1203 = vmatprep.subr.bf16.mxu0 %v1155_v18 }
 0x190   : > { %v1063_v54 = vsel %vm1062_vm2, %v1057_v21, %v1059_v17  ;;  %v1050_v8 = vsel %vm1049_vm14, %v1044_v22, %v6658_v11  ;;  %v5600_v11 = vcombine.low %v6614_v47, %v6614_v47  ;;  %vm608_vm14 = vcmask 138240  }
 0x191   : > { %1067 = vst [vmem:[#allocation8 + $0x170] sm:$0xff] %v1063_v54  ;;  %1054 = vst [vmem:[#allocation8 + $0x160] sm:$0xff] %v1050_v8  ;;  %v1154_v10 = vpack.c.bf16 %v1063_v54, %v1050_v8  ;;  %vm8226_vm2 = vcmask 1047688  }
 0x192   : > { %609 = vst.msk [vmem:[#allocation3] sm:$0xff] %vm608_vm14, %v6274_v0  ;;  %636 = vst.msk [vmem:[#allocation7] sm:$0xff] %vm608_vm14, %v6274_v0 }
 0x193   : > { %v1072_v14 = vpop.permute.xlu0 %1071  ;;  %v1070_v23 = vpop.permute.xlu1 %1069  ;;  %1204 = vmatpush1.bf16.msra.mxu0 %v1154_v10  ;;  %637 = vst.msk [vmem:[#allocation7 + $0x18] sm:$0xff] %vm608_vm14, %v6274_v0 }
 0x194   : > { %v1076_v24 = vsel %vm1075_vm3, %v1070_v23, %v1072_v14 }
 0x195   : > { %1080 = vst [vmem:[#allocation8 + $0x180] sm:$0xff] %v1076_v24  ;;  %v1156_v56 = vpack.c.bf16 %v1076_v24, %v1076_v24 }
 0x197   : > { %v1074_v25 = vpop.permute.xlu1 %1073  ;;  %v1176_v20 = vsel %vm8229_vm13, %v1156_v56, 0 }
 0x198   : > { %v1077_v27 = vsel %vm1075_vm3, %v1072_v14, %v1074_v25  ;;  %vm6734_vm3 = vcmp.lt.s32.totalorder %v1248_v19, 15 }
 0x199   : > { %v1157_v28 = vpack.c.bf16 %v1077_v27, %v1077_v27 }
 0x19b   : > { %5602 = vmatprep.subr.msk.bf16.mxu0 %vm8229_vm13, %v1157_v28  ;;  %vm1270_vm13 = vcmp.lt.s32.totalorder %v1262_v48, 0 }
 0x19c   : > { %1206 = vmatpush1.bf16.msra.mxu0 %v1176_v20  ;;  %vm1273_vm4 = vmand %vm1270_vm13, %vm1267_vm5 }
 0x19d   : > { %1785 = vmatprep.subr.bf16.mxu0 %v6299_v51  ;;  %v6768_v52 = vsel %vm1273_vm4, %v1276_v26, %v1262_v48  ;;  %vm6813_vm13 = vmpackc.low %vm6301_vm12, %vm6734_vm3 }
 0x19e   : > { %vm8252_vm11 = vcmp.ge.s32.totalorder %v6768_v52, 1  ;;  %vm8251_vm5 = vcmp.lt.s32.totalorder %v6768_v52, 15 }
 0x19f   : > { %1214 = vmatmul.mubr.bf16.vlgmr.msra.gmra.mrb[0].mxu0 %v5600_v11 }
 0x1a4   : > { %v1162_v47 = vpop.permute.xlu0 %1161 }
 0x272   : > { %v1215_v29 = vpop.f32.mrb[0].mxu0 }
 0x273   : > { %v1216_v12 = vadd.f32 %v1215_v29, %v1162_v47  ;;  %v1217_v30 = vpop.f32.mrb[1].mxu0 }
 0x274   : > { %v1219_v31 = vpop.f32.mrb[2].mxu0  ;;  %v1218_v33 = vadd.f32 %v1217_v30, %v1162_v47 }
 0x275   : > { %v1222_v32 = vmax.f32 %v1216_v12, 0.0  ;;  %v1220_v34 = vpop.f32.mrb[3].mxu0 }
 0x276   : > { %v1223_v43 = vmax.f32 %v1218_v33, 0.0 }
 0x277   : > { %1226 = vrot.lane.b32.xlu1 %v1222_v32, %s8239_s25 }
 0x27b   : > { %1228 = vrot.lane.b32.xlu1 %v1223_v43, %s8239_s25  ;;  %s8318_s25 = sld [smem:[#allocation13_spill]] }
 0x2e9   : > { %v1227_v35 = vpop.permute.xlu1 %1226 }
 0x2ea   : > { %1235 = vst.msk [vmem:[#allocation3] sm:$0xff] %vm8226_vm2, %v1227_v35  ;;  %vm1266_vm2 = vcmp.ne.s32.totalorder %v1255_v44, 0 }
 0x2eb   : > { %vm1272_vm6 = vmand %vm1269_vm7, %vm1266_vm2 }
 0x2ec   : > { %v6770_v45 = vsel %vm1272_vm6, %v1275_v6, %v1255_v44 }
 0x2ed   : > { %v1229_v36 = vpop.permute.xlu1 %1228  ;;  %vm8250_vm7 = vcmp.ge.s32.totalorder %v6770_v45, 1  ;;  %vm8253_vm6 = vcmp.lt.s32.totalorder %v6770_v45, 15 }
 0x2ee   : > { %1237 = vst.msk [vmem:[#allocation3 + $0x10] sm:$0xff] %vm608_vm14, %v1229_v36  ;;  %v1230_v49 = vsel %vm608_vm14, %v1227_v35, %v1229_v36  ;;  %vm6803_vm4 = vmpackc.low %vm6301_vm12, %vm8253_vm6  ;;  %vm8295_vm12 = vcmask 900096  }
 0x2ef   : > { %v1302_v3 = vsel %vm8250_vm7, %v1230_v49, 0.0  ;;  %v1290_v55 = vsel %vm8253_vm6, %v1230_v49, 0.0  ;;  %vm8296_vm2 = vmmov %vm8295_vm12 }
 0x2f1   : > { %v6738_v59 = vld [vmem:[#allocation3] sm:$0xff] }
 0x2f2   : > { %1351 = vrot.lane.b32.xlu1 %v6738_v59, %s8241_s29  ;;  %1309 = vrot.lane.b32.xlu0 %v6738_v59, %s8245_s26  ;;  %v1289_v15 = vsel %vm6734_vm3, %v6738_v59, 0.0  ;;  %v1301_v40 = vsel %vm6750_vm15, %v6738_v59, 0.0 }
 0x2f3   : > { %1304 = vst [vmem:[#allocation8] sm:$0xff] %v1289_v15 }
 0x2f5   : > { %v1240_v61 = vld [vmem:[#allocation3 + $0x10] sm:$0xff] }
 0x2f6   : > { %1387 = vrot.lane.b32.xlu0 %v6738_v59, %s8237_s24  ;;  %1313 = vrot.lane.b32.xlu1 %v1240_v61, %s8245_s26  ;;  %v1303_v63 = vsel %vm8252_vm11, %v1240_v61, 0.0  ;;  %v1291_v53 = vsel %vm8251_vm5, %v1240_v61, 0.0 }
 0x2fa   : > { %1339 = vrot.lane.b32.xlu0 %v1289_v15, %s8243_s2  ;;  %1324 = vrot.lane.b32.xlu1 %v1301_v40, %s8288_s27 }
 0x2fe   : > { %1355 = vrot.lane.b32.xlu0 %v1240_v61, %s8241_s29  ;;  %1375 = vrot.lane.b32.xlu1 %v1289_v15, %s8235_s1 }
 0x302   : > { %1363 = vrot.lane.b32.xlu0 %v1301_v40, %s8289_s22  ;;  %1399 = vrot.lane.b32.xlu1 %v1301_v40, %s8290_s23  ;;  %v1514_v40 = vld [vmem:[%s8299_s15 + $0x80] sm:$0xff] }
 0x306   : > { %1391 = vrot.lane.b32.xlu0 %v1240_v61, %s8237_s24  ;;  %1353 = vrot.lane.b32.xlu1 %v1230_v49, %s8241_s29 }
 0x30a   : > { %1389 = vrot.lane.b32.xlu1 %v1230_v49, %s8237_s24  ;;  %1311 = vrot.lane.b32.xlu0 %v1230_v49, %s8245_s26  ;;  %s8304_s24 = sld [smem:[#allocation12_spill]]  ;;  %s8254_s26 = smov 9  }
 0x30e   : > { %1328 = vrot.lane.b32.xlu0 %v1303_v63, %s8288_s27  ;;  %1326 = vrot.lane.b32.xlu1 %v1302_v3, %s8288_s27 }
 0x312   : > { %1343 = vrot.lane.b32.xlu0 %v1291_v53, %s8243_s2  ;;  %1341 = vrot.lane.b32.xlu1 %v1290_v55, %s8243_s2  ;;  %s8314_s2 = smov 127  }
 0x316   : > { %1367 = vrot.lane.b32.xlu0 %v1303_v63, %s8289_s22  ;;  %1365 = vrot.lane.b32.xlu1 %v1302_v3, %s8289_s22 }
 0x31a   : > { %1379 = vrot.lane.b32.xlu0 %v1291_v53, %s8235_s1  ;;  %1377 = vrot.lane.b32.xlu1 %v1290_v55, %s8235_s1  ;;  %v1498_v53 = vld [vmem:[%s8299_s15] sm:$0xff]  ;;  %v1499_v55 = vld [vmem:[%s8299_s15 + $0x8] sm:$0xff]  ;;  %s8260_s1 = smov 119  }
 0x31e   : > { %1401 = vrot.lane.b32.xlu0 %v1302_v3, %s8290_s23  ;;  %1403 = vrot.lane.b32.xlu1 %v1303_v63, %s8290_s23  ;;  %v6005_v3 = vpack.c.bf16 %v1515_v42, %v1514_v40 }
 0x364   : > { %v1310_v57 = vpop.permute.xlu0 %1309  ;;  %v1352_v60 = vpop.permute.xlu1 %1351 }
 0x368   : > { %v1388_v1 = vpop.permute.xlu0 %1387  ;;  %v1314_v7 = vpop.permute.xlu1 %1313 }
 0x36c   : > { %v1340_v41 = vpop.permute.xlu0 %1339  ;;  %v1325_v62 = vpop.permute.xlu1 %1324 }
 0x370   : > { %v1356_v2 = vpop.permute.xlu0 %1355  ;;  %v1376_v39 = vpop.permute.xlu1 %1375 }
 0x374   : > { %v1364_v46 = vpop.permute.xlu0 %1363  ;;  %v1400_v50 = vpop.permute.xlu1 %1399 }
 0x378   : > { %v1392_v5 = vpop.permute.xlu0 %1391  ;;  %v1354_v16 = vpop.permute.xlu1 %1353 }
 0x379   : > { %v1357_v17 = vsel %vm8247_vm1, %v1352_v60, %v1354_v16  ;;  %v1358_v32 = vsel %vm8247_vm1, %v1354_v16, %v1356_v2  ;;  %v1517_v60 = vld [vmem:[%s8299_s15 + $0x98] sm:$0xff]  ;;  %v1500_v2 = vld [vmem:[%s8299_s15 + $0x10] sm:$0xff]  ;;  %vm615_vm1 = vcmask 671304  }
 0x37a   : > { %1361 = vst [vmem:[#allocation8 + $0x40] sm:$0xff] %v1357_v17 }
 0x37c   : > { %v1312_v9 = vpop.permute.xlu0 %1311  ;;  %v1390_v18 = vpop.permute.xlu1 %1389 }
 0x37d   : > { %v1315_v21 = vsel %vm8248_vm8, %v1310_v57, %v1312_v9  ;;  %v1316_v22 = vsel %vm8248_vm8, %v1312_v9, %v1314_v7  ;;  %v1393_v54 = vsel %vm8249_vm10, %v1388_v1, %v1390_v18  ;;  %v1394_v36 = vsel %vm8249_vm10, %v1390_v18, %v1392_v5  ;;  %v1516_v57 = vld [vmem:[%s8299_s15 + $0x90] sm:$0xff]  ;;  %v6120_v7 = vld [vmem:[%s8304_s24] sm:$0xff]   ;;  %v1503_v9 = vld [vmem:[%s8299_s15 + $0x28] sm:$0xff]  ;;  %s8258_s24 = smov 120  }
 0x37e   : > { %1319 = vst [vmem:[#allocation8 + $0x10] sm:$0xff] %v1315_v21  ;;  %1397 = vst [vmem:[#allocation8 + $0x70] sm:$0xff] %v1393_v54  ;;  %v6249_v23 = vpack.c.bf16 %v1316_v22, %v1230_v49  ;;  %v6252_v56 = vpack.c.bf16 %v1315_v21, %v6738_v59  ;;  %v1520_v18 = vld [vmem:[%s8299_s15 + $0xb0] sm:$0xff]  ;;  %v1521_v21 = vld [vmem:[%s8299_s15 + $0xb8] sm:$0xff] }
 0x380   : > { %v1329_v8 = vpop.permute.xlu0 %1328  ;;  %v1327_v10 = vpop.permute.xlu1 %1326  ;;  %6250 = vmatprep.subr.msk.bf16.mxu1 %vm6803_vm4, %v6249_v23  ;;  %v1522_v23 = vld [vmem:[%s8299_s15 + $0xc0] sm:$0xff] }
 0x381   : > { %v1330_v24 = vsel %vm8234_vm9, %v1325_v62, %v1327_v10  ;;  %6253 = vmatpush1.bf16.msk.msra.mxu1 %vm6813_vm13, %v6252_v56  ;;  %v1331_v20 = vsel %vm8234_vm9, %v1327_v10, %v1329_v8  ;;  %v6009_v62 = vpack.c.bf16 %v1517_v60, %v1516_v57  ;;  %v1504_v8 = vld [vmem:[%s8299_s15 + $0x30] sm:$0xff]  ;;  %v1505_v10 = vld [vmem:[%s8299_s15 + $0x38] sm:$0xff] }
 0x382   : > { %1334 = vst [vmem:[#allocation8 + $0x20] sm:$0xff] %v1330_v24  ;;  %v6019_v56 = vpack.c.bf16 %v1505_v10, %v1504_v8 }
 0x384   : > { %v1344_v27 = vpop.permute.xlu0 %1343  ;;  %v1342_v28 = vpop.permute.xlu1 %1341 }
 0x385   : > { %v1345_v11 = vsel %vm8233_vm0, %v1340_v41, %v1342_v28  ;;  %v1346_v47 = vsel %vm8233_vm0, %v1342_v28, %v1344_v27  ;;  %vm8297_vm0 = vcmask 785408   ;;  %v6007_v41 = vpack.c.bf16 %v1499_v55, %v1498_v53  ;;  %v1506_v28 = vld [vmem:[%s8299_s15 + $0x40] sm:$0xff] }
 0x386   : > { %1349 = vst [vmem:[#allocation8 + $0x30] sm:$0xff] %v1345_v11  ;;  %v1432_v29 = vpack.c.bf16 %v1346_v47, %v1331_v20  ;;  %v1431_v12 = vpack.c.bf16 %v1345_v11, %v1330_v24  ;;  %vm8298_vm9 = vmmov %vm8297_vm0  ;;  %v1523_v24 = vld [vmem:[%s8299_s15 + $0xc8] sm:$0xff]  ;;  %v1524_v11 = vld [vmem:[%s8299_s15 + $0xd0] sm:$0xff] }
 0x387   : > { %v6021_v27 = vpack.c.bf16 %v1523_v24, %v1522_v23  ;;  %v1507_v20 = vld [vmem:[%s8299_s15 + $0x48] sm:$0xff]  ;;  %v1525_v47 = vld [vmem:[%s8299_s15 + $0xd8] sm:$0xff] }
 0x388   : > { %v1368_v30 = vpop.permute.xlu0 %1367  ;;  %v1366_v31 = vpop.permute.xlu1 %1365  ;;  %1457 = vmatprep.subr.bf16.mxu1 %v1432_v29  ;;  %v6023_v29 = vpack.c.bf16 %v1507_v20, %v1506_v28  ;;  %v1647_v28 = vadd.s32 64, %v6428_v4 }
 0x389   : > { %v1369_v33 = vsel %vm8295_vm12, %v1364_v46, %v1366_v31  ;;  %v1370_v34 = vsel %vm8296_vm2, %v1366_v31, %v1368_v30  ;;  %1458 = vmatpush1.bf16.msra.mxu1 %v1431_v12  ;;  %vm8300_vm12 = vcmask 769024   ;;  %v1518_v46 = vld [vmem:[%s8299_s15 + $0xa0] sm:$0xff]  ;;  %v6025_v12 = vpack.c.bf16 %v1525_v47, %v1524_v11  ;;  %v1508_v30 = vld [vmem:[%s8299_s15 + $0x50] sm:$0xff]  ;;  %v1509_v31 = vld [vmem:[%s8299_s15 + $0x58] sm:$0xff] }
 0x38a   : > { %1373 = vst [vmem:[#allocation8 + $0x50] sm:$0xff] %v1369_v33  ;;  %v1434_v43 = vpack.c.bf16 %v1370_v34, %v1358_v32  ;;  %v1433_v58 = vpack.c.bf16 %v1369_v33, %v1357_v17  ;;  %v1502_v17 = vld [vmem:[%s8299_s15 + $0x20] sm:$0xff]  ;;  %v1527_v33 = vld [vmem:[%s8299_s15 + $0xe8] sm:$0xff]  ;;  %v6027_v34 = vpack.c.bf16 %v1509_v31, %v1508_v30  ;;  %v5610_v20 = vadd.s32 4294967287, %v1647_v28 }
 0x38b   : > { %v6015_v22 = vpack.c.bf16 %v1503_v9, %v1502_v17  ;;  %v1526_v32 = vld [vmem:[%s8299_s15 + $0xe0] sm:$0xff] }
 0x38c   : > { %v1380_v35 = vpop.permute.xlu0 %1379  ;;  %v1378_v19 = vpop.permute.xlu1 %1377  ;;  %1459 = vmatprep.subr.bf16.mxu1 %v1434_v43  ;;  %v6029_v43 = vpack.c.bf16 %v1527_v33, %v1526_v32  ;;  %v1653_v47 = vand.u32 7, %v5610_v20 }
 0x38d   : > { %v1381_v59 = vsel %vm8297_vm0, %v1376_v39, %v1378_v19  ;;  %v1382_v15 = vsel %vm8298_vm9, %v1378_v19, %v1380_v35  ;;  %1460 = vmatpush1.bf16.msra.mxu1 %v1433_v58  ;;  %vm8301_vm0 = vmmov %vm8300_vm12  ;;  %vm8302_vm9 = vcmask 1043456   ;;  %v1501_v39 = vld [vmem:[%s8299_s15 + $0x18] sm:$0xff]  ;;  %v1510_v58 = vld [vmem:[%s8299_s15 + $0x60] sm:$0xff] }
 0x38e   : > { %1385 = vst [vmem:[#allocation8 + $0x60] sm:$0xff] %v1381_v59  ;;  %v1436_v61 = vpack.c.bf16 %v1394_v36, %v1382_v15  ;;  %v1435_v38 = vpack.c.bf16 %v1393_v54, %v1381_v59  ;;  %vm8303_vm2 = vmmov %vm8302_vm9  ;;  %v6011_v5 = vpack.c.bf16 %v1501_v39, %v1500_v2  ;;  %v6017_v54 = vpack.c.bf16 %v1521_v21, %v1520_v18  ;;  %v1511_v35 = vld [vmem:[%s8299_s15 + $0x68] sm:$0xff]  ;;  %v1528_v19 = vld [vmem:[%s8299_s15 + $0xf0] sm:$0xff] }
 0x38f   : > { %v1529_v36 = vld [vmem:[%s8299_s15 + $0xf8] sm:$0xff]  ;;  %v6031_v59 = vpack.c.bf16 %v1511_v35, %v1510_v58 }
 0x390   : > { %v1402_v44 = vpop.permute.xlu0 %1401  ;;  %v1404_v48 = vpop.permute.xlu1 %1403  ;;  %1461 = vmatprep.subr.bf16.mxu1 %v1436_v61  ;;  %v6033_v15 = vpack.c.bf16 %v1529_v36, %v1528_v19  ;;  %v1512_v61 = vld [vmem:[%s8299_s15 + $0x70] sm:$0xff] }
 0x391   : > { %v1405_v26 = vsel %vm8300_vm12, %v1400_v50, %v1402_v44  ;;  %v1406_v6 = vsel %vm8301_vm0, %v1402_v44, %v1404_v48  ;;  %1462 = vmatpush1.bf16.msra.mxu1 %v1435_v38  ;;  %v1519_v50 = vld [vmem:[%s8299_s15 + $0xa8] sm:$0xff]  ;;  %vm8305_vm12 = vcmask 588800   ;;  %v1513_v38 = vld [vmem:[%s8299_s15 + $0x78] sm:$0xff]  ;;  %vm8306_vm0 = vcmask 523264   ;;  %s8268_s15 = smov 5  }
 0x392   : > { %1409 = vst [vmem:[#allocation8 + $0x80] sm:$0xff] %v1405_v26  ;;  %v1438_v49 = vpack.c.bf16 %v1406_v6, %v1406_v6  ;;  %v1437_v63 = vpack.c.bf16 %v1405_v26, %v1405_v26  ;;  %v6013_v16 = vpack.c.bf16 %v1519_v50, %v1518_v46  ;;  %v6035_v40 = vpack.c.bf16 %v1513_v38, %v1512_v61 }
 0x394   : > { %5608 = vmatprep.subr.msk.bf16.mxu1 %vm8302_vm9, %v1438_v49  ;;  %v1450_v1 = vsel %vm8303_vm2, %v1437_v63, 0  ;;  %vm8307_vm9 = vmmov %vm8306_vm0 }
 0x395   : > { %1464 = vmatpush1.bf16.msra.mxu1 %v1450_v1  ;;  %vm8308_vm2 = vmmov %vm8306_vm0 }
 0x396   : > { %6006 = vmatprep.subr.bf16.mxu1 %v6005_v3 }
 0x398   : > { %5609 = vmatmul.mubr.msk.bf16.vlgmr.msra.gmra.mrb[0].mxu1 %vm8305_vm12, %v6120_v7  ;;  %vm8309_vm12 = vmmov %vm8306_vm0 }
 0x399   : > { %6008 = vmatpush3.bf16.msra.mxu1 %v6007_v41 }
 0x39a   : > { %6010 = vmatprep.subr.bf16.mxu1 %v6009_v62 }
 0x39d   : > { %6012 = vmatpush3.bf16.msra.mxu1 %v6011_v5 }
 0x39e   : > { %6014 = vmatprep.subr.bf16.mxu1 %v6013_v16 }
 0x3a1   : > { %6016 = vmatpush3.bf16.msra.mxu1 %v6015_v22 }
 0x3a2   : > { %6018 = vmatprep.subr.bf16.mxu1 %v6017_v54 }
 0x3a5   : > { %6020 = vmatpush3.bf16.msra.mxu1 %v6019_v56 }
 0x3a6   : > { %6022 = vmatprep.subr.bf16.mxu1 %v6021_v27 }
 0x3a9   : > { %6024 = vmatpush3.bf16.msra.mxu1 %v6023_v29 }
 0x3aa   : > { %6026 = vmatprep.subr.bf16.mxu1 %v6025_v12 }
 0x3ad   : > { %6028 = vmatpush3.bf16.msra.mxu1 %v6027_v34 }
 0x3ae   : > { %6030 = vmatprep.subr.bf16.mxu1 %v6029_v43 }
 0x3b1   : > { %6032 = vmatpush3.bf16.msra.mxu1 %v6031_v59  ;;  %v6121_v59 = vld [vmem:[%s8318_s25 + $0x4] ss:$8 sps:$4 sm:$0xff]  }
 0x3b2   : > { %6034 = vmatprep.subr.bf16.mxu1 %v6033_v15 }
 0x3b5   : > { %6036 = vmatpush3.bf16.msra.mxu1 %v6035_v40 }
 0x3b6   : > { %1997 = vmatprep.subr.bf16.mxu1 %v6299_v51 }
 0x46b   : > { %v1489_v42 = vpop.f32.mrb[0].mxu1 }
 0x46c   : > { %v1491_v44 = vpop.f32.mrb[1].mxu1 }
 0x46d   : > { %v1493_v48 = vpop.f32.mrb[2].mxu1  ;;  %1594 = vmatprep.mubr.f32.mxu1 %v1491_v44 }
 0x46e   : > { %v1495_v26 = vpop.f32.mrb[3].mxu1  ;;  %1595 = vmatmul.mubr.f32.vlgmr.msra.gmra.mrb[4].mxu1 %v1489_v42 }
 0x46f   : > { %1599 = vmatprep.mubr.f32.mxu1 %v1495_v26 }
 0x472   : > { %1600 = vmatmul.mubr.f32.gmra.mrb[6].mxu1 %v1493_v48 }
 0x541   : > { %v5716_v6 = vpop.f32.mrb[4].mxu1 }
 0x542   : > { %v5717_v49 = vpop.f32.mrb[5].mxu1 }
 0x543   : > { %v5718_v63 = vadd.f32 %v5717_v49, %v5716_v6 }
 0x545   : > { %v5719_v3 = vpop.f32.mrb[6].mxu1  ;;  %v1605_v53 = vsel %vm8306_vm0, %v5718_v63, 0.0  ;;  %vm612_vm0 = vcmask 72704  }
 0x546   : > { %v5720_v55 = vpop.f32.mrb[7].mxu1  ;;  %1606 = vadd.xlane.f32.xlu0 %v1605_v53  ;;  %613 = vst.msk [vmem:[#allocation4] sm:$0xff] %vm612_vm0, %v6274_v0  ;;  %614 = vst.msk [vmem:[#allocation4 + $0x8] sm:$0xff] %vm612_vm0, %v6274_v0 }
 0x547   : > { %v5721_v57 = vadd.f32 %v5720_v55, %v5719_v3  ;;  %628 = vst.msk [vmem:[#allocation6] sm:$0xff] %vm612_vm0, %v6274_v0  ;;  %629 = vst.msk [vmem:[#allocation6 + $0x8] sm:$0xff] %vm612_vm0, %v6274_v0 }
 0x548   : > { %630 = vst.msk [vmem:[#allocation6 + $0x10] sm:$0xff] %vm612_vm0, %v6274_v0  ;;  %631 = vst.msk [vmem:[#allocation6 + $0x18] sm:$0xff] %vm612_vm0, %v6274_v0 }
 0x549   : > { %v1608_v60 = vsel %vm8307_vm9, %v5721_v57, 0.0  ;;  %616 = vst.msk [vmem:[#allocation4] sm:$0xff] %vm615_vm1, %v6274_v0  ;;  %617 = vst.msk [vmem:[#allocation4 + $0x8] sm:$0xff] %vm615_vm1, %v6274_v0  ;;  %vm6955_vm9 = vcmp.ge.s32.totalorder %v1653_v47, 1 }
 0x54a   : > { %1609 = vadd.xlane.f32.xlu1 %v1608_v60  ;;  %632 = vst.msk [vmem:[#allocation6] sm:$0xff] %vm615_vm1, %v6274_v0  ;;  %633 = vst.msk [vmem:[#allocation6 + $0x8] sm:$0xff] %vm615_vm1, %v6274_v0 }
 0x54b   : > { %634 = vst.msk [vmem:[#allocation6 + $0x10] sm:$0xff] %vm615_vm1, %v6274_v0  ;;  %635 = vst.msk [vmem:[#allocation6 + $0x18] sm:$0xff] %vm615_vm1, %v6274_v0  ;;  %vm1642_vm1 = vcmask 597064  }
 0x54c   : > { %vm8315_vm0 = vmmov %vm8309_vm12 }
 0x54d   : > { %vm8319_vm8 = vmmov %vm8315_vm0 }
 0x54e   : > { %vm8320_vm10 = vmmov %vm8315_vm0 }
 0x54f   : > { %vm8321_vm7 = vmmov %vm8315_vm0 }
 0x550   : > { %vm8322_vm5 = vmmov %vm8315_vm0 }
 0x551   : > { %vm8323_vm11 = vmmov %vm8315_vm0 }
 0x552   : > { %vm8324_vm6 = vmmov %vm8315_vm0 }
 0x5d3   : > { %v1607_v1 = vpop.xlane.xlu0 %1606 }
 0x5d4   : > { %v1612_v7 = vmul.f32 0.015625, %v1607_v1 }
 0x5d6   : > { %v1614_v41 = vsub.f32 %v5718_v63, %v1612_v7 }
 0x5d7   : > { %v1610_v62 = vpop.xlane.xlu1 %1609 }
 0x5d8   : > { %v1613_v2 = vmul.f32 0.015625, %v1610_v62  ;;  %v1616_v39 = vmul.f32 %v1614_v41, %v1614_v41 }
 0x5da   : > { %v1615_v46 = vsub.f32 %v5721_v57, %v1613_v2  ;;  %v1618_v50 = vsel %vm8308_vm2, %v1616_v39, 0.0  ;;  %vm6959_vm2 = vcmp.lt.s32.totalorder %v1653_v47, 7 }
 0x5db   : > { %1619 = vadd.xlane.f32.xlu0 %v1618_v50 }
 0x5dc   : > { %v1617_v5 = vmul.f32 %v1615_v46, %v1615_v46 }
 0x5de   : > { %v1621_v16 = vsel %vm8309_vm12, %v1617_v5, 0.0 }
 0x5df   : > { %1622 = vadd.xlane.f32.xlu0 %v1621_v16 }
 0x668   : > { %v1620_v17 = vpop.xlane.xlu0 %1619 }
 0x669   : > { %v1624_v9 = vmul.f32 0.015625, %v1620_v17 }
 0x66b   : > { %v1626_v18 = vadd.f32 1e-05, %v1624_v9 }
 0x66c   : > { %v1623_v21 = vpop.xlane.xlu0 %1622 }
 0x66d   : > { %6176 = vrsqrt.f32 %v1626_v18  ;;  %v1625_v22 = vmul.f32 0.015625, %v1623_v21 }
 0x66f   : > { %v1627_v54 = vadd.f32 1e-05, %v1625_v22 }
 0x671   : > { %6178 = vrsqrt.f32 %v1627_v54 }
 0x677   : > { %v6177_v8 = vpop.eup %6176 }
 0x678   : > { %v1630_v10 = vmul.f32 %v6177_v8, %v1614_v41 }
 0x67a   : > { %v1632_v23 = vmax.f32 %v1630_v10, 0.0 }
 0x67b   : > { %v6179_v24 = vpop.eup %6178 }
 0x67c   : > { %1636 = vrot.lane.b32.xlu1 %v1632_v23, %s8254_s26  ;;  %v1631_v56 = vmul.f32 %v6179_v24, %v1615_v46 }
 0x67e   : > { %v1633_v27 = vmax.f32 %v1631_v56, 0.0 }
 0x680   : > { %1638 = vrot.lane.b32.xlu0 %v1633_v27, %s8254_s26 }
 0x6ee   : > { %v1637_v11 = vpop.permute.xlu1 %1636 }
 0x6ef   : > { %1643 = vst.msk [vmem:[#allocation4] sm:$0xff] %vm1642_vm1, %v1637_v11  ;;  %v6123_v11 = vld [vmem:[%s8318_s25] ss:$8 sps:$4 sm:$0xff]   ;;  %s8363_s25 = smov 124  }
 0x6f2   : > { %v1639_v29 = vpop.permute.xlu0 %1638 }
 0x6f3   : > { %1644 = vst.msk [vmem:[#allocation4 + $0x8] sm:$0xff] %vm1642_vm1, %v1639_v29 }
 0x6f6   : > { %v1645_v31 = vld [vmem:[#allocation4] sm:$0xff] }
 0x6f7   : > { %1675 = vrot.lane.b32.xlu1 %v1645_v31, %s8314_s2  ;;  %v1669_v32 = vsel %vm6955_vm9, %v1645_v31, 0.0  ;;  %v1664_v33 = vsel %vm6959_vm2, %v1645_v31, 0.0 }
 0x6f8   : > { %1685 = vrot.lane.b32.xlu0 %v1669_v32, %s8288_s27  ;;  %1671 = vst.msk [vmem:[#allocation8] sm:$0xff] %vm8309_vm12, %v1664_v33  ;;  %vm1781_vm12 = vcmask 130048  }
 0x6f9   : > { %5613 = vmatprep.mubr.msk.bf16.mxu0 %vm1781_vm12, %v6121_v59 }
 0x6fa   : > { %v1646_v34 = vld [vmem:[#allocation4 + $0x8] sm:$0xff] }
 0x6fb   : > { %1677 = vrot.lane.b32.xlu1 %v1646_v34, %s8314_s2  ;;  %v1665_v43 = vsel %vm6959_vm2, %v1646_v34, 0.0  ;;  %v1670_v58 = vsel %vm6955_vm9, %v1646_v34, 0.0 }
 0x6fc   : > { %1695 = vrot.lane.b32.xlu0 %v1664_v33, %s8258_s24  ;;  %1672 = vst.msk [vmem:[#allocation8 + $0x10] sm:$0xff] %vm8315_vm0, %v1665_v43 }
 0x6ff   : > { %1687 = vrot.lane.b32.xlu1 %v1670_v58, %s8288_s27  ;;  %v1743_v35 = vld [vmem:[#allocation8] sm:$0xff] }
 0x700   : > { %1703 = vrot.lane.b32.xlu0 %v1645_v31, %s8260_s1 }
 0x703   : > { %1697 = vrot.lane.b32.xlu1 %v1665_v43, %s8258_s24  ;;  %v1744_v19 = vld [vmem:[#allocation8 + $0x10] sm:$0xff] }
 0x704   : > { %1711 = vrot.lane.b32.xlu0 %v1669_v32, %s8256_s28  ;;  %v1761_v36 = vpack.c.bf16 %v1744_v19, %v1743_v35 }
 0x706   : > { %1786 = vmatpush1.bf16.msra.mxu0 %v1761_v36 }
 0x707   : > { %1705 = vrot.lane.b32.xlu1 %v1646_v34, %s8260_s1  ;;  %1787 = vmatprep.subr.bf16.mxu0 %v6299_v51 }
 0x708   : > { %1719 = vrot.lane.b32.xlu0 %v1664_v33, %s8316_s21 }
 0x70b   : > { %1713 = vrot.lane.b32.xlu1 %v1670_v58, %s8256_s28 }
 0x70c   : > { %1727 = vrot.lane.b32.xlu0 %v1645_v31, %s8317_s13 }
 0x70f   : > { %1721 = vrot.lane.b32.xlu1 %v1665_v43, %s8316_s21 }
 0x710   : > { %1735 = vrot.lane.b32.xlu0 %v1669_v32, %s8289_s22 }
 0x713   : > { %1729 = vrot.lane.b32.xlu1 %v1646_v34, %s8317_s13 }
 0x717   : > { %1737 = vrot.lane.b32.xlu1 %v1670_v58, %s8289_s22 }
 0x769   : > { %v1676_v15 = vpop.permute.xlu1 %1675 }
 0x76a   : > { %1681 = vst.msk [vmem:[#allocation8 + $0x20] sm:$0xff] %vm8315_vm0, %v1676_v15  ;;  %v1686_v61 = vpop.permute.xlu0 %1685 }
 0x76b   : > { %1691 = vst.msk [vmem:[#allocation8 + $0x40] sm:$0xff] %vm8319_vm8, %v1686_v61  ;;  %vm8325_vm8 = vmmov %vm8315_vm0 }
 0x76d   : > { %v1678_v38 = vpop.permute.xlu1 %1677 }
 0x76e   : > { %1682 = vst.msk [vmem:[#allocation8 + $0x30] sm:$0xff] %vm8320_vm10, %v1678_v38  ;;  %v1696_v40 = vpop.permute.xlu0 %1695  ;;  %vm8326_vm10 = vmmov %vm8315_vm0 }
 0x76f   : > { %1701 = vst.msk [vmem:[#allocation8 + $0x60] sm:$0xff] %vm8321_vm7, %v1696_v40  ;;  %vm8328_vm7 = vmmov %vm8315_vm0 }
 0x771   : > { %v1688_v42 = vpop.permute.xlu1 %1687  ;;  %v1745_v26 = vld [vmem:[#allocation8 + $0x20] sm:$0xff] }
 0x772   : > { %1692 = vst.msk [vmem:[#allocation8 + $0x50] sm:$0xff] %vm8322_vm5, %v1688_v42  ;;  %v1704_v44 = vpop.permute.xlu0 %1703  ;;  %v1747_v53 = vld [vmem:[#allocation8 + $0x40] sm:$0xff]  ;;  %vm8329_vm5 = vmmov %vm8315_vm0 }
 0x773   : > { %1709 = vst.msk [vmem:[#allocation8 + $0x80] sm:$0xff] %vm8323_vm11, %v1704_v44  ;;  %vm8327_vm11 = vmmov %vm8315_vm0 }
 0x775   : > { %v1698_v48 = vpop.permute.xlu1 %1697  ;;  %v1746_v6 = vld [vmem:[#allocation8 + $0x30] sm:$0xff] }
 0x776   : > { %1702 = vst.msk [vmem:[#allocation8 + $0x70] sm:$0xff] %vm8324_vm6, %v1698_v48  ;;  %v1712_v49 = vpop.permute.xlu0 %1711  ;;  %v1762_v63 = vpack.c.bf16 %v1746_v6, %v1745_v26  ;;  %v1749_v7 = vld [vmem:[#allocation8 + $0x60] sm:$0xff]  ;;  %vm8330_vm6 = vmmov %vm8315_vm0 }
 0x777   : > { %1717 = vst.msk [vmem:[#allocation8 + $0xa0] sm:$0xff] %vm8325_vm8, %v1712_v49  ;;  %vm8331_vm8 = vmmov %vm8315_vm0 }
 0x778   : > { %1788 = vmatpush1.bf16.msra.mxu0 %v1762_v63 }
 0x779   : > { %v1706_v3 = vpop.permute.xlu1 %1705  ;;  %1789 = vmatprep.subr.bf16.mxu0 %v6299_v51  ;;  %v1748_v55 = vld [vmem:[#allocation8 + $0x50] sm:$0xff] }
 0x77a   : > { %1710 = vst.msk [vmem:[#allocation8 + $0x90] sm:$0xff] %vm8326_vm10, %v1706_v3  ;;  %v1720_v57 = vpop.permute.xlu0 %1719  ;;  %v1763_v60 = vpack.c.bf16 %v1748_v55, %v1747_v53  ;;  %v1751_v46 = vld [vmem:[#allocation8 + $0x80] sm:$0xff]  ;;  %vm8332_vm10 = vmmov %vm8315_vm0 }
 0x77b   : > { %1725 = vst.msk [vmem:[#allocation8 + $0xc0] sm:$0xff] %vm8327_vm11, %v1720_v57  ;;  %vm8333_vm11 = vmmov %vm8315_vm0 }
 0x77c   : > { %1790 = vmatpush1.bf16.msra.mxu0 %v1763_v60 }
 0x77d   : > { %v1714_v1 = vpop.permute.xlu1 %1713  ;;  %1791 = vmatprep.subr.bf16.mxu0 %v6299_v51  ;;  %v1750_v41 = vld [vmem:[#allocation8 + $0x70] sm:$0xff] }
 0x77e   : > { %1718 = vst.msk [vmem:[#allocation8 + $0xb0] sm:$0xff] %vm8328_vm7, %v1714_v1  ;;  %v1728_v62 = vpop.permute.xlu0 %1727  ;;  %v1764_v2 = vpack.c.bf16 %v1750_v41, %v1749_v7  ;;  %v1753_v9 = vld [vmem:[#allocation8 + $0xa0] sm:$0xff]  ;;  %vm8334_vm7 = vmmov %vm8315_vm0 }
 0x77f   : > { %1733 = vst.msk [vmem:[#allocation8 + $0xe0] sm:$0xff] %vm8329_vm5, %v1728_v62  ;;  %vm8335_vm5 = vmmov %vm8315_vm0 }
 0x780   : > { %1792 = vmatpush1.bf16.msra.mxu0 %v1764_v2 }
 0x781   : > { %v1722_v39 = vpop.permute.xlu1 %1721  ;;  %1793 = vmatprep.subr.bf16.mxu0 %v6299_v51  ;;  %v1752_v50 = vld [vmem:[#allocation8 + $0x90] sm:$0xff] }
 0x782   : > { %1726 = vst.msk [vmem:[#allocation8 + $0xd0] sm:$0xff] %vm8330_vm6, %v1722_v39  ;;  %v1736_v5 = vpop.permute.xlu0 %1735  ;;  %v1765_v16 = vpack.c.bf16 %v1752_v50, %v1751_v46  ;;  %v1755_v54 = vld [vmem:[#allocation8 + $0xc0] sm:$0xff]  ;;  %vm8336_vm6 = vmmov %vm8315_vm0 }
 0x783   : > { %1741 = vst.msk [vmem:[#allocation8 + $0x100] sm:$0xff] %vm8315_vm0, %v1736_v5 }
 0x784   : > { %1794 = vmatpush1.bf16.msra.mxu0 %v1765_v16 }
 0x785   : > { %v1730_v17 = vpop.permute.xlu1 %1729  ;;  %1795 = vmatprep.subr.bf16.mxu0 %v6299_v51  ;;  %v1754_v18 = vld [vmem:[#allocation8 + $0xb0] sm:$0xff] }
 0x786   : > { %1734 = vst.msk [vmem:[#allocation8 + $0xf0] sm:$0xff] %vm8331_vm8, %v1730_v17  ;;  %v1766_v21 = vpack.c.bf16 %v1754_v18, %v1753_v9  ;;  %v1757_v23 = vld [vmem:[#allocation8 + $0xe0] sm:$0xff]  ;;  %vm8337_vm8 = vmmov %vm8315_vm0  ;;  %v6126_v9 = vld [vmem:[%s8338_s4 + $0x4] ss:$8 sps:$4 sm:$0xff]  }
 0x787   : > { %5618 = vmatprep.mubr.msk.bf16.mxu1 %vm1781_vm12, %v6126_v9  ;;  %v2046_v18 = vld [vmem:[%s8339_s16] sm:$0xff] }
 0x788   : > { %1796 = vmatpush1.bf16.msra.mxu0 %v1766_v21  ;;  %v2047_v21 = vld [vmem:[%s8339_s16 + $0x8] sm:$0xff] }
 0x789   : > { %v1738_v22 = vpop.permute.xlu1 %1737  ;;  %1797 = vmatprep.subr.bf16.mxu0 %v6299_v51  ;;  %v1756_v8 = vld [vmem:[#allocation8 + $0xd0] sm:$0xff] }
 0x78a   : > { %1742 = vst.msk [vmem:[#allocation8 + $0x110] sm:$0xff] %vm8332_vm10, %v1738_v22  ;;  %v1767_v10 = vpack.c.bf16 %v1756_v8, %v1755_v54  ;;  %v1759_v27 = vld [vmem:[#allocation8 + $0x100] sm:$0xff]  ;;  %v6037_v54 = vpack.c.bf16 %v2047_v21, %v2046_v18  ;;  %v2049_v8 = vld [vmem:[%s8339_s16 + $0x18] sm:$0xff]  ;;  %vm8340_vm10 = vmmov %vm8315_vm0 }
 0x78b   : > { %v2048_v22 = vld [vmem:[%s8339_s16 + $0x10] sm:$0xff]  ;;  %v6124_v9 = vld [vmem:[%s8338_s4] ss:$8 sps:$4 sm:$0xff]  }
 0x78c   : > { %1798 = vmatpush1.bf16.msra.mxu0 %v1767_v10  ;;  %v6041_v10 = vpack.c.bf16 %v2049_v8, %v2048_v22  ;;  %v6127_v18 = vld [vmem:[%s8338_s4 + $0x14] ss:$8 sps:$4 sm:$0xff]   ;;  %v6129_v21 = vld [vmem:[%s8338_s4 + $0x10] ss:$8 sps:$4 sm:$0xff]  }
 0x78d   : > { %1799 = vmatprep.subr.bf16.mxu0 %v6299_v51  ;;  %v1758_v24 = vld [vmem:[#allocation8 + $0xf0] sm:$0xff] }
 0x78e   : > { %v1768_v56 = vpack.c.bf16 %v1758_v24, %v1757_v23  ;;  %v2050_v23 = vld [vmem:[%s8339_s16 + $0x20] sm:$0xff]  ;;  %v2051_v24 = vld [vmem:[%s8339_s16 + $0x28] sm:$0xff] }
 0x790   : > { %1800 = vmatpush1.bf16.msra.mxu0 %v1768_v56  ;;  %v6045_v56 = vpack.c.bf16 %v2051_v24, %v2050_v23 }
 0x791   : > { %1801 = vmatprep.subr.bf16.mxu0 %v6299_v51  ;;  %v1760_v28 = vld [vmem:[#allocation8 + $0x110] sm:$0xff] }
 0x792   : > { %v1769_v20 = vpack.c.bf16 %v1760_v28, %v1759_v27  ;;  %v2052_v27 = vld [vmem:[%s8339_s16 + $0x30] sm:$0xff]  ;;  %v2053_v28 = vld [vmem:[%s8339_s16 + $0x38] sm:$0xff] }
 0x794   : > { %1802 = vmatpush1.bf16.msra.mxu0 %v1769_v20  ;;  %v6049_v20 = vpack.c.bf16 %v2053_v28, %v2052_v27 }
 0x795   : > { %6038 = vmatprep.subr.bf16.mxu0 %v6037_v54 }
 0x797   : > { %1818 = vmatmul.mubr.bf16.vlgmr.msra.gmra.mrb[4].mxu0 %v6123_v11 }
 0x798   : > { %6040 = vmatpush3.bf16.msra.mxu0 %v6037_v54 }
 0x799   : > { %6042 = vmatprep.subr.bf16.mxu0 %v6041_v10 }
 0x79c   : > { %6044 = vmatpush3.bf16.msra.mxu0 %v6041_v10 }
 0x79d   : > { %6046 = vmatprep.subr.bf16.mxu0 %v6045_v56 }
 0x7a0   : > { %6048 = vmatpush3.bf16.msra.mxu0 %v6045_v56 }
 0x7a1   : > { %6050 = vmatprep.subr.bf16.mxu0 %v6049_v20 }
 0x7a4   : > { %6052 = vmatpush3.bf16.msra.mxu0 %v6049_v20 }
 0x86a   : > { %v1819_v47 = vpop.f32.mrb[4].mxu0 }
 0x86b   : > { %v1821_v29 = vpop.f32.mrb[5].mxu0  ;;  %v1826_v31 = vsel %vm8333_vm11, %v1819_v47, 0.0  ;;  %vm8341_vm11 = vmmov %vm8315_vm0 }
 0x86c   : > { %1827 = vadd.xlane.f32.xlu0 %v1826_v31  ;;  %v1822_v32 = vpop.f32.mrb[6].mxu0 }
 0x86d   : > { %v1824_v33 = vpop.f32.mrb[7].mxu0  ;;  %v1829_v34 = vsel %vm8334_vm7, %v1822_v32, 0.0  ;;  %vm8342_vm7 = vmmov %vm8315_vm0 }
 0x86e   : > { %1830 = vadd.xlane.f32.xlu1 %v1829_v34 }
 0x8f9   : > { %v1828_v43 = vpop.xlane.xlu0 %1827 }
 0x8fa   : > { %v1832_v58 = vmul.f32 0.015625, %v1828_v43 }
 0x8fb   : > { %v1831_v35 = vpop.xlane.xlu1 %1830 }
 0x8fc   : > { %v1834_v19 = vsub.f32 %v1819_v47, %v1832_v58  ;;  %v1833_v36 = vmul.f32 0.015625, %v1831_v35 }
 0x8fe   : > { %v1835_v59 = vsub.f32 %v1822_v32, %v1833_v36  ;;  %v1836_v15 = vmul.f32 %v1834_v19, %v1834_v19 }
 0x900   : > { %v1838_v61 = vsel %vm8335_vm5, %v1836_v15, 0.0  ;;  %v1837_v38 = vmul.f32 %v1835_v59, %v1835_v59  ;;  %vm8343_vm5 = vmmov %vm8315_vm0 }
 0x901   : > { %1839 = vadd.xlane.f32.xlu0 %v1838_v61 }
 0x902   : > { %v1841_v40 = vsel %vm8336_vm6, %v1837_v38, 0.0  ;;  %vm8344_vm6 = vmmov %vm8315_vm0 }
 0x905   : > { %1842 = vadd.xlane.f32.xlu0 %v1841_v40 }
 0x98e   : > { %v1840_v42 = vpop.xlane.xlu0 %1839 }
 0x98f   : > { %v1844_v44 = vmul.f32 0.015625, %v1840_v42 }
 0x991   : > { %v1846_v48 = vadd.f32 1e-05, %v1844_v44 }
 0x992   : > { %v1843_v26 = vpop.xlane.xlu0 %1842 }
 0x993   : > { %6180 = vrsqrt.f32 %v1846_v48  ;;  %v1845_v6 = vmul.f32 0.015625, %v1843_v26 }
 0x995   : > { %v1847_v49 = vadd.f32 1e-05, %v1845_v6 }
 0x997   : > { %6182 = vrsqrt.f32 %v1847_v49 }
 0x99d   : > { %v6181_v63 = vpop.eup %6180 }
 0x99e   : > { %v1850_v3 = vmul.f32 %v6181_v63, %v1834_v19 }
 0x9a0   : > { %v1852_v53 = vmax.f32 %v1850_v3, 0.0 }
 0x9a1   : > { %v6183_v55 = vpop.eup %6182 }
 0x9a2   : > { %1856 = vrot.lane.b32.xlu1 %v1852_v53, %s8254_s26  ;;  %v1851_v57 = vmul.f32 %v6183_v55, %v1835_v59 }
 0x9a4   : > { %v1853_v60 = vmax.f32 %v1851_v57, 0.0 }
 0x9a6   : > { %1858 = vrot.lane.b32.xlu0 %v1853_v60, %s8254_s26  ;;  %s8365_s26 = smov 118  }
 0xa14   : > { %v1857_v1 = vpop.permute.xlu1 %1856 }
 0xa15   : > { %1862 = vst.msk [vmem:[#allocation4] sm:$0xff] %vm1642_vm1, %v1857_v1 }
 0xa18   : > { %v1859_v7 = vpop.permute.xlu0 %1858 }
 0xa19   : > { %1863 = vst.msk [vmem:[#allocation4 + $0x8] sm:$0xff] %vm1642_vm1, %v1859_v7 }
 0xa1c   : > { %v1864_v41 = vld [vmem:[#allocation4] sm:$0xff] }
 0xa1d   : > { %1874 = vrot.lane.b32.xlu1 %v1864_v41, %s8314_s2  ;;  %v1868_v62 = vsel %vm6955_vm9, %v1864_v41, 0.0  ;;  %v1866_v2 = vsel %vm6959_vm2, %v1864_v41, 0.0 }
 0xa1e   : > { %1884 = vrot.lane.b32.xlu0 %v1868_v62, %s8288_s27  ;;  %1870 = vst.msk [vmem:[#allocation8] sm:$0xff] %vm8315_vm0, %v1866_v2 }
 0xa20   : > { %v1865_v39 = vld [vmem:[#allocation4 + $0x8] sm:$0xff] }
 0xa21   : > { %1876 = vrot.lane.b32.xlu1 %v1865_v39, %s8314_s2  ;;  %v1867_v46 = vsel %vm6959_vm2, %v1865_v39, 0.0  ;;  %v1869_v50 = vsel %vm6955_vm9, %v1865_v39, 0.0 }
 0xa22   : > { %1894 = vrot.lane.b32.xlu0 %v1866_v2, %s8258_s24  ;;  %1871 = vst.msk [vmem:[#allocation8 + $0x10] sm:$0xff] %vm8337_vm8, %v1867_v46  ;;  %vm8345_vm8 = vmmov %vm8315_vm0 }
 0xa25   : > { %1886 = vrot.lane.b32.xlu1 %v1869_v50, %s8288_s27  ;;  %v1942_v5 = vld [vmem:[#allocation8] sm:$0xff] }
 0xa26   : > { %1902 = vrot.lane.b32.xlu0 %v1864_v41, %s8260_s1 }
 0xa29   : > { %1896 = vrot.lane.b32.xlu1 %v1867_v46, %s8258_s24  ;;  %v1943_v16 = vld [vmem:[#allocation8 + $0x10] sm:$0xff]  ;;  %s8266_s24 = smov 123  }
 0xa2a   : > { %1910 = vrot.lane.b32.xlu0 %v1868_v62, %s8256_s28  ;;  %v1960_v17 = vpack.c.bf16 %v1943_v16, %v1942_v5 }
 0xa2c   : > { %1998 = vmatpush1.bf16.msra.mxu1 %v1960_v17 }
 0xa2d   : > { %1904 = vrot.lane.b32.xlu1 %v1865_v39, %s8260_s1  ;;  %1999 = vmatprep.subr.bf16.mxu1 %v6299_v51  ;;  %s8361_s1 = smov 119  }
 0xa2e   : > { %1918 = vrot.lane.b32.xlu0 %v1866_v2, %s8316_s21 }
 0xa31   : > { %1912 = vrot.lane.b32.xlu1 %v1869_v50, %s8256_s28  ;;  %s8264_s28 = smov 122  }
 0xa32   : > { %1926 = vrot.lane.b32.xlu0 %v1864_v41, %s8317_s13 }
 0xa35   : > { %1920 = vrot.lane.b32.xlu1 %v1867_v46, %s8316_s21 }
 0xa36   : > { %1934 = vrot.lane.b32.xlu0 %v1868_v62, %s8289_s22 }
 0xa39   : > { %1928 = vrot.lane.b32.xlu1 %v1865_v39, %s8317_s13 }
 0xa3d   : > { %1936 = vrot.lane.b32.xlu1 %v1869_v50, %s8289_s22 }
 0xa8f   : > { %v1875_v11 = vpop.permute.xlu1 %1874 }
 0xa90   : > { %1880 = vst.msk [vmem:[#allocation8 + $0x20] sm:$0xff] %vm8340_vm10, %v1875_v11  ;;  %v1885_v47 = vpop.permute.xlu0 %1884  ;;  %vm8346_vm10 = vmmov %vm8315_vm0 }
 0xa91   : > { %1890 = vst.msk [vmem:[#allocation8 + $0x40] sm:$0xff] %vm8341_vm11, %v1885_v47  ;;  %vm8347_vm11 = vmmov %vm8315_vm0 }
 0xa93   : > { %v1877_v29 = vpop.permute.xlu1 %1876 }
 0xa94   : > { %1881 = vst.msk [vmem:[#allocation8 + $0x30] sm:$0xff] %vm8342_vm7, %v1877_v29  ;;  %v1895_v31 = vpop.permute.xlu0 %1894  ;;  %vm8348_vm7 = vmmov %vm8315_vm0 }
 0xa95   : > { %1900 = vst.msk [vmem:[#allocation8 + $0x60] sm:$0xff] %vm8343_vm5, %v1895_v31  ;;  %vm8349_vm5 = vmmov %vm8315_vm0 }
 0xa97   : > { %v1887_v32 = vpop.permute.xlu1 %1886  ;;  %v1944_v43 = vld [vmem:[#allocation8 + $0x20] sm:$0xff] }
 0xa98   : > { %1891 = vst.msk [vmem:[#allocation8 + $0x50] sm:$0xff] %vm8344_vm6, %v1887_v32  ;;  %v1903_v33 = vpop.permute.xlu0 %1902  ;;  %v1946_v59 = vld [vmem:[#allocation8 + $0x40] sm:$0xff]  ;;  %vm8350_vm6 = vmmov %vm8315_vm0 }
 0xa99   : > { %1908 = vst.msk [vmem:[#allocation8 + $0x80] sm:$0xff] %vm8315_vm0, %v1903_v33 }
 0xa9b   : > { %v1897_v34 = vpop.permute.xlu1 %1896  ;;  %v1945_v58 = vld [vmem:[#allocation8 + $0x30] sm:$0xff] }
 0xa9c   : > { %1901 = vst.msk [vmem:[#allocation8 + $0x70] sm:$0xff] %vm8345_vm8, %v1897_v34  ;;  %v1911_v35 = vpop.permute.xlu0 %1910  ;;  %v1961_v19 = vpack.c.bf16 %v1945_v58, %v1944_v43  ;;  %v1948_v42 = vld [vmem:[#allocation8 + $0x60] sm:$0xff]  ;;  %vm8351_vm8 = vmmov %vm8315_vm0 }
 0xa9d   : > { %1916 = vst.msk [vmem:[#allocation8 + $0xa0] sm:$0xff] %vm8346_vm10, %v1911_v35  ;;  %vm8352_vm10 = vmmov %vm8315_vm0 }
 0xa9e   : > { %2000 = vmatpush1.bf16.msra.mxu1 %v1961_v19 }
 0xa9f   : > { %v1905_v36 = vpop.permute.xlu1 %1904  ;;  %2001 = vmatprep.subr.bf16.mxu1 %v6299_v51  ;;  %v1947_v15 = vld [vmem:[#allocation8 + $0x50] sm:$0xff] }
 0xaa0   : > { %1909 = vst.msk [vmem:[#allocation8 + $0x90] sm:$0xff] %vm8347_vm11, %v1905_v36  ;;  %v1919_v61 = vpop.permute.xlu0 %1918  ;;  %v1962_v38 = vpack.c.bf16 %v1947_v15, %v1946_v59  ;;  %v1950_v49 = vld [vmem:[#allocation8 + $0x80] sm:$0xff]  ;;  %vm8353_vm11 = vmmov %vm8315_vm0 }
 0xaa1   : > { %1924 = vst.msk [vmem:[#allocation8 + $0xc0] sm:$0xff] %vm8348_vm7, %v1919_v61  ;;  %vm8354_vm7 = vmmov %vm8315_vm0 }
 0xaa2   : > { %2002 = vmatpush1.bf16.msra.mxu1 %v1962_v38 }
 0xaa3   : > { %v1913_v40 = vpop.permute.xlu1 %1912  ;;  %2003 = vmatprep.subr.bf16.mxu1 %v6299_v51  ;;  %v1949_v44 = vld [vmem:[#allocation8 + $0x70] sm:$0xff] }
 0xaa4   : > { %1917 = vst.msk [vmem:[#allocation8 + $0xb0] sm:$0xff] %vm8349_vm5, %v1913_v40  ;;  %v1927_v48 = vpop.permute.xlu0 %1926  ;;  %v1963_v26 = vpack.c.bf16 %v1949_v44, %v1948_v42  ;;  %v1952_v57 = vld [vmem:[#allocation8 + $0xa0] sm:$0xff]  ;;  %vm8355_vm5 = vmmov %vm8315_vm0 }
 0xaa5   : > { %1932 = vst.msk [vmem:[#allocation8 + $0xe0] sm:$0xff] %vm8350_vm6, %v1927_v48  ;;  %vm8356_vm6 = vmmov %vm8315_vm0 }
 0xaa6   : > { %2004 = vmatpush1.bf16.msra.mxu1 %v1963_v26 }
 0xaa7   : > { %v1921_v6 = vpop.permute.xlu1 %1920  ;;  %2005 = vmatprep.subr.bf16.mxu1 %v6299_v51  ;;  %v1951_v63 = vld [vmem:[#allocation8 + $0x90] sm:$0xff] }
 0xaa8   : > { %1925 = vst.msk [vmem:[#allocation8 + $0xd0] sm:$0xff] %vm8315_vm0, %v1921_v6  ;;  %v1935_v3 = vpop.permute.xlu0 %1934  ;;  %v1964_v53 = vpack.c.bf16 %v1951_v63, %v1950_v49  ;;  %v1954_v41 = vld [vmem:[#allocation8 + $0xc0] sm:$0xff] }
 0xaa9   : > { %1940 = vst.msk [vmem:[#allocation8 + $0x100] sm:$0xff] %vm8351_vm8, %v1935_v3  ;;  %vm618_vm8 = vcmask 39936  }
 0xaaa   : > { %2006 = vmatpush1.bf16.msra.mxu1 %v1964_v53  ;;  %620 = vst.msk [vmem:[#allocation5 + $0x8] sm:$0xff] %vm618_vm8, %v6274_v0  ;;  %619 = vst.msk [vmem:[#allocation5] sm:$0xff] %vm618_vm8, %v6274_v0 }
 0xaab   : > { %v1929_v55 = vpop.permute.xlu1 %1928  ;;  %2007 = vmatprep.subr.bf16.mxu1 %v6299_v51  ;;  %v1953_v60 = vld [vmem:[#allocation8 + $0xb0] sm:$0xff]  ;;  %621 = vst.msk [vmem:[#allocation5 + $0x10] sm:$0xff] %vm618_vm8, %v6274_v0  ;;  %622 = vst.msk [vmem:[#allocation5 + $0x18] sm:$0xff] %vm618_vm8, %v6274_v0 }
 0xaac   : > { %1933 = vst.msk [vmem:[#allocation8 + $0xf0] sm:$0xff] %vm8352_vm10, %v1929_v55  ;;  %v1965_v1 = vpack.c.bf16 %v1953_v60, %v1952_v57  ;;  %v1956_v39 = vld [vmem:[#allocation8 + $0xe0] sm:$0xff]  ;;  %vm623_vm10 = vcmask 212136   ;;  %vm8370_vm8 = vmmov %vm8315_vm0 }
 0xaad   : > { %625 = vst.msk [vmem:[#allocation5 + $0x8] sm:$0xff] %vm623_vm10, %v6274_v0  ;;  %624 = vst.msk [vmem:[#allocation5] sm:$0xff] %vm623_vm10, %v6274_v0 }
 0xaae   : > { %2008 = vmatpush1.bf16.msra.mxu1 %v1965_v1  ;;  %626 = vst.msk [vmem:[#allocation5 + $0x10] sm:$0xff] %vm623_vm10, %v6274_v0  ;;  %627 = vst.msk [vmem:[#allocation5 + $0x18] sm:$0xff] %vm623_vm10, %v6274_v0 }
 0xaaf   : > { %v1937_v7 = vpop.permute.xlu1 %1936  ;;  %2009 = vmatprep.subr.bf16.mxu1 %v6299_v51  ;;  %v1955_v62 = vld [vmem:[#allocation8 + $0xd0] sm:$0xff]  ;;  %vm8371_vm10 = vmmov %vm8315_vm0 }
 0xab0   : > { %1941 = vst.msk [vmem:[#allocation8 + $0x110] sm:$0xff] %vm8353_vm11, %v1937_v7  ;;  %v1966_v2 = vpack.c.bf16 %v1955_v62, %v1954_v41  ;;  %v1958_v5 = vld [vmem:[#allocation8 + $0x100] sm:$0xff]  ;;  %vm2224_vm11 = vcmask 171048  }
 0xab2   : > { %2010 = vmatpush1.bf16.msra.mxu1 %v1966_v2 }
 0xab3   : > { %2011 = vmatprep.subr.bf16.mxu1 %v6299_v51  ;;  %v1957_v46 = vld [vmem:[#allocation8 + $0xf0] sm:$0xff] }
 0xab4   : > { %v1967_v50 = vpack.c.bf16 %v1957_v46, %v1956_v39 }
 0xab6   : > { %2012 = vmatpush1.bf16.msra.mxu1 %v1967_v50 }
 0xab7   : > { %2013 = vmatprep.subr.bf16.mxu1 %v6299_v51  ;;  %v1959_v16 = vld [vmem:[#allocation8 + $0x110] sm:$0xff] }
 0xab8   : > { %v1968_v17 = vpack.c.bf16 %v1959_v16, %v1958_v5 }
 0xaba   : > { %2014 = vmatpush1.bf16.msra.mxu1 %v1968_v17 }
 0xabd   : > { %2030 = vmatmul.mubr.bf16.vlgmr.msra.gmra.mrb[8].mxu1 %v6124_v9 }
 0xabe   : > { %5619 = vmatprep.mubr.msk.bf16.mxu1 %vm1781_vm12, %v6127_v18 }
 0xac5   : > { %2038 = vmatmul.mubr.bf16.gmra.mrb[12].mxu1 %v6129_v21 }
 0xb90   : > { %v2031_v22 = vpop.f32.mrb[8].mxu1 }
 0xb91   : > { %v2033_v54 = vpop.f32.mrb[9].mxu1  ;;  %5941 = vmatprep.mubr.msk.f32.mxu0 %vm8354_vm7, %v2031_v22 }
 0xb92   : > { %v2034_v8 = vpop.f32.mrb[10].mxu1 }
 0xb93   : > { %v2036_v10 = vpop.f32.mrb[11].mxu1  ;;  %5942 = vmatmul.mubr.msk.f32.vlgmr.msra.gmra.mrb[8].mxu0 %vm8355_vm5, %v2034_v8 }
 0xb98   : > { %v2039_v23 = vpop.f32.mrb[12].mxu1 }
 0xb99   : > { %v2041_v24 = vpop.f32.mrb[13].mxu1  ;;  %5944 = vmatprep.mubr.msk.f32.mxu0 %vm8356_vm6, %v2039_v23  ;;  %vm2497_vm6 = vcmask 261120  }
 0xb9a   : > { %v2042_v56 = vpop.f32.mrb[14].mxu1 }
 0xb9b   : > { %5945 = vmatmul.mubr.msk.f32.gmra.mrb[10].mxu0 %vm8315_vm0, %v2042_v56  ;;  %v2044_v27 = vpop.f32.mrb[15].mxu1 }
 0xb9c   : > { %v2233_v27 = vadd.s32 32, %v6428_v4 }
 0xc66   : > { %v5943_v28 = vpop.f32.mrb[8].mxu0 }
 0xc67   : > { %v2132_v20 = vpop.f32.mrb[9].mxu0  ;;  %v2154_v11 = vsel %vm1781_vm12, %v5943_v28, 0.0 }
 0xc68   : > { %2155 = vadd.xlane.f32.xlu1 %v2154_v11  ;;  %v2151_v47 = vsel %vm1781_vm12, %v2132_v20, 0.0 }
 0xc69   : > { %2152 = vadd.xlane.f32.xlu0 %v2151_v47 }
 0xc6e   : > { %v5946_v29 = vpop.f32.mrb[10].mxu0 }
 0xc6f   : > { %v2142_v31 = vpop.f32.mrb[11].mxu0  ;;  %v2160_v33 = vsel %vm1781_vm12, %v5946_v29, 0.0 }
 0xc70   : > { %v2157_v32 = vsel %vm1781_vm12, %v2142_v31, 0.0 }
 0xc71   : > { %2158 = vadd.xlane.f32.xlu0 %v2157_v32 }
 0xc75   : > { %2161 = vadd.xlane.f32.xlu0 %v2160_v33 }
 0xcf5   : > { %v2156_v34 = vpop.xlane.xlu1 %2155 }
 0xcf6   : > { %v2165_v43 = vmul.f32 0.0625, %v2156_v34  ;;  %v2153_v58 = vpop.xlane.xlu0 %2152 }
 0xcf7   : > { %v2164_v35 = vmul.f32 0.0625, %v2153_v58  ;;  %v6164_v58 = vld [vmem:[%s8204_s9 + $0x4] ss:$12 sps:$4 sm:$0xff]  }
 0xcf8   : > { %v2169_v19 = vsub.f32 %v5943_v28, %v2165_v43  ;;  %v5624_v28 = vadd.s32 4294967291, %v2233_v27 }
 0xcf9   : > { %v2168_v36 = vsub.f32 %v2132_v20, %v2164_v35 }
 0xcfa   : > { %v2173_v59 = vmul.f32 %v2169_v19, %v2169_v19  ;;  %v2239_v47 = vand.u32 3, %v5624_v28 }
 0xcfb   : > { %v2172_v15 = vmul.f32 %v2168_v36, %v2168_v36 }
 0xcfc   : > { %v2179_v61 = vsel %vm1781_vm12, %v2173_v59, 0.0  ;;  %vm7163_vm7 = vcmp.lt.s32.totalorder %v2239_v47, 3  ;;  %vm7179_vm5 = vcmp.ge.s32.totalorder %v2239_v47, 1 }
 0xcfd   : > { %2180 = vadd.xlane.f32.xlu0 %v2179_v61  ;;  %v2176_v38 = vsel %vm1781_vm12, %v2172_v15, 0.0 }
 0xcfe   : > { %2177 = vadd.xlane.f32.xlu1 %v2176_v38  ;;  %v2159_v40 = vpop.xlane.xlu0 %2158 }
 0xcff   : > { %v2166_v42 = vmul.f32 0.0625, %v2159_v40 }
 0xd01   : > { %v2170_v44 = vsub.f32 %v2142_v31, %v2166_v42  ;;  %v6132_v42 = vld [vmem:[%s8364_s5 + $0x4] ss:$12 sps:$4 sm:$0xff]  }
 0xd02   : > { %v2162_v48 = vpop.xlane.xlu0 %2161  ;;  %2536 = vmatprep.mubr.bf16.mxu1 %v6132_v42 }
 0xd03   : > { %v2167_v26 = vmul.f32 0.0625, %v2162_v48  ;;  %v2174_v6 = vmul.f32 %v2170_v44, %v2170_v44 }
 0xd05   : > { %v2171_v49 = vsub.f32 %v5946_v29, %v2167_v26  ;;  %v2182_v63 = vsel %vm1781_vm12, %v2174_v6, 0.0 }
 0xd06   : > { %2183 = vadd.xlane.f32.xlu1 %v2182_v63 }
 0xd07   : > { %v2175_v3 = vmul.f32 %v2171_v49, %v2171_v49 }
 0xd09   : > { %v2185_v53 = vsel %vm1781_vm12, %v2175_v3, 0.0 }
 0xd0a   : > { %2186 = vadd.xlane.f32.xlu0 %v2185_v53 }
 0xd8a   : > { %v2181_v55 = vpop.xlane.xlu0 %2180 }
 0xd8b   : > { %v2189_v57 = vmul.f32 0.0625, %v2181_v55  ;;  %v2178_v60 = vpop.xlane.xlu1 %2177 }
 0xd8c   : > { %v2188_v1 = vmul.f32 0.0625, %v2178_v60 }
 0xd8d   : > { %v2193_v7 = vadd.f32 1e-05, %v2189_v57 }
 0xd8e   : > { %v2192_v41 = vadd.f32 1e-05, %v2188_v1 }
 0xd8f   : > { %6184 = vrsqrt.f32 %v2193_v7 }
 0xd90   : > { %6186 = vrsqrt.f32 %v2192_v41 }
 0xd93   : > { %v2184_v62 = vpop.xlane.xlu1 %2183 }
 0xd94   : > { %v2190_v2 = vmul.f32 0.0625, %v2184_v62 }
 0xd96   : > { %v2194_v39 = vadd.f32 1e-05, %v2190_v2 }
 0xd97   : > { %v2187_v46 = vpop.xlane.xlu0 %2186 }
 0xd98   : > { %6188 = vrsqrt.f32 %v2194_v39  ;;  %v2191_v50 = vmul.f32 0.0625, %v2187_v46 }
 0xd99   : > { %v6185_v5 = vpop.eup %6184 }
 0xd9a   : > { %v6187_v16 = vpop.eup %6186  ;;  %v2195_v17 = vadd.f32 1e-05, %v2191_v50  ;;  %v7136_v9 = vmul.f32 %v6185_v5, %v2169_v19 }
 0xd9b   : > { %v7138_v18 = vmul.f32 %v6187_v16, %v2168_v36 }
 0xd9c   : > { %6190 = vrsqrt.f32 %v2195_v17  ;;  %v2205_v21 = vmax.f32 %v7136_v9, 0.0 }
 0xd9d   : > { %v2204_v22 = vmax.f32 %v7138_v18, 0.0 }
 0xd9e   : > { %2214 = vrot.lane.b32.xlu0 %v2205_v21, %s8268_s15 }
 0xd9f   : > { %2212 = vrot.lane.b32.xlu1 %v2204_v22, %s8268_s15 }
 0xda2   : > { %v6189_v54 = vpop.eup %6188 }
 0xda3   : > { %v7148_v8 = vmul.f32 %v6189_v54, %v2170_v44 }
 0xda5   : > { %v2206_v10 = vmax.f32 %v7148_v8, 0.0 }
 0xda6   : > { %v6191_v23 = vpop.eup %6190 }
 0xda7   : > { %2216 = vrot.lane.b32.xlu1 %v2206_v10, %s8268_s15  ;;  %v7154_v24 = vmul.f32 %v6191_v23, %v2171_v49 }
 0xda9   : > { %v2207_v56 = vmax.f32 %v7154_v24, 0.0 }
 0xdab   : > { %2218 = vrot.lane.b32.xlu1 %v2207_v56, %s8268_s15  ;;  %s8366_s15 = smov 5  }
 0xe10   : > { %v2215_v20 = vpop.permute.xlu0 %2214 }
 0xe11   : > { %2226 = vst.msk [vmem:[#allocation5 + $0x8] sm:$0xff] %vm2224_vm11, %v2215_v20  ;;  %v2213_v11 = vpop.permute.xlu1 %2212 }
 0xe12   : > { %2225 = vst.msk [vmem:[#allocation5] sm:$0xff] %vm2224_vm11, %v2213_v11 }
 0xe18   : > { %v2230_v31 = vld [vmem:[#allocation5 + $0x8] sm:$0xff] }
 0xe19   : > { %v2217_v32 = vpop.permute.xlu1 %2216  ;;  %2327 = vrot.lane.b32.xlu1 %v2230_v31, %s8266_s24  ;;  %v2229_v33 = vld [vmem:[#allocation5] sm:$0xff]  ;;  %v2251_v4 = vsel %vm7163_vm7, %v2230_v31, 0.0  ;;  %v2258_v36 = vsel %vm7179_vm5, %v2230_v31, 0.0 }
 0xe1a   : > { %2227 = vst.msk [vmem:[#allocation5 + $0x10] sm:$0xff] %vm2224_vm11, %v2217_v32  ;;  %2325 = vrot.lane.b32.xlu0 %v2229_v33, %s8266_s24  ;;  %v2250_v34 = vsel %vm7163_vm7, %v2229_v33, 0.0  ;;  %v2257_v59 = vsel %vm7179_vm5, %v2229_v33, 0.0 }
 0xe1b   : > { %2262 = vst.msk [vmem:[#allocation8 + $0x10] sm:$0xff] %vm1781_vm12, %v2251_v4  ;;  %2261 = vst.msk [vmem:[#allocation8] sm:$0xff] %vm1781_vm12, %v2250_v34 }
 0xe1d   : > { %v2219_v43 = vpop.permute.xlu1 %2218  ;;  %2271 = vrot.lane.b32.xlu1 %v2230_v31, %s8314_s2 }
 0xe1e   : > { %2228 = vst.msk [vmem:[#allocation5 + $0x18] sm:$0xff] %vm2224_vm11, %v2219_v43  ;;  %2269 = vrot.lane.b32.xlu0 %v2229_v33, %s8314_s2 }
 0xe21   : > { %2375 = vrot.lane.b32.xlu1 %v2230_v31, %s8361_s1  ;;  %v2231_v35 = vld [vmem:[#allocation5 + $0x10] sm:$0xff] }
 0xe22   : > { %2373 = vrot.lane.b32.xlu0 %v2229_v33, %s8361_s1  ;;  %v2252_v19 = vsel %vm7163_vm7, %v2231_v35, 0.0  ;;  %v2259_v40 = vsel %vm7179_vm5, %v2231_v35, 0.0  ;;  %v2405_v3 = vld [vmem:[#allocation8] sm:$0xff]  ;;  %v2406_v53 = vld [vmem:[#allocation8 + $0x10] sm:$0xff] }
 0xe23   : > { %2263 = vst.msk [vmem:[#allocation8 + $0x20] sm:$0xff] %vm1781_vm12, %v2252_v19  ;;  %v2441_v1 = vpack.c.bf16 %v2406_v53, %v2405_v3 }
 0xe25   : > { %2343 = vrot.lane.b32.xlu1 %v2258_v36, %s8264_s28  ;;  %v2232_v15 = vld [vmem:[#allocation5 + $0x18] sm:$0xff] }
 0xe26   : > { %2341 = vrot.lane.b32.xlu0 %v2257_v59, %s8264_s28  ;;  %v2253_v61 = vsel %vm7163_vm7, %v2232_v15, 0.0  ;;  %v2260_v38 = vsel %vm7179_vm5, %v2232_v15, 0.0 }
 0xe27   : > { %2264 = vst.msk [vmem:[#allocation8 + $0x30] sm:$0xff] %vm1781_vm12, %v2253_v61 }
 0xe29   : > { %2359 = vrot.lane.b32.xlu1 %v2251_v4, %s8362_s0 }
 0xe2a   : > { %2357 = vrot.lane.b32.xlu0 %v2250_v34, %s8362_s0  ;;  %v2407_v32 = vld [vmem:[#allocation8 + $0x20] sm:$0xff] }
 0xe2d   : > { %2291 = vrot.lane.b32.xlu1 %v2258_v36, %s8288_s27 }
 0xe2e   : > { %2289 = vrot.lane.b32.xlu0 %v2257_v59, %s8288_s27  ;;  %v2408_v27 = vld [vmem:[#allocation8 + $0x30] sm:$0xff] }
 0xe2f   : > { %v2442_v33 = vpack.c.bf16 %v2408_v27, %v2407_v32 }
 0xe31   : > { %2331 = vrot.lane.b32.xlu1 %v2232_v15, %s8266_s24 }
 0xe32   : > { %2329 = vrot.lane.b32.xlu0 %v2231_v35, %s8266_s24  ;;  %s8367_s24 = smov 123  }
 0xe35   : > { %2275 = vrot.lane.b32.xlu1 %v2232_v15, %s8314_s2 }
 0xe36   : > { %2273 = vrot.lane.b32.xlu0 %v2231_v35, %s8314_s2 }
 0xe39   : > { %2347 = vrot.lane.b32.xlu1 %v2260_v38, %s8264_s28 }
 0xe3a   : > { %2345 = vrot.lane.b32.xlu0 %v2259_v40, %s8264_s28  ;;  %s8369_s28 = smov 9  }
 0xe3d   : > { %2363 = vrot.lane.b32.xlu1 %v2253_v61, %s8362_s0 }
 0xe3e   : > { %2309 = vrot.lane.b32.xlu0 %v2250_v34, %s8363_s25 }
 0xe41   : > { %2295 = vrot.lane.b32.xlu1 %v2260_v38, %s8288_s27 }
 0xe42   : > { %2361 = vrot.lane.b32.xlu0 %v2252_v19, %s8362_s0 }
 0xe45   : > { %2311 = vrot.lane.b32.xlu1 %v2251_v4, %s8363_s25 }
 0xe46   : > { %2293 = vrot.lane.b32.xlu0 %v2259_v40, %s8288_s27 }
 0xe49   : > { %2379 = vrot.lane.b32.xlu1 %v2232_v15, %s8361_s1 }
 0xe4a   : > { %2377 = vrot.lane.b32.xlu0 %v2231_v35, %s8361_s1 }
 0xe4d   : > { %2315 = vrot.lane.b32.xlu1 %v2253_v61, %s8363_s25 }
 0xe4e   : > { %2313 = vrot.lane.b32.xlu0 %v2252_v19, %s8363_s25 }
 0xe51   : > { %2391 = vrot.lane.b32.xlu1 %v2258_v36, %s8365_s26 }
 0xe52   : > { %2389 = vrot.lane.b32.xlu0 %v2257_v59, %s8365_s26 }
 0xe55   : > { %2395 = vrot.lane.b32.xlu1 %v2260_v38, %s8365_s26 }
 0xe56   : > { %2393 = vrot.lane.b32.xlu0 %v2259_v40, %s8365_s26 }
 0xe8b   : > { %v2328_v44 = vpop.permute.xlu1 %2327 }
 0xe8c   : > { %2338 = vst.msk [vmem:[#allocation8 + $0x110] sm:$0xff] %vm1781_vm12, %v2328_v44  ;;  %v2326_v48 = vpop.permute.xlu0 %2325 }
 0xe8d   : > { %2337 = vst.msk [vmem:[#allocation8 + $0x100] sm:$0xff] %vm1781_vm12, %v2326_v48 }
 0xe8f   : > { %v2272_v26 = vpop.permute.xlu1 %2271 }
 0xe90   : > { %2282 = vst.msk [vmem:[#allocation8 + $0x50] sm:$0xff] %vm1781_vm12, %v2272_v26  ;;  %v2270_v6 = vpop.permute.xlu0 %2269 }
 0xe91   : > { %2281 = vst.msk [vmem:[#allocation8 + $0x40] sm:$0xff] %vm1781_vm12, %v2270_v6 }
 0xe93   : > { %v2376_v49 = vpop.permute.xlu1 %2375  ;;  %v2422_v63 = vld [vmem:[#allocation8 + $0x110] sm:$0xff] }
 0xe94   : > { %2386 = vst.msk [vmem:[#allocation8 + $0x1d0] sm:$0xff] %vm1781_vm12, %v2376_v49  ;;  %v2374_v55 = vpop.permute.xlu0 %2373  ;;  %v2421_v57 = vld [vmem:[#allocation8 + $0x100] sm:$0xff] }
 0xe95   : > { %2385 = vst.msk [vmem:[#allocation8 + $0x1c0] sm:$0xff] %vm1781_vm12, %v2374_v55  ;;  %v2449_v60 = vpack.c.bf16 %v2422_v63, %v2421_v57 }
 0xe97   : > { %v2344_v7 = vpop.permute.xlu1 %2343  ;;  %5734 = vmatprep.subr.bf16.mxu1 %v2449_v60  ;;  %v2410_v35 = vld [vmem:[#allocation8 + $0x50] sm:$0xff] }
 0xe98   : > { %2354 = vst.msk [vmem:[#allocation8 + $0x150] sm:$0xff] %vm1781_vm12, %v2344_v7  ;;  %5735 = vmatpush3.bf16.msra.mxu1 %v2441_v1  ;;  %v2342_v41 = vpop.permute.xlu0 %2341  ;;  %v2409_v43 = vld [vmem:[#allocation8 + $0x40] sm:$0xff] }
 0xe99   : > { %2353 = vst.msk [vmem:[#allocation8 + $0x140] sm:$0xff] %vm1781_vm12, %v2342_v41  ;;  %v2443_v36 = vpack.c.bf16 %v2410_v35, %v2409_v43 }
 0xe9b   : > { %v2360_v62 = vpop.permute.xlu1 %2359 }
 0xe9c   : > { %2370 = vst.msk [vmem:[#allocation8 + $0x190] sm:$0xff] %vm1781_vm12, %v2360_v62  ;;  %v2358_v2 = vpop.permute.xlu0 %2357 }
 0xe9d   : > { %2369 = vst.msk [vmem:[#allocation8 + $0x180] sm:$0xff] %vm1781_vm12, %v2358_v2 }
 0xe9f   : > { %v2292_v39 = vpop.permute.xlu1 %2291  ;;  %v2426_v47 = vld [vmem:[#allocation8 + $0x150] sm:$0xff] }
 0xea0   : > { %2302 = vst.msk [vmem:[#allocation8 + $0x90] sm:$0xff] %vm1781_vm12, %v2292_v39  ;;  %v2290_v46 = vpop.permute.xlu0 %2289  ;;  %v2425_v11 = vld [vmem:[#allocation8 + $0x140] sm:$0xff] }
 0xea1   : > { %2301 = vst.msk [vmem:[#allocation8 + $0x80] sm:$0xff] %vm1781_vm12, %v2290_v46  ;;  %v2451_v34 = vpack.c.bf16 %v2426_v47, %v2425_v11  ;;  %v2433_v39 = vld [vmem:[#allocation8 + $0x1c0] sm:$0xff]  ;;  %v2434_v46 = vld [vmem:[#allocation8 + $0x1d0] sm:$0xff] }
 0xea3   : > { %v2332_v50 = vpop.permute.xlu1 %2331  ;;  %v2430_v48 = vld [vmem:[#allocation8 + $0x190] sm:$0xff] }
 0xea4   : > { %2340 = vst.msk [vmem:[#allocation8 + $0x130] sm:$0xff] %vm1781_vm12, %v2332_v50  ;;  %v2330_v5 = vpop.permute.xlu0 %2329  ;;  %v2429_v44 = vld [vmem:[#allocation8 + $0x180] sm:$0xff] }
 0xea5   : > { %2339 = vst.msk [vmem:[#allocation8 + $0x120] sm:$0xff] %vm1781_vm12, %v2330_v5  ;;  %v2453_v63 = vpack.c.bf16 %v2430_v48, %v2429_v44  ;;  %v6135_v44 = vld [vmem:[%s8364_s5 + $0x18] ss:$12 sps:$4 sm:$0xff]   ;;  %v6136_v48 = vld [vmem:[%s8364_s5 + $0x8] ss:$12 sps:$4 sm:$0xff]  }
 0xea7   : > { %v2276_v16 = vpop.permute.xlu1 %2275  ;;  %v2414_v53 = vld [vmem:[#allocation8 + $0x90] sm:$0xff] }
 0xea8   : > { %2284 = vst.msk [vmem:[#allocation8 + $0x70] sm:$0xff] %vm1781_vm12, %v2276_v16  ;;  %v2274_v17 = vpop.permute.xlu0 %2273  ;;  %v2413_v3 = vld [vmem:[#allocation8 + $0x80] sm:$0xff] }
 0xea9   : > { %2283 = vst.msk [vmem:[#allocation8 + $0x60] sm:$0xff] %vm1781_vm12, %v2274_v17  ;;  %v2445_v57 = vpack.c.bf16 %v2414_v53, %v2413_v3 }
 0xeab   : > { %v2348_v54 = vpop.permute.xlu1 %2347  ;;  %v2424_v23 = vld [vmem:[#allocation8 + $0x130] sm:$0xff] }
 0xeac   : > { %2356 = vst.msk [vmem:[#allocation8 + $0x170] sm:$0xff] %vm1781_vm12, %v2348_v54  ;;  %v2346_v28 = vpop.permute.xlu0 %2345  ;;  %v2423_v20 = vld [vmem:[#allocation8 + $0x120] sm:$0xff]  ;;  %v2455_v54 = vpack.c.bf16 %v2434_v46, %v2433_v39 }
 0xead   : > { %2355 = vst.msk [vmem:[#allocation8 + $0x160] sm:$0xff] %vm1781_vm12, %v2346_v28  ;;  %v2450_v31 = vpack.c.bf16 %v2424_v23, %v2423_v20 }
 0xeaf   : > { %v2364_v4 = vpop.permute.xlu1 %2363  ;;  %5736 = vmatprep.subr.bf16.mxu1 %v2450_v31  ;;  %v2412_v38 = vld [vmem:[#allocation8 + $0x70] sm:$0xff] }
 0xeb0   : > { %2372 = vst.msk [vmem:[#allocation8 + $0x1b0] sm:$0xff] %vm1781_vm12, %v2364_v4  ;;  %5737 = vmatpush3.bf16.msra.mxu1 %v2442_v33  ;;  %v2310_v19 = vpop.permute.xlu0 %2309  ;;  %v2411_v61 = vld [vmem:[#allocation8 + $0x60] sm:$0xff] }
 0xeb1   : > { %2321 = vst.msk [vmem:[#allocation8 + $0xc0] sm:$0xff] %vm1781_vm12, %v2310_v19  ;;  %5738 = vmatprep.subr.bf16.mxu1 %v2451_v34  ;;  %v2444_v6 = vpack.c.bf16 %v2412_v38, %v2411_v61  ;;  %v6130_v19 = vld [vmem:[%s8364_s5] ss:$12 sps:$4 sm:$0xff]  }
 0xeb3   : > { %v2296_v59 = vpop.permute.xlu1 %2295  ;;  %v2428_v15 = vld [vmem:[#allocation8 + $0x170] sm:$0xff] }
 0xeb4   : > { %2304 = vst.msk [vmem:[#allocation8 + $0xb0] sm:$0xff] %vm1781_vm12, %v2296_v59  ;;  %5739 = vmatpush3.bf16.msra.mxu1 %v2443_v36  ;;  %v2362_v40 = vpop.permute.xlu0 %2361  ;;  %v2427_v42 = vld [vmem:[#allocation8 + $0x160] sm:$0xff]  ;;  %v6133_v59 = vld [vmem:[%s8364_s5 + $0x1c] ss:$12 sps:$4 sm:$0xff]  }
 0xeb5   : > { %2371 = vst.msk [vmem:[#allocation8 + $0x1a0] sm:$0xff] %vm1781_vm12, %v2362_v40  ;;  %v2452_v26 = vpack.c.bf16 %v2428_v15, %v2427_v42 }
 0xeb7   : > { %v2312_v49 = vpop.permute.xlu1 %2311  ;;  %5740 = vmatprep.subr.bf16.mxu1 %v2452_v26  ;;  %v2432_v41 = vld [vmem:[#allocation8 + $0x1b0] sm:$0xff] }
 0xeb8   : > { %2322 = vst.msk [vmem:[#allocation8 + $0xd0] sm:$0xff] %vm1781_vm12, %v2312_v49  ;;  %5741 = vmatpush3.bf16.msra.mxu1 %v2444_v6  ;;  %v2294_v55 = vpop.permute.xlu0 %2293  ;;  %v2417_v11 = vld [vmem:[#allocation8 + $0xc0] sm:$0xff]  ;;  %v6137_v26 = vld [vmem:[%s8364_s5 + $0x20] ss:$12 sps:$4 sm:$0xff]  }
 0xeb9   : > { %2303 = vst.msk [vmem:[#allocation8 + $0xa0] sm:$0xff] %vm1781_vm12, %v2294_v55  ;;  %5742 = vmatprep.subr.bf16.mxu1 %v2453_v63 }
 0xebb   : > { %v2380_v60 = vpop.permute.xlu1 %2379  ;;  %v2416_v16 = vld [vmem:[#allocation8 + $0xb0] sm:$0xff] }
 0xebc   : > { %2388 = vst.msk [vmem:[#allocation8 + $0x1f0] sm:$0xff] %vm1781_vm12, %v2380_v60  ;;  %5743 = vmatpush3.bf16.msra.mxu1 %v2445_v57  ;;  %v2378_v1 = vpop.permute.xlu0 %2377  ;;  %v2431_v7 = vld [vmem:[#allocation8 + $0x1a0] sm:$0xff] }
 0xebd   : > { %2387 = vst.msk [vmem:[#allocation8 + $0x1e0] sm:$0xff] %vm1781_vm12, %v2378_v1  ;;  %v2454_v62 = vpack.c.bf16 %v2432_v41, %v2431_v7 }
 0xebf   : > { %v2316_v2 = vpop.permute.xlu1 %2315  ;;  %5744 = vmatprep.subr.bf16.mxu1 %v2454_v62  ;;  %v2418_v23 = vld [vmem:[#allocation8 + $0xd0] sm:$0xff] }
 0xec0   : > { %2324 = vst.msk [vmem:[#allocation8 + $0xf0] sm:$0xff] %vm1781_vm12, %v2316_v2  ;;  %v2314_v50 = vpop.permute.xlu0 %2313  ;;  %v2415_v5 = vld [vmem:[#allocation8 + $0xa0] sm:$0xff]  ;;  %v2447_v31 = vpack.c.bf16 %v2418_v23, %v2417_v11 }
 0xec1   : > { %2323 = vst.msk [vmem:[#allocation8 + $0xe0] sm:$0xff] %vm1781_vm12, %v2314_v50  ;;  %v2446_v17 = vpack.c.bf16 %v2416_v16, %v2415_v5 }
 0xec3   : > { %v2392_v27 = vpop.permute.xlu1 %2391  ;;  %5745 = vmatpush3.bf16.msra.mxu1 %v2446_v17  ;;  %v2436_v28 = vld [vmem:[#allocation8 + $0x1f0] sm:$0xff] }
 0xec4   : > { %2402 = vst.msk [vmem:[#allocation8 + $0x210] sm:$0xff] %vm1781_vm12, %v2392_v27  ;;  %5746 = vmatprep.subr.bf16.mxu1 %v2455_v54  ;;  %v2390_v20 = vpop.permute.xlu0 %2389  ;;  %v2435_v47 = vld [vmem:[#allocation8 + $0x1e0] sm:$0xff] }
 0xec5   : > { %2401 = vst.msk [vmem:[#allocation8 + $0x200] sm:$0xff] %vm1781_vm12, %v2390_v20  ;;  %v2456_v32 = vpack.c.bf16 %v2436_v28, %v2435_v47 }
 0xec7   : > { %v2396_v33 = vpop.permute.xlu1 %2395  ;;  %5747 = vmatpush3.bf16.msra.mxu1 %v2447_v31  ;;  %v2420_v4 = vld [vmem:[#allocation8 + $0xf0] sm:$0xff] }
 0xec8   : > { %2404 = vst.msk [vmem:[#allocation8 + $0x230] sm:$0xff] %vm1781_vm12, %v2396_v33  ;;  %5748 = vmatprep.subr.bf16.mxu1 %v2456_v32  ;;  %v2394_v34 = vpop.permute.xlu0 %2393  ;;  %v2419_v43 = vld [vmem:[#allocation8 + $0xe0] sm:$0xff] }
 0xec9   : > { %2403 = vst.msk [vmem:[#allocation8 + $0x220] sm:$0xff] %vm1781_vm12, %v2394_v34  ;;  %v2448_v35 = vpack.c.bf16 %v2420_v4, %v2419_v43 }
 0xecb   : > { %5749 = vmatpush3.bf16.msra.mxu1 %v2448_v35  ;;  %v2438_v36 = vld [vmem:[#allocation8 + $0x210] sm:$0xff] }
 0xecc   : > { %v2437_v15 = vld [vmem:[#allocation8 + $0x200] sm:$0xff] }
 0xecd   : > { %v2457_v61 = vpack.c.bf16 %v2438_v36, %v2437_v15 }
 0xece   : > { %2537 = vmatmul.mubr.bf16.vlgmr.msra.gmra.mrb[16].mxu1 %v6130_v19 }
 0xecf   : > { %5947 = vmatprep.subr.bf16.mxu1 %v2457_v61  ;;  %v2440_v38 = vld [vmem:[#allocation8 + $0x230] sm:$0xff]  ;;  %2544 = vmatprep.mubr.bf16.mxu1 %v6133_v59 }
 0xed0   : > { %5948 = vmatpush3.bf16.msra.mxu1 %v2457_v61  ;;  %v2439_v40 = vld [vmem:[#allocation8 + $0x220] sm:$0xff] }
 0xed1   : > { %v2458_v42 = vpack.c.bf16 %v2440_v38, %v2439_v40 }
 0xed3   : > { %5949 = vmatprep.subr.bf16.mxu1 %v2458_v42 }
 0xed4   : > { %5950 = vmatpush3.bf16.msra.mxu1 %v2458_v42 }
 0xed6   : > { %2545 = vmatmul.mubr.bf16.gmra.mrb[20].mxu1 %v6135_v44 }
 0xed7   : > { %5951 = vmatprep.mubr.msk.bf16.mxu1 %vm2497_vm6, %v6136_v48 }
 0xede   : > { %5952 = vmatmul.mubr.msk.bf16.vlgmr.msra.gmra.mrb[24].mxu1 %vm2497_vm6, %v6137_v26 }
 0xfa1   : > { %v5750_v6 = vpop.f32.mrb[16].mxu1 }
 0xfa2   : > { %v5751_v49 = vpop.f32.mrb[17].mxu1 }
 0xfa3   : > { %v5752_v63 = vadd.f32 %v5751_v49, %v5750_v6  ;;  %v5753_v3 = vpop.f32.mrb[18].mxu1 }
 0xfa4   : > { %v5754_v53 = vpop.f32.mrb[19].mxu1 }
 0xfa5   : > { %v5755_v55 = vadd.f32 %v5754_v53, %v5753_v3 }
 0xfa9   : > { %v5756_v57 = vpop.f32.mrb[20].mxu1 }
 0xfaa   : > { %v5757_v60 = vpop.f32.mrb[21].mxu1 }
 0xfab   : > { %v5758_v1 = vadd.f32 %v5757_v60, %v5756_v57  ;;  %v5759_v7 = vpop.f32.mrb[22].mxu1 }
 0xfac   : > { %v5760_v41 = vpop.f32.mrb[23].mxu1 }
 0xfad   : > { %v5761_v62 = vadd.f32 %v5760_v41, %v5759_v7 }
 0xfb1   : > { %v5953_v2 = vpop.f32.mrb[24].mxu1 }
 0xfb2   : > { %v2596_v39 = vadd.f32 %v5953_v2, %v5758_v1  ;;  %v2587_v46 = vpop.f32.mrb[25].mxu1 }
 0xfb3   : > { %v2588_v50 = vadd.f32 %v5752_v63, %v2587_v46  ;;  %v5954_v5 = vpop.f32.mrb[26].mxu1 }
 0xfb4   : > { %v2599_v16 = vadd.f32 %v5954_v5, %v5761_v62  ;;  %v2590_v17 = vpop.f32.mrb[27].mxu1  ;;  %v2608_v28 = vsel %vm1781_vm12, %v2596_v39, 0.0 }
 0xfb5   : > { %v2591_v54 = vadd.f32 %v5755_v55, %v2590_v17  ;;  %v2602_v23 = vsel %vm1781_vm12, %v2588_v50, 0.0 }
 0xfb6   : > { %2603 = vadd.xlane.f32.xlu0 %v2602_v23  ;;  %v2611_v20 = vsel %vm1781_vm12, %v2599_v16, 0.0 }
 0xfb7   : > { %v2605_v27 = vsel %vm1781_vm12, %v2591_v54, 0.0 }
 0xfb8   : > { %2606 = vadd.xlane.f32.xlu1 %v2605_v27 }
 0xfba   : > { %2609 = vadd.xlane.f32.xlu0 %v2608_v28 }
 0xfbe   : > { %2612 = vadd.xlane.f32.xlu0 %v2611_v20 }
0x1043   : > { %v2604_v11 = vpop.xlane.xlu0 %2603 }
0x1044   : > { %v2614_v47 = vmul.f32 0.0625, %v2604_v11 }
0x1045   : > { %v2607_v31 = vpop.xlane.xlu1 %2606 }
0x1046   : > { %v2618_v32 = vsub.f32 %v2588_v50, %v2614_v47  ;;  %v2615_v33 = vmul.f32 0.0625, %v2607_v31 }
0x1047   : > { %v2610_v4 = vpop.xlane.xlu0 %2609 }
0x1048   : > { %v2619_v34 = vsub.f32 %v2591_v54, %v2615_v33  ;;  %v2616_v43 = vmul.f32 0.0625, %v2610_v4  ;;  %v2622_v35 = vmul.f32 %v2618_v32, %v2618_v32 }
0x104a   : > { %v2620_v19 = vsub.f32 %v2596_v39, %v2616_v43  ;;  %v2626_v36 = vsel %vm1781_vm12, %v2622_v35, 0.0  ;;  %v2623_v59 = vmul.f32 %v2619_v34, %v2619_v34 }
0x104b   : > { %2627 = vadd.xlane.f32.xlu1 %v2626_v36  ;;  %v2613_v15 = vpop.xlane.xlu0 %2612 }
0x104c   : > { %v2617_v61 = vmul.f32 0.0625, %v2613_v15  ;;  %v2629_v38 = vsel %vm1781_vm12, %v2623_v59, 0.0  ;;  %v2624_v40 = vmul.f32 %v2620_v19, %v2620_v19 }
0x104d   : > { %2630 = vadd.xlane.f32.xlu0 %v2629_v38 }
0x104e   : > { %v2621_v42 = vsub.f32 %v2599_v16, %v2617_v61  ;;  %v2632_v44 = vsel %vm1781_vm12, %v2624_v40, 0.0 }
0x104f   : > { %2633 = vadd.xlane.f32.xlu1 %v2632_v44  ;;  %v6143_v44 = vld [vmem:[%s8201_s6 + $0x8] ss:$12 sps:$4 sm:$0xff]  }
0x1050   : > { %v2625_v48 = vmul.f32 %v2621_v42, %v2621_v42  ;;  %5959 = vmatprep.mubr.msk.bf16.mxu1 %vm2497_vm6, %v6143_v44 }
0x1052   : > { %v2635_v26 = vsel %vm1781_vm12, %v2625_v48, 0.0 }
0x1053   : > { %2636 = vadd.xlane.f32.xlu0 %v2635_v26 }
0x10d8   : > { %v2628_v6 = vpop.xlane.xlu1 %2627 }
0x10d9   : > { %v2638_v49 = vmul.f32 0.0625, %v2628_v6 }
0x10da   : > { %v2631_v63 = vpop.xlane.xlu0 %2630 }
0x10db   : > { %v2642_v3 = vadd.f32 1e-05, %v2638_v49  ;;  %v2639_v53 = vmul.f32 0.0625, %v2631_v63 }
0x10dc   : > { %v2634_v55 = vpop.xlane.xlu1 %2633 }
0x10dd   : > { %6192 = vrsqrt.f32 %v2642_v3  ;;  %v2643_v57 = vadd.f32 1e-05, %v2639_v53  ;;  %v2640_v60 = vmul.f32 0.0625, %v2634_v55 }
0x10df   : > { %6194 = vrsqrt.f32 %v2643_v57  ;;  %v2644_v1 = vadd.f32 1e-05, %v2640_v60 }
0x10e0   : > { %v2637_v7 = vpop.xlane.xlu0 %2636 }
0x10e1   : > { %6196 = vrsqrt.f32 %v2644_v1  ;;  %v2641_v41 = vmul.f32 0.0625, %v2637_v7 }
0x10e3   : > { %v2645_v62 = vadd.f32 1e-05, %v2641_v41 }
0x10e5   : > { %6198 = vrsqrt.f32 %v2645_v62 }
0x10e7   : > { %v6193_v2 = vpop.eup %6192 }
0x10e8   : > { %v2650_v39 = vmul.f32 %v6193_v2, %v2618_v32 }
0x10e9   : > { %v6195_v46 = vpop.eup %6194 }
0x10ea   : > { %v2654_v50 = vmax.f32 %v2650_v39, 0.0  ;;  %v2651_v5 = vmul.f32 %v6195_v46, %v2619_v34 }
0x10eb   : > { %v6197_v16 = vpop.eup %6196 }
0x10ec   : > { %2662 = vrot.lane.b32.xlu1 %v2654_v50, %s8366_s15  ;;  %v2655_v17 = vmax.f32 %v2651_v5, 0.0  ;;  %v2652_v54 = vmul.f32 %v6197_v16, %v2620_v19 }
0x10ee   : > { %2664 = vrot.lane.b32.xlu0 %v2655_v17, %s8366_s15  ;;  %v2656_v23 = vmax.f32 %v2652_v54, 0.0 }
0x10ef   : > { %v6199_v27 = vpop.eup %6198 }
0x10f0   : > { %2666 = vrot.lane.b32.xlu1 %v2656_v23, %s8366_s15  ;;  %v2653_v28 = vmul.f32 %v6199_v27, %v2621_v42  ;;  %v6140_v42 = vld [vmem:[%s8201_s6 + $0x4] ss:$12 sps:$4 sm:$0xff]  }
0x10f1   : > { %2964 = vmatprep.mubr.bf16.mxu0 %v6140_v42 }
0x10f2   : > { %v2657_v20 = vmax.f32 %v2653_v28, 0.0 }
0x10f4   : > { %2668 = vrot.lane.b32.xlu1 %v2657_v20, %s8366_s15 }
0x115e   : > { %v2663_v11 = vpop.permute.xlu1 %2662 }
0x115f   : > { %2674 = vst.msk [vmem:[#allocation5] sm:$0xff] %vm2224_vm11, %v2663_v11 }
0x1160   : > { %v2665_v47 = vpop.permute.xlu0 %2664 }
0x1161   : > { %2675 = vst.msk [vmem:[#allocation5 + $0x8] sm:$0xff] %vm2224_vm11, %v2665_v47 }
0x1162   : > { %v2667_v31 = vpop.permute.xlu1 %2666 }
0x1163   : > { %2676 = vst.msk [vmem:[#allocation5 + $0x10] sm:$0xff] %vm2224_vm11, %v2667_v31 }
0x1166   : > { %v2669_v32 = vpop.permute.xlu1 %2668  ;;  %v2678_v33 = vld [vmem:[#allocation5] sm:$0xff] }
0x1167   : > { %2677 = vst.msk [vmem:[#allocation5 + $0x18] sm:$0xff] %vm2224_vm11, %v2669_v32  ;;  %v2682_v4 = vsel %vm7163_vm7, %v2678_v33, 0.0  ;;  %v2686_v38 = vsel %vm7179_vm5, %v2678_v33, 0.0 }
0x1168   : > { %v2679_v34 = vld [vmem:[#allocation5 + $0x8] sm:$0xff]  ;;  %2690 = vst.msk [vmem:[#allocation8] sm:$0xff] %vm1781_vm12, %v2682_v4 }
0x1169   : > { %v2683_v43 = vsel %vm7163_vm7, %v2679_v34, 0.0  ;;  %v2687_v40 = vsel %vm7179_vm5, %v2679_v34, 0.0 }
0x116a   : > { %v2680_v35 = vld [vmem:[#allocation5 + $0x10] sm:$0xff]  ;;  %2691 = vst.msk [vmem:[#allocation8 + $0x10] sm:$0xff] %vm1781_vm12, %v2683_v43 }
0x116b   : > { %2758 = vrot.lane.b32.xlu0 %v2680_v35, %s8367_s24  ;;  %v2684_v19 = vsel %vm7163_vm7, %v2680_v35, 0.0  ;;  %v2688_v15 = vsel %vm7179_vm5, %v2680_v35, 0.0 }
0x116c   : > { %2692 = vst.msk [vmem:[#allocation8 + $0x20] sm:$0xff] %vm1781_vm12, %v2684_v19 }
0x116e   : > { %v2681_v36 = vld [vmem:[#allocation5 + $0x18] sm:$0xff] }
0x116f   : > { %2702 = vrot.lane.b32.xlu0 %v2680_v35, %s8314_s2  ;;  %2760 = vrot.lane.b32.xlu1 %v2681_v36, %s8367_s24  ;;  %v2685_v59 = vsel %vm7163_vm7, %v2681_v36, 0.0  ;;  %v2689_v61 = vsel %vm7179_vm5, %v2681_v36, 0.0  ;;  %v2834_v46 = vld [vmem:[#allocation8] sm:$0xff] }
0x1170   : > { %2693 = vst.msk [vmem:[#allocation8 + $0x30] sm:$0xff] %vm1781_vm12, %v2685_v59 }
0x1171   : > { %v2835_v60 = vld [vmem:[#allocation8 + $0x10] sm:$0xff] }
0x1172   : > { %v2870_v50 = vpack.c.bf16 %v2835_v60, %v2834_v46 }
0x1173   : > { %2754 = vrot.lane.b32.xlu0 %v2678_v33, %s8367_s24  ;;  %2704 = vrot.lane.b32.xlu1 %v2681_v36, %s8314_s2  ;;  %v2836_v27 = vld [vmem:[#allocation8 + $0x20] sm:$0xff] }
0x1177   : > { %2698 = vrot.lane.b32.xlu0 %v2678_v33, %s8314_s2  ;;  %2756 = vrot.lane.b32.xlu1 %v2679_v34, %s8367_s24  ;;  %v2837_v17 = vld [vmem:[#allocation8 + $0x30] sm:$0xff] }
0x1178   : > { %v2871_v28 = vpack.c.bf16 %v2837_v17, %v2836_v27 }
0x117b   : > { %2774 = vrot.lane.b32.xlu0 %v2688_v15, %s8368_s20  ;;  %2700 = vrot.lane.b32.xlu1 %v2679_v34, %s8314_s2 }
0x117f   : > { %2790 = vrot.lane.b32.xlu0 %v2684_v19, %s8362_s0  ;;  %2776 = vrot.lane.b32.xlu1 %v2689_v61, %s8368_s20 }
0x1183   : > { %2722 = vrot.lane.b32.xlu0 %v2688_v15, %s8288_s27  ;;  %2792 = vrot.lane.b32.xlu1 %v2685_v59, %s8362_s0 }
0x1187   : > { %2802 = vrot.lane.b32.xlu0 %v2678_v33, %s8361_s1  ;;  %2724 = vrot.lane.b32.xlu1 %v2689_v61, %s8288_s27 }
0x118b   : > { %2770 = vrot.lane.b32.xlu0 %v2686_v38, %s8368_s20  ;;  %2804 = vrot.lane.b32.xlu1 %v2679_v34, %s8361_s1 }
0x118f   : > { %2786 = vrot.lane.b32.xlu0 %v2682_v4, %s8362_s0  ;;  %2772 = vrot.lane.b32.xlu1 %v2687_v40, %s8368_s20 }
0x1193   : > { %2718 = vrot.lane.b32.xlu0 %v2686_v38, %s8288_s27  ;;  %2788 = vrot.lane.b32.xlu1 %v2683_v43, %s8362_s0 }
0x1197   : > { %2806 = vrot.lane.b32.xlu0 %v2680_v35, %s8361_s1  ;;  %2720 = vrot.lane.b32.xlu1 %v2687_v40, %s8288_s27 }
0x119b   : > { %2738 = vrot.lane.b32.xlu0 %v2682_v4, %s8363_s25  ;;  %2808 = vrot.lane.b32.xlu1 %v2681_v36, %s8361_s1 }
0x119f   : > { %2742 = vrot.lane.b32.xlu0 %v2684_v19, %s8363_s25  ;;  %2740 = vrot.lane.b32.xlu1 %v2683_v43, %s8363_s25 }
0x11a3   : > { %2818 = vrot.lane.b32.xlu0 %v2686_v38, %s8365_s26  ;;  %2744 = vrot.lane.b32.xlu1 %v2685_v59, %s8363_s25 }
0x11a7   : > { %2822 = vrot.lane.b32.xlu0 %v2688_v15, %s8365_s26  ;;  %2820 = vrot.lane.b32.xlu1 %v2687_v40, %s8365_s26 }
0x11ab   : > { %2824 = vrot.lane.b32.xlu1 %v2689_v61, %s8365_s26 }
0x11dd   : > { %v2759_v48 = vpop.permute.xlu0 %2758 }
0x11de   : > { %2768 = vst.msk [vmem:[#allocation8 + $0x120] sm:$0xff] %vm1781_vm12, %v2759_v48 }
0x11e1   : > { %v2761_v26 = vpop.permute.xlu1 %2760  ;;  %v2703_v6 = vpop.permute.xlu0 %2702 }
0x11e2   : > { %2769 = vst.msk [vmem:[#allocation8 + $0x130] sm:$0xff] %vm1781_vm12, %v2761_v26  ;;  %2712 = vst.msk [vmem:[#allocation8 + $0x60] sm:$0xff] %vm1781_vm12, %v2703_v6 }
0x11e5   : > { %v2705_v49 = vpop.permute.xlu1 %2704  ;;  %v2755_v63 = vpop.permute.xlu0 %2754  ;;  %v2852_v5 = vld [vmem:[#allocation8 + $0x120] sm:$0xff] }
0x11e6   : > { %2713 = vst.msk [vmem:[#allocation8 + $0x70] sm:$0xff] %vm1781_vm12, %v2705_v49  ;;  %2766 = vst.msk [vmem:[#allocation8 + $0x100] sm:$0xff] %vm1781_vm12, %v2755_v63 }
0x11e9   : > { %v2757_v3 = vpop.permute.xlu1 %2756  ;;  %v2699_v53 = vpop.permute.xlu0 %2698  ;;  %v2853_v2 = vld [vmem:[#allocation8 + $0x130] sm:$0xff]  ;;  %v2840_v63 = vld [vmem:[#allocation8 + $0x60] sm:$0xff] }
0x11ea   : > { %2767 = vst.msk [vmem:[#allocation8 + $0x110] sm:$0xff] %vm1781_vm12, %v2757_v3  ;;  %2710 = vst.msk [vmem:[#allocation8 + $0x40] sm:$0xff] %vm1781_vm12, %v2699_v53  ;;  %v2879_v16 = vpack.c.bf16 %v2853_v2, %v2852_v5 }
0x11ed   : > { %v2701_v55 = vpop.permute.xlu1 %2700  ;;  %v2775_v57 = vpop.permute.xlu0 %2774  ;;  %v2850_v41 = vld [vmem:[#allocation8 + $0x100] sm:$0xff]  ;;  %v2841_v48 = vld [vmem:[#allocation8 + $0x70] sm:$0xff] }
0x11ee   : > { %2711 = vst.msk [vmem:[#allocation8 + $0x50] sm:$0xff] %vm1781_vm12, %v2701_v55  ;;  %2784 = vst.msk [vmem:[#allocation8 + $0x160] sm:$0xff] %vm1781_vm12, %v2775_v57  ;;  %v2873_v3 = vpack.c.bf16 %v2841_v48, %v2840_v63  ;;  %v6144_v48 = vld [vmem:[%s8201_s6 + $0x18] ss:$12 sps:$4 sm:$0xff]  }
0x11f1   : > { %v2777_v1 = vpop.permute.xlu1 %2776  ;;  %v2791_v7 = vpop.permute.xlu0 %2790  ;;  %v2851_v62 = vld [vmem:[#allocation8 + $0x110] sm:$0xff]  ;;  %v2838_v38 = vld [vmem:[#allocation8 + $0x40] sm:$0xff] }
0x11f2   : > { %2785 = vst.msk [vmem:[#allocation8 + $0x170] sm:$0xff] %vm1781_vm12, %v2777_v1  ;;  %2800 = vst.msk [vmem:[#allocation8 + $0x1a0] sm:$0xff] %vm1781_vm12, %v2791_v7  ;;  %v2878_v39 = vpack.c.bf16 %v2851_v62, %v2850_v41 }
0x11f4   : > { %5766 = vmatprep.subr.bf16.mxu0 %v2878_v39 }
0x11f5   : > { %v2793_v54 = vpop.permute.xlu1 %2792  ;;  %5767 = vmatpush3.bf16.msra.mxu0 %v2870_v50  ;;  %v2723_v23 = vpop.permute.xlu0 %2722  ;;  %v2839_v43 = vld [vmem:[#allocation8 + $0x50] sm:$0xff]  ;;  %v2856_v42 = vld [vmem:[#allocation8 + $0x160] sm:$0xff] }
0x11f6   : > { %2801 = vst.msk [vmem:[#allocation8 + $0x1b0] sm:$0xff] %vm1781_vm12, %v2793_v54  ;;  %2732 = vst.msk [vmem:[#allocation8 + $0xa0] sm:$0xff] %vm1781_vm12, %v2723_v23  ;;  %5768 = vmatprep.subr.bf16.mxu0 %v2879_v16  ;;  %v2872_v40 = vpack.c.bf16 %v2839_v43, %v2838_v38 }
0x11f9   : > { %v2725_v20 = vpop.permute.xlu1 %2724  ;;  %5769 = vmatpush3.bf16.msra.mxu0 %v2871_v28  ;;  %v2803_v11 = vpop.permute.xlu0 %2802  ;;  %v2857_v15 = vld [vmem:[#allocation8 + $0x170] sm:$0xff]  ;;  %v2860_v2 = vld [vmem:[#allocation8 + $0x1a0] sm:$0xff] }
0x11fa   : > { %2733 = vst.msk [vmem:[#allocation8 + $0xb0] sm:$0xff] %vm1781_vm12, %v2725_v20  ;;  %2814 = vst.msk [vmem:[#allocation8 + $0x1c0] sm:$0xff] %vm1781_vm12, %v2803_v11  ;;  %v2881_v44 = vpack.c.bf16 %v2857_v15, %v2856_v42 }
0x11fd   : > { %v2805_v47 = vpop.permute.xlu1 %2804  ;;  %v2771_v31 = vpop.permute.xlu0 %2770  ;;  %v2861_v41 = vld [vmem:[#allocation8 + $0x1b0] sm:$0xff]  ;;  %v2844_v17 = vld [vmem:[#allocation8 + $0xa0] sm:$0xff] }
0x11fe   : > { %2815 = vst.msk [vmem:[#allocation8 + $0x1d0] sm:$0xff] %vm1781_vm12, %v2805_v47  ;;  %2782 = vst.msk [vmem:[#allocation8 + $0x140] sm:$0xff] %vm1781_vm12, %v2771_v31  ;;  %v2883_v39 = vpack.c.bf16 %v2861_v41, %v2860_v2 }
0x1201   : > { %v2773_v32 = vpop.permute.xlu1 %2772  ;;  %v2787_v33 = vpop.permute.xlu0 %2786  ;;  %v2845_v46 = vld [vmem:[#allocation8 + $0xb0] sm:$0xff]  ;;  %v2862_v23 = vld [vmem:[#allocation8 + $0x1c0] sm:$0xff] }
0x1202   : > { %2783 = vst.msk [vmem:[#allocation8 + $0x150] sm:$0xff] %vm1781_vm12, %v2773_v32  ;;  %2798 = vst.msk [vmem:[#allocation8 + $0x180] sm:$0xff] %vm1781_vm12, %v2787_v33  ;;  %v2875_v54 = vpack.c.bf16 %v2845_v46, %v2844_v17 }
0x1205   : > { %v2789_v4 = vpop.permute.xlu1 %2788  ;;  %v2719_v34 = vpop.permute.xlu0 %2718  ;;  %v2854_v36 = vld [vmem:[#allocation8 + $0x140] sm:$0xff]  ;;  %v2863_v16 = vld [vmem:[#allocation8 + $0x1d0] sm:$0xff] }
0x1206   : > { %2799 = vst.msk [vmem:[#allocation8 + $0x190] sm:$0xff] %vm1781_vm12, %v2789_v4  ;;  %2730 = vst.msk [vmem:[#allocation8 + $0x80] sm:$0xff] %vm1781_vm12, %v2719_v34  ;;  %v2884_v27 = vpack.c.bf16 %v2863_v16, %v2862_v23 }
0x1209   : > { %v2721_v35 = vpop.permute.xlu1 %2720  ;;  %v2807_v19 = vpop.permute.xlu0 %2806  ;;  %v2855_v59 = vld [vmem:[#allocation8 + $0x150] sm:$0xff]  ;;  %v2858_v53 = vld [vmem:[#allocation8 + $0x180] sm:$0xff] }
0x120a   : > { %2731 = vst.msk [vmem:[#allocation8 + $0x90] sm:$0xff] %vm1781_vm12, %v2721_v35  ;;  %2816 = vst.msk [vmem:[#allocation8 + $0x1e0] sm:$0xff] %vm1781_vm12, %v2807_v19  ;;  %v2880_v61 = vpack.c.bf16 %v2855_v59, %v2854_v36  ;;  %v6138_v36 = vld [vmem:[%s8201_s6] ss:$12 sps:$4 sm:$0xff]  }
0x120c   : > { %5770 = vmatprep.subr.bf16.mxu0 %v2880_v61  ;;  %v6141_v61 = vld [vmem:[%s8201_s6 + $0x1c] ss:$12 sps:$4 sm:$0xff]  }
0x120d   : > { %v2809_v26 = vpop.permute.xlu1 %2808  ;;  %5771 = vmatpush3.bf16.msra.mxu0 %v2872_v40  ;;  %v2739_v6 = vpop.permute.xlu0 %2738  ;;  %v2859_v49 = vld [vmem:[#allocation8 + $0x190] sm:$0xff]  ;;  %v2842_v1 = vld [vmem:[#allocation8 + $0x80] sm:$0xff] }
0x120e   : > { %2817 = vst.msk [vmem:[#allocation8 + $0x1f0] sm:$0xff] %vm1781_vm12, %v2809_v26  ;;  %2750 = vst.msk [vmem:[#allocation8 + $0xc0] sm:$0xff] %vm1781_vm12, %v2739_v6  ;;  %5772 = vmatprep.subr.bf16.mxu0 %v2881_v44  ;;  %v2882_v55 = vpack.c.bf16 %v2859_v49, %v2858_v53  ;;  %v6145_v26 = vld [vmem:[%s8201_s6 + $0x20] ss:$12 sps:$4 sm:$0xff]  }
0x1211   : > { %v2741_v57 = vpop.permute.xlu1 %2740  ;;  %5773 = vmatpush3.bf16.msra.mxu0 %v2873_v3  ;;  %v2743_v60 = vpop.permute.xlu0 %2742  ;;  %v2843_v7 = vld [vmem:[#allocation8 + $0x90] sm:$0xff]  ;;  %v2864_v33 = vld [vmem:[#allocation8 + $0x1e0] sm:$0xff] }
0x1212   : > { %2751 = vst.msk [vmem:[#allocation8 + $0xd0] sm:$0xff] %vm1781_vm12, %v2741_v57  ;;  %2752 = vst.msk [vmem:[#allocation8 + $0xe0] sm:$0xff] %vm1781_vm12, %v2743_v60  ;;  %5774 = vmatprep.subr.bf16.mxu0 %v2882_v55  ;;  %v2874_v62 = vpack.c.bf16 %v2843_v7, %v2842_v1 }
0x1215   : > { %v2745_v50 = vpop.permute.xlu1 %2744  ;;  %5775 = vmatpush3.bf16.msra.mxu0 %v2874_v62  ;;  %v2819_v5 = vpop.permute.xlu0 %2818  ;;  %v2846_v11 = vld [vmem:[#allocation8 + $0xc0] sm:$0xff]  ;;  %v2865_v31 = vld [vmem:[#allocation8 + $0x1f0] sm:$0xff] }
0x1216   : > { %2753 = vst.msk [vmem:[#allocation8 + $0xf0] sm:$0xff] %vm1781_vm12, %v2745_v50  ;;  %2830 = vst.msk [vmem:[#allocation8 + $0x200] sm:$0xff] %vm1781_vm12, %v2819_v5  ;;  %5776 = vmatprep.subr.bf16.mxu0 %v2883_v39  ;;  %v2885_v4 = vpack.c.bf16 %v2865_v31, %v2864_v33 }
0x1219   : > { %v2821_v28 = vpop.permute.xlu1 %2820  ;;  %5777 = vmatpush3.bf16.msra.mxu0 %v2875_v54  ;;  %v2823_v20 = vpop.permute.xlu0 %2822  ;;  %v2847_v47 = vld [vmem:[#allocation8 + $0xd0] sm:$0xff]  ;;  %v2848_v43 = vld [vmem:[#allocation8 + $0xe0] sm:$0xff] }
0x121a   : > { %2831 = vst.msk [vmem:[#allocation8 + $0x210] sm:$0xff] %vm1781_vm12, %v2821_v28  ;;  %2832 = vst.msk [vmem:[#allocation8 + $0x220] sm:$0xff] %vm1781_vm12, %v2823_v20  ;;  %5778 = vmatprep.subr.bf16.mxu0 %v2884_v27  ;;  %v2876_v32 = vpack.c.bf16 %v2847_v47, %v2846_v11 }
0x121d   : > { %v2825_v34 = vpop.permute.xlu1 %2824  ;;  %5779 = vmatpush3.bf16.msra.mxu0 %v2876_v32  ;;  %v2849_v35 = vld [vmem:[#allocation8 + $0xf0] sm:$0xff]  ;;  %v2866_v59 = vld [vmem:[#allocation8 + $0x200] sm:$0xff] }
0x121e   : > { %2833 = vst.msk [vmem:[#allocation8 + $0x230] sm:$0xff] %vm1781_vm12, %v2825_v34  ;;  %5780 = vmatprep.subr.bf16.mxu0 %v2885_v4  ;;  %v2877_v19 = vpack.c.bf16 %v2849_v35, %v2848_v43 }
0x1221   : > { %5781 = vmatpush3.bf16.msra.mxu0 %v2877_v19  ;;  %v2867_v15 = vld [vmem:[#allocation8 + $0x210] sm:$0xff]  ;;  %v2868_v40 = vld [vmem:[#allocation8 + $0x220] sm:$0xff] }
0x1222   : > { %v2886_v38 = vpack.c.bf16 %v2867_v15, %v2866_v59 }
0x1224   : > { %2965 = vmatmul.mubr.bf16.vlgmr.msra.gmra.mrb[12].mxu0 %v6138_v36  ;;  %5955 = vmatprep.subr.bf16.mxu1 %v2886_v38 }
0x1225   : > { %5956 = vmatpush3.bf16.msra.mxu1 %v2886_v38  ;;  %v2869_v42 = vld [vmem:[#allocation8 + $0x230] sm:$0xff]  ;;  %2972 = vmatprep.mubr.bf16.mxu0 %v6141_v61 }
0x1226   : > { %v2887_v44 = vpack.c.bf16 %v2869_v42, %v2868_v40 }
0x1228   : > { %5957 = vmatprep.subr.bf16.mxu1 %v2887_v44 }
0x1229   : > { %5958 = vmatpush3.bf16.msra.mxu1 %v2887_v44 }
0x122c   : > { %2973 = vmatmul.mubr.bf16.gmra.mrb[16].mxu0 %v6144_v48  ;;  %5960 = vmatmul.mubr.msk.bf16.vlgmr.msra.gmra.mrb[28].mxu1 %vm2497_vm6, %v6145_v26 }
0x12f7   : > { %v5782_v6 = vpop.f32.mrb[12].mxu0 }
0x12f8   : > { %v5783_v49 = vpop.f32.mrb[13].mxu0 }
0x12f9   : > { %v5784_v63 = vadd.f32 %v5783_v49, %v5782_v6  ;;  %v5785_v3 = vpop.f32.mrb[14].mxu0 }
0x12fa   : > { %v5786_v53 = vpop.f32.mrb[15].mxu0 }
0x12fb   : > { %v5787_v55 = vadd.f32 %v5786_v53, %v5785_v3 }
0x12ff   : > { %v5788_v57 = vpop.f32.mrb[16].mxu0  ;;  %v5961_v60 = vpop.f32.mrb[28].mxu1 }
0x1300   : > { %v5789_v1 = vpop.f32.mrb[17].mxu0  ;;  %v3015_v7 = vpop.f32.mrb[29].mxu1 }
0x1301   : > { %v5790_v41 = vadd.f32 %v5789_v1, %v5788_v57  ;;  %v3016_v62 = vadd.f32 %v5784_v63, %v3015_v7  ;;  %v5791_v2 = vpop.f32.mrb[18].mxu0  ;;  %v5962_v39 = vpop.f32.mrb[30].mxu1 }
0x1302   : > { %v5792_v46 = vpop.f32.mrb[19].mxu0  ;;  %v3018_v50 = vpop.f32.mrb[31].mxu1 }
0x1303   : > { %v3024_v5 = vadd.f32 %v5961_v60, %v5790_v41  ;;  %v5793_v16 = vadd.f32 %v5792_v46, %v5791_v2  ;;  %v3019_v17 = vadd.f32 %v5787_v55, %v3018_v50  ;;  %v3030_v54 = vsel %vm1781_vm12, %v3016_v62, 0.0 }
0x1304   : > { %3031 = vadd.xlane.f32.xlu0 %v3030_v54 }
0x1305   : > { %v3027_v23 = vadd.f32 %v5962_v39, %v5793_v16  ;;  %v3033_v27 = vsel %vm1781_vm12, %v3019_v17, 0.0  ;;  %v3036_v28 = vsel %vm1781_vm12, %v3024_v5, 0.0 }
0x1306   : > { %3034 = vadd.xlane.f32.xlu1 %v3033_v27 }
0x1307   : > { %v3039_v20 = vsel %vm1781_vm12, %v3027_v23, 0.0 }
0x1308   : > { %3037 = vadd.xlane.f32.xlu0 %v3036_v28 }
0x130c   : > { %3040 = vadd.xlane.f32.xlu0 %v3039_v20 }
0x1391   : > { %v3032_v11 = vpop.xlane.xlu0 %3031 }
0x1392   : > { %v3042_v47 = vmul.f32 0.0625, %v3032_v11 }
0x1393   : > { %v3035_v31 = vpop.xlane.xlu1 %3034 }
0x1394   : > { %v3046_v32 = vsub.f32 %v3016_v62, %v3042_v47  ;;  %v3043_v33 = vmul.f32 0.0625, %v3035_v31 }
0x1395   : > { %v3038_v4 = vpop.xlane.xlu0 %3037 }
0x1396   : > { %v3047_v34 = vsub.f32 %v3019_v17, %v3043_v33  ;;  %v3044_v43 = vmul.f32 0.0625, %v3038_v4  ;;  %v3050_v35 = vmul.f32 %v3046_v32, %v3046_v32 }
0x1398   : > { %v3048_v19 = vsub.f32 %v3024_v5, %v3044_v43  ;;  %v3054_v36 = vsel %vm1781_vm12, %v3050_v35, 0.0  ;;  %v3051_v59 = vmul.f32 %v3047_v34, %v3047_v34  ;;  %v6148_v35 = vld [vmem:[%s8202_s7 + $0x4] ss:$12 sps:$4 sm:$0xff]  }
0x1399   : > { %3055 = vadd.xlane.f32.xlu1 %v3054_v36  ;;  %v3041_v15 = vpop.xlane.xlu0 %3040  ;;  %3392 = vmatprep.mubr.bf16.mxu1 %v6148_v35 }
0x139a   : > { %v3045_v61 = vmul.f32 0.0625, %v3041_v15  ;;  %v3057_v38 = vsel %vm1781_vm12, %v3051_v59, 0.0  ;;  %v3052_v40 = vmul.f32 %v3048_v19, %v3048_v19 }
0x139b   : > { %3058 = vadd.xlane.f32.xlu0 %v3057_v38 }
0x139c   : > { %v3049_v42 = vsub.f32 %v3027_v23, %v3045_v61  ;;  %v3060_v44 = vsel %vm1781_vm12, %v3052_v40, 0.0 }
0x139d   : > { %3061 = vadd.xlane.f32.xlu1 %v3060_v44 }
0x139e   : > { %v3053_v48 = vmul.f32 %v3049_v42, %v3049_v42 }
0x13a0   : > { %v3063_v26 = vsel %vm1781_vm12, %v3053_v48, 0.0 }
0x13a1   : > { %3064 = vadd.xlane.f32.xlu0 %v3063_v26 }
0x1426   : > { %v3056_v6 = vpop.xlane.xlu1 %3055 }
0x1427   : > { %v3066_v49 = vmul.f32 0.0625, %v3056_v6 }
0x1428   : > { %v3059_v63 = vpop.xlane.xlu0 %3058 }
0x1429   : > { %v3070_v3 = vadd.f32 1e-05, %v3066_v49  ;;  %v3067_v53 = vmul.f32 0.0625, %v3059_v63 }
0x142a   : > { %v3062_v55 = vpop.xlane.xlu1 %3061 }
0x142b   : > { %6200 = vrsqrt.f32 %v3070_v3  ;;  %v3071_v57 = vadd.f32 1e-05, %v3067_v53  ;;  %v3068_v60 = vmul.f32 0.0625, %v3062_v55 }
0x142d   : > { %6202 = vrsqrt.f32 %v3071_v57  ;;  %v3072_v1 = vadd.f32 1e-05, %v3068_v60 }
0x142e   : > { %v3065_v7 = vpop.xlane.xlu0 %3064 }
0x142f   : > { %6204 = vrsqrt.f32 %v3072_v1  ;;  %v3069_v41 = vmul.f32 0.0625, %v3065_v7 }
0x1431   : > { %v3073_v62 = vadd.f32 1e-05, %v3069_v41 }
0x1433   : > { %6206 = vrsqrt.f32 %v3073_v62 }
0x1435   : > { %v6201_v2 = vpop.eup %6200 }
0x1436   : > { %v3078_v39 = vmul.f32 %v6201_v2, %v3046_v32 }
0x1437   : > { %v6203_v46 = vpop.eup %6202 }
0x1438   : > { %v7407_v50 = vadd.f32 %v3078_v39, %v2204_v22  ;;  %v3079_v5 = vmul.f32 %v6203_v46, %v3047_v34 }
0x1439   : > { %v6205_v16 = vpop.eup %6204 }
0x143a   : > { %3090 = vrot.lane.b32.xlu1 %v7407_v50, %s8366_s15  ;;  %v7413_v17 = vadd.f32 %v3079_v5, %v2205_v21  ;;  %v3080_v54 = vmul.f32 %v6205_v16, %v3048_v19  ;;  %v6151_v19 = vld [vmem:[%s8202_s7 + $0x8] ss:$12 sps:$4 sm:$0xff]  }
0x143b   : > { %5967 = vmatprep.mubr.msk.bf16.mxu0 %vm2497_vm6, %v6151_v19 }
0x143c   : > { %3092 = vrot.lane.b32.xlu0 %v7413_v17, %s8366_s15  ;;  %v7419_v23 = vadd.f32 %v3080_v54, %v2206_v10 }
0x143d   : > { %v6207_v18 = vpop.eup %6206 }
0x143e   : > { %3094 = vrot.lane.b32.xlu1 %v7419_v23, %s8366_s15  ;;  %v3081_v22 = vmul.f32 %v6207_v18, %v3049_v42 }
0x1440   : > { %v7425_v27 = vadd.f32 %v3081_v22, %v2207_v56 }
0x1442   : > { %3096 = vrot.lane.b32.xlu1 %v7425_v27, %s8366_s15 }
0x14ac   : > { %v3091_v9 = vpop.permute.xlu1 %3090 }
0x14ad   : > { %3102 = vst.msk [vmem:[#allocation5] sm:$0xff] %vm2224_vm11, %v3091_v9 }
0x14ae   : > { %v3093_v21 = vpop.permute.xlu0 %3092 }
0x14af   : > { %3103 = vst.msk [vmem:[#allocation5 + $0x8] sm:$0xff] %vm2224_vm11, %v3093_v21 }
0x14b0   : > { %v3095_v8 = vpop.permute.xlu1 %3094 }
0x14b1   : > { %3104 = vst.msk [vmem:[#allocation5 + $0x10] sm:$0xff] %vm2224_vm11, %v3095_v8 }
0x14b4   : > { %v3097_v10 = vpop.permute.xlu1 %3096  ;;  %v3106_v28 = vld [vmem:[#allocation5] sm:$0xff] }
0x14b5   : > { %3105 = vst.msk [vmem:[#allocation5 + $0x18] sm:$0xff] %vm2224_vm11, %v3097_v10  ;;  %3182 = vrot.lane.b32.xlu0 %v3106_v28, %s8367_s24  ;;  %v3110_v24 = vsel %vm7163_vm7, %v3106_v28, 0.0  ;;  %v3114_v33 = vsel %vm7179_vm5, %v3106_v28, 0.0 }
0x14b6   : > { %v3107_v56 = vld [vmem:[#allocation5 + $0x8] sm:$0xff]  ;;  %3118 = vst.msk [vmem:[#allocation8] sm:$0xff] %vm1781_vm12, %v3110_v24 }
0x14b7   : > { %3184 = vrot.lane.b32.xlu1 %v3107_v56, %s8367_s24  ;;  %v3111_v20 = vsel %vm7163_vm7, %v3107_v56, 0.0  ;;  %v3115_v4 = vsel %vm7179_vm5, %v3107_v56, 0.0 }
0x14b8   : > { %3119 = vst.msk [vmem:[#allocation8 + $0x10] sm:$0xff] %vm1781_vm12, %v3111_v20  ;;  %v3108_v11 = vld [vmem:[#allocation5 + $0x10] sm:$0xff] }
0x14b9   : > { %3126 = vrot.lane.b32.xlu0 %v3106_v28, %s8314_s2  ;;  %v3112_v47 = vsel %vm7163_vm7, %v3108_v11, 0.0  ;;  %v3116_v34 = vsel %vm7179_vm5, %v3108_v11, 0.0 }
0x14ba   : > { %3120 = vst.msk [vmem:[#allocation8 + $0x20] sm:$0xff] %vm1781_vm12, %v3112_v47 }
0x14bb   : > { %3128 = vrot.lane.b32.xlu1 %v3107_v56, %s8314_s2 }
0x14bc   : > { %v3109_v31 = vld [vmem:[#allocation5 + $0x18] sm:$0xff] }
0x14bd   : > { %3230 = vrot.lane.b32.xlu0 %v3106_v28, %s8361_s1  ;;  %v3113_v32 = vsel %vm7163_vm7, %v3109_v31, 0.0  ;;  %v3117_v43 = vsel %vm7179_vm5, %v3109_v31, 0.0  ;;  %v3262_v6 = vld [vmem:[#allocation8] sm:$0xff] }
0x14be   : > { %3121 = vst.msk [vmem:[#allocation8 + $0x30] sm:$0xff] %vm1781_vm12, %v3113_v32 }
0x14bf   : > { %3232 = vrot.lane.b32.xlu1 %v3107_v56, %s8361_s1  ;;  %v3263_v40 = vld [vmem:[#allocation8 + $0x10] sm:$0xff] }
0x14c0   : > { %v3298_v63 = vpack.c.bf16 %v3263_v40, %v3262_v6 }
0x14c1   : > { %3198 = vrot.lane.b32.xlu0 %v3114_v33, %s8368_s20  ;;  %v3264_v21 = vld [vmem:[#allocation8 + $0x20] sm:$0xff] }
0x14c3   : > { %3200 = vrot.lane.b32.xlu1 %v3115_v4, %s8368_s20 }
0x14c5   : > { %3214 = vrot.lane.b32.xlu0 %v3110_v24, %s8362_s0  ;;  %v3265_v5 = vld [vmem:[#allocation8 + $0x30] sm:$0xff] }
0x14c6   : > { %v3299_v10 = vpack.c.bf16 %v3265_v5, %v3264_v21 }
0x14c7   : > { %3216 = vrot.lane.b32.xlu1 %v3111_v20, %s8362_s0 }
0x14c9   : > { %3146 = vrot.lane.b32.xlu0 %v3114_v33, %s8288_s27 }
0x14cb   : > { %3148 = vrot.lane.b32.xlu1 %v3115_v4, %s8288_s27 }
0x14cd   : > { %3166 = vrot.lane.b32.xlu0 %v3110_v24, %s8363_s25 }
0x14cf   : > { %3168 = vrot.lane.b32.xlu1 %v3111_v20, %s8363_s25 }
0x14d1   : > { %3186 = vrot.lane.b32.xlu0 %v3108_v11, %s8367_s24 }
0x14d3   : > { %3188 = vrot.lane.b32.xlu1 %v3109_v31, %s8367_s24 }
0x14d5   : > { %3130 = vrot.lane.b32.xlu0 %v3108_v11, %s8314_s2 }
0x14d7   : > { %3132 = vrot.lane.b32.xlu1 %v3109_v31, %s8314_s2 }
0x14d9   : > { %3202 = vrot.lane.b32.xlu0 %v3116_v34, %s8368_s20 }
0x14db   : > { %3204 = vrot.lane.b32.xlu1 %v3117_v43, %s8368_s20 }
0x14dd   : > { %3218 = vrot.lane.b32.xlu0 %v3112_v47, %s8362_s0 }
0x14df   : > { %3220 = vrot.lane.b32.xlu1 %v3113_v32, %s8362_s0 }
0x14e1   : > { %3150 = vrot.lane.b32.xlu0 %v3116_v34, %s8288_s27 }
0x14e3   : > { %3152 = vrot.lane.b32.xlu1 %v3117_v43, %s8288_s27 }
0x14e5   : > { %3234 = vrot.lane.b32.xlu0 %v3108_v11, %s8361_s1 }
0x14e7   : > { %3236 = vrot.lane.b32.xlu1 %v3109_v31, %s8361_s1 }
0x14e9   : > { %3170 = vrot.lane.b32.xlu0 %v3112_v47, %s8363_s25 }
0x14eb   : > { %3172 = vrot.lane.b32.xlu1 %v3113_v32, %s8363_s25 }
0x14ed   : > { %3246 = vrot.lane.b32.xlu0 %v3114_v33, %s8365_s26 }
0x14ef   : > { %3248 = vrot.lane.b32.xlu1 %v3115_v4, %s8365_s26 }
0x14f1   : > { %3250 = vrot.lane.b32.xlu0 %v3116_v34, %s8365_s26 }
0x14f3   : > { %3252 = vrot.lane.b32.xlu1 %v3117_v43, %s8365_s26 }
0x1527   : > { %v3183_v36 = vpop.permute.xlu0 %3182 }
0x1528   : > { %3194 = vst.msk [vmem:[#allocation8 + $0x100] sm:$0xff] %vm1781_vm12, %v3183_v36 }
0x1529   : > { %v3185_v59 = vpop.permute.xlu1 %3184 }
0x152a   : > { %3195 = vst.msk [vmem:[#allocation8 + $0x110] sm:$0xff] %vm1781_vm12, %v3185_v59 }
0x152b   : > { %v3127_v15 = vpop.permute.xlu0 %3126 }
0x152c   : > { %3138 = vst.msk [vmem:[#allocation8 + $0x40] sm:$0xff] %vm1781_vm12, %v3127_v15 }
0x152d   : > { %v3129_v61 = vpop.permute.xlu1 %3128 }
0x152e   : > { %3139 = vst.msk [vmem:[#allocation8 + $0x50] sm:$0xff] %vm1781_vm12, %v3129_v61 }
0x152f   : > { %v3231_v38 = vpop.permute.xlu0 %3230  ;;  %v3278_v44 = vld [vmem:[#allocation8 + $0x100] sm:$0xff] }
0x1530   : > { %3242 = vst.msk [vmem:[#allocation8 + $0x1c0] sm:$0xff] %vm1781_vm12, %v3231_v38 }
0x1531   : > { %v3233_v42 = vpop.permute.xlu1 %3232  ;;  %v3279_v48 = vld [vmem:[#allocation8 + $0x110] sm:$0xff] }
0x1532   : > { %3243 = vst.msk [vmem:[#allocation8 + $0x1d0] sm:$0xff] %vm1781_vm12, %v3233_v42  ;;  %v3306_v26 = vpack.c.bf16 %v3279_v48, %v3278_v44 }
0x1533   : > { %v3199_v49 = vpop.permute.xlu0 %3198  ;;  %v3266_v11 = vld [vmem:[#allocation8 + $0x40] sm:$0xff] }
0x1534   : > { %3210 = vst.msk [vmem:[#allocation8 + $0x140] sm:$0xff] %vm1781_vm12, %v3199_v49  ;;  %5798 = vmatprep.subr.bf16.mxu1 %v3306_v26 }
0x1535   : > { %v3201_v3 = vpop.permute.xlu1 %3200  ;;  %5799 = vmatpush3.bf16.msra.mxu1 %v3298_v63  ;;  %v3267_v56 = vld [vmem:[#allocation8 + $0x50] sm:$0xff] }
0x1536   : > { %3211 = vst.msk [vmem:[#allocation8 + $0x150] sm:$0xff] %vm1781_vm12, %v3201_v3  ;;  %v3300_v31 = vpack.c.bf16 %v3267_v56, %v3266_v11 }
0x1537   : > { %v3215_v53 = vpop.permute.xlu0 %3214 }
0x1538   : > { %3226 = vst.msk [vmem:[#allocation8 + $0x180] sm:$0xff] %vm1781_vm12, %v3215_v53 }
0x1539   : > { %v3217_v55 = vpop.permute.xlu1 %3216 }
0x153a   : > { %3227 = vst.msk [vmem:[#allocation8 + $0x190] sm:$0xff] %vm1781_vm12, %v3217_v55  ;;  %v3291_v55 = vld [vmem:[#allocation8 + $0x1d0] sm:$0xff] }
0x153b   : > { %v3147_v57 = vpop.permute.xlu0 %3146  ;;  %v3282_v28 = vld [vmem:[#allocation8 + $0x140] sm:$0xff] }
0x153c   : > { %3158 = vst.msk [vmem:[#allocation8 + $0x80] sm:$0xff] %vm1781_vm12, %v3147_v57 }
0x153d   : > { %v3149_v60 = vpop.permute.xlu1 %3148  ;;  %v3283_v22 = vld [vmem:[#allocation8 + $0x150] sm:$0xff] }
0x153e   : > { %3159 = vst.msk [vmem:[#allocation8 + $0x90] sm:$0xff] %vm1781_vm12, %v3149_v60  ;;  %v3308_v24 = vpack.c.bf16 %v3283_v22, %v3282_v28 }
0x153f   : > { %v3167_v1 = vpop.permute.xlu0 %3166  ;;  %v3286_v15 = vld [vmem:[#allocation8 + $0x180] sm:$0xff] }
0x1540   : > { %3178 = vst.msk [vmem:[#allocation8 + $0xc0] sm:$0xff] %vm1781_vm12, %v3167_v1  ;;  %v3290_v1 = vld [vmem:[#allocation8 + $0x1c0] sm:$0xff] }
0x1541   : > { %v3169_v7 = vpop.permute.xlu1 %3168  ;;  %v3287_v43 = vld [vmem:[#allocation8 + $0x190] sm:$0xff] }
0x1542   : > { %3179 = vst.msk [vmem:[#allocation8 + $0xd0] sm:$0xff] %vm1781_vm12, %v3169_v7  ;;  %v3310_v61 = vpack.c.bf16 %v3287_v43, %v3286_v15  ;;  %v3312_v7 = vpack.c.bf16 %v3291_v55, %v3290_v1 }
0x1543   : > { %v3187_v41 = vpop.permute.xlu0 %3186  ;;  %v3270_v44 = vld [vmem:[#allocation8 + $0x80] sm:$0xff] }
0x1544   : > { %3196 = vst.msk [vmem:[#allocation8 + $0x120] sm:$0xff] %vm1781_vm12, %v3187_v41 }
0x1545   : > { %v3189_v62 = vpop.permute.xlu1 %3188  ;;  %v3271_v38 = vld [vmem:[#allocation8 + $0x90] sm:$0xff] }
0x1546   : > { %3197 = vst.msk [vmem:[#allocation8 + $0x130] sm:$0xff] %vm1781_vm12, %v3189_v62  ;;  %v3302_v26 = vpack.c.bf16 %v3271_v38, %v3270_v44 }
0x1547   : > { %v3131_v2 = vpop.permute.xlu0 %3130 }
0x1548   : > { %3140 = vst.msk [vmem:[#allocation8 + $0x60] sm:$0xff] %vm1781_vm12, %v3131_v2 }
0x1549   : > { %v3133_v39 = vpop.permute.xlu1 %3132  ;;  %v3275_v41 = vld [vmem:[#allocation8 + $0xd0] sm:$0xff] }
0x154a   : > { %3141 = vst.msk [vmem:[#allocation8 + $0x70] sm:$0xff] %vm1781_vm12, %v3133_v39  ;;  %v3274_v39 = vld [vmem:[#allocation8 + $0xc0] sm:$0xff] }
0x154b   : > { %v3203_v46 = vpop.permute.xlu0 %3202  ;;  %v3280_v54 = vld [vmem:[#allocation8 + $0x120] sm:$0xff]  ;;  %v3304_v5 = vpack.c.bf16 %v3275_v41, %v3274_v39 }
0x154c   : > { %3212 = vst.msk [vmem:[#allocation8 + $0x160] sm:$0xff] %vm1781_vm12, %v3203_v46 }
0x154d   : > { %v3205_v16 = vpop.permute.xlu1 %3204  ;;  %v3281_v18 = vld [vmem:[#allocation8 + $0x130] sm:$0xff] }
0x154e   : > { %3213 = vst.msk [vmem:[#allocation8 + $0x170] sm:$0xff] %vm1781_vm12, %v3205_v16  ;;  %v3307_v9 = vpack.c.bf16 %v3281_v18, %v3280_v54 }
0x154f   : > { %v3219_v8 = vpop.permute.xlu0 %3218  ;;  %v3268_v19 = vld [vmem:[#allocation8 + $0x60] sm:$0xff] }
0x1550   : > { %3228 = vst.msk [vmem:[#allocation8 + $0x1a0] sm:$0xff] %vm1781_vm12, %v3219_v8  ;;  %5800 = vmatprep.subr.bf16.mxu1 %v3307_v9  ;;  %v6146_v8 = vld [vmem:[%s8202_s7] ss:$12 sps:$4 sm:$0xff]  }
0x1551   : > { %v3221_v20 = vpop.permute.xlu1 %3220  ;;  %5801 = vmatpush3.bf16.msra.mxu1 %v3299_v10  ;;  %v3269_v32 = vld [vmem:[#allocation8 + $0x70] sm:$0xff] }
0x1552   : > { %3229 = vst.msk [vmem:[#allocation8 + $0x1b0] sm:$0xff] %vm1781_vm12, %v3221_v20  ;;  %5802 = vmatprep.subr.bf16.mxu1 %v3308_v24  ;;  %v3301_v59 = vpack.c.bf16 %v3269_v32, %v3268_v19  ;;  %v6149_v24 = vld [vmem:[%s8202_s7 + $0x1c] ss:$12 sps:$4 sm:$0xff]   ;;  %v6153_v32 = vld [vmem:[%s8202_s7 + $0x20] ss:$12 sps:$4 sm:$0xff]  }
0x1553   : > { %v3151_v47 = vpop.permute.xlu0 %3150  ;;  %v3284_v4 = vld [vmem:[#allocation8 + $0x160] sm:$0xff] }
0x1554   : > { %3160 = vst.msk [vmem:[#allocation8 + $0xa0] sm:$0xff] %vm1781_vm12, %v3151_v47 }
0x1555   : > { %v3153_v33 = vpop.permute.xlu1 %3152  ;;  %5803 = vmatpush3.bf16.msra.mxu1 %v3300_v31  ;;  %v3285_v34 = vld [vmem:[#allocation8 + $0x170] sm:$0xff] }
0x1556   : > { %3161 = vst.msk [vmem:[#allocation8 + $0xb0] sm:$0xff] %vm1781_vm12, %v3153_v33  ;;  %v3309_v35 = vpack.c.bf16 %v3285_v34, %v3284_v4  ;;  %v6152_v31 = vld [vmem:[%s8202_s7 + $0x18] ss:$12 sps:$4 sm:$0xff]  }
0x1557   : > { %v3235_v36 = vpop.permute.xlu0 %3234  ;;  %v3288_v6 = vld [vmem:[#allocation8 + $0x1a0] sm:$0xff] }
0x1558   : > { %3244 = vst.msk [vmem:[#allocation8 + $0x1e0] sm:$0xff] %vm1781_vm12, %v3235_v36  ;;  %5804 = vmatprep.subr.bf16.mxu1 %v3309_v35 }
0x1559   : > { %v3237_v40 = vpop.permute.xlu1 %3236  ;;  %5805 = vmatpush3.bf16.msra.mxu1 %v3301_v59  ;;  %v3289_v42 = vld [vmem:[#allocation8 + $0x1b0] sm:$0xff] }
0x155a   : > { %3245 = vst.msk [vmem:[#allocation8 + $0x1f0] sm:$0xff] %vm1781_vm12, %v3237_v40  ;;  %5806 = vmatprep.subr.bf16.mxu1 %v3310_v61  ;;  %v3311_v49 = vpack.c.bf16 %v3289_v42, %v3288_v6 }
0x155b   : > { %v3171_v48 = vpop.permute.xlu0 %3170  ;;  %v3272_v3 = vld [vmem:[#allocation8 + $0xa0] sm:$0xff] }
0x155c   : > { %3180 = vst.msk [vmem:[#allocation8 + $0xe0] sm:$0xff] %vm1781_vm12, %v3171_v48 }
0x155d   : > { %v3173_v63 = vpop.permute.xlu1 %3172  ;;  %5807 = vmatpush3.bf16.msra.mxu1 %v3302_v26  ;;  %v3273_v53 = vld [vmem:[#allocation8 + $0xb0] sm:$0xff] }
0x155e   : > { %3181 = vst.msk [vmem:[#allocation8 + $0xf0] sm:$0xff] %vm1781_vm12, %v3173_v63  ;;  %5808 = vmatprep.subr.bf16.mxu1 %v3311_v49  ;;  %v3303_v57 = vpack.c.bf16 %v3273_v53, %v3272_v3 }
0x155f   : > { %v3247_v60 = vpop.permute.xlu0 %3246  ;;  %v3292_v16 = vld [vmem:[#allocation8 + $0x1e0] sm:$0xff] }
0x1560   : > { %3258 = vst.msk [vmem:[#allocation8 + $0x200] sm:$0xff] %vm1781_vm12, %v3247_v60 }
0x1561   : > { %v3249_v62 = vpop.permute.xlu1 %3248  ;;  %5809 = vmatpush3.bf16.msra.mxu1 %v3303_v57  ;;  %v3293_v2 = vld [vmem:[#allocation8 + $0x1f0] sm:$0xff] }
0x1562   : > { %3259 = vst.msk [vmem:[#allocation8 + $0x210] sm:$0xff] %vm1781_vm12, %v3249_v62  ;;  %5810 = vmatprep.subr.bf16.mxu1 %v3312_v7  ;;  %v3313_v54 = vpack.c.bf16 %v3293_v2, %v3292_v16 }
0x1563   : > { %v3251_v46 = vpop.permute.xlu0 %3250  ;;  %v3276_v22 = vld [vmem:[#allocation8 + $0xe0] sm:$0xff] }
0x1564   : > { %3260 = vst.msk [vmem:[#allocation8 + $0x220] sm:$0xff] %vm1781_vm12, %v3251_v46 }
0x1565   : > { %v3253_v18 = vpop.permute.xlu1 %3252  ;;  %5811 = vmatpush3.bf16.msra.mxu1 %v3304_v5  ;;  %v3277_v9 = vld [vmem:[#allocation8 + $0xf0] sm:$0xff] }
0x1566   : > { %3261 = vst.msk [vmem:[#allocation8 + $0x230] sm:$0xff] %vm1781_vm12, %v3253_v18  ;;  %5812 = vmatprep.subr.bf16.mxu1 %v3313_v54  ;;  %v3305_v21 = vpack.c.bf16 %v3277_v9, %v3276_v22 }
0x1567   : > { %v3294_v10 = vld [vmem:[#allocation8 + $0x200] sm:$0xff] }
0x1569   : > { %5813 = vmatpush3.bf16.msra.mxu1 %v3305_v21  ;;  %v3295_v28 = vld [vmem:[#allocation8 + $0x210] sm:$0xff] }
0x156a   : > { %v3314_v56 = vpack.c.bf16 %v3295_v28, %v3294_v10 }
0x156b   : > { %v3296_v20 = vld [vmem:[#allocation8 + $0x220] sm:$0xff] }
0x156c   : > { %3393 = vmatmul.mubr.bf16.vlgmr.msra.gmra.mrb[32].mxu1 %v6146_v8  ;;  %5963 = vmatprep.subr.bf16.mxu0 %v3314_v56 }
0x156d   : > { %5964 = vmatpush3.bf16.msra.mxu0 %v3314_v56  ;;  %v3297_v11 = vld [vmem:[#allocation8 + $0x230] sm:$0xff]  ;;  %3400 = vmatprep.mubr.bf16.mxu1 %v6149_v24 }
0x156e   : > { %v3315_v47 = vpack.c.bf16 %v3297_v11, %v3296_v20 }
0x1570   : > { %5965 = vmatprep.subr.bf16.mxu0 %v3315_v47 }
0x1571   : > { %5966 = vmatpush3.bf16.msra.mxu0 %v3315_v47 }
0x1574   : > { %3401 = vmatmul.mubr.bf16.gmra.mrb[36].mxu1 %v6152_v31  ;;  %5968 = vmatmul.mubr.msk.bf16.vlgmr.msra.gmra.mrb[20].mxu0 %vm2497_vm6, %v6153_v32 }
0x163f   : > { %v5814_v33 = vpop.f32.mrb[32].mxu1 }
0x1640   : > { %v5815_v4 = vpop.f32.mrb[33].mxu1 }
0x1641   : > { %v5816_v34 = vadd.f32 %v5815_v4, %v5814_v33  ;;  %v5817_v43 = vpop.f32.mrb[34].mxu1 }
0x1642   : > { %v5818_v35 = vpop.f32.mrb[35].mxu1 }
0x1643   : > { %v5819_v19 = vadd.f32 %v5818_v35, %v5817_v43 }
0x1647   : > { %v5820_v36 = vpop.f32.mrb[36].mxu1  ;;  %v5969_v59 = vpop.f32.mrb[20].mxu0 }
0x1648   : > { %v5821_v15 = vpop.f32.mrb[37].mxu1  ;;  %v3443_v61 = vpop.f32.mrb[21].mxu0 }
0x1649   : > { %v5822_v38 = vadd.f32 %v5821_v15, %v5820_v36  ;;  %v3444_v40 = vadd.f32 %v5816_v34, %v3443_v61  ;;  %v5823_v42 = vpop.f32.mrb[38].mxu1  ;;  %v5970_v44 = vpop.f32.mrb[22].mxu0 }
0x164a   : > { %v5824_v48 = vpop.f32.mrb[39].mxu1  ;;  %v3446_v26 = vpop.f32.mrb[23].mxu0 }
0x164b   : > { %v3452_v6 = vadd.f32 %v5969_v59, %v5822_v38  ;;  %v5825_v49 = vadd.f32 %v5824_v48, %v5823_v42  ;;  %v3447_v63 = vadd.f32 %v5819_v19, %v3446_v26  ;;  %v3458_v3 = vsel %vm1781_vm12, %v3444_v40, 0.0 }
0x164c   : > { %3459 = vadd.xlane.f32.xlu0 %v3458_v3 }
0x164d   : > { %v3455_v53 = vadd.f32 %v5970_v44, %v5825_v49  ;;  %v3461_v55 = vsel %vm1781_vm12, %v3447_v63, 0.0  ;;  %v3464_v57 = vsel %vm1781_vm12, %v3452_v6, 0.0 }
0x164e   : > { %3462 = vadd.xlane.f32.xlu1 %v3461_v55 }
0x164f   : > { %v3467_v60 = vsel %vm1781_vm12, %v3455_v53, 0.0 }
0x1650   : > { %3465 = vadd.xlane.f32.xlu0 %v3464_v57 }
0x1654   : > { %3468 = vadd.xlane.f32.xlu0 %v3467_v60 }
0x16d9   : > { %v3460_v1 = vpop.xlane.xlu0 %3459 }
0x16da   : > { %v3470_v7 = vmul.f32 0.0625, %v3460_v1 }
0x16db   : > { %v3463_v41 = vpop.xlane.xlu1 %3462 }
0x16dc   : > { %v3474_v62 = vsub.f32 %v3444_v40, %v3470_v7  ;;  %v3471_v2 = vmul.f32 0.0625, %v3463_v41 }
0x16dd   : > { %v3466_v39 = vpop.xlane.xlu0 %3465 }
0x16de   : > { %v3475_v46 = vsub.f32 %v3447_v63, %v3471_v2  ;;  %v3472_v5 = vmul.f32 0.0625, %v3466_v39  ;;  %v3478_v16 = vmul.f32 %v3474_v62, %v3474_v62 }
0x16e0   : > { %v3476_v54 = vsub.f32 %v3452_v6, %v3472_v5  ;;  %v3482_v18 = vsel %vm1781_vm12, %v3478_v16, 0.0  ;;  %v3479_v22 = vmul.f32 %v3475_v46, %v3475_v46 }
0x16e1   : > { %3483 = vadd.xlane.f32.xlu1 %v3482_v18  ;;  %v3469_v9 = vpop.xlane.xlu0 %3468 }
0x16e2   : > { %v3473_v21 = vmul.f32 0.0625, %v3469_v9  ;;  %v3485_v8 = vsel %vm1781_vm12, %v3479_v22, 0.0  ;;  %v3480_v10 = vmul.f32 %v3476_v54, %v3476_v54  ;;  %v6156_v9 = vld [vmem:[%s8203_s8 + $0x4] ss:$12 sps:$4 sm:$0xff]  }
0x16e3   : > { %3486 = vadd.xlane.f32.xlu0 %v3485_v8  ;;  %3820 = vmatprep.mubr.bf16.mxu0 %v6156_v9 }
0x16e4   : > { %v3477_v28 = vsub.f32 %v3455_v53, %v3473_v21  ;;  %v3488_v24 = vsel %vm1781_vm12, %v3480_v10, 0.0  ;;  %v6159_v21 = vld [vmem:[%s8203_s8 + $0x8] ss:$12 sps:$4 sm:$0xff]  }
0x16e5   : > { %3489 = vadd.xlane.f32.xlu1 %v3488_v24  ;;  %5975 = vmatprep.mubr.msk.bf16.mxu1 %vm2497_vm6, %v6159_v21 }
0x16e6   : > { %v3481_v56 = vmul.f32 %v3477_v28, %v3477_v28 }
0x16e8   : > { %v3491_v20 = vsel %vm1781_vm12, %v3481_v56, 0.0 }
0x16e9   : > { %3492 = vadd.xlane.f32.xlu0 %v3491_v20 }
0x176e   : > { %v3484_v11 = vpop.xlane.xlu1 %3483 }
0x176f   : > { %v3494_v47 = vmul.f32 0.0625, %v3484_v11 }
0x1770   : > { %v3487_v31 = vpop.xlane.xlu0 %3486 }
0x1771   : > { %v3498_v32 = vadd.f32 1e-05, %v3494_v47  ;;  %v3495_v33 = vmul.f32 0.0625, %v3487_v31 }
0x1772   : > { %v3490_v4 = vpop.xlane.xlu1 %3489 }
0x1773   : > { %6208 = vrsqrt.f32 %v3498_v32  ;;  %v3499_v34 = vadd.f32 1e-05, %v3495_v33  ;;  %v3496_v43 = vmul.f32 0.0625, %v3490_v4 }
0x1775   : > { %6210 = vrsqrt.f32 %v3499_v34  ;;  %v3500_v35 = vadd.f32 1e-05, %v3496_v43 }
0x1776   : > { %v3493_v19 = vpop.xlane.xlu0 %3492 }
0x1777   : > { %6212 = vrsqrt.f32 %v3500_v35  ;;  %v3497_v36 = vmul.f32 0.0625, %v3493_v19 }
0x1779   : > { %v3501_v59 = vadd.f32 1e-05, %v3497_v36 }
0x177b   : > { %6214 = vrsqrt.f32 %v3501_v59 }
0x177d   : > { %v6209_v15 = vpop.eup %6208 }
0x177e   : > { %v3506_v61 = vmul.f32 %v6209_v15, %v3474_v62 }
0x177f   : > { %v6211_v38 = vpop.eup %6210 }
0x1780   : > { %v3510_v40 = vmax.f32 %v3506_v61, 0.0  ;;  %v3507_v42 = vmul.f32 %v6211_v38, %v3475_v46 }
0x1781   : > { %v6213_v44 = vpop.eup %6212 }
0x1782   : > { %3518 = vrot.lane.b32.xlu1 %v3510_v40, %s8366_s15  ;;  %v3511_v48 = vmax.f32 %v3507_v42, 0.0  ;;  %v3508_v26 = vmul.f32 %v6213_v44, %v3476_v54 }
0x1784   : > { %3520 = vrot.lane.b32.xlu0 %v3511_v48, %s8366_s15  ;;  %v3512_v6 = vmax.f32 %v3508_v26, 0.0 }
0x1785   : > { %v6215_v49 = vpop.eup %6214 }
0x1786   : > { %3522 = vrot.lane.b32.xlu1 %v3512_v6, %s8366_s15  ;;  %v3509_v63 = vmul.f32 %v6215_v49, %v3477_v28 }
0x1788   : > { %v3513_v3 = vmax.f32 %v3509_v63, 0.0 }
0x178a   : > { %3524 = vrot.lane.b32.xlu1 %v3513_v3, %s8366_s15 }
0x17f4   : > { %v3519_v53 = vpop.permute.xlu1 %3518 }
0x17f5   : > { %3530 = vst.msk [vmem:[#allocation5] sm:$0xff] %vm2224_vm11, %v3519_v53 }
0x17f6   : > { %v3521_v55 = vpop.permute.xlu0 %3520 }
0x17f7   : > { %3531 = vst.msk [vmem:[#allocation5 + $0x8] sm:$0xff] %vm2224_vm11, %v3521_v55 }
0x17f8   : > { %v3523_v57 = vpop.permute.xlu1 %3522 }
0x17f9   : > { %3532 = vst.msk [vmem:[#allocation5 + $0x10] sm:$0xff] %vm2224_vm11, %v3523_v57 }
0x17fc   : > { %v3525_v60 = vpop.permute.xlu1 %3524  ;;  %v3534_v1 = vld [vmem:[#allocation5] sm:$0xff] }
0x17fd   : > { %3533 = vst.msk [vmem:[#allocation5 + $0x18] sm:$0xff] %vm2224_vm11, %v3525_v60  ;;  %3610 = vrot.lane.b32.xlu0 %v3534_v1, %s8367_s24  ;;  %v3538_v7 = vsel %vm7163_vm7, %v3534_v1, 0.0  ;;  %v3542_v16 = vsel %vm7179_vm5, %v3534_v1, 0.0 }
0x17fe   : > { %v3535_v41 = vld [vmem:[#allocation5 + $0x8] sm:$0xff]  ;;  %3546 = vst.msk [vmem:[#allocation8] sm:$0xff] %vm1781_vm12, %v3538_v7 }
0x17ff   : > { %3612 = vrot.lane.b32.xlu1 %v3535_v41, %s8367_s24  ;;  %v3539_v62 = vsel %vm7163_vm7, %v3535_v41, 0.0  ;;  %v3543_v54 = vsel %vm7179_vm5, %v3535_v41, 0.0 }
0x1800   : > { %3547 = vst.msk [vmem:[#allocation8 + $0x10] sm:$0xff] %vm1781_vm12, %v3539_v62  ;;  %v3536_v2 = vld [vmem:[#allocation5 + $0x10] sm:$0xff] }
0x1801   : > { %3554 = vrot.lane.b32.xlu0 %v3534_v1, %s8314_s2  ;;  %v3540_v39 = vsel %vm7163_vm7, %v3536_v2, 0.0  ;;  %v3544_v18 = vsel %vm7179_vm5, %v3536_v2, 0.0 }
0x1802   : > { %3548 = vst.msk [vmem:[#allocation8 + $0x20] sm:$0xff] %vm1781_vm12, %v3540_v39 }
0x1803   : > { %3556 = vrot.lane.b32.xlu1 %v3535_v41, %s8314_s2 }
0x1804   : > { %v3537_v46 = vld [vmem:[#allocation5 + $0x18] sm:$0xff] }
0x1805   : > { %3658 = vrot.lane.b32.xlu0 %v3534_v1, %s8361_s1  ;;  %v3541_v5 = vsel %vm7163_vm7, %v3537_v46, 0.0  ;;  %v3545_v22 = vsel %vm7179_vm5, %v3537_v46, 0.0  ;;  %v3690_v33 = vld [vmem:[#allocation8] sm:$0xff] }
0x1806   : > { %3549 = vst.msk [vmem:[#allocation8 + $0x30] sm:$0xff] %vm1781_vm12, %v3541_v5 }
0x1807   : > { %3660 = vrot.lane.b32.xlu1 %v3535_v41, %s8361_s1  ;;  %v3691_v20 = vld [vmem:[#allocation8 + $0x10] sm:$0xff] }
0x1808   : > { %v3726_v34 = vpack.c.bf16 %v3691_v20, %v3690_v33 }
0x1809   : > { %3626 = vrot.lane.b32.xlu0 %v3542_v16, %s8368_s20  ;;  %v3692_v55 = vld [vmem:[#allocation8 + $0x20] sm:$0xff] }
0x180b   : > { %3628 = vrot.lane.b32.xlu1 %v3543_v54, %s8368_s20 }
0x180d   : > { %3642 = vrot.lane.b32.xlu0 %v3538_v7, %s8362_s0  ;;  %v3693_v26 = vld [vmem:[#allocation8 + $0x30] sm:$0xff] }
0x180e   : > { %v3727_v60 = vpack.c.bf16 %v3693_v26, %v3692_v55 }
0x180f   : > { %3644 = vrot.lane.b32.xlu1 %v3539_v62, %s8362_s0 }
0x1811   : > { %3574 = vrot.lane.b32.xlu0 %v3542_v16, %s8288_s27 }
0x1813   : > { %3576 = vrot.lane.b32.xlu1 %v3543_v54, %s8288_s27 }
0x1815   : > { %3594 = vrot.lane.b32.xlu0 %v3538_v7, %s8363_s25 }
0x1817   : > { %3596 = vrot.lane.b32.xlu1 %v3539_v62, %s8363_s25 }
0x1819   : > { %3614 = vrot.lane.b32.xlu0 %v3536_v2, %s8367_s24 }
0x181b   : > { %3616 = vrot.lane.b32.xlu1 %v3537_v46, %s8367_s24 }
0x181d   : > { %3558 = vrot.lane.b32.xlu0 %v3536_v2, %s8314_s2 }
0x181f   : > { %3560 = vrot.lane.b32.xlu1 %v3537_v46, %s8314_s2 }
0x1821   : > { %3630 = vrot.lane.b32.xlu0 %v3544_v18, %s8368_s20 }
0x1823   : > { %3632 = vrot.lane.b32.xlu1 %v3545_v22, %s8368_s20 }
0x1825   : > { %3646 = vrot.lane.b32.xlu0 %v3540_v39, %s8362_s0 }
0x1827   : > { %3648 = vrot.lane.b32.xlu1 %v3541_v5, %s8362_s0 }
0x1829   : > { %3578 = vrot.lane.b32.xlu0 %v3544_v18, %s8288_s27 }
0x182b   : > { %3580 = vrot.lane.b32.xlu1 %v3545_v22, %s8288_s27 }
0x182d   : > { %3662 = vrot.lane.b32.xlu0 %v3536_v2, %s8361_s1 }
0x182f   : > { %3664 = vrot.lane.b32.xlu1 %v3537_v46, %s8361_s1 }
0x1831   : > { %3598 = vrot.lane.b32.xlu0 %v3540_v39, %s8363_s25 }
0x1833   : > { %3600 = vrot.lane.b32.xlu1 %v3541_v5, %s8363_s25 }
0x1835   : > { %3674 = vrot.lane.b32.xlu0 %v3542_v16, %s8365_s26 }
0x1837   : > { %3676 = vrot.lane.b32.xlu1 %v3543_v54, %s8365_s26 }
0x1839   : > { %3678 = vrot.lane.b32.xlu0 %v3544_v18, %s8365_s26 }
0x183b   : > { %3680 = vrot.lane.b32.xlu1 %v3545_v22, %s8365_s26 }
0x186f   : > { %v3611_v8 = vpop.permute.xlu0 %3610 }
0x1870   : > { %3622 = vst.msk [vmem:[#allocation8 + $0x100] sm:$0xff] %vm1781_vm12, %v3611_v8 }
0x1871   : > { %v3613_v10 = vpop.permute.xlu1 %3612 }
0x1872   : > { %3623 = vst.msk [vmem:[#allocation8 + $0x110] sm:$0xff] %vm1781_vm12, %v3613_v10 }
0x1873   : > { %v3555_v28 = vpop.permute.xlu0 %3554 }
0x1874   : > { %3566 = vst.msk [vmem:[#allocation8 + $0x40] sm:$0xff] %vm1781_vm12, %v3555_v28 }
0x1875   : > { %v3557_v24 = vpop.permute.xlu1 %3556 }
0x1876   : > { %3567 = vst.msk [vmem:[#allocation8 + $0x50] sm:$0xff] %vm1781_vm12, %v3557_v24 }
0x1877   : > { %v3659_v56 = vpop.permute.xlu0 %3658  ;;  %v3706_v47 = vld [vmem:[#allocation8 + $0x100] sm:$0xff] }
0x1878   : > { %3670 = vst.msk [vmem:[#allocation8 + $0x1c0] sm:$0xff] %vm1781_vm12, %v3659_v56 }
0x1879   : > { %v3661_v11 = vpop.permute.xlu1 %3660  ;;  %v3707_v31 = vld [vmem:[#allocation8 + $0x110] sm:$0xff] }
0x187a   : > { %3671 = vst.msk [vmem:[#allocation8 + $0x1d0] sm:$0xff] %vm1781_vm12, %v3661_v11  ;;  %v3734_v32 = vpack.c.bf16 %v3707_v31, %v3706_v47 }
0x187b   : > { %v3627_v4 = vpop.permute.xlu0 %3626  ;;  %v3694_v2 = vld [vmem:[#allocation8 + $0x40] sm:$0xff] }
0x187c   : > { %3638 = vst.msk [vmem:[#allocation8 + $0x140] sm:$0xff] %vm1781_vm12, %v3627_v4  ;;  %5830 = vmatprep.subr.bf16.mxu0 %v3734_v32 }
0x187d   : > { %v3629_v43 = vpop.permute.xlu1 %3628  ;;  %5831 = vmatpush3.bf16.msra.mxu0 %v3726_v34  ;;  %v3695_v41 = vld [vmem:[#allocation8 + $0x50] sm:$0xff] }
0x187e   : > { %3639 = vst.msk [vmem:[#allocation8 + $0x150] sm:$0xff] %vm1781_vm12, %v3629_v43  ;;  %v3728_v46 = vpack.c.bf16 %v3695_v41, %v3694_v2 }
0x187f   : > { %v3643_v35 = vpop.permute.xlu0 %3642 }
0x1880   : > { %3654 = vst.msk [vmem:[#allocation8 + $0x180] sm:$0xff] %vm1781_vm12, %v3643_v35 }
0x1881   : > { %v3645_v19 = vpop.permute.xlu1 %3644 }
0x1882   : > { %3655 = vst.msk [vmem:[#allocation8 + $0x190] sm:$0xff] %vm1781_vm12, %v3645_v19  ;;  %v3719_v19 = vld [vmem:[#allocation8 + $0x1d0] sm:$0xff] }
0x1883   : > { %v3575_v36 = vpop.permute.xlu0 %3574  ;;  %v3710_v1 = vld [vmem:[#allocation8 + $0x140] sm:$0xff] }
0x1884   : > { %3586 = vst.msk [vmem:[#allocation8 + $0x80] sm:$0xff] %vm1781_vm12, %v3575_v36 }
0x1885   : > { %v3577_v59 = vpop.permute.xlu1 %3576  ;;  %v3711_v3 = vld [vmem:[#allocation8 + $0x150] sm:$0xff] }
0x1886   : > { %3587 = vst.msk [vmem:[#allocation8 + $0x90] sm:$0xff] %vm1781_vm12, %v3577_v59  ;;  %v3736_v7 = vpack.c.bf16 %v3711_v3, %v3710_v1 }
0x1887   : > { %v3595_v15 = vpop.permute.xlu0 %3594  ;;  %v3714_v28 = vld [vmem:[#allocation8 + $0x180] sm:$0xff] }
0x1888   : > { %3606 = vst.msk [vmem:[#allocation8 + $0xc0] sm:$0xff] %vm1781_vm12, %v3595_v15  ;;  %v3718_v15 = vld [vmem:[#allocation8 + $0x1c0] sm:$0xff] }
0x1889   : > { %v3597_v61 = vpop.permute.xlu1 %3596  ;;  %v3715_v22 = vld [vmem:[#allocation8 + $0x190] sm:$0xff] }
0x188a   : > { %3607 = vst.msk [vmem:[#allocation8 + $0xd0] sm:$0xff] %vm1781_vm12, %v3597_v61  ;;  %v3738_v24 = vpack.c.bf16 %v3715_v22, %v3714_v28  ;;  %v3740_v61 = vpack.c.bf16 %v3719_v19, %v3718_v15 }
0x188b   : > { %v3615_v38 = vpop.permute.xlu0 %3614  ;;  %v3698_v47 = vld [vmem:[#allocation8 + $0x80] sm:$0xff] }
0x188c   : > { %3624 = vst.msk [vmem:[#allocation8 + $0x120] sm:$0xff] %vm1781_vm12, %v3615_v38 }
0x188d   : > { %v3617_v40 = vpop.permute.xlu1 %3616  ;;  %v3699_v56 = vld [vmem:[#allocation8 + $0x90] sm:$0xff] }
0x188e   : > { %3625 = vst.msk [vmem:[#allocation8 + $0x130] sm:$0xff] %vm1781_vm12, %v3617_v40  ;;  %v3730_v32 = vpack.c.bf16 %v3699_v56, %v3698_v47 }
0x188f   : > { %v3559_v42 = vpop.permute.xlu0 %3558 }
0x1890   : > { %3568 = vst.msk [vmem:[#allocation8 + $0x60] sm:$0xff] %vm1781_vm12, %v3559_v42 }
0x1891   : > { %v3561_v44 = vpop.permute.xlu1 %3560  ;;  %v3703_v38 = vld [vmem:[#allocation8 + $0xd0] sm:$0xff] }
0x1892   : > { %3569 = vst.msk [vmem:[#allocation8 + $0x70] sm:$0xff] %vm1781_vm12, %v3561_v44  ;;  %v3702_v44 = vld [vmem:[#allocation8 + $0xc0] sm:$0xff] }
0x1893   : > { %v3631_v48 = vpop.permute.xlu0 %3630  ;;  %v3708_v49 = vld [vmem:[#allocation8 + $0x120] sm:$0xff]  ;;  %v3732_v26 = vpack.c.bf16 %v3703_v38, %v3702_v44 }
0x1894   : > { %3640 = vst.msk [vmem:[#allocation8 + $0x160] sm:$0xff] %vm1781_vm12, %v3631_v48 }
0x1895   : > { %v3633_v6 = vpop.permute.xlu1 %3632  ;;  %v3709_v63 = vld [vmem:[#allocation8 + $0x130] sm:$0xff] }
0x1896   : > { %3641 = vst.msk [vmem:[#allocation8 + $0x170] sm:$0xff] %vm1781_vm12, %v3633_v6  ;;  %v3735_v53 = vpack.c.bf16 %v3709_v63, %v3708_v49 }
0x1897   : > { %v3647_v57 = vpop.permute.xlu0 %3646  ;;  %v3696_v21 = vld [vmem:[#allocation8 + $0x60] sm:$0xff] }
0x1898   : > { %3656 = vst.msk [vmem:[#allocation8 + $0x1a0] sm:$0xff] %vm1781_vm12, %v3647_v57  ;;  %5832 = vmatprep.subr.bf16.mxu0 %v3735_v53  ;;  %v6154_v57 = vld [vmem:[%s8203_s8] ss:$12 sps:$4 sm:$0xff]  }
0x1899   : > { %v3649_v62 = vpop.permute.xlu1 %3648  ;;  %5833 = vmatpush3.bf16.msra.mxu0 %v3727_v60  ;;  %v3697_v5 = vld [vmem:[#allocation8 + $0x70] sm:$0xff] }
0x189a   : > { %3657 = vst.msk [vmem:[#allocation8 + $0x1b0] sm:$0xff] %vm1781_vm12, %v3649_v62  ;;  %5834 = vmatprep.subr.bf16.mxu0 %v3736_v7  ;;  %v3729_v10 = vpack.c.bf16 %v3697_v5, %v3696_v21  ;;  %v6157_v7 = vld [vmem:[%s8203_s8 + $0x1c] ss:$12 sps:$4 sm:$0xff]   ;;  %v6161_v5 = vld [vmem:[%s8203_s8 + $0x20] ss:$12 sps:$4 sm:$0xff]  }
0x189b   : > { %v3579_v39 = vpop.permute.xlu0 %3578  ;;  %v3712_v54 = vld [vmem:[#allocation8 + $0x160] sm:$0xff] }
0x189c   : > { %3588 = vst.msk [vmem:[#allocation8 + $0xa0] sm:$0xff] %vm1781_vm12, %v3579_v39 }
0x189d   : > { %v3581_v16 = vpop.permute.xlu1 %3580  ;;  %5835 = vmatpush3.bf16.msra.mxu0 %v3728_v46  ;;  %v3713_v18 = vld [vmem:[#allocation8 + $0x170] sm:$0xff] }
0x189e   : > { %3589 = vst.msk [vmem:[#allocation8 + $0xb0] sm:$0xff] %vm1781_vm12, %v3581_v16  ;;  %v3737_v9 = vpack.c.bf16 %v3713_v18, %v3712_v54  ;;  %v6160_v46 = vld [vmem:[%s8203_s8 + $0x18] ss:$12 sps:$4 sm:$0xff]  }
0x189f   : > { %v3663_v8 = vpop.permute.xlu0 %3662  ;;  %v3716_v33 = vld [vmem:[#allocation8 + $0x1a0] sm:$0xff] }
0x18a0   : > { %3672 = vst.msk [vmem:[#allocation8 + $0x1e0] sm:$0xff] %vm1781_vm12, %v3663_v8  ;;  %5836 = vmatprep.subr.bf16.mxu0 %v3737_v9 }
0x18a1   : > { %v3665_v20 = vpop.permute.xlu1 %3664  ;;  %5837 = vmatpush3.bf16.msra.mxu0 %v3729_v10  ;;  %v3717_v11 = vld [vmem:[#allocation8 + $0x1b0] sm:$0xff] }
0x18a2   : > { %3673 = vst.msk [vmem:[#allocation8 + $0x1f0] sm:$0xff] %vm1781_vm12, %v3665_v20  ;;  %5838 = vmatprep.subr.bf16.mxu0 %v3738_v24  ;;  %v3739_v4 = vpack.c.bf16 %v3717_v11, %v3716_v33 }
0x18a3   : > { %v3599_v31 = vpop.permute.xlu0 %3598  ;;  %v3700_v43 = vld [vmem:[#allocation8 + $0xa0] sm:$0xff] }
0x18a4   : > { %3608 = vst.msk [vmem:[#allocation8 + $0xe0] sm:$0xff] %vm1781_vm12, %v3599_v31 }
0x18a5   : > { %v3601_v34 = vpop.permute.xlu1 %3600  ;;  %5839 = vmatpush3.bf16.msra.mxu0 %v3730_v32  ;;  %v3701_v35 = vld [vmem:[#allocation8 + $0xb0] sm:$0xff] }
0x18a6   : > { %3609 = vst.msk [vmem:[#allocation8 + $0xf0] sm:$0xff] %vm1781_vm12, %v3601_v34  ;;  %5840 = vmatprep.subr.bf16.mxu0 %v3739_v4  ;;  %v3731_v36 = vpack.c.bf16 %v3701_v35, %v3700_v43 }
0x18a7   : > { %v3675_v59 = vpop.permute.xlu0 %3674  ;;  %v3720_v6 = vld [vmem:[#allocation8 + $0x1e0] sm:$0xff] }
0x18a8   : > { %3686 = vst.msk [vmem:[#allocation8 + $0x200] sm:$0xff] %vm1781_vm12, %v3675_v59 }
0x18a9   : > { %v3677_v40 = vpop.permute.xlu1 %3676  ;;  %5841 = vmatpush3.bf16.msra.mxu0 %v3731_v36  ;;  %v3721_v42 = vld [vmem:[#allocation8 + $0x1f0] sm:$0xff] }
0x18aa   : > { %3687 = vst.msk [vmem:[#allocation8 + $0x210] sm:$0xff] %vm1781_vm12, %v3677_v40  ;;  %5842 = vmatprep.subr.bf16.mxu0 %v3740_v61  ;;  %v3741_v49 = vpack.c.bf16 %v3721_v42, %v3720_v6 }
0x18ab   : > { %v3679_v48 = vpop.permute.xlu0 %3678  ;;  %v3704_v3 = vld [vmem:[#allocation8 + $0xe0] sm:$0xff] }
0x18ac   : > { %3688 = vst.msk [vmem:[#allocation8 + $0x220] sm:$0xff] %vm1781_vm12, %v3679_v48 }
0x18ad   : > { %v3681_v63 = vpop.permute.xlu1 %3680  ;;  %5843 = vmatpush3.bf16.msra.mxu0 %v3732_v26  ;;  %v3705_v53 = vld [vmem:[#allocation8 + $0xf0] sm:$0xff] }
0x18ae   : > { %3689 = vst.msk [vmem:[#allocation8 + $0x230] sm:$0xff] %vm1781_vm12, %v3681_v63  ;;  %5844 = vmatprep.subr.bf16.mxu0 %v3741_v49  ;;  %v3733_v55 = vpack.c.bf16 %v3705_v53, %v3704_v3 }
0x18af   : > { %v3722_v60 = vld [vmem:[#allocation8 + $0x200] sm:$0xff] }
0x18b1   : > { %5845 = vmatpush3.bf16.msra.mxu0 %v3733_v55  ;;  %v3723_v1 = vld [vmem:[#allocation8 + $0x210] sm:$0xff] }
0x18b2   : > { %v3742_v41 = vpack.c.bf16 %v3723_v1, %v3722_v60 }
0x18b3   : > { %v3724_v62 = vld [vmem:[#allocation8 + $0x220] sm:$0xff] }
0x18b4   : > { %3821 = vmatmul.mubr.bf16.vlgmr.msra.gmra.mrb[24].mxu0 %v6154_v57  ;;  %5971 = vmatprep.subr.bf16.mxu1 %v3742_v41 }
0x18b5   : > { %5972 = vmatpush3.bf16.msra.mxu1 %v3742_v41  ;;  %v3725_v2 = vld [vmem:[#allocation8 + $0x230] sm:$0xff]  ;;  %3828 = vmatprep.mubr.bf16.mxu0 %v6157_v7 }
0x18b6   : > { %v3743_v39 = vpack.c.bf16 %v3725_v2, %v3724_v62 }
0x18b8   : > { %5973 = vmatprep.subr.bf16.mxu1 %v3743_v39 }
0x18b9   : > { %5974 = vmatpush3.bf16.msra.mxu1 %v3743_v39 }
0x18bc   : > { %3829 = vmatmul.mubr.bf16.gmra.mrb[28].mxu0 %v6160_v46  ;;  %5976 = vmatmul.mubr.msk.bf16.vlgmr.msra.gmra.mrb[40].mxu1 %vm2497_vm6, %v6161_v5 }
0x18bd   : > { %4248 = vmatprep.mubr.bf16.mxu1 %v6164_v58 }
0x1987   : > { %v5846_v16 = vpop.f32.mrb[24].mxu0 }
0x1988   : > { %v5847_v54 = vpop.f32.mrb[25].mxu0 }
0x1989   : > { %v5848_v18 = vadd.f32 %v5847_v54, %v5846_v16  ;;  %v5849_v22 = vpop.f32.mrb[26].mxu0 }
0x198a   : > { %v5850_v9 = vpop.f32.mrb[27].mxu0 }
0x198b   : > { %v5851_v21 = vadd.f32 %v5850_v9, %v5849_v22 }
0x198f   : > { %v5852_v8 = vpop.f32.mrb[28].mxu0  ;;  %v5977_v10 = vpop.f32.mrb[40].mxu1 }
0x1990   : > { %v5853_v28 = vpop.f32.mrb[29].mxu0  ;;  %v3871_v24 = vpop.f32.mrb[41].mxu1 }
0x1991   : > { %v5854_v56 = vadd.f32 %v5853_v28, %v5852_v8  ;;  %v3872_v20 = vadd.f32 %v5848_v18, %v3871_v24  ;;  %v5855_v11 = vpop.f32.mrb[30].mxu0  ;;  %v5978_v47 = vpop.f32.mrb[42].mxu1 }
0x1992   : > { %v5856_v31 = vpop.f32.mrb[31].mxu0  ;;  %v3874_v32 = vpop.f32.mrb[43].mxu1 }
0x1993   : > { %v3880_v33 = vadd.f32 %v5977_v10, %v5854_v56  ;;  %v5857_v4 = vadd.f32 %v5856_v31, %v5855_v11  ;;  %v3875_v34 = vadd.f32 %v5851_v21, %v3874_v32  ;;  %v3886_v43 = vsel %vm1781_vm12, %v3872_v20, 0.0 }
0x1994   : > { %3887 = vadd.xlane.f32.xlu0 %v3886_v43 }
0x1995   : > { %v3883_v35 = vadd.f32 %v5978_v47, %v5857_v4  ;;  %v3889_v19 = vsel %vm1781_vm12, %v3875_v34, 0.0  ;;  %v3892_v36 = vsel %vm1781_vm12, %v3880_v33, 0.0 }
0x1996   : > { %3890 = vadd.xlane.f32.xlu1 %v3889_v19 }
0x1997   : > { %v3895_v59 = vsel %vm1781_vm12, %v3883_v35, 0.0 }
0x1998   : > { %3893 = vadd.xlane.f32.xlu0 %v3892_v36 }
0x199c   : > { %3896 = vadd.xlane.f32.xlu0 %v3895_v59 }
0x1a21   : > { %v3888_v15 = vpop.xlane.xlu0 %3887 }
0x1a22   : > { %v3898_v61 = vmul.f32 0.0625, %v3888_v15 }
0x1a23   : > { %v3891_v38 = vpop.xlane.xlu1 %3890 }
0x1a24   : > { %v3902_v40 = vsub.f32 %v3872_v20, %v3898_v61  ;;  %v3899_v42 = vmul.f32 0.0625, %v3891_v38 }
0x1a25   : > { %v3894_v44 = vpop.xlane.xlu0 %3893 }
0x1a26   : > { %v3903_v48 = vsub.f32 %v3875_v34, %v3899_v42  ;;  %v3900_v26 = vmul.f32 0.0625, %v3894_v44  ;;  %v3906_v6 = vmul.f32 %v3902_v40, %v3902_v40 }
0x1a28   : > { %v3904_v49 = vsub.f32 %v3880_v33, %v3900_v26  ;;  %v3910_v63 = vsel %vm1781_vm12, %v3906_v6, 0.0  ;;  %v3907_v3 = vmul.f32 %v3903_v48, %v3903_v48  ;;  %v6167_v26 = vld [vmem:[%s8204_s9 + $0x8] ss:$12 sps:$4 sm:$0xff]  }
0x1a29   : > { %3911 = vadd.xlane.f32.xlu1 %v3910_v63  ;;  %v3897_v53 = vpop.xlane.xlu0 %3896  ;;  %5983 = vmatprep.mubr.msk.bf16.mxu0 %vm2497_vm6, %v6167_v26 }
0x1a2a   : > { %v3901_v55 = vmul.f32 0.0625, %v3897_v53  ;;  %v3913_v57 = vsel %vm1781_vm12, %v3907_v3, 0.0  ;;  %v3908_v60 = vmul.f32 %v3904_v49, %v3904_v49 }
0x1a2b   : > { %3914 = vadd.xlane.f32.xlu0 %v3913_v57 }
0x1a2c   : > { %v3905_v1 = vsub.f32 %v3883_v35, %v3901_v55  ;;  %v3916_v7 = vsel %vm1781_vm12, %v3908_v60, 0.0 }
0x1a2d   : > { %3917 = vadd.xlane.f32.xlu1 %v3916_v7 }
0x1a2e   : > { %v3909_v41 = vmul.f32 %v3905_v1, %v3905_v1 }
0x1a30   : > { %v3919_v62 = vsel %vm1781_vm12, %v3909_v41, 0.0 }
0x1a31   : > { %3920 = vadd.xlane.f32.xlu0 %v3919_v62 }
0x1ab6   : > { %v3912_v2 = vpop.xlane.xlu1 %3911 }
0x1ab7   : > { %v3922_v39 = vmul.f32 0.0625, %v3912_v2 }
0x1ab8   : > { %v3915_v46 = vpop.xlane.xlu0 %3914 }
0x1ab9   : > { %v3926_v5 = vadd.f32 1e-05, %v3922_v39  ;;  %v3923_v16 = vmul.f32 0.0625, %v3915_v46 }
0x1aba   : > { %v3918_v54 = vpop.xlane.xlu1 %3917 }
0x1abb   : > { %6216 = vrsqrt.f32 %v3926_v5  ;;  %v3927_v18 = vadd.f32 1e-05, %v3923_v16  ;;  %v3924_v22 = vmul.f32 0.0625, %v3918_v54 }
0x1abd   : > { %6218 = vrsqrt.f32 %v3927_v18  ;;  %v3928_v9 = vadd.f32 1e-05, %v3924_v22 }
0x1abe   : > { %v3921_v21 = vpop.xlane.xlu0 %3920 }
0x1abf   : > { %6220 = vrsqrt.f32 %v3928_v9  ;;  %v3925_v8 = vmul.f32 0.0625, %v3921_v21 }
0x1ac1   : > { %v3929_v10 = vadd.f32 1e-05, %v3925_v8 }
0x1ac3   : > { %6222 = vrsqrt.f32 %v3929_v10 }
0x1ac5   : > { %v6217_v28 = vpop.eup %6216 }
0x1ac6   : > { %v3934_v24 = vmul.f32 %v6217_v28, %v3902_v40 }
0x1ac7   : > { %v6219_v56 = vpop.eup %6218 }
0x1ac8   : > { %v3938_v20 = vadd.f32 %v3934_v24, %v7407_v50  ;;  %v3935_v11 = vmul.f32 %v6219_v56, %v3903_v48 }
0x1ac9   : > { %v6221_v47 = vpop.eup %6220 }
0x1aca   : > { %3946 = vrot.lane.b32.xlu1 %v3938_v20, %s8366_s15  ;;  %v3939_v31 = vadd.f32 %v3935_v11, %v7413_v17  ;;  %v3936_v32 = vmul.f32 %v6221_v47, %v3904_v49 }
0x1acc   : > { %3948 = vrot.lane.b32.xlu0 %v3939_v31, %s8366_s15  ;;  %v3940_v33 = vadd.f32 %v3936_v32, %v7419_v23 }
0x1acd   : > { %v6223_v4 = vpop.eup %6222 }
0x1ace   : > { %3950 = vrot.lane.b32.xlu1 %v3940_v33, %s8366_s15  ;;  %v3937_v34 = vmul.f32 %v6223_v4, %v3905_v1 }
0x1ad0   : > { %v3941_v43 = vadd.f32 %v3937_v34, %v7425_v27 }
0x1ad2   : > { %3952 = vrot.lane.b32.xlu1 %v3941_v43, %s8366_s15 }
0x1b3c   : > { %v3947_v50 = vpop.permute.xlu1 %3946 }
0x1b3d   : > { %3958 = vst.msk [vmem:[#allocation5] sm:$0xff] %vm2224_vm11, %v3947_v50 }
0x1b3e   : > { %v3949_v35 = vpop.permute.xlu0 %3948 }
0x1b3f   : > { %3959 = vst.msk [vmem:[#allocation5 + $0x8] sm:$0xff] %vm2224_vm11, %v3949_v35 }
0x1b40   : > { %v3951_v17 = vpop.permute.xlu1 %3950 }
0x1b41   : > { %3960 = vst.msk [vmem:[#allocation5 + $0x10] sm:$0xff] %vm2224_vm11, %v3951_v17 }
0x1b44   : > { %v3953_v19 = vpop.permute.xlu1 %3952  ;;  %v3962_v36 = vld [vmem:[#allocation5] sm:$0xff] }
0x1b45   : > { %3961 = vst.msk [vmem:[#allocation5 + $0x18] sm:$0xff] %vm2224_vm11, %v3953_v19  ;;  %4038 = vrot.lane.b32.xlu0 %v3962_v36, %s8367_s24  ;;  %v3966_v23 = vsel %vm7163_vm7, %v3962_v36, 0.0  ;;  %v3970_v42 = vsel %vm7179_vm5, %v3962_v36, 0.0  ;;  %vm8374_vm11 = vmmov %vm8315_vm0 }
0x1b46   : > { %v3963_v27 = vld [vmem:[#allocation5 + $0x8] sm:$0xff]  ;;  %3974 = vst.msk [vmem:[#allocation8] sm:$0xff] %vm1781_vm12, %v3966_v23 }
0x1b47   : > { %4040 = vrot.lane.b32.xlu1 %v3963_v27, %s8367_s24  ;;  %v3967_v59 = vsel %vm7163_vm7, %v3963_v27, 0.0  ;;  %v3971_v44 = vsel %vm7179_vm5, %v3963_v27, 0.0 }
0x1b48   : > { %3975 = vst.msk [vmem:[#allocation8 + $0x10] sm:$0xff] %vm1781_vm12, %v3967_v59  ;;  %v3964_v15 = vld [vmem:[#allocation5 + $0x10] sm:$0xff] }
0x1b49   : > { %3982 = vrot.lane.b32.xlu0 %v3962_v36, %s8314_s2  ;;  %v3968_v61 = vsel %vm7163_vm7, %v3964_v15, 0.0  ;;  %v3972_v29 = vsel %vm7179_vm5, %v3964_v15, 0.0 }
0x1b4a   : > { %3976 = vst.msk [vmem:[#allocation8 + $0x20] sm:$0xff] %vm1781_vm12, %v3968_v61 }
0x1b4b   : > { %3984 = vrot.lane.b32.xlu1 %v3963_v27, %s8314_s2 }
0x1b4c   : > { %v3965_v38 = vld [vmem:[#allocation5 + $0x18] sm:$0xff] }
0x1b4d   : > { %4086 = vrot.lane.b32.xlu0 %v3962_v36, %s8361_s1  ;;  %v3969_v40 = vsel %vm7163_vm7, %v3965_v38, 0.0  ;;  %v3973_v48 = vsel %vm7179_vm5, %v3965_v38, 0.0  ;;  %v4118_v41 = vld [vmem:[#allocation8] sm:$0xff]  ;;  %vm8375_vm7 = vmmov %vm8315_vm0 }
0x1b4e   : > { %3977 = vst.msk [vmem:[#allocation8 + $0x30] sm:$0xff] %vm1781_vm12, %v3969_v40  ;;  %vm8376_vm5 = vmmov %vm8315_vm0 }
0x1b4f   : > { %4088 = vrot.lane.b32.xlu1 %v3963_v27, %s8361_s1  ;;  %v4119_v55 = vld [vmem:[#allocation8 + $0x10] sm:$0xff] }
0x1b50   : > { %v4154_v2 = vpack.c.bf16 %v4119_v55, %v4118_v41 }
0x1b51   : > { %4054 = vrot.lane.b32.xlu0 %v3970_v42, %s8368_s20  ;;  %v4120_v32 = vld [vmem:[#allocation8 + $0x20] sm:$0xff] }
0x1b53   : > { %4056 = vrot.lane.b32.xlu1 %v3971_v44, %s8368_s20 }
0x1b55   : > { %4070 = vrot.lane.b32.xlu0 %v3966_v23, %s8362_s0  ;;  %v4121_v24 = vld [vmem:[#allocation8 + $0x30] sm:$0xff] }
0x1b56   : > { %v4155_v4 = vpack.c.bf16 %v4121_v24, %v4120_v32 }
0x1b57   : > { %4072 = vrot.lane.b32.xlu1 %v3967_v59, %s8362_s0 }
0x1b59   : > { %4002 = vrot.lane.b32.xlu0 %v3970_v42, %s8288_s27 }
0x1b5b   : > { %4004 = vrot.lane.b32.xlu1 %v3971_v44, %s8288_s27 }
0x1b5d   : > { %4022 = vrot.lane.b32.xlu0 %v3966_v23, %s8363_s25 }
0x1b5f   : > { %4024 = vrot.lane.b32.xlu1 %v3967_v59, %s8363_s25 }
0x1b61   : > { %4042 = vrot.lane.b32.xlu0 %v3964_v15, %s8367_s24 }
0x1b63   : > { %4044 = vrot.lane.b32.xlu1 %v3965_v38, %s8367_s24 }
0x1b65   : > { %3986 = vrot.lane.b32.xlu0 %v3964_v15, %s8314_s2 }
0x1b67   : > { %3988 = vrot.lane.b32.xlu1 %v3965_v38, %s8314_s2 }
0x1b69   : > { %4058 = vrot.lane.b32.xlu0 %v3972_v29, %s8368_s20 }
0x1b6b   : > { %4060 = vrot.lane.b32.xlu1 %v3973_v48, %s8368_s20 }
0x1b6d   : > { %4074 = vrot.lane.b32.xlu0 %v3968_v61, %s8362_s0 }
0x1b6f   : > { %4076 = vrot.lane.b32.xlu1 %v3969_v40, %s8362_s0 }
0x1b71   : > { %4006 = vrot.lane.b32.xlu0 %v3972_v29, %s8288_s27 }
0x1b73   : > { %4008 = vrot.lane.b32.xlu1 %v3973_v48, %s8288_s27 }
0x1b75   : > { %4090 = vrot.lane.b32.xlu0 %v3964_v15, %s8361_s1 }
0x1b77   : > { %4092 = vrot.lane.b32.xlu1 %v3965_v38, %s8361_s1 }
0x1b79   : > { %4026 = vrot.lane.b32.xlu0 %v3968_v61, %s8363_s25 }
0x1b7b   : > { %4028 = vrot.lane.b32.xlu1 %v3969_v40, %s8363_s25 }
0x1b7d   : > { %4102 = vrot.lane.b32.xlu0 %v3970_v42, %s8365_s26 }
0x1b7f   : > { %4104 = vrot.lane.b32.xlu1 %v3971_v44, %s8365_s26 }
0x1b81   : > { %4106 = vrot.lane.b32.xlu0 %v3972_v29, %s8365_s26 }
0x1b83   : > { %4108 = vrot.lane.b32.xlu1 %v3973_v48, %s8365_s26 }
0x1bb7   : > { %v4039_v6 = vpop.permute.xlu0 %4038 }
0x1bb8   : > { %4050 = vst.msk [vmem:[#allocation8 + $0x100] sm:$0xff] %vm1781_vm12, %v4039_v6 }
0x1bb9   : > { %v4041_v49 = vpop.permute.xlu1 %4040 }
0x1bba   : > { %4051 = vst.msk [vmem:[#allocation8 + $0x110] sm:$0xff] %vm1781_vm12, %v4041_v49 }
0x1bbb   : > { %v3983_v63 = vpop.permute.xlu0 %3982 }
0x1bbc   : > { %3994 = vst.msk [vmem:[#allocation8 + $0x40] sm:$0xff] %vm1781_vm12, %v3983_v63 }
0x1bbd   : > { %v3985_v3 = vpop.permute.xlu1 %3984 }
0x1bbe   : > { %3995 = vst.msk [vmem:[#allocation8 + $0x50] sm:$0xff] %vm1781_vm12, %v3985_v3 }
0x1bbf   : > { %v4087_v53 = vpop.permute.xlu0 %4086  ;;  %v4134_v60 = vld [vmem:[#allocation8 + $0x100] sm:$0xff] }
0x1bc0   : > { %4098 = vst.msk [vmem:[#allocation8 + $0x1c0] sm:$0xff] %vm1781_vm12, %v4087_v53 }
0x1bc1   : > { %v4089_v57 = vpop.permute.xlu1 %4088  ;;  %v4135_v1 = vld [vmem:[#allocation8 + $0x110] sm:$0xff] }
0x1bc2   : > { %4099 = vst.msk [vmem:[#allocation8 + $0x1d0] sm:$0xff] %vm1781_vm12, %v4089_v57  ;;  %v4162_v7 = vpack.c.bf16 %v4135_v1, %v4134_v60 }
0x1bc3   : > { %v4055_v62 = vpop.permute.xlu0 %4054  ;;  %v4122_v17 = vld [vmem:[#allocation8 + $0x40] sm:$0xff] }
0x1bc4   : > { %4066 = vst.msk [vmem:[#allocation8 + $0x140] sm:$0xff] %vm1781_vm12, %v4055_v62  ;;  %5862 = vmatprep.subr.bf16.mxu1 %v4162_v7 }
0x1bc5   : > { %v4057_v39 = vpop.permute.xlu1 %4056  ;;  %5863 = vmatpush3.bf16.msra.mxu1 %v4154_v2  ;;  %v4123_v50 = vld [vmem:[#allocation8 + $0x50] sm:$0xff] }
0x1bc6   : > { %4067 = vst.msk [vmem:[#allocation8 + $0x150] sm:$0xff] %vm1781_vm12, %v4057_v39  ;;  %v4156_v36 = vpack.c.bf16 %v4123_v50, %v4122_v17 }
0x1bc7   : > { %v4071_v46 = vpop.permute.xlu0 %4070  ;;  %v4146_v2 = vld [vmem:[#allocation8 + $0x1c0] sm:$0xff] }
0x1bc8   : > { %4082 = vst.msk [vmem:[#allocation8 + $0x180] sm:$0xff] %vm1781_vm12, %v4071_v46 }
0x1bc9   : > { %v4073_v5 = vpop.permute.xlu1 %4072  ;;  %v4147_v7 = vld [vmem:[#allocation8 + $0x1d0] sm:$0xff] }
0x1bca   : > { %4083 = vst.msk [vmem:[#allocation8 + $0x190] sm:$0xff] %vm1781_vm12, %v4073_v5  ;;  %v4168_v39 = vpack.c.bf16 %v4147_v7, %v4146_v2 }
0x1bcb   : > { %v4003_v16 = vpop.permute.xlu0 %4002  ;;  %v4138_v34 = vld [vmem:[#allocation8 + $0x140] sm:$0xff] }
0x1bcc   : > { %4014 = vst.msk [vmem:[#allocation8 + $0x80] sm:$0xff] %vm1781_vm12, %v4003_v16 }
0x1bcd   : > { %v4005_v54 = vpop.permute.xlu1 %4004  ;;  %v4139_v47 = vld [vmem:[#allocation8 + $0x150] sm:$0xff] }
0x1bce   : > { %4015 = vst.msk [vmem:[#allocation8 + $0x90] sm:$0xff] %vm1781_vm12, %v4005_v54  ;;  %v4164_v43 = vpack.c.bf16 %v4139_v47, %v4138_v34  ;;  %v6165_v47 = vld [vmem:[%s8204_s9 + $0x1c] ss:$12 sps:$4 sm:$0xff]   ;;  %v6168_v34 = vld [vmem:[%s8204_s9 + $0x18] ss:$12 sps:$4 sm:$0xff]  }
0x1bcf   : > { %v4023_v18 = vpop.permute.xlu0 %4022  ;;  %v4142_v29 = vld [vmem:[#allocation8 + $0x180] sm:$0xff] }
0x1bd0   : > { %4034 = vst.msk [vmem:[#allocation8 + $0xc0] sm:$0xff] %vm1781_vm12, %v4023_v18 }
0x1bd1   : > { %v4025_v22 = vpop.permute.xlu1 %4024  ;;  %v4143_v61 = vld [vmem:[#allocation8 + $0x190] sm:$0xff] }
0x1bd2   : > { %4035 = vst.msk [vmem:[#allocation8 + $0xd0] sm:$0xff] %vm1781_vm12, %v4025_v22  ;;  %v4166_v48 = vpack.c.bf16 %v4143_v61, %v4142_v29 }
0x1bd3   : > { %v4043_v9 = vpop.permute.xlu0 %4042  ;;  %v4126_v49 = vld [vmem:[#allocation8 + $0x80] sm:$0xff] }
0x1bd4   : > { %4052 = vst.msk [vmem:[#allocation8 + $0x120] sm:$0xff] %vm1781_vm12, %v4043_v9 }
0x1bd5   : > { %v4045_v21 = vpop.permute.xlu1 %4044  ;;  %v4127_v58 = vld [vmem:[#allocation8 + $0x90] sm:$0xff] }
0x1bd6   : > { %4053 = vst.msk [vmem:[#allocation8 + $0x130] sm:$0xff] %vm1781_vm12, %v4045_v21  ;;  %v4158_v3 = vpack.c.bf16 %v4127_v58, %v4126_v49 }
0x1bd7   : > { %v3987_v8 = vpop.permute.xlu0 %3986  ;;  %v4130_v54 = vld [vmem:[#allocation8 + $0xc0] sm:$0xff] }
0x1bd8   : > { %3996 = vst.msk [vmem:[#allocation8 + $0x60] sm:$0xff] %vm1781_vm12, %v3987_v8 }
0x1bd9   : > { %v3989_v10 = vpop.permute.xlu1 %3988  ;;  %v4131_v46 = vld [vmem:[#allocation8 + $0xd0] sm:$0xff] }
0x1bda   : > { %3997 = vst.msk [vmem:[#allocation8 + $0x70] sm:$0xff] %vm1781_vm12, %v3989_v10  ;;  %v4160_v22 = vpack.c.bf16 %v4131_v46, %v4130_v54 }
0x1bdb   : > { %v4059_v28 = vpop.permute.xlu0 %4058  ;;  %v4136_v20 = vld [vmem:[#allocation8 + $0x120] sm:$0xff] }
0x1bdc   : > { %4068 = vst.msk [vmem:[#allocation8 + $0x160] sm:$0xff] %vm1781_vm12, %v4059_v28 }
0x1bdd   : > { %v4061_v56 = vpop.permute.xlu1 %4060  ;;  %v4137_v11 = vld [vmem:[#allocation8 + $0x130] sm:$0xff] }
0x1bde   : > { %4069 = vst.msk [vmem:[#allocation8 + $0x170] sm:$0xff] %vm1781_vm12, %v4061_v56  ;;  %v4163_v31 = vpack.c.bf16 %v4137_v11, %v4136_v20  ;;  %v6162_v56 = vld [vmem:[%s8204_s9] ss:$12 sps:$4 sm:$0xff]  }
0x1bdf   : > { %v4075_v33 = vpop.permute.xlu0 %4074  ;;  %v4124_v40 = vld [vmem:[#allocation8 + $0x60] sm:$0xff] }
0x1be0   : > { %4084 = vst.msk [vmem:[#allocation8 + $0x1a0] sm:$0xff] %vm1781_vm12, %v4075_v33  ;;  %5864 = vmatprep.subr.bf16.mxu1 %v4163_v31 }
0x1be1   : > { %v4077_v35 = vpop.permute.xlu1 %4076  ;;  %5865 = vmatpush3.bf16.msra.mxu1 %v4155_v4  ;;  %v4125_v23 = vld [vmem:[#allocation8 + $0x70] sm:$0xff] }
0x1be2   : > { %4085 = vst.msk [vmem:[#allocation8 + $0x1b0] sm:$0xff] %vm1781_vm12, %v4077_v35  ;;  %5866 = vmatprep.subr.bf16.mxu1 %v4164_v43  ;;  %v4157_v44 = vpack.c.bf16 %v4125_v23, %v4124_v40  ;;  %v6169_v43 = vld [vmem:[%s8204_s9 + $0x20] ss:$12 sps:$4 sm:$0xff]  }
0x1be3   : > { %v4007_v19 = vpop.permute.xlu0 %4006  ;;  %v4140_v59 = vld [vmem:[#allocation8 + $0x160] sm:$0xff] }
0x1be4   : > { %4016 = vst.msk [vmem:[#allocation8 + $0xa0] sm:$0xff] %vm1781_vm12, %v4007_v19 }
0x1be5   : > { %v4009_v27 = vpop.permute.xlu1 %4008  ;;  %5867 = vmatpush3.bf16.msra.mxu1 %v4156_v36  ;;  %v4141_v15 = vld [vmem:[#allocation8 + $0x170] sm:$0xff] }
0x1be6   : > { %4017 = vst.msk [vmem:[#allocation8 + $0xb0] sm:$0xff] %vm1781_vm12, %v4009_v27  ;;  %v4165_v38 = vpack.c.bf16 %v4141_v15, %v4140_v59 }
0x1be7   : > { %v4091_v42 = vpop.permute.xlu0 %4090  ;;  %v4144_v53 = vld [vmem:[#allocation8 + $0x1a0] sm:$0xff] }
0x1be8   : > { %4100 = vst.msk [vmem:[#allocation8 + $0x1e0] sm:$0xff] %vm1781_vm12, %v4091_v42  ;;  %5868 = vmatprep.subr.bf16.mxu1 %v4165_v38 }
0x1be9   : > { %v4093_v26 = vpop.permute.xlu1 %4092  ;;  %5869 = vmatpush3.bf16.msra.mxu1 %v4157_v44  ;;  %v4145_v6 = vld [vmem:[#allocation8 + $0x1b0] sm:$0xff] }
0x1bea   : > { %4101 = vst.msk [vmem:[#allocation8 + $0x1f0] sm:$0xff] %vm1781_vm12, %v4093_v26  ;;  %5870 = vmatprep.subr.bf16.mxu1 %v4166_v48  ;;  %v4167_v55 = vpack.c.bf16 %v4145_v6, %v4144_v53 }
0x1beb   : > { %v4027_v63 = vpop.permute.xlu0 %4026  ;;  %v4128_v60 = vld [vmem:[#allocation8 + $0xa0] sm:$0xff] }
0x1bec   : > { %4036 = vst.msk [vmem:[#allocation8 + $0xe0] sm:$0xff] %vm1781_vm12, %v4027_v63 }
0x1bed   : > { %v4029_v57 = vpop.permute.xlu1 %4028  ;;  %5871 = vmatpush3.bf16.msra.mxu1 %v4158_v3  ;;  %v4129_v1 = vld [vmem:[#allocation8 + $0xb0] sm:$0xff] }
0x1bee   : > { %4037 = vst.msk [vmem:[#allocation8 + $0xf0] sm:$0xff] %vm1781_vm12, %v4029_v57  ;;  %5872 = vmatprep.subr.bf16.mxu1 %v4167_v55  ;;  %v4159_v41 = vpack.c.bf16 %v4129_v1, %v4128_v60 }
0x1bef   : > { %v4103_v62 = vpop.permute.xlu0 %4102  ;;  %v4148_v9 = vld [vmem:[#allocation8 + $0x1e0] sm:$0xff] }
0x1bf0   : > { %4114 = vst.msk [vmem:[#allocation8 + $0x200] sm:$0xff] %vm1781_vm12, %v4103_v62 }
0x1bf1   : > { %v4105_v5 = vpop.permute.xlu1 %4104  ;;  %5873 = vmatpush3.bf16.msra.mxu1 %v4159_v41  ;;  %v4149_v16 = vld [vmem:[#allocation8 + $0x1f0] sm:$0xff] }
0x1bf2   : > { %4115 = vst.msk [vmem:[#allocation8 + $0x210] sm:$0xff] %vm1781_vm12, %v4105_v5  ;;  %5874 = vmatprep.subr.bf16.mxu1 %v4168_v39  ;;  %v4169_v21 = vpack.c.bf16 %v4149_v16, %v4148_v9 }
0x1bf3   : > { %v4107_v18 = vpop.permute.xlu0 %4106  ;;  %v4132_v10 = vld [vmem:[#allocation8 + $0xe0] sm:$0xff] }
0x1bf4   : > { %4116 = vst.msk [vmem:[#allocation8 + $0x220] sm:$0xff] %vm1781_vm12, %v4107_v18 }
0x1bf5   : > { %v4109_v8 = vpop.permute.xlu1 %4108  ;;  %5875 = vmatpush3.bf16.msra.mxu1 %v4160_v22  ;;  %v4133_v28 = vld [vmem:[#allocation8 + $0xf0] sm:$0xff] }
0x1bf6   : > { %4117 = vst.msk [vmem:[#allocation8 + $0x230] sm:$0xff] %vm1781_vm12, %v4109_v8  ;;  %5876 = vmatprep.subr.bf16.mxu1 %v4169_v21  ;;  %v4161_v24 = vpack.c.bf16 %v4133_v28, %v4132_v10 }
0x1bf7   : > { %v4150_v20 = vld [vmem:[#allocation8 + $0x200] sm:$0xff] }
0x1bf9   : > { %5877 = vmatpush3.bf16.msra.mxu1 %v4161_v24  ;;  %v4151_v11 = vld [vmem:[#allocation8 + $0x210] sm:$0xff] }
0x1bfa   : > { %v4170_v31 = vpack.c.bf16 %v4151_v11, %v4150_v20  ;;  %5997 = vmatprep.subr.bf16.mxu1 %v6274_v0  ;;  %v4371_v20 = vld [vmem:[%s8212_s17 + $0x8] sm:$0xff] }
0x1bfb   : > { %v4152_v32 = vld [vmem:[#allocation8 + $0x220] sm:$0xff] }
0x1bfc   : > { %4249 = vmatmul.mubr.bf16.vlgmr.msra.gmra.mrb[44].mxu1 %v6162_v56  ;;  %5979 = vmatprep.subr.bf16.mxu0 %v4170_v31  ;;  %v4370_v56 = vld [vmem:[%s8212_s17] sm:$0xff] }
0x1bfd   : > { %5980 = vmatpush3.bf16.msra.mxu0 %v4170_v31  ;;  %v4153_v33 = vld [vmem:[#allocation8 + $0x230] sm:$0xff]  ;;  %4256 = vmatprep.mubr.bf16.mxu1 %v6165_v47  ;;  %v6053_v11 = vpack.c.bf16 %v4371_v20, %v4370_v56 }
0x1bfe   : > { %v4171_v4 = vpack.c.bf16 %v4153_v33, %v4152_v32 }
0x1c00   : > { %5981 = vmatprep.subr.bf16.mxu0 %v4171_v4 }
0x1c01   : > { %5982 = vmatpush3.bf16.msra.mxu0 %v4171_v4 }
0x1c02   : > { %6054 = vmatprep.subr.bf16.mxu0 %v6053_v11 }
0x1c04   : > { %4257 = vmatmul.mubr.bf16.gmra.mrb[48].mxu1 %v6168_v34  ;;  %5984 = vmatmul.mubr.msk.bf16.vlgmr.msra.gmra.mrb[32].mxu0 %vm2497_vm6, %v6169_v43 }
0x1c05   : > { %6056 = vmatpush3.bf16.msra.mxu0 %v6053_v11 }
0x1ccf   : > { %v5878_v50 = vpop.f32.mrb[44].mxu1 }
0x1cd0   : > { %v5879_v35 = vpop.f32.mrb[45].mxu1 }
0x1cd1   : > { %v5880_v17 = vadd.f32 %v5879_v35, %v5878_v50  ;;  %v5881_v19 = vpop.f32.mrb[46].mxu1 }
0x1cd2   : > { %v5882_v36 = vpop.f32.mrb[47].mxu1 }
0x1cd3   : > { %v5883_v23 = vadd.f32 %v5882_v36, %v5881_v19 }
0x1cd7   : > { %v5884_v27 = vpop.f32.mrb[48].mxu1  ;;  %v5985_v59 = vpop.f32.mrb[32].mxu0 }
0x1cd8   : > { %v5885_v15 = vpop.f32.mrb[49].mxu1  ;;  %v4299_v61 = vpop.f32.mrb[33].mxu0 }
0x1cd9   : > { %v5886_v38 = vadd.f32 %v5885_v15, %v5884_v27  ;;  %v4300_v40 = vadd.f32 %v5880_v17, %v4299_v61  ;;  %v5887_v42 = vpop.f32.mrb[50].mxu1  ;;  %v5986_v44 = vpop.f32.mrb[34].mxu0 }
0x1cda   : > { %v5888_v29 = vpop.f32.mrb[51].mxu1  ;;  %v4302_v48 = vpop.f32.mrb[35].mxu0 }
0x1cdb   : > { %v4308_v58 = vadd.f32 %v5985_v59, %v5886_v38  ;;  %v5889_v26 = vadd.f32 %v5888_v29, %v5887_v42  ;;  %v4303_v6 = vadd.f32 %v5883_v23, %v4302_v48  ;;  %v4314_v49 = vsel %vm1781_vm12, %v4300_v40, 0.0 }
0x1cdc   : > { %4315 = vadd.xlane.f32.xlu0 %v4314_v49 }
0x1cdd   : > { %v4311_v63 = vadd.f32 %v5986_v44, %v5889_v26  ;;  %v4317_v3 = vsel %vm1781_vm12, %v4303_v6, 0.0  ;;  %v4320_v53 = vsel %vm1781_vm12, %v4308_v58, 0.0 }
0x1cde   : > { %4318 = vadd.xlane.f32.xlu1 %v4317_v3 }
0x1cdf   : > { %v4323_v55 = vsel %vm1781_vm12, %v4311_v63, 0.0 }
0x1ce0   : > { %4321 = vadd.xlane.f32.xlu0 %v4320_v53 }
0x1ce4   : > { %4324 = vadd.xlane.f32.xlu0 %v4323_v55 }
0x1d69   : > { %v4316_v57 = vpop.xlane.xlu0 %4315 }
0x1d6a   : > { %v4326_v60 = vmul.f32 0.0625, %v4316_v57 }
0x1d6b   : > { %v4319_v1 = vpop.xlane.xlu1 %4318 }
0x1d6c   : > { %v4330_v7 = vsub.f32 %v4300_v40, %v4326_v60  ;;  %v4327_v41 = vmul.f32 0.0625, %v4319_v1 }
0x1d6d   : > { %v4322_v62 = vpop.xlane.xlu0 %4321 }
0x1d6e   : > { %v4331_v2 = vsub.f32 %v4303_v6, %v4327_v41  ;;  %v4328_v39 = vmul.f32 0.0625, %v4322_v62  ;;  %v4334_v46 = vmul.f32 %v4330_v7, %v4330_v7 }
0x1d70   : > { %v4332_v5 = vsub.f32 %v4308_v58, %v4328_v39  ;;  %v4338_v16 = vsel %vm1781_vm12, %v4334_v46, 0.0  ;;  %v4335_v54 = vmul.f32 %v4331_v2, %v4331_v2 }
0x1d71   : > { %4339 = vadd.xlane.f32.xlu1 %v4338_v16  ;;  %v4325_v18 = vpop.xlane.xlu0 %4324 }
0x1d72   : > { %v4329_v22 = vmul.f32 0.0625, %v4325_v18  ;;  %v4341_v9 = vsel %vm1781_vm12, %v4335_v54, 0.0  ;;  %v4336_v21 = vmul.f32 %v4332_v5, %v4332_v5  ;;  %v6172_v18 = vld [vmem:[%s8205_s10 + $0x4] ss:$12 sps:$4 sm:$0xff]  }
0x1d73   : > { %4342 = vadd.xlane.f32.xlu0 %v4341_v9 }
0x1d74   : > { %v4333_v8 = vsub.f32 %v4311_v63, %v4329_v22  ;;  %v4344_v10 = vsel %vm1781_vm12, %v4336_v21, 0.0 }
0x1d75   : > { %4345 = vadd.xlane.f32.xlu1 %v4344_v10 }
0x1d76   : > { %v4337_v28 = vmul.f32 %v4333_v8, %v4333_v8 }
0x1d78   : > { %v4347_v24 = vsel %vm1781_vm12, %v4337_v28, 0.0 }
0x1d79   : > { %4348 = vadd.xlane.f32.xlu0 %v4347_v24 }
0x1dfe   : > { %v4340_v47 = vpop.xlane.xlu1 %4339 }
0x1dff   : > { %v4350_v31 = vmul.f32 0.0625, %v4340_v47 }
0x1e00   : > { %v4343_v32 = vpop.xlane.xlu0 %4342 }
0x1e01   : > { %v4354_v33 = vadd.f32 1e-05, %v4350_v31  ;;  %v4351_v4 = vmul.f32 0.0625, %v4343_v32 }
0x1e02   : > { %v4346_v34 = vpop.xlane.xlu1 %4345 }
0x1e03   : > { %6224 = vrsqrt.f32 %v4354_v33  ;;  %v4355_v43 = vadd.f32 1e-05, %v4351_v4  ;;  %v4352_v50 = vmul.f32 0.0625, %v4346_v34 }
0x1e05   : > { %6226 = vrsqrt.f32 %v4355_v43  ;;  %v4356_v35 = vadd.f32 1e-05, %v4352_v50 }
0x1e06   : > { %v4349_v17 = vpop.xlane.xlu0 %4348 }
0x1e07   : > { %6228 = vrsqrt.f32 %v4356_v35  ;;  %v4353_v19 = vmul.f32 0.0625, %v4349_v17 }
0x1e09   : > { %v4357_v36 = vadd.f32 1e-05, %v4353_v19 }
0x1e0b   : > { %6230 = vrsqrt.f32 %v4357_v36 }
0x1e0d   : > { %v6225_v23 = vpop.eup %6224 }
0x1e0e   : > { %v4362_v27 = vmul.f32 %v6225_v23, %v4330_v7 }
0x1e0f   : > { %v6227_v59 = vpop.eup %6226 }
0x1e10   : > { %v4366_v15 = vmax.f32 %v4362_v27, 0.0  ;;  %v4363_v61 = vmul.f32 %v6227_v59, %v4331_v2 }
0x1e11   : > { %v6229_v38 = vpop.eup %6228 }
0x1e12   : > { %5991 = vmatprep.mubr.msk.f32.mxu0 %vm1781_vm12, %v4366_v15  ;;  %v4367_v40 = vmax.f32 %v4363_v61, 0.0  ;;  %v4364_v42 = vmul.f32 %v6229_v38, %v4332_v5 }
0x1e14   : > { %5992 = vmatmul.mubr.msk.f32.vlgmr.msra.gmra.mrb[36].mxu0 %vm1781_vm12, %v4367_v40  ;;  %v4368_v44 = vmax.f32 %v4364_v42, 0.0 }
0x1e15   : > { %v6231_v29 = vpop.eup %6230 }
0x1e16   : > { %5994 = vmatprep.mubr.msk.f32.mxu0 %vm1781_vm12, %v4368_v44  ;;  %v4365_v48 = vmul.f32 %v6231_v29, %v4333_v8 }
0x1e18   : > { %v4369_v58 = vmax.f32 %v4365_v48, 0.0 }
0x1e1a   : > { %5995 = vmatmul.mubr.msk.f32.gmra.mrb[38].mxu0 %vm1781_vm12, %v4369_v58 }
0x1e1b   : > { %4753 = vmatprep.mubr.bf16.mxu0 %v6172_v18 }
0x1ee7   : > { %v5993_v26 = vpop.f32.mrb[36].mxu0 }
0x1ee8   : > { %4475 = vrot.lane.b32.xlu0 %v5993_v26, %s8369_s28  ;;  %v4450_v6 = vpop.f32.mrb[37].mxu0 }
0x1ee9   : > { %4473 = vrot.lane.b32.xlu1 %v4450_v6, %s8369_s28 }
0x1eed   : > { %v5996_v49 = vpop.f32.mrb[38].mxu0 }
0x1eee   : > { %v4460_v63 = vpop.f32.mrb[39].mxu0 }
0x1eef   : > { %4477 = vrot.lane.b32.xlu1 %v4460_v63, %s8369_s28 }
0x1ef3   : > { %4479 = vrot.lane.b32.xlu1 %v5996_v49, %s8369_s28  ;;  %s8407_s28 = smov 17  }
0x1f5a   : > { %v4476_v3 = vpop.permute.xlu0 %4475 }
0x1f5b   : > { %4486 = vst.msk [vmem:[#allocation6 + $0x8] sm:$0xff] %vm1642_vm1, %v4476_v3  ;;  %v4474_v53 = vpop.permute.xlu1 %4473 }
0x1f5c   : > { %4485 = vst.msk [vmem:[#allocation6] sm:$0xff] %vm1642_vm1, %v4474_v53 }
0x1f61   : > { %v4478_v55 = vpop.permute.xlu1 %4477 }
0x1f62   : > { %4487 = vst.msk [vmem:[#allocation6 + $0x10] sm:$0xff] %vm1642_vm1, %v4478_v55  ;;  %v4490_v57 = vld [vmem:[#allocation6 + $0x8] sm:$0xff] }
0x1f63   : > { %4567 = vrot.lane.b32.xlu1 %v4490_v57, %s8361_s1  ;;  %v4489_v60 = vld [vmem:[#allocation6] sm:$0xff]  ;;  %v4494_v1 = vsel %vm6959_vm2, %v4490_v57, 0.0  ;;  %v4498_v46 = vsel %vm6955_vm9, %v4490_v57, 0.0 }
0x1f64   : > { %4565 = vrot.lane.b32.xlu0 %v4489_v60, %s8361_s1  ;;  %4502 = vst.msk [vmem:[#allocation8 + $0x10] sm:$0xff] %vm8315_vm0, %v4494_v1  ;;  %v4493_v7 = vsel %vm6959_vm2, %v4489_v60, 0.0  ;;  %v4497_v16 = vsel %vm6955_vm9, %v4489_v60, 0.0 }
0x1f65   : > { %v4480_v41 = vpop.permute.xlu1 %4479  ;;  %4501 = vst.msk [vmem:[#allocation8] sm:$0xff] %vm8370_vm8, %v4493_v7  ;;  %vm8377_vm8 = vmmov %vm8315_vm0 }
0x1f66   : > { %4488 = vst.msk [vmem:[#allocation6 + $0x18] sm:$0xff] %vm1642_vm1, %v4480_v41  ;;  %vm8372_vm1 = vmmov %vm8315_vm0 }
0x1f67   : > { %4511 = vrot.lane.b32.xlu1 %v4490_v57, %s8314_s2 }
0x1f68   : > { %4509 = vrot.lane.b32.xlu0 %v4489_v60, %s8314_s2 }
0x1f69   : > { %v4491_v62 = vld [vmem:[#allocation6 + $0x10] sm:$0xff] }
0x1f6a   : > { %v4495_v2 = vsel %vm6959_vm2, %v4491_v62, 0.0  ;;  %v4499_v54 = vsel %vm6955_vm9, %v4491_v62, 0.0 }
0x1f6b   : > { %4615 = vrot.lane.b32.xlu1 %v4490_v57, %s8317_s13  ;;  %4503 = vst.msk [vmem:[#allocation8 + $0x20] sm:$0xff] %vm8371_vm10, %v4495_v2  ;;  %v4646_v24 = vld [vmem:[#allocation8 + $0x10] sm:$0xff]  ;;  %vm8378_vm10 = vmmov %vm8315_vm0 }
0x1f6c   : > { %4613 = vrot.lane.b32.xlu0 %v4489_v60, %s8317_s13  ;;  %v4645_v28 = vld [vmem:[#allocation8] sm:$0xff] }
0x1f6d   : > { %v4492_v39 = vld [vmem:[#allocation6 + $0x18] sm:$0xff]  ;;  %v4681_v47 = vpack.c.bf16 %v4646_v24, %v4645_v28 }
0x1f6e   : > { %v4496_v5 = vsel %vm6959_vm2, %v4492_v39, 0.0  ;;  %v4500_v30 = vsel %vm6955_vm9, %v4492_v39, 0.0  ;;  %vm6310_vm9 = vmmov 0   ;;  %vm8373_vm2 = vmmov %vm8315_vm0 }
0x1f6f   : > { %4583 = vrot.lane.b32.xlu1 %v4498_v46, %s8365_s26  ;;  %4504 = vst.msk [vmem:[#allocation8 + $0x30] sm:$0xff] %vm8372_vm1, %v4496_v5  ;;  %6001 = vmatprep.mubr.msk.bf16.mxu1 %vm6310_vm9, %v6274_v0  ;;  %vm8379_vm1 = vmmov %vm8315_vm0 }
0x1f70   : > { %4581 = vrot.lane.b32.xlu0 %v4497_v16, %s8365_s26  ;;  %vm8380_vm9 = vmmov %vm8315_vm0 }
0x1f72   : > { %v4647_v29 = vld [vmem:[#allocation8 + $0x20] sm:$0xff] }
0x1f73   : > { %4599 = vrot.lane.b32.xlu1 %v4494_v1, %s8316_s21 }
0x1f74   : > { %4597 = vrot.lane.b32.xlu0 %v4493_v7, %s8316_s21 }
0x1f76   : > { %v4648_v15 = vld [vmem:[#allocation8 + $0x30] sm:$0xff] }
0x1f77   : > { %4531 = vrot.lane.b32.xlu1 %v4498_v46, %s8288_s27  ;;  %v4682_v48 = vpack.c.bf16 %v4648_v15, %v4647_v29 }
0x1f78   : > { %4529 = vrot.lane.b32.xlu0 %v4497_v16, %s8288_s27 }
0x1f7b   : > { %4551 = vrot.lane.b32.xlu1 %v4494_v1, %s8362_s0 }
0x1f7c   : > { %4549 = vrot.lane.b32.xlu0 %v4493_v7, %s8362_s0 }
0x1f7f   : > { %4571 = vrot.lane.b32.xlu1 %v4492_v39, %s8361_s1 }
0x1f80   : > { %4569 = vrot.lane.b32.xlu0 %v4491_v62, %s8361_s1  ;;  %s8413_s1 = smov 95  }
0x1f83   : > { %4515 = vrot.lane.b32.xlu1 %v4492_v39, %s8314_s2 }
0x1f84   : > { %4513 = vrot.lane.b32.xlu0 %v4491_v62, %s8314_s2 }
0x1f87   : > { %4619 = vrot.lane.b32.xlu1 %v4492_v39, %s8317_s13 }
0x1f88   : > { %4617 = vrot.lane.b32.xlu0 %v4491_v62, %s8317_s13 }
0x1f8b   : > { %4587 = vrot.lane.b32.xlu1 %v4500_v30, %s8365_s26 }
0x1f8c   : > { %4585 = vrot.lane.b32.xlu0 %v4499_v54, %s8365_s26 }
0x1f8f   : > { %4603 = vrot.lane.b32.xlu1 %v4496_v5, %s8316_s21 }
0x1f90   : > { %4601 = vrot.lane.b32.xlu0 %v4495_v2, %s8316_s21 }
0x1f93   : > { %4535 = vrot.lane.b32.xlu1 %v4500_v30, %s8288_s27 }
0x1f94   : > { %4533 = vrot.lane.b32.xlu0 %v4499_v54, %s8288_s27 }
0x1f97   : > { %4631 = vrot.lane.b32.xlu1 %v4498_v46, %s8289_s22 }
0x1f98   : > { %4629 = vrot.lane.b32.xlu0 %v4497_v16, %s8289_s22 }
0x1f9b   : > { %4555 = vrot.lane.b32.xlu1 %v4496_v5, %s8362_s0 }
0x1f9c   : > { %4553 = vrot.lane.b32.xlu0 %v4495_v2, %s8362_s0 }
0x1f9f   : > { %4635 = vrot.lane.b32.xlu1 %v4500_v30, %s8289_s22 }
0x1fa0   : > { %4633 = vrot.lane.b32.xlu0 %v4499_v54, %s8289_s22 }
0x1fd5   : > { %v4568_v12 = vpop.permute.xlu1 %4567 }
0x1fd6   : > { %4578 = vst.msk [vmem:[#allocation8 + $0x110] sm:$0xff] %vm8373_vm2, %v4568_v12  ;;  %v4566_v22 = vpop.permute.xlu0 %4565  ;;  %vm8381_vm2 = vmmov %vm8315_vm0 }
0x1fd7   : > { %4577 = vst.msk [vmem:[#allocation8 + $0x100] sm:$0xff] %vm8374_vm11, %v4566_v22  ;;  %vm8382_vm11 = vmmov %vm8315_vm0 }
0x1fd9   : > { %v4512_v9 = vpop.permute.xlu1 %4511 }
0x1fda   : > { %4522 = vst.msk [vmem:[#allocation8 + $0x50] sm:$0xff] %vm8375_vm7, %v4512_v9  ;;  %v4510_v21 = vpop.permute.xlu0 %4509  ;;  %vm8383_vm7 = vmmov %vm8315_vm0 }
0x1fdb   : > { %4521 = vst.msk [vmem:[#allocation8 + $0x40] sm:$0xff] %vm8376_vm5, %v4510_v21  ;;  %vm8384_vm5 = vmmov %vm8315_vm0 }
0x1fdd   : > { %v4616_v8 = vpop.permute.xlu1 %4615  ;;  %v4662_v10 = vld [vmem:[#allocation8 + $0x110] sm:$0xff] }
0x1fde   : > { %4626 = vst.msk [vmem:[#allocation8 + $0x1d0] sm:$0xff] %vm8315_vm0, %v4616_v8  ;;  %v4614_v56 = vpop.permute.xlu0 %4613  ;;  %v4661_v20 = vld [vmem:[#allocation8 + $0x100] sm:$0xff] }
0x1fdf   : > { %4625 = vst.msk [vmem:[#allocation8 + $0x1c0] sm:$0xff] %vm8377_vm8, %v4614_v56  ;;  %v4689_v11 = vpack.c.bf16 %v4662_v10, %v4661_v20  ;;  %vm8385_vm8 = vmmov %vm8315_vm0 }
0x1fe1   : > { %v4584_v31 = vpop.permute.xlu1 %4583  ;;  %5900 = vmatprep.subr.bf16.mxu0 %v4689_v11  ;;  %v4650_v49 = vld [vmem:[#allocation8 + $0x50] sm:$0xff] }
0x1fe2   : > { %4594 = vst.msk [vmem:[#allocation8 + $0x150] sm:$0xff] %vm8378_vm10, %v4584_v31  ;;  %5901 = vmatpush3.bf16.msra.mxu0 %v4681_v47  ;;  %v4582_v32 = vpop.permute.xlu0 %4581  ;;  %vm8386_vm10 = vmmov %vm8315_vm0  ;;  %v4649_v6 = vld [vmem:[#allocation8 + $0x40] sm:$0xff] }
0x1fe3   : > { %4593 = vst.msk [vmem:[#allocation8 + $0x140] sm:$0xff] %vm8379_vm1, %v4582_v32  ;;  %vm8387_vm1 = vmmov %vm8315_vm0  ;;  %v4683_v3 = vpack.c.bf16 %v4650_v49, %v4649_v6 }
0x1fe5   : > { %v4600_v33 = vpop.permute.xlu1 %4599  ;;  %v4674_v11 = vld [vmem:[#allocation8 + $0x1d0] sm:$0xff] }
0x1fe6   : > { %4610 = vst.msk [vmem:[#allocation8 + $0x190] sm:$0xff] %vm8380_vm9, %v4600_v33  ;;  %v4598_v4 = vpop.permute.xlu0 %4597  ;;  %vm8388_vm9 = vmmov %vm8315_vm0  ;;  %v4673_v20 = vld [vmem:[#allocation8 + $0x1c0] sm:$0xff] }
0x1fe7   : > { %4609 = vst.msk [vmem:[#allocation8 + $0x180] sm:$0xff] %vm8381_vm2, %v4598_v4  ;;  %vm8389_vm2 = vmmov %vm8315_vm0  ;;  %v4695_v32 = vpack.c.bf16 %v4674_v11, %v4673_v20  ;;  %v4835_v20 = vld [vmem:[%s8213_s18 + $0x20] sm:$0xff]  ;;  %v4837_v11 = vld [vmem:[%s8213_s18 + $0x30] sm:$0xff] }
0x1fe9   : > { %v4532_v34 = vpop.permute.xlu1 %4531  ;;  %v4666_v42 = vld [vmem:[#allocation8 + $0x150] sm:$0xff] }
0x1fea   : > { %4542 = vst.msk [vmem:[#allocation8 + $0x90] sm:$0xff] %vm8382_vm11, %v4532_v34  ;;  %v4530_v43 = vpop.permute.xlu0 %4529  ;;  %v4665_v40 = vld [vmem:[#allocation8 + $0x140] sm:$0xff]  ;;  %vm8390_vm11 = vmmov %vm8315_vm0 }
0x1feb   : > { %4541 = vst.msk [vmem:[#allocation8 + $0x80] sm:$0xff] %vm8383_vm7, %v4530_v43  ;;  %v4691_v26 = vpack.c.bf16 %v4666_v42, %v4665_v40  ;;  %vm8391_vm7 = vmmov %vm8315_vm0 }
0x1fed   : > { %v4552_v50 = vpop.permute.xlu1 %4551  ;;  %v4670_v39 = vld [vmem:[#allocation8 + $0x190] sm:$0xff] }
0x1fee   : > { %4562 = vst.msk [vmem:[#allocation8 + $0xd0] sm:$0xff] %vm8384_vm5, %v4552_v50  ;;  %v4550_v35 = vpop.permute.xlu0 %4549  ;;  %vm8392_vm5 = vmmov %vm8315_vm0  ;;  %v4669_v2 = vld [vmem:[#allocation8 + $0x180] sm:$0xff] }
0x1fef   : > { %4561 = vst.msk [vmem:[#allocation8 + $0xc0] sm:$0xff] %vm8315_vm0, %v4550_v35  ;;  %v4693_v30 = vpack.c.bf16 %v4670_v39, %v4669_v2 }
0x1ff1   : > { %v4572_v17 = vpop.permute.xlu1 %4571  ;;  %v4654_v18 = vld [vmem:[#allocation8 + $0x90] sm:$0xff] }
0x1ff2   : > { %4580 = vst.msk [vmem:[#allocation8 + $0x130] sm:$0xff] %vm8385_vm8, %v4572_v17  ;;  %v4570_v19 = vpop.permute.xlu0 %4569  ;;  %vm8393_vm8 = vmmov %vm8315_vm0  ;;  %v4653_v54 = vld [vmem:[#allocation8 + $0x80] sm:$0xff] }
0x1ff3   : > { %4579 = vst.msk [vmem:[#allocation8 + $0x120] sm:$0xff] %vm8386_vm10, %v4570_v19  ;;  %vm8394_vm10 = vmmov %vm8315_vm0  ;;  %v4685_v21 = vpack.c.bf16 %v4654_v18, %v4653_v54 }
0x1ff5   : > { %v4516_v36 = vpop.permute.xlu1 %4515  ;;  %v4658_v34 = vld [vmem:[#allocation8 + $0xd0] sm:$0xff] }
0x1ff6   : > { %4524 = vst.msk [vmem:[#allocation8 + $0x70] sm:$0xff] %vm8387_vm1, %v4516_v36  ;;  %v4514_v23 = vpop.permute.xlu0 %4513  ;;  %vm8395_vm1 = vmmov %vm8315_vm0  ;;  %v4657_v4 = vld [vmem:[#allocation8 + $0xc0] sm:$0xff] }
0x1ff7   : > { %4523 = vst.msk [vmem:[#allocation8 + $0x60] sm:$0xff] %vm8388_vm9, %v4514_v23  ;;  %vm8396_vm9 = vmmov %vm8315_vm0  ;;  %v4687_v36 = vpack.c.bf16 %v4658_v34, %v4657_v4  ;;  %v4841_v34 = vld [vmem:[%s8213_s18 + $0x50] sm:$0xff] }
0x1ff9   : > { %v4620_v27 = vpop.permute.xlu1 %4619  ;;  %v4664_v59 = vld [vmem:[#allocation8 + $0x130] sm:$0xff] }
0x1ffa   : > { %4628 = vst.msk [vmem:[#allocation8 + $0x1f0] sm:$0xff] %vm8389_vm2, %v4620_v27  ;;  %v4618_v61 = vpop.permute.xlu0 %4617  ;;  %v4663_v38 = vld [vmem:[#allocation8 + $0x120] sm:$0xff]  ;;  %vm8397_vm2 = vmmov %vm8315_vm0 }
0x1ffb   : > { %4627 = vst.msk [vmem:[#allocation8 + $0x1e0] sm:$0xff] %vm8390_vm11, %v4618_v61  ;;  %v4690_v44 = vpack.c.bf16 %v4664_v59, %v4663_v38  ;;  %vm8398_vm11 = vmmov %vm8315_vm0  ;;  %v6170_v61 = vld [vmem:[%s8205_s10] ss:$12 sps:$4 sm:$0xff]  }
0x1ffd   : > { %v4588_v58 = vpop.permute.xlu1 %4587  ;;  %5902 = vmatprep.subr.bf16.mxu0 %v4690_v44  ;;  %v4652_v7 = vld [vmem:[#allocation8 + $0x70] sm:$0xff]  ;;  %v6173_v44 = vld [vmem:[%s8205_s10 + $0x8] ss:$12 sps:$4 sm:$0xff]  }
0x1ffe   : > { %4596 = vst.msk [vmem:[#allocation8 + $0x170] sm:$0xff] %vm8391_vm7, %v4588_v58  ;;  %5903 = vmatpush3.bf16.msra.mxu0 %v4682_v48  ;;  %v4586_v63 = vpop.permute.xlu0 %4585  ;;  %v4651_v1 = vld [vmem:[#allocation8 + $0x60] sm:$0xff]  ;;  %vm8399_vm7 = vmmov %vm8315_vm0 }
0x1fff   : > { %4595 = vst.msk [vmem:[#allocation8 + $0x160] sm:$0xff] %vm8392_vm5, %v4586_v63  ;;  %5904 = vmatprep.subr.bf16.mxu0 %v4691_v26  ;;  %v4684_v5 = vpack.c.bf16 %v4652_v7, %v4651_v1  ;;  %vm8400_vm5 = vmmov %vm8315_vm0 }
0x2001   : > { %v4604_v53 = vpop.permute.xlu1 %4603  ;;  %v4676_v17 = vld [vmem:[#allocation8 + $0x1f0] sm:$0xff] }
0x2002   : > { %4612 = vst.msk [vmem:[#allocation8 + $0x1b0] sm:$0xff] %vm8315_vm0, %v4604_v53  ;;  %5905 = vmatpush3.bf16.msra.mxu0 %v4683_v3  ;;  %v4602_v55 = vpop.permute.xlu0 %4601  ;;  %v4675_v35 = vld [vmem:[#allocation8 + $0x1e0] sm:$0xff] }
0x2003   : > { %4611 = vst.msk [vmem:[#allocation8 + $0x1a0] sm:$0xff] %vm8393_vm8, %v4602_v55  ;;  %v4696_v23 = vpack.c.bf16 %v4676_v17, %v4675_v35  ;;  %vm8401_vm8 = vmmov %vm8315_vm0 }
0x2005   : > { %v4536_v57 = vpop.permute.xlu1 %4535  ;;  %v4668_v60 = vld [vmem:[#allocation8 + $0x170] sm:$0xff] }
0x2006   : > { %4544 = vst.msk [vmem:[#allocation8 + $0xb0] sm:$0xff] %vm8394_vm10, %v4536_v57  ;;  %v4534_v41 = vpop.permute.xlu0 %4533  ;;  %v4667_v62 = vld [vmem:[#allocation8 + $0x160] sm:$0xff]  ;;  %vm8402_vm10 = vmmov %vm8315_vm0 }
0x2007   : > { %4543 = vst.msk [vmem:[#allocation8 + $0xa0] sm:$0xff] %vm8395_vm1, %v4534_v41  ;;  %v4692_v46 = vpack.c.bf16 %v4668_v60, %v4667_v62  ;;  %vm8404_vm1 = vmmov %vm8315_vm0 }
0x2009   : > { %v4632_v16 = vpop.permute.xlu1 %4631  ;;  %5906 = vmatprep.subr.bf16.mxu0 %v4692_v46  ;;  %v4672_v9 = vld [vmem:[#allocation8 + $0x1b0] sm:$0xff] }
0x200a   : > { %4642 = vst.msk [vmem:[#allocation8 + $0x210] sm:$0xff] %vm8396_vm9, %v4632_v16  ;;  %5907 = vmatpush3.bf16.msra.mxu0 %v4684_v5  ;;  %v4630_v12 = vpop.permute.xlu0 %4629  ;;  %v4671_v22 = vld [vmem:[#allocation8 + $0x1a0] sm:$0xff]  ;;  %vm8405_vm9 = vmmov %vm8315_vm0 }
0x200b   : > { %4641 = vst.msk [vmem:[#allocation8 + $0x200] sm:$0xff] %vm8397_vm2, %v4630_v12  ;;  %5908 = vmatprep.subr.bf16.mxu0 %v4693_v30  ;;  %v4694_v10 = vpack.c.bf16 %v4672_v9, %v4671_v22  ;;  %v4832_v12 = vld [vmem:[%s8213_s18 + $0x8] sm:$0xff]  ;;  %v4834_v22 = vld [vmem:[%s8213_s18 + $0x18] sm:$0xff]  ;;  %vm8406_vm2 = vmmov %vm8315_vm0 }
0x200c   : > { %v6057_v9 = vpack.c.bf16 %v4834_v22, %v4832_v12 }
0x200d   : > { %v4556_v8 = vpop.permute.xlu1 %4555  ;;  %v4656_v28 = vld [vmem:[#allocation8 + $0xb0] sm:$0xff] }
0x200e   : > { %4564 = vst.msk [vmem:[#allocation8 + $0xf0] sm:$0xff] %vm8398_vm11, %v4556_v8  ;;  %5909 = vmatpush3.bf16.msra.mxu0 %v4685_v21  ;;  %v4554_v24 = vpop.permute.xlu0 %4553  ;;  %v4655_v56 = vld [vmem:[#allocation8 + $0xa0] sm:$0xff]  ;;  %v4831_v21 = vld [vmem:[%s8213_s18] sm:$0xff]  ;;  %vm8408_vm11 = vcmask 1047688  }
0x200f   : > { %4563 = vst.msk [vmem:[#allocation8 + $0xe0] sm:$0xff] %vm8399_vm7, %v4554_v24  ;;  %5910 = vmatprep.subr.bf16.mxu0 %v4694_v10  ;;  %v4686_v47 = vpack.c.bf16 %v4656_v28, %v4655_v56  ;;  %v4833_v8 = vld [vmem:[%s8213_s18 + $0x10] sm:$0xff]  ;;  %v4836_v28 = vld [vmem:[%s8213_s18 + $0x28] sm:$0xff]  ;;  %v4838_v24 = vld [vmem:[%s8213_s18 + $0x38] sm:$0xff] }
0x2010   : > { %v6059_v10 = vpack.c.bf16 %v4833_v8, %v4831_v21  ;;  %v6061_v56 = vpack.c.bf16 %v4838_v24, %v4836_v28  ;;  %vm8409_vm7 = vmmov %vm8408_vm11  ;;  %v8046_v28 = vld [vmem:[%s8206_s11] sm:$0xff] }
0x2011   : > { %v4636_v31 = vpop.permute.xlu1 %4635  ;;  %v4678_v33 = vld [vmem:[#allocation8 + $0x210] sm:$0xff]  ;;  %v5676_v24 = vcombine.high %v8046_v28, %v8046_v28 }
0x2012   : > { %4644 = vst.msk [vmem:[#allocation8 + $0x230] sm:$0xff] %vm8400_vm5, %v4636_v31  ;;  %5911 = vmatpush3.bf16.msra.mxu0 %v4686_v47  ;;  %v4634_v43 = vpop.permute.xlu0 %4633  ;;  %v4677_v50 = vld [vmem:[#allocation8 + $0x200] sm:$0xff]  ;;  %v6063_v47 = vpack.c.bf16 %v4837_v11, %v4835_v20  ;;  %v4840_v31 = vld [vmem:[%s8213_s18 + $0x48] sm:$0xff]  ;;  %vm8410_vm5 = vcmp.lt.s32.totalorder %v6770_v45, 15 }
0x2013   : > { %4643 = vst.msk [vmem:[#allocation8 + $0x220] sm:$0xff] %vm8315_vm0, %v4634_v43  ;;  %5912 = vmatprep.subr.bf16.mxu0 %v4695_v32  ;;  %v4697_v19 = vpack.c.bf16 %v4678_v33, %v4677_v50  ;;  %v4842_v32 = vld [vmem:[%s8213_s18 + $0x58] sm:$0xff]  ;;  %v4839_v33 = vld [vmem:[%s8213_s18 + $0x40] sm:$0xff]  ;;  %v4844_v43 = vld [vmem:[%s8213_s18 + $0x68] sm:$0xff] }
0x2014   : > { %v6065_v4 = vpack.c.bf16 %v4842_v32, %v4840_v31  ;;  %v4846_v50 = vld [vmem:[%s8213_s18 + $0x78] sm:$0xff]  ;;  %v6067_v35 = vpack.c.bf16 %v4841_v34, %v4839_v33 }
0x2015   : > { %5998 = vmatpush3.bf16.msra.mxu1 %v4697_v19  ;;  %v4660_v27 = vld [vmem:[#allocation8 + $0xf0] sm:$0xff]  ;;  %v6069_v17 = vpack.c.bf16 %v4846_v50, %v4844_v43 }
0x2016   : > { %5913 = vmatpush3.bf16.msra.mxu0 %v4687_v36  ;;  %v4659_v59 = vld [vmem:[#allocation8 + $0xe0] sm:$0xff]  ;;  %5999 = vmatprep.subr.bf16.mxu1 %v6274_v0  ;;  %v4843_v19 = vld [vmem:[%s8213_s18 + $0x60] sm:$0xff] }
0x2017   : > { %5914 = vmatprep.subr.bf16.mxu0 %v4696_v23  ;;  %v4688_v15 = vpack.c.bf16 %v4660_v27, %v4659_v59  ;;  %v4845_v36 = vld [vmem:[%s8213_s18 + $0x70] sm:$0xff] }
0x2018   : > { %v6071_v23 = vpack.c.bf16 %v4845_v36, %v4843_v19 }
0x2019   : > { %v4680_v38 = vld [vmem:[#allocation8 + $0x230] sm:$0xff] }
0x201a   : > { %5915 = vmatpush3.bf16.msra.mxu0 %v4688_v15  ;;  %v4679_v40 = vld [vmem:[#allocation8 + $0x220] sm:$0xff] }
0x201b   : > { %v4698_v42 = vpack.c.bf16 %v4680_v38, %v4679_v40 }
0x201d   : > { %4754 = vmatmul.mubr.bf16.vlgmr.msra.gmra.mrb[40].mxu0 %v6170_v61  ;;  %6000 = vmatpush3.bf16.msra.mxu1 %v4698_v42 }
0x201e   : > { %6058 = vmatprep.subr.bf16.mxu1 %v6057_v9  ;;  %5677 = vmatprep.mubr.msk.bf16.mxu0 %vm1781_vm12, %v5676_v24  ;;  %vm8421_vm12 = vcmask 777216  }
0x2020   : > { %6002 = vmatmul.mubr.msk.bf16.vlgmr.msra.gmra.mrb[52].mxu1 %vm2497_vm6, %v6173_v44  ;;  %vm8403_vm6 = vmmov %vm8315_vm0 }
0x2021   : > { %4917 = vmatprep.mubr.f32.mxu1 %v6274_v0  ;;  %6060 = vmatpush1.bf16.msra.mxu1 %v6059_v10  ;;  %vm8411_vm0 = vmmov %vm8410_vm5 }
0x2022   : > { %6062 = vmatprep.subr.bf16.mxu1 %v6061_v56 }
0x2025   : > { %6064 = vmatpush1.bf16.msra.mxu1 %v6063_v47 }
0x2026   : > { %6066 = vmatprep.subr.bf16.mxu1 %v6065_v4 }
0x2029   : > { %6068 = vmatpush1.bf16.msra.mxu1 %v6067_v35 }
0x202a   : > { %6070 = vmatprep.subr.bf16.mxu1 %v6069_v17 }
0x202d   : > { %6072 = vmatpush1.bf16.msra.mxu1 %v6071_v23 }
0x20f0   : > { %v5916_v29 = vpop.f32.mrb[40].mxu0 }
0x20f1   : > { %v5917_v48 = vpop.f32.mrb[41].mxu0 }
0x20f2   : > { %v5918_v58 = vadd.f32 %v5917_v48, %v5916_v29  ;;  %v5919_v26 = vpop.f32.mrb[42].mxu0 }
0x20f3   : > { %v5920_v6 = vpop.f32.mrb[43].mxu0  ;;  %v4796_v49 = vpop.f32.mrb[52].mxu1 }
0x20f4   : > { %v5921_v63 = vadd.f32 %v5920_v6, %v5919_v26  ;;  %v4797_v3 = vadd.f32 %v5918_v58, %v4796_v49  ;;  %v6003_v53 = vpop.f32.mrb[53].mxu1 }
0x20f5   : > { %v4799_v55 = vpop.f32.mrb[54].mxu1 }
0x20f6   : > { %v4800_v57 = vadd.f32 %v5921_v63, %v4799_v55  ;;  %v4803_v60 = vsel %vm8401_vm8, %v4797_v3, 0.0  ;;  %v6004_v1 = vpop.f32.mrb[55].mxu1  ;;  %vm8412_vm8 = vmmov %vm8411_vm0 }
0x20f7   : > { %4804 = vadd.xlane.f32.xlu0 %v4803_v60 }
0x20f8   : > { %v4806_v7 = vsel %vm8402_vm10, %v4800_v57, 0.0  ;;  %vm6254_vm10 = vmpackc.low %vm8412_vm8, %vm8412_vm8 }
0x20f9   : > { %4807 = vadd.xlane.f32.xlu1 %v4806_v7 }
0x2184   : > { %v4805_v41 = vpop.xlane.xlu0 %4804 }
0x2185   : > { %v4809_v62 = vmul.f32 0.015625, %v4805_v41 }
0x2186   : > { %v4808_v2 = vpop.xlane.xlu1 %4807 }
0x2187   : > { %v4811_v39 = vsub.f32 %v4797_v3, %v4809_v62  ;;  %v4810_v46 = vmul.f32 0.015625, %v4808_v2 }
0x2189   : > { %v4812_v5 = vsub.f32 %v4800_v57, %v4810_v46  ;;  %v4813_v16 = vmul.f32 %v4811_v39, %v4811_v39 }
0x218b   : > { %v4815_v30 = vsel %vm8403_vm6, %v4813_v16, 0.0  ;;  %v4814_v54 = vmul.f32 %v4812_v5, %v4812_v5  ;;  %vm6257_vm6 = vmpackc.low %vm6734_vm3, %vm6734_vm3 }
0x218c   : > { %4816 = vadd.xlane.f32.xlu0 %v4815_v30 }
0x218d   : > { %v4818_v18 = vsel %vm8404_vm1, %v4814_v54, 0.0  ;;  %vm8414_vm1 = vcmp.ge.s32.totalorder %v6768_v52, 1 }
0x2190   : > { %4819 = vadd.xlane.f32.xlu0 %v4818_v18 }
0x2219   : > { %v4817_v27 = vpop.xlane.xlu0 %4816 }
0x221a   : > { %v4821_v59 = vmul.f32 0.015625, %v4817_v27 }
0x221c   : > { %v4823_v15 = vadd.f32 1e-05, %v4821_v59 }
0x221d   : > { %v4820_v61 = vpop.xlane.xlu0 %4819 }
0x221e   : > { %6232 = vrsqrt.f32 %v4823_v15  ;;  %v4822_v38 = vmul.f32 0.015625, %v4820_v61 }
0x2220   : > { %v4824_v40 = vadd.f32 1e-05, %v4822_v38 }
0x2222   : > { %6234 = vrsqrt.f32 %v4824_v40 }
0x2228   : > { %v6233_v42 = vpop.eup %6232 }
0x2229   : > { %v4827_v44 = vmul.f32 %v6233_v42, %v4811_v39 }
0x222b   : > { %v4829_v29 = vmax.f32 %v4827_v44, 0.0 }
0x222c   : > { %v6235_v48 = vpop.eup %6234 }
0x222d   : > { %5673 = vmatmul.mubr.msk.f32.vlgmr.msra.gmra.mrb[56].mxu1 %vm8405_vm9, %v4829_v29  ;;  %v4828_v58 = vmul.f32 %v6235_v48, %v4812_v5  ;;  %vm8415_vm9 = vcmp.lt.s32.totalorder %v6768_v52, 15 }
0x222e   : > { %4923 = vmatprep.mubr.f32.mxu1 %v6274_v0 }
0x222f   : > { %v4830_v26 = vmax.f32 %v4828_v58, 0.0 }
0x2231   : > { %5674 = vmatmul.mubr.msk.f32.gmra.mrb[58].mxu1 %vm8406_vm2, %v4830_v26  ;;  %vm8417_vm2 = vcmp.ge.s32.totalorder %v6770_v45, 1 }
0x2232   : > { %5517 = vmatprep.mubr.bf16.mxu1 %v6299_v51 }
0x2300   : > { %v4919_v6 = vpop.f32.mrb[56].mxu1 }
0x2301   : > { %4934 = vrot.lane.b32.xlu1 %v4919_v6, %s8407_s28  ;;  %v4921_v49 = vpop.f32.mrb[57].mxu1 }
0x2302   : > { %4936 = vrot.lane.b32.xlu0 %v4921_v49, %s8407_s28 }
0x2304   : > { %v4925_v63 = vpop.f32.mrb[58].mxu1 }
0x2305   : > { %4938 = vrot.lane.b32.xlu1 %v4925_v63, %s8407_s28  ;;  %v4927_v3 = vpop.f32.mrb[59].mxu1 }
0x2309   : > { %4940 = vrot.lane.b32.xlu1 %v4927_v3, %s8407_s28 }
0x2373   : > { %v4935_v53 = vpop.permute.xlu1 %4934 }
0x2374   : > { %4950 = vst.msk [vmem:[#allocation7] sm:$0xff] %vm8408_vm11, %v4935_v53  ;;  %v4937_v0 = vpop.permute.xlu0 %4936  ;;  %vm8418_vm11 = vmmov %vm8417_vm2 }
0x2375   : > { %v4942_v55 = vsel %vm608_vm14, %v4935_v53, %v4937_v0  ;;  %4952 = vst.msk [vmem:[#allocation7 + $0x10] sm:$0xff] %vm608_vm14, %v4937_v0 }
0x2376   : > { %v4963_v41 = vsel %vm8410_vm5, %v4942_v55, 0.0  ;;  %v4969_v12 = vsel %vm8417_vm2, %v4942_v55, 0.0  ;;  %vm8420_vm5 = vmmov %vm8415_vm9 }
0x2377   : > { %v4939_v51 = vpop.permute.xlu1 %4938 }
0x2378   : > { %4953 = vst.msk [vmem:[#allocation7 + $0x18] sm:$0xff] %vm8409_vm7, %v4939_v51  ;;  %vm8419_vm7 = vmmov %vm8414_vm1 }
0x237b   : > { %v4941_v57 = vpop.permute.xlu1 %4940  ;;  %v4956_v60 = vld [vmem:[#allocation7] sm:$0xff] }
0x237c   : > { %v4943_v1 = vsel %vm608_vm14, %v4939_v51, %v4941_v57  ;;  %4955 = vst.msk [vmem:[#allocation7 + $0x28] sm:$0xff] %vm608_vm14, %v4941_v57  ;;  %4984 = vrot.lane.b32.xlu0 %v4956_v60, %s8314_s2  ;;  %v4958_v7 = vld [vmem:[#allocation7 + $0x10] sm:$0xff]  ;;  %v4962_v46 = vsel %vm6734_vm3, %v4956_v60, 0.0  ;;  %v4968_v16 = vsel %vm6750_vm15, %v4956_v60, 0.0 }
0x237d   : > { %4988 = vrot.lane.b32.xlu1 %v4958_v7, %s8314_s2  ;;  %v4966_v62 = vsel %vm8411_vm0, %v4943_v1, 0.0  ;;  %v6255_v5 = vpack.c.bf16 %v4943_v1, %v4942_v55  ;;  %v4970_v54 = vsel %vm8414_vm1, %v4958_v7, 0.0  ;;  %v4964_v18 = vsel %vm8415_vm9, %v4958_v7, 0.0 }
0x237e   : > { %v4972_v21 = vsel %vm8418_vm11, %v4943_v1, 0.0  ;;  %vm8422_vm0 = vcmask 900096   ;;  %vm8426_vm1 = vcmask 1039360  }
0x237f   : > { %v4959_v2 = vld [vmem:[#allocation7 + $0x18] sm:$0xff]  ;;  %6256 = vmatprep.subr.msk.bf16.mxu0 %vm6254_vm10, %v6255_v5  ;;  %vm8423_vm8 = vmmov %vm8422_vm0  ;;  %vm8424_vm10 = vcmask 785408  }
0x2380   : > { %v4965_v39 = vsel %vm6734_vm3, %v4959_v2, 0.0  ;;  %5068 = vrot.lane.b32.xlu0 %v4956_v60, %s8317_s13  ;;  %v6258_v30 = vpack.c.bf16 %v4959_v2, %v4956_v60  ;;  %v4971_v9 = vsel %vm6750_vm15, %v4959_v2, 0.0  ;;  %vm8427_vm9 = vmmov %vm8426_vm1 }
0x2381   : > { %5072 = vrot.lane.b32.xlu1 %v4958_v7, %s8317_s13  ;;  %vm8428_vm2 = vmmov %vm8426_vm1 }
0x2382   : > { %6259 = vmatpush1.bf16.msk.msra.mxu0 %vm6257_vm6, %v6258_v30  ;;  %vm8425_vm6 = vmmov %vm8424_vm10 }
0x2383   : > { %v4961_v22 = vld [vmem:[#allocation7 + $0x28] sm:$0xff]  ;;  %vm8429_vm11 = vmmov %vm8426_vm1 }
0x2384   : > { %5014 = vrot.lane.b32.xlu0 %v4968_v16, %s8288_s27  ;;  %v4973_v8 = vsel %vm8419_vm7, %v4961_v22, 0.0  ;;  %v4967_v10 = vsel %vm8420_vm5, %v4961_v22, 0.0  ;;  %vm8430_vm7 = vcmask 908288  }
0x2385   : > { %5144 = vrot.lane.b32.xlu1 %v4958_v7, %s8413_s1  ;;  %vm8431_vm5 = vmmov %vm8430_vm7 }
0x2388   : > { %5044 = vrot.lane.b32.xlu0 %v4962_v46, %s8316_s21 }
0x2389   : > { %5018 = vrot.lane.b32.xlu1 %v4970_v54, %s8288_s27 }
0x238c   : > { %5092 = vrot.lane.b32.xlu0 %v4968_v16, %s8289_s22 }
0x238d   : > { %5048 = vrot.lane.b32.xlu1 %v4964_v18, %s8316_s21 }
0x2390   : > { %5116 = vrot.lane.b32.xlu0 %v4962_v46, %s8416_s3 }
0x2391   : > { %5096 = vrot.lane.b32.xlu1 %v4970_v54, %s8289_s22 }
0x2394   : > { %4986 = vrot.lane.b32.xlu0 %v4942_v55, %s8314_s2 }
0x2395   : > { %5120 = vrot.lane.b32.xlu1 %v4964_v18, %s8416_s3 }
0x2398   : > { %5070 = vrot.lane.b32.xlu0 %v4942_v55, %s8317_s13 }
0x2399   : > { %4990 = vrot.lane.b32.xlu1 %v4959_v2, %s8314_s2 }
0x239c   : > { %5142 = vrot.lane.b32.xlu0 %v4942_v55, %s8413_s1 }
0x239d   : > { %5074 = vrot.lane.b32.xlu1 %v4959_v2, %s8317_s13 }
0x23a0   : > { %5016 = vrot.lane.b32.xlu0 %v4969_v12, %s8288_s27 }
0x23a1   : > { %4994 = vrot.lane.b32.xlu1 %v4961_v22, %s8314_s2 }
0x23a4   : > { %5046 = vrot.lane.b32.xlu0 %v4963_v41, %s8316_s21 }
0x23a5   : > { %5020 = vrot.lane.b32.xlu1 %v4971_v9, %s8288_s27 }
0x23a8   : > { %5094 = vrot.lane.b32.xlu0 %v4969_v12, %s8289_s22 }
0x23a9   : > { %5050 = vrot.lane.b32.xlu1 %v4965_v39, %s8316_s21 }
0x23ac   : > { %5118 = vrot.lane.b32.xlu0 %v4963_v41, %s8416_s3 }
0x23ad   : > { %5078 = vrot.lane.b32.xlu1 %v4961_v22, %s8317_s13 }
0x23b0   : > { %4992 = vrot.lane.b32.xlu0 %v4943_v1, %s8314_s2 }
0x23b1   : > { %5098 = vrot.lane.b32.xlu1 %v4971_v9, %s8289_s22 }
0x23b4   : > { %5076 = vrot.lane.b32.xlu0 %v4943_v1, %s8317_s13 }
0x23b5   : > { %5122 = vrot.lane.b32.xlu1 %v4965_v39, %s8416_s3 }
0x23b8   : > { %5148 = vrot.lane.b32.xlu0 %v4943_v1, %s8413_s1 }
0x23b9   : > { %5150 = vrot.lane.b32.xlu1 %v4961_v22, %s8413_s1 }
0x23bc   : > { %5022 = vrot.lane.b32.xlu0 %v4972_v21, %s8288_s27 }
0x23bd   : > { %5024 = vrot.lane.b32.xlu1 %v4973_v8, %s8288_s27 }
0x23c0   : > { %5052 = vrot.lane.b32.xlu0 %v4966_v62, %s8316_s21 }
0x23c1   : > { %5054 = vrot.lane.b32.xlu1 %v4967_v10, %s8316_s21 }
0x23c4   : > { %5140 = vrot.lane.b32.xlu0 %v4956_v60, %s8413_s1 }
0x23c5   : > { %5102 = vrot.lane.b32.xlu1 %v4973_v8, %s8289_s22 }
0x23c8   : > { %5100 = vrot.lane.b32.xlu0 %v4972_v21, %s8289_s22 }
0x23c9   : > { %5126 = vrot.lane.b32.xlu1 %v4967_v10, %s8416_s3 }
0x23cc   : > { %5124 = vrot.lane.b32.xlu0 %v4966_v62, %s8416_s3 }
0x23cd   : > { %5146 = vrot.lane.b32.xlu1 %v4959_v2, %s8413_s1 }
0x23d0   : > { %5166 = vrot.lane.b32.xlu0 %v4969_v12, %s8290_s23 }
0x23d1   : > { %5168 = vrot.lane.b32.xlu1 %v4970_v54, %s8290_s23 }
0x23d4   : > { %5172 = vrot.lane.b32.xlu0 %v4972_v21, %s8290_s23 }
0x23d5   : > { %5174 = vrot.lane.b32.xlu1 %v4973_v8, %s8290_s23 }
0x23d8   : > { %5164 = vrot.lane.b32.xlu0 %v4968_v16, %s8290_s23 }
0x23d9   : > { %5170 = vrot.lane.b32.xlu1 %v4971_v9, %s8290_s23 }
0x23ee   : > { %v4985_v56 = vpop.permute.xlu0 %4984 }
0x23ef   : > { %v4989_v20 = vpop.permute.xlu1 %4988 }
0x23f2   : > { %v8057_v11 = vpop.permute.xlu0 %5068 }
0x23f3   : > { %v8059_v47 = vpop.permute.xlu1 %5072 }
0x23f6   : > { %v5015_v31 = vpop.permute.xlu0 %5014 }
0x23f7   : > { %v5145_v32 = vpop.permute.xlu1 %5144 }
0x23fa   : > { %v5045_v33 = vpop.permute.xlu0 %5044 }
0x23fb   : > { %v5019_v4 = vpop.permute.xlu1 %5018 }
0x23fe   : > { %v5093_v34 = vpop.permute.xlu0 %5092 }
0x23ff   : > { %v5049_v43 = vpop.permute.xlu1 %5048 }
0x2402   : > { %v5117_v50 = vpop.permute.xlu0 %5116 }
0x2403   : > { %v5097_v35 = vpop.permute.xlu1 %5096 }
0x2406   : > { %v4987_v17 = vpop.permute.xlu0 %4986 }
0x2407   : > { %v5121_v19 = vpop.permute.xlu1 %5120  ;;  %v4996_v53 = vsel %vm8426_vm1, %v4985_v56, %v4987_v17  ;;  %v4997_v0 = vsel %vm8427_vm9, %v4987_v17, %v4989_v20  ;;  %vm8436_vm1 = vcmask 916480  }
0x2408   : > { %vm8437_vm9 = vmmov %vm8436_vm1 }
0x240a   : > { %v8061_v36 = vpop.permute.xlu0 %5070 }
0x240b   : > { %v4991_v23 = vpop.permute.xlu1 %4990 }
0x240e   : > { %v5143_v27 = vpop.permute.xlu0 %5142 }
0x240f   : > { %v8064_v59 = vsel %vm8421_vm12, %v5143_v27, %v5145_v32  ;;  %v5075_v15 = vpop.permute.xlu1 %5074 }
0x2412   : > { %v5017_v61 = vpop.permute.xlu0 %5016 }
0x2413   : > { %v4995_v38 = vpop.permute.xlu1 %4994 }
0x2416   : > { %v5047_v40 = vpop.permute.xlu0 %5046 }
0x2417   : > { %v5021_v42 = vpop.permute.xlu1 %5020  ;;  %v5057_v56 = vsel %vm8437_vm9, %v5047_v40, %v5049_v43  ;;  %vm8448_vm9 = vcmask 769024  }
0x241a   : > { %v5095_v44 = vpop.permute.xlu0 %5094 }
0x241b   : > { %v8067_v29 = vsel %vm8422_vm0, %v5093_v34, %v5095_v44  ;;  %v8070_v48 = vsel %vm8423_vm8, %v5095_v44, %v5097_v35  ;;  %v5051_v58 = vpop.permute.xlu1 %5050  ;;  %vm8432_vm0 = vcmask 1031168  }
0x241c   : > { %5112 = vst [vmem:[#allocation8 + $0xa0] sm:$0xff] %v8067_v29  ;;  %vm8433_vm8 = vmmov %vm8432_vm0 }
0x241d   : > { %v5027_v18 = vsel %vm8433_vm8, %v5017_v61, %v5019_v4 }
0x241e   : > { %v5119_v26 = vpop.permute.xlu0 %5118 }
0x241f   : > { %v8074_v6 = vsel %vm8424_vm10, %v5117_v50, %v5119_v26  ;;  %v8077_v49 = vsel %vm8425_vm6, %v5119_v26, %v5121_v19  ;;  %v5079_v63 = vpop.permute.xlu1 %5078  ;;  %vm8434_vm10 = vmmov %vm8432_vm0 }
0x2420   : > { %5136 = vst [vmem:[#allocation8 + $0xc0] sm:$0xff] %v8074_v6  ;;  %vm8435_vm6 = vmmov %vm8432_vm0 }
0x2421   : > { %v5026_v22 = vsel %vm8435_vm6, %v5015_v31, %v5017_v61 }
0x2422   : > { %v4993_v3 = vpop.permute.xlu0 %4992 }
0x2423   : > { %v4998_v55 = vsel %vm8428_vm2, %v4991_v23, %v4993_v3  ;;  %v4999_v51 = vsel %vm8429_vm11, %v4993_v3, %v4995_v38  ;;  %v5099_v57 = vpop.permute.xlu1 %5098  ;;  %vm8438_vm2 = vmmov %vm8436_vm1 }
0x2424   : > { %v5227_v60 = vpack.c.bf16 %v4999_v51, %v4997_v0  ;;  %v5226_v1 = vpack.c.bf16 %v4998_v55, %v4996_v53  ;;  %vm8439_vm11 = vmmov %vm8436_vm1 }
0x2425   : > { %v5056_v32 = vsel %vm8439_vm11, %v5045_v33, %v5047_v40 }
0x2426   : > { %v5077_v7 = vpop.permute.xlu0 %5076  ;;  %5254 = vmatprep.subr.bf16.mxu0 %v5227_v60 }
0x2427   : > { %v5082_v41 = vsel %vm8430_vm7, %v5075_v15, %v5077_v7  ;;  %v5083_v62 = vsel %vm8431_vm5, %v5077_v7, %v5079_v63  ;;  %v5123_v2 = vpop.permute.xlu1 %5122  ;;  %5255 = vmatpush1.bf16.msra.mxu0 %v5226_v1  ;;  %vm8440_vm7 = vmmov %vm8431_vm5  ;;  %v5675_v7 = vcombine.low %v8046_v28, %v8046_v28 }
0x2428   : > { %5090 = vst [vmem:[#allocation8 + $0x90] sm:$0xff] %v5082_v41  ;;  %v5081_v4 = vsel %vm8440_vm7, %v8061_v36, %v8059_v47  ;;  %vm8441_vm5 = vmmov %vm8421_vm12 }
0x2429   : > { %v5233_v19 = vpack.c.bf16 %v5083_v62, %v5081_v4 }
0x242a   : > { %v5149_v39 = vpop.permute.xlu0 %5148 }
0x242b   : > { %v5151_v46 = vpop.permute.xlu1 %5150 }
0x242c   : > { %v5155_v5 = vsel %vm8421_vm12, %v5149_v39, %v5151_v46  ;;  %vm8442_vm12 = vmmov %vm8440_vm7 }
0x242d   : > { %v5080_v43 = vsel %vm8442_vm12, %v8057_v11, %v8061_v36  ;;  %v5239_v3 = vpack.c.bf16 %v5155_v5, %v8064_v59  ;;  %vm8453_vm12 = vcmp.lt.s32.totalorder %v6770_v45, 15 }
0x242e   : > { %v5023_v16 = vpop.permute.xlu0 %5022  ;;  %v5232_v23 = vpack.c.bf16 %v5082_v41, %v5080_v43 }
0x242f   : > { %v5028_v30 = vsel %vm8432_vm0, %v5021_v42, %v5023_v16  ;;  %v5025_v54 = vpop.permute.xlu1 %5024  ;;  %vm8443_vm0 = vcmask 900096  }
0x2430   : > { %v5029_v12 = vsel %vm8434_vm10, %v5023_v16, %v5025_v54  ;;  %v5228_v8 = vpack.c.bf16 %v5028_v30, %v5026_v22  ;;  %vm8444_vm8 = vmmov %vm8443_vm0  ;;  %vm8445_vm10 = vcmask 785408  }
0x2431   : > { %v5229_v9 = vpack.c.bf16 %v5029_v12, %v5027_v18  ;;  %vm8446_vm6 = vmmov %vm8445_vm10 }
0x2432   : > { %v5053_v21 = vpop.permute.xlu0 %5052 }
0x2433   : > { %v5058_v10 = vsel %vm8436_vm1, %v5051_v58, %v5053_v21  ;;  %v5055_v24 = vpop.permute.xlu1 %5054  ;;  %5256 = vmatprep.subr.bf16.mxu0 %v5229_v9  ;;  %vm8447_vm1 = vmmov %vm8441_vm5 }
0x2434   : > { %v5059_v20 = vsel %vm8438_vm2, %v5053_v21, %v5055_v24  ;;  %5257 = vmatpush1.bf16.msra.mxu0 %v5228_v8  ;;  %v5230_v50 = vpack.c.bf16 %v5058_v10, %v5056_v32  ;;  %vm8449_vm2 = vmmov %vm8448_vm9 }
0x2435   : > { %v5231_v34 = vpack.c.bf16 %v5059_v20, %v5057_v56  ;;  %vm8450_vm11 = vmmov %vm8449_vm2 }
0x2436   : > { %v5141_v31 = vpop.permute.xlu0 %5140  ;;  %vm8451_vm7 = vmmov %vm8449_vm2 }
0x2437   : > { %v5152_v35 = vsel %vm8441_vm5, %v5141_v31, %v5143_v27  ;;  %v5103_v17 = vpop.permute.xlu1 %5102  ;;  %5258 = vmatprep.subr.bf16.mxu0 %v5231_v34  ;;  %vm8452_vm5 = vcmask 1047688  }
0x2438   : > { %5160 = vst [vmem:[#allocation8 + $0xe0] sm:$0xff] %v5152_v35  ;;  %5259 = vmatpush1.bf16.msra.mxu0 %v5230_v50 }
0x2439   : > { %5260 = vmatprep.subr.bf16.mxu0 %v5233_v19 }
0x243a   : > { %v5101_v33 = vpop.permute.xlu0 %5100 }
0x243b   : > { %v5106_v15 = vsel %vm8443_vm0, %v5099_v57, %v5101_v33  ;;  %v5107_v47 = vsel %vm8444_vm8, %v5101_v33, %v5103_v17  ;;  %v5127_v61 = vpop.permute.xlu1 %5126  ;;  %vm8457_vm0 = vcmask 908288  }
0x243c   : > { %5114 = vst [vmem:[#allocation8 + $0xb0] sm:$0xff] %v5106_v15  ;;  %5261 = vmatpush1.bf16.msra.mxu0 %v5232_v23  ;;  %v5235_v27 = vpack.c.bf16 %v5107_v47, %v8070_v48  ;;  %v5234_v40 = vpack.c.bf16 %v5106_v15, %v8067_v29  ;;  %vm8458_vm8 = vmmov %vm8457_vm0 }
0x243e   : > { %v5125_v38 = vpop.permute.xlu0 %5124  ;;  %5262 = vmatprep.subr.bf16.mxu0 %v5235_v27 }
0x243f   : > { %v5130_v42 = vsel %vm8445_vm10, %v5123_v2, %v5125_v38  ;;  %v5131_v11 = vsel %vm8446_vm6, %v5125_v38, %v5127_v61  ;;  %v5147_v36 = vpop.permute.xlu1 %5146  ;;  %vm8459_vm10 = vmmov %vm8447_vm1 }
0x2440   : > { %5138 = vst [vmem:[#allocation8 + $0xd0] sm:$0xff] %v5130_v42  ;;  %v5154_v44 = vsel %vm8447_vm1, %v5147_v36, %v5149_v39  ;;  %5263 = vmatpush1.bf16.msra.mxu0 %v5234_v40  ;;  %v5237_v58 = vpack.c.bf16 %v5131_v11, %v8077_v49  ;;  %v5236_v48 = vpack.c.bf16 %v5130_v42, %v8074_v6  ;;  %vm8460_vm6 = vmmov %vm8447_vm1  ;;  %vm8461_vm1 = vcmask 1039360  }
0x2441   : > { %5162 = vst [vmem:[#allocation8 + $0xf0] sm:$0xff] %v5154_v44  ;;  %v5238_v0 = vpack.c.bf16 %v5154_v44, %v5152_v35 }
0x2442   : > { %v5167_v26 = vpop.permute.xlu0 %5166  ;;  %5264 = vmatprep.subr.bf16.mxu0 %v5237_v58 }
0x2443   : > { %v5169_v63 = vpop.permute.xlu1 %5168 }
0x2444   : > { %v5177_v29 = vsel %vm8448_vm9, %v5167_v26, %v5169_v63  ;;  %5265 = vmatpush1.bf16.msra.mxu0 %v5236_v48  ;;  %vm8462_vm9 = vmmov %vm8461_vm1 }
0x2445   : > { %5266 = vmatprep.subr.bf16.mxu0 %v5239_v3 }
0x2446   : > { %v5173_v53 = vpop.permute.xlu0 %5172 }
0x2447   : > { %v5175_v55 = vpop.permute.xlu1 %5174 }
0x2448   : > { %v5179_v51 = vsel %vm8449_vm2, %v5173_v53, %v5175_v55  ;;  %5267 = vmatpush1.bf16.msra.mxu0 %v5238_v0  ;;  %vm8463_vm2 = vcmask 1031168  }
0x2449   : > { %v5241_v57 = vpack.c.bf16 %v5179_v51, %v5177_v29 }
0x244a   : > { %v5165_v49 = vpop.permute.xlu0 %5164 }
0x244b   : > { %v5176_v60 = vsel %vm8450_vm11, %v5165_v49, %v5167_v26  ;;  %v5171_v1 = vpop.permute.xlu1 %5170  ;;  %5268 = vmatprep.subr.bf16.mxu0 %v5241_v57  ;;  %vm8464_vm11 = vmmov %vm8463_vm2 }
0x244c   : > { %5184 = vst [vmem:[#allocation8 + $0x100] sm:$0xff] %v5176_v60  ;;  %v5178_v6 = vsel %vm8451_vm7, %v5171_v1, %v5173_v53  ;;  %vm8465_vm7 = vcmask 916480  }
0x244d   : > { %5186 = vst [vmem:[#allocation8 + $0x110] sm:$0xff] %v5178_v6  ;;  %v5240_v59 = vpack.c.bf16 %v5178_v6, %v5176_v60 }
0x244f   : > { %5269 = vmatpush1.bf16.msra.mxu0 %v5240_v59 }
0x2452   : > { %5285 = vmatmul.mubr.bf16.vlgmr.msra.gmra.mrb[44].mxu0 %v5675_v7 }
0x2525   : > { %v5286_v41 = vpop.f32.mrb[44].mxu0 }
0x2526   : > { %v5288_v62 = vpop.f32.mrb[45].mxu0 }
0x2527   : > { %v5293_v2 = vadd.f32 %v5288_v62, %v5286_v41  ;;  %v5290_v39 = vpop.f32.mrb[46].mxu0 }
0x2528   : > { %v5291_v46 = vpop.f32.mrb[47].mxu0 }
0x2529   : > { %5294 = vadd.xlane.f32.xlu0 %v5293_v2 }
0x25b6   : > { %v5295_v5 = vpop.xlane.xlu0 %5294 }
0x25b7   : > { %v5297_v16 = vmul.f32 0.00390625, %v5295_v5 }
0x25b9   : > { %v5298_v30 = vsub.f32 %v5286_v41, %v5297_v16  ;;  %v5299_v54 = vsub.f32 %v5288_v62, %v5297_v16 }
0x25bb   : > { %v5300_v18 = vmul.f32 %v5298_v30, %v5298_v30  ;;  %v5301_v12 = vmul.f32 %v5299_v54, %v5299_v54 }
0x25bd   : > { %v5302_v22 = vadd.f32 %v5301_v12, %v5300_v18 }
0x25bf   : > { %5303 = vadd.xlane.f32.xlu1 %v5302_v22 }
0x264c   : > { %v5304_v9 = vpop.xlane.xlu1 %5303 }
0x264d   : > { %v5305_v21 = vmul.f32 0.00390625, %v5304_v9 }
0x264f   : > { %v5306_v8 = vadd.f32 1e-05, %v5305_v21 }
0x2651   : > { %6236 = vrsqrt.f32 %v5306_v8 }
0x265b   : > { %v6237_v28 = vpop.eup %6236 }
0x265c   : > { %v5309_v10 = vmul.f32 %v6237_v28, %v5299_v54  ;;  %v5308_v24 = vmul.f32 %v6237_v28, %v5298_v30 }
0x265e   : > { %v5311_v56 = vmax.f32 %v5309_v10, 0.0  ;;  %v5310_v20 = vmax.f32 %v5308_v24, 0.0 }
0x2660   : > { %5317 = vrot.lane.b32.xlu1 %v5311_v56, %s8407_s28  ;;  %5315 = vrot.lane.b32.xlu0 %v5310_v20, %s8407_s28  ;;  %v5470_v20 = vld [vmem:[%s8207_s12] sm:$0x3] }
0x26d2   : > { %v5318_v32 = vpop.permute.xlu1 %5317  ;;  %v5316_v34 = vpop.permute.xlu0 %5315 }
0x26d3   : > { %5325 = vst.msk [vmem:[#allocation3 + $0x10] sm:$0xff] %vm608_vm14, %v5318_v32  ;;  %v5319_v4 = vsel %vm608_vm14, %v5316_v34, %v5318_v32  ;;  %vm8454_vm14 = vcmp.ge.s32.totalorder %v6768_v52, 1 }
0x26d4   : > { %5323 = vst.msk [vmem:[#allocation3] sm:$0xff] %vm8452_vm5, %v5316_v34  ;;  %v5330_v31 = vsel %vm8453_vm12, %v5319_v4, 0.0  ;;  %vm8466_vm5 = vmmov %vm8465_vm7  ;;  %vm8469_vm12 = vcmask 785408  }
0x26da   : > { %v5328_v50 = vld [vmem:[#allocation3 + $0x10] sm:$0xff] }
0x26db   : > { %v5326_v35 = vld [vmem:[#allocation3] sm:$0xff]  ;;  %5344 = vrot.lane.b32.xlu1 %v5328_v50, %s8314_s2  ;;  %v5334_v13 = vsel %vm8454_vm14, %v5328_v50, 0.0  ;;  %vm8470_vm14 = vmmov %vm8469_vm12 }
0x26dc   : > { %5340 = vrot.lane.b32.xlu0 %v5326_v35, %s8314_s2  ;;  %v5329_v17 = vsel %vm6734_vm3, %v5326_v35, 0.0  ;;  %v5332_v19 = vsel %vm6750_vm15, %v5326_v35, 0.0  ;;  %vm8455_vm3 = vcmp.lt.s32.totalorder %v6768_v52, 15  ;;  %vm8456_vm15 = vcmp.ge.s32.totalorder %v6770_v45, 1  ;;  %v5312_v52 = vld [vmem:[%s8209_s14] sm:$0x7] }
0x26dd   : > { %5335 = vst [vmem:[#allocation8] sm:$0xff] %v5329_v17  ;;  %v5331_v37 = vsel %vm8455_vm3, %v5328_v50, 0.0  ;;  %v5333_v43 = vsel %vm8456_vm15, %v5319_v4, 0.0  ;;  %vm8471_vm3 = vcmask 769024  }
0x26de   : > { %vm8472_vm15 = vmmov %vm8471_vm3 }
0x26df   : > { %5382 = vrot.lane.b32.xlu1 %v5326_v35, %s8317_s13 }
0x26e0   : > { %5386 = vrot.lane.b32.xlu0 %v5328_v50, %s8317_s13 }
0x26e3   : > { %5355 = vrot.lane.b32.xlu1 %v5332_v19, %s8288_s27 }
0x26e4   : > { %5422 = vrot.lane.b32.xlu0 %v5328_v50, %s8413_s1 }
0x26e7   : > { %5384 = vrot.lane.b32.xlu1 %v5319_v4, %s8317_s13 }
0x26e8   : > { %5418 = vrot.lane.b32.xlu0 %v5326_v35, %s8413_s1 }
0x26eb   : > { %5420 = vrot.lane.b32.xlu1 %v5319_v4, %s8413_s1 }
0x26ec   : > { %5342 = vrot.lane.b32.xlu0 %v5319_v4, %s8314_s2 }
0x26ef   : > { %5406 = vrot.lane.b32.xlu1 %v5329_v17, %s8416_s3 }
0x26f0   : > { %5359 = vrot.lane.b32.xlu0 %v5334_v13, %s8288_s27 }
0x26f3   : > { %5430 = vrot.lane.b32.xlu1 %v5332_v19, %s8290_s23 }
0x26f4   : > { %5374 = vrot.lane.b32.xlu0 %v5331_v37, %s8316_s21 }
0x26f7   : > { %5357 = vrot.lane.b32.xlu1 %v5333_v43, %s8288_s27 }
0x26f8   : > { %5370 = vrot.lane.b32.xlu0 %v5329_v17, %s8316_s21 }
0x26fb   : > { %5372 = vrot.lane.b32.xlu1 %v5330_v31, %s8316_s21 }
0x26fc   : > { %5398 = vrot.lane.b32.xlu0 %v5334_v13, %s8289_s22 }
0x26ff   : > { %5396 = vrot.lane.b32.xlu1 %v5333_v43, %s8289_s22 }
0x2700   : > { %5394 = vrot.lane.b32.xlu0 %v5332_v19, %s8289_s22 }
0x2703   : > { %5408 = vrot.lane.b32.xlu1 %v5330_v31, %s8416_s3 }
0x2704   : > { %5410 = vrot.lane.b32.xlu0 %v5331_v37, %s8416_s3 }
0x2707   : > { %5434 = vrot.lane.b32.xlu1 %v5334_v13, %s8290_s23 }
0x2708   : > { %5432 = vrot.lane.b32.xlu0 %v5333_v43, %s8290_s23  ;;  %s5683_s23 = sshll.u32 %s8478_s30, 3 }
0x2709   : > { %s602_s29 = scalar_lea.vmem %s8214_s19, %s5683_s23 }
0x270c   : > { %5473 = vperm.xlu0 %6117, %v5312_v52  }
0x274d   : > { %v5345_v45 = vpop.permute.xlu1 %5344 }
0x274e   : > { %v5341_v33 = vpop.permute.xlu0 %5340 }
0x2751   : > { %v5383_v23 = vpop.permute.xlu1 %5382 }
0x2752   : > { %v5387_v15 = vpop.permute.xlu0 %5386 }
0x2755   : > { %v5356_v61 = vpop.permute.xlu1 %5355 }
0x2756   : > { %v5423_v47 = vpop.permute.xlu0 %5422 }
0x2759   : > { %v5385_v38 = vpop.permute.xlu1 %5384 }
0x275a   : > { %v5419_v27 = vpop.permute.xlu0 %5418  ;;  %v5388_v40 = vsel %vm8457_vm0, %v5383_v23, %v5385_v38  ;;  %v5389_v42 = vsel %vm8458_vm8, %v5385_v38, %v5387_v15  ;;  %vm8473_vm0 = vcmask 1043456  }
0x275b   : > { %5392 = vst [vmem:[#allocation8 + $0x40] sm:$0xff] %v5388_v40  ;;  %vm8474_vm8 = vmmov %vm8473_vm0 }
0x275d   : > { %v5421_v11 = vpop.permute.xlu1 %5420 }
0x275e   : > { %v5343_v36 = vpop.permute.xlu0 %5342  ;;  %v5424_v44 = vsel %vm8459_vm10, %v5419_v27, %v5421_v11  ;;  %v5425_v58 = vsel %vm8460_vm6, %v5421_v11, %v5423_v47  ;;  %vm8475_vm10 = vcmask 588800  }
0x275f   : > { %v5346_v26 = vsel %vm8461_vm1, %v5341_v33, %v5343_v36  ;;  %v5347_v48 = vsel %vm8462_vm9, %v5343_v36, %v5345_v45  ;;  %5428 = vst [vmem:[#allocation8 + $0x70] sm:$0xff] %v5424_v44 }
0x2760   : > { %5350 = vst [vmem:[#allocation8 + $0x10] sm:$0xff] %v5346_v26  ;;  %v6261_v29 = vpack.c.bf16 %v5347_v48, %v5319_v4  ;;  %v6264_v53 = vpack.c.bf16 %v5346_v26, %v5326_v35 }
0x2761   : > { %v5407_v63 = vpop.permute.xlu1 %5406 }
0x2762   : > { %v5360_v3 = vpop.permute.xlu0 %5359  ;;  %6262 = vmatprep.subr.msk.bf16.mxu1 %vm6803_vm4, %v6261_v29  ;;  %vm8467_vm4 = vcmask 900096  }
0x2763   : > { %6265 = vmatpush1.bf16.msk.msra.mxu1 %vm6813_vm13, %v6264_v53  ;;  %vm8468_vm13 = vmmov %vm8467_vm4 }
0x2765   : > { %v5431_v0 = vpop.permute.xlu1 %5430 }
0x2766   : > { %v5375_v55 = vpop.permute.xlu0 %5374 }
0x2769   : > { %v5358_v57 = vpop.permute.xlu1 %5357 }
0x276a   : > { %v5371_v51 = vpop.permute.xlu0 %5370  ;;  %v5361_v49 = vsel %vm8463_vm2, %v5356_v61, %v5358_v57  ;;  %v5362_v60 = vsel %vm8464_vm11, %v5358_v57, %v5360_v3 }
0x276b   : > { %5365 = vst [vmem:[#allocation8 + $0x20] sm:$0xff] %v5361_v49 }
0x276d   : > { %v5373_v6 = vpop.permute.xlu1 %5372 }
0x276e   : > { %v5399_v1 = vpop.permute.xlu0 %5398  ;;  %v5376_v59 = vsel %vm8465_vm7, %v5371_v51, %v5373_v6  ;;  %v5377_v14 = vsel %vm8466_vm5, %v5373_v6, %v5375_v55 }
0x276f   : > { %5380 = vst [vmem:[#allocation8 + $0x30] sm:$0xff] %v5376_v59  ;;  %v5463_v7 = vpack.c.bf16 %v5377_v14, %v5362_v60  ;;  %v5462_v41 = vpack.c.bf16 %v5376_v59, %v5361_v49 }
0x2771   : > { %v5397_v62 = vpop.permute.xlu1 %5396  ;;  %5487 = vmatprep.subr.bf16.mxu1 %v5463_v7 }
0x2772   : > { %v5395_v25 = vpop.permute.xlu0 %5394  ;;  %v5401_v39 = vsel %vm8468_vm13, %v5397_v62, %v5399_v1  ;;  %5488 = vmatpush1.bf16.msra.mxu1 %v5462_v41 }
0x2773   : > { %v5400_v2 = vsel %vm8467_vm4, %v5395_v25, %v5397_v62  ;;  %v5465_v46 = vpack.c.bf16 %v5401_v39, %v5389_v42 }
0x2774   : > { %5404 = vst [vmem:[#allocation8 + $0x50] sm:$0xff] %v5400_v2  ;;  %v5464_v5 = vpack.c.bf16 %v5400_v2, %v5388_v40 }
0x2775   : > { %v5409_v30 = vpop.permute.xlu1 %5408  ;;  %5489 = vmatprep.subr.bf16.mxu1 %v5465_v46 }
0x2776   : > { %v5411_v16 = vpop.permute.xlu0 %5410  ;;  %v5412_v54 = vsel %vm8469_vm12, %v5407_v63, %v5409_v30  ;;  %5490 = vmatpush1.bf16.msra.mxu1 %v5464_v5 }
0x2777   : > { %v5413_v18 = vsel %vm8470_vm14, %v5409_v30, %v5411_v16  ;;  %5416 = vst [vmem:[#allocation8 + $0x60] sm:$0xff] %v5412_v54  ;;  %v5466_v22 = vpack.c.bf16 %v5424_v44, %v5412_v54 }
0x2778   : > { %v5467_v12 = vpack.c.bf16 %v5425_v58, %v5413_v18 }
0x2779   : > { %v5435_v21 = vpop.permute.xlu1 %5434 }
0x277a   : > { %v5433_v9 = vpop.permute.xlu0 %5432  ;;  %5491 = vmatprep.subr.bf16.mxu1 %v5467_v12 }
0x277b   : > { %v5436_v8 = vsel %vm8471_vm3, %v5431_v0, %v5433_v9  ;;  %v5437_v28 = vsel %vm8472_vm15, %v5433_v9, %v5435_v21  ;;  %5492 = vmatpush1.bf16.msra.mxu1 %v5466_v22 }
0x277c   : > { %5440 = vst [vmem:[#allocation8 + $0x80] sm:$0xff] %v5436_v8  ;;  %v5469_v10 = vpack.c.bf16 %v5437_v28, %v5437_v28  ;;  %v5468_v24 = vpack.c.bf16 %v5436_v8, %v5436_v8 }
0x277e   : > { %5678 = vmatprep.subr.msk.bf16.mxu1 %vm8473_vm0, %v5469_v10  ;;  %v5480_v56 = vsel %vm8474_vm8, %v5468_v24, 0 }
0x277f   : > { %5494 = vmatpush1.bf16.msra.mxu1 %v5480_v56 }
0x2782   : > { %5679 = vmatmul.mubr.msk.bf16.vlgmr.msra.gmra.mrb[60].mxu1 %vm8475_vm10, %v5470_v20 }
0x278b   : > { %v5474_v32 = vpop.permute.xlu0 %5473 }
0x2855   : > { %v5519_v34 = vpop.f32.mrb[60].mxu1 }
0x2856   : > { %v5520_v4 = vadd.f32 %v5519_v34, %v5474_v32  ;;  %v5521_v31 = vpop.f32.mrb[61].mxu1 }
0x2857   : > { %v5522_v50 = vadd.f32 %v5521_v31, %v5474_v32  ;;  %v5523_v35 = vpop.f32.mrb[62].mxu1 }
0x2858   : > { %6238 = vtanh.f32 %v5520_v4  ;;  %v5524_v17 = vpop.f32.mrb[63].mxu1 }
0x2859   : > { %6240 = vtanh.f32 %v5522_v50 }
0x2862   : > { %v6239_v19 = vpop.eup %6238 }
0x2863   : > { %v6241_v13 = vpop.eup %6240 }
0x2864   : > { %v5530_v37 = vcombine.low %v6239_v19, %v6241_v13 }
0x2866   : > { %5532 = vst [vmem:[%s602_s29] sm:$0x77] %v5530_v37 }
0x2867 PF: > { %s8476_s15 = sld [smem:[#allocation9_spill]] }
0x286d   : > { %s29_s0 = sadd.s32 1, %s8476_s15  }
0x286e   : > { %p26_p4 = scmp.ge.s32.totalorder %s29_s0, 4  }
0x2870   :  { %28 = sbr.rel (!%p26_p4) target bundleno = 10 (0xa), region = 126 }

</bundles_post_ra>
